<compile_context>
chip_gen: v6e
topology: v6e:2x2x1
jax: 0.10.0
libtpu: 0.0.40
codegen_flags: <defaults>
</compile_context>

<pallas_src>
import functools

import jax
import jax.numpy as jnp
from jax import lax
from jax.experimental import pallas as pl
from jax.experimental.pallas import tpu as pltpu

CONV_OUT = 128   # Conv1d output channels / LSTM input width (module: nn.Conv1d(input_size, 128, 5))
KERNEL = 5       # Conv1d kernel size
OUT_PAD = 128    # fc2 output lane-padded width (real output_size sliced in wrapper)
BP = 8           # batch padded to one full sublane tile


def _sigmoid(x):
    # One EUP pass (tanh) + two cheap VPU ops, instead of exp + reciprocal (two EUP passes).
    return 0.5 * jnp.tanh(0.5 * x) + 0.5


# ----------------------------------------------------------------------------
# Fused kernel: (conv∘wih0) projection -> LSTM stack -> fc1/fc2 heads
# ----------------------------------------------------------------------------
def make_fused_kernel(T, Bp, H, num_layers):
    L1 = num_layers - 1
    n_seq = min(L1, 2)

    def kernel(*refs):
        it = iter(refs)
        xwin_ref = next(it)                         # (T*Bp, K*Cin) f32
        stat_ref = next(it)                         # (Bp, 4) f32
        w0_ref = next(it)                           # (K*Cin, 4H) bf16 (conv fused into wih0)
        b0_ref = next(it)                           # (1, 4H) f32
        whh0_ref = next(it)                         # (H, 4H) bf16
        rest = [next(it) for _ in range(3 * L1)]    # per layer>=1: wih(ANY), whh(ANY), b(VMEM)
        fc1w_ref = next(it)                         # (4, 128) bf16
        fc1b_ref = next(it)                         # (1, 128) f32
        fc2w_ref = next(it)                         # (H+128, OUT_PAD) bf16
        fc2b_ref = next(it)                         # (1, OUT_PAD) f32
        o_ref = next(it)                            # (Bp, OUT_PAD) f32
        gx_ref = next(it)                           # (T*Bp, 4H) f32 scratch
        seq_refs = [next(it) for _ in range(n_seq)]  # (T*Bp, H) f32 scratches
        if L1 > 0:
            wih_s = next(it)                        # (L1, H, 4H) bf16 scratch (DMA landing)
            whh_s = next(it)                        # (L1, H, 4H) bf16 scratch (DMA landing)
            sem = next(it)                          # DMA semaphores (L1, 2)

        # ---- Prologue: kick off HBM->VMEM DMAs for layer>=1 weights; they complete
        #      under layer-0 compute (fused conv/gx matmul + 6-step recurrence). ----
        for li in range(L1):
            pltpu.make_async_copy(rest[3 * li], wih_s.at[li], sem.at[li, 0]).start()
            pltpu.make_async_copy(rest[3 * li + 1], whh_s.at[li], sem.at[li, 1]).start()

        def store_gates_x(x_bf, wih_col, b_ref):
            # Hoisted input projection for all timesteps, written in 4 per-gate column
            # chunks so at most ~12 result vregs are live at once.
            for g in range(4):
                gx_ref[:, g * H:(g + 1) * H] = (
                    jnp.dot(x_bf, wih_col(g), preferred_element_type=jnp.float32)
                    + b_ref[:, g * H:(g + 1) * H])

        x_bf = xwin_ref[...].astype(jnp.bfloat16)   # (T*Bp, K*Cin)
        h_last = None
        for layer in range(num_layers):
            is_last = layer == num_layers - 1
            if layer == 0:
                wih_col = lambda g: w0_ref[:, g * H:(g + 1) * H]
                b_ref = b0_ref
                whh_view = whh0_ref
            else:
                li = layer - 1
                # Wait for this layer's weights (DMAs issued at kernel entry).
                pltpu.make_async_copy(rest[3 * li], wih_s.at[li], sem.at[li, 0]).wait()
                pltpu.make_async_copy(rest[3 * li + 1], whh_s.at[li], sem.at[li, 1]).wait()
                wih_col = lambda g, li=li: wih_s[li, :, g * H:(g + 1) * H]
                b_ref = rest[3 * li + 2]
                whh_view = whh_s.at[li]

            store_gates_x(x_bf, wih_col, b_ref)

            out_seq = None if is_last else seq_refs[layer % n_seq]

            def step(t, carry, whh_view=whh_view, out_seq=out_seq):
                h, c = carry
                row = pl.ds(pl.multiple_of(t * Bp, Bp), Bp)
                # TODO(synk): hold W_hh in MXU staging regs across the T steps
                # (pltpu.matmul_push_rhs / matmul_acc_lhs / matmul_pop) instead of
                # re-pushing the (H, 4H) RHS every step (M=Bp=8 => push-dominated);
                # needs a staging-capacity check for the 4H-wide RHS first.
                gates = gx_ref[row, :] + jnp.dot(
                    h.astype(jnp.bfloat16), whh_view[...],
                    preferred_element_type=jnp.float32)
                i = _sigmoid(gates[:, 0:H])
                f = _sigmoid(gates[:, H:2 * H])
                g = jnp.tanh(gates[:, 2 * H:3 * H])
                o = _sigmoid(gates[:, 3 * H:4 * H])
                c_new = f * c + i * g
                h_new = o * jnp.tanh(c_new)
                if out_seq is not None:             # intermediate layers need the full seq
                    out_seq[row, :] = h_new
                return h_new, c_new

            h0 = jnp.zeros((Bp, H), jnp.float32)
            c0 = jnp.zeros((Bp, H), jnp.float32)
            h_last, _ = lax.fori_loop(0, T, step, (h0, c0), unroll=True)

            if not is_last:
                x_bf = seq_refs[layer % n_seq][...].astype(jnp.bfloat16)

        # ---- Heads: fc1(static) and fc2 split over [h_last | static_out] ----
        static_out = (jnp.dot(stat_ref[...].astype(jnp.bfloat16), fc1w_ref[...],
                              preferred_element_type=jnp.float32) + fc1b_ref[...])
        out = (jnp.dot(h_last.astype(jnp.bfloat16), fc2w_ref[0:H, :],
                       preferred_element_type=jnp.float32)
               + jnp.dot(static_out.astype(jnp.bfloat16), fc2w_ref[H:, :],
                         preferred_element_type=jnp.float32)
               + fc2b_ref[...])
        o_ref[...] = out                            # (Bp, 128) lane-dense store

    return kernel


# ----------------------------------------------------------------------------
# Forward wrapper (pad batch, build time-major im2col windows, call the kernel)
# ----------------------------------------------------------------------------
@functools.partial(jax.jit, static_argnames=("output_size",))
def lstm_model_forward(dynamic_x, static_x, params, *, output_size=12):
    B, T_in, Cin = dynamic_x.shape
    Tout = T_in + 2 - KERNEL + 1                    # left-pad 2, valid conv -> T - 2
    H = params["whh0"].shape[0]
    num_layers = 1 + len(params["lstm_rest"])
    Bp = BP
    # TODO(synk): for B > 8 add a leading batch grid axis with
    # dimension_semantics=("parallel",) so both v7x TensorCores run batch tiles.
    assert B <= Bp, "this fused kernel handles a single 8-row batch tile"

    # Causal left-pad + im2col windows, time-major, flattened to (Tout*Bp, K*Cin)
    # so the kernel never needs a reshape/relayout.
    x_pad = jnp.pad(dynamic_x, ((0, 0), (2, 0), (0, 0)))
    wins = jnp.stack([x_pad[:, k:k + Tout, :] for k in range(KERNEL)], axis=2)  # (B,Tout,K,Cin)
    x_win = jnp.transpose(wins.reshape(B, Tout, KERNEL * Cin), (1, 0, 2))       # (Tout,B,K*Cin)
    x_win = jnp.pad(x_win, ((0, 0), (0, Bp - B), (0, 0))).reshape(Tout * Bp, KERNEL * Cin)
    stat_p = jnp.pad(static_x, ((0, Bp - B), (0, 0)))

    vmem = pl.BlockSpec(memory_space=pltpu.MemorySpace.VMEM)
    hbm = pl.BlockSpec(memory_space=pl.ANY)

    inputs = [x_win, stat_p, params["w0"], params["b0"], params["whh0"]]
    in_specs = [vmem] * 5
    for (wih, whh, b) in params["lstm_rest"]:
        inputs += [wih, whh, b]
        in_specs += [hbm, hbm, vmem]                # big layer>=1 weights: manual overlapped DMA
    inputs += [params["fc1_w"], params["fc1_b"], params["fc2_w"], params["fc2_b"]]
    in_specs += [vmem] * 4

    L1 = num_layers - 1
    n_seq = min(L1, 2)
    scratch = [pltpu.VMEM((Tout * Bp, 4 * H), jnp.float32)]            # hoisted gates_x
    scratch += [pltpu.VMEM((Tout * Bp, H), jnp.float32)] * n_seq       # inter-layer h seq
    if L1 > 0:
        scratch += [pltpu.VMEM((L1, H, 4 * H), jnp.bfloat16),          # wih_l landing buffer
                    pltpu.VMEM((L1, H, 4 * H), jnp.bfloat16),          # whh_l landing buffer
                    pltpu.SemaphoreType.DMA((L1, 2))]

    out_pad = pl.pallas_call(
        make_fused_kernel(Tout, Bp, H, num_layers),
        out_shape=jax.ShapeDtypeStruct((Bp, OUT_PAD), jnp.float32),
        in_specs=in_specs,
        out_specs=vmem,
        scratch_shapes=scratch,
        compiler_params=pltpu.CompilerParams(vmem_limit_bytes=16 * 1024 * 1024),
    )(*inputs)

    return out_pad[:B, :output_size]


# ----------------------------------------------------------------------------
# Pure-JAX reference (mirrors the packed weights / bf16-at-dot-inputs math)
# ----------------------------------------------------------------------------
def reference_forward(dynamic_x, static_x, params, *, output_size=12):
    B, T_in, Cin = dynamic_x.shape
    Tout = T_in + 2 - KERNEL + 1
    H = params["whh0"].shape[0]

    x_pad = jnp.pad(dynamic_x, ((0, 0), (2, 0), (0, 0)))
    wins = jnp.stack([x_pad[:, k:k + Tout, :] for k in range(KERNEL)], axis=2)
    x_win = jnp.transpose(wins.reshape(B, Tout, KERNEL * Cin), (1, 0, 2))       # (Tout,B,KC)

    layers = [(params["w0"], params["whh0"], params["b0"])] + list(params["lstm_rest"])
    x_flat = x_win.reshape(Tout * B, KERNEL * Cin)
    h = None
    for (wih, whh, b) in layers:
        gx = (jnp.dot(x_flat.astype(jnp.bfloat16), wih,
                      preferred_element_type=jnp.float32) + b).reshape(Tout, B, 4 * H)
        h = jnp.zeros((B, H), jnp.float32)
        c = jnp.zeros((B, H), jnp.float32)
        outs = []
        for t in range(Tout):
            gates = gx[t] + jnp.dot(h.astype(jnp.bfloat16), whh,
                                    preferred_element_type=jnp.float32)
            i = _sigmoid(gates[:, 0:H])
            f = _sigmoid(gates[:, H:2 * H])
            g = jnp.tanh(gates[:, 2 * H:3 * H])
            o = _sigmoid(gates[:, 3 * H:4 * H])
            c = f * c + i * g
            h = o * jnp.tanh(c)
            outs.append(h)
        x_flat = jnp.stack(outs, axis=0).reshape(Tout * B, H)

    static_out = (jnp.dot(static_x.astype(jnp.bfloat16), params["fc1_w"],
                          preferred_element_type=jnp.float32) + params["fc1_b"])
    out = (jnp.dot(h.astype(jnp.bfloat16), params["fc2_w"][:H],
                   preferred_element_type=jnp.float32)
           + jnp.dot(static_out.astype(jnp.bfloat16), params["fc2_w"][H:],
                     preferred_element_type=jnp.float32)
           + params["fc2_b"])
    return out[:, :output_size]


# ----------------------------------------------------------------------------
# Deterministic parameter init (PyTorch-equivalent shapes, packed for the kernel:
# conv folded into layer-0 projection, weights bf16, biases f32, fc2 lane-padded).
# NOTE: bf16 weights vs PyTorch f32 is an intentional fidelity tradeoff; LSTM bias
# is the fused b_ih + b_hh (pack real checkpoints accordingly).
# ----------------------------------------------------------------------------
def init_params(key, input_size, hidden_size, num_layers, output_size=12):
    def u(k, shape, fan):
        s = 1.0 / jnp.sqrt(jnp.float32(fan))
        return jax.random.uniform(k, shape, jnp.float32, -s, s)

    keys = jax.random.split(key, 6 + 3 * num_layers)
    conv_w = u(keys[0], (KERNEL * input_size, CONV_OUT), input_size * KERNEL)   # (K*Cin, 128)
    conv_b = u(keys[1], (1, CONV_OUT), input_size * KERNEL)
    fc1_w = u(keys[2], (4, CONV_OUT), 4)
    fc1_b = u(keys[3], (1, CONV_OUT), 4)
    fc2_w = u(keys[4], (hidden_size + CONV_OUT, output_size), hidden_size + CONV_OUT)
    fc2_b = u(keys[5], (1, output_size), hidden_size + CONV_OUT)

    # Layer 0 LSTM weights, then fold the conv in (valid: no nonlinearity in between).
    wih0 = u(keys[6], (CONV_OUT, 4 * hidden_size), hidden_size)
    whh0 = u(keys[7], (hidden_size, 4 * hidden_size), hidden_size)
    b0 = u(keys[8], (1, 4 * hidden_size), hidden_size)                          # b_ih + b_hh
    w0 = jnp.dot(conv_w, wih0)                                                  # (K*Cin, 4H) f32
    b0_fused = jnp.dot(conv_b, wih0) + b0                                       # (1, 4H) f32

    params = {
        "w0": w0.astype(jnp.bfloat16),
        "b0": b0_fused,
        "whh0": whh0.astype(jnp.bfloat16),
        "lstm_rest": [],
        "fc1_w": fc1_w.astype(jnp.bfloat16),
        "fc1_b": fc1_b,
        "fc2_w": jnp.pad(fc2_w, ((0, 0), (0, OUT_PAD - output_size))).astype(jnp.bfloat16),
        "fc2_b": jnp.pad(fc2_b, ((0, 0), (0, OUT_PAD - output_size))),
    }
    for layer in range(1, num_layers):
        kw = keys[6 + 3 * layer: 9 + 3 * layer]
        wih = u(kw[0], (hidden_size, 4 * hidden_size), hidden_size).astype(jnp.bfloat16)
        whh = u(kw[1], (hidden_size, 4 * hidden_size), hidden_size).astype(jnp.bfloat16)
        b = u(kw[2], (1, 4 * hidden_size), hidden_size)                          # b_ih + b_hh fused
        params["lstm_rest"].append((wih, whh, b))
    return params


if __name__ == "__main__":
    INPUT_SIZE = 4      # dynamic feature count
    HIDDEN_SIZE = 256   # hidden + 128 == 384 == fc2 input, as the module requires
    NUM_LAYERS = 2
    OUTPUT_SIZE = 12
    BATCH = 2
    SEQ = 8             # conv output length = SEQ - 2 = 6

    key = jax.random.PRNGKey(0)
    k_params, k_dyn, k_stat = jax.random.split(key, 3)

    params = init_params(k_params, INPUT_SIZE, HIDDEN_SIZE, NUM_LAYERS, OUTPUT_SIZE)
    dynamic_x = jax.random.normal(k_dyn, (BATCH, SEQ, INPUT_SIZE), jnp.float32)
    static_x = jax.random.normal(k_stat, (BATCH, 4), jnp.float32)

    out = jax.block_until_ready(
        lstm_model_forward(dynamic_x, static_x, params, output_size=OUTPUT_SIZE))
    ref = jax.block_until_ready(
        reference_forward(dynamic_x, static_x, params, output_size=OUTPUT_SIZE))

    assert out.shape == (BATCH, OUTPUT_SIZE), out.shape
    max_err = float(jnp.max(jnp.abs(out - ref)))
    assert jnp.allclose(out, ref, rtol=2e-3, atol=2e-3), max_err

    print("KERNEL_OK")
</pallas_src>

<mosaic_0001>
module attributes {stable_mosaic.version = 11 : i64} {
  func.func @kernel(%arg0: memref<48x20xf32, #tpu.memory_space<vmem>>, %arg1: memref<8x4xf32, #tpu.memory_space<vmem>>, %arg2: memref<20x1024xbf16, #tpu.memory_space<vmem>>, %arg3: memref<1x1024xf32, #tpu.memory_space<vmem>>, %arg4: memref<256x1024xbf16, #tpu.memory_space<vmem>>, %arg5: memref<256x1024xbf16, #tpu.memory_space<any>>, %arg6: memref<256x1024xbf16, #tpu.memory_space<any>>, %arg7: memref<1x1024xf32, #tpu.memory_space<vmem>>, %arg8: memref<4x128xbf16, #tpu.memory_space<vmem>>, %arg9: memref<1x128xf32, #tpu.memory_space<vmem>>, %arg10: memref<384x128xbf16, #tpu.memory_space<vmem>>, %arg11: memref<1x128xf32, #tpu.memory_space<vmem>>, %arg12: memref<8x128xf32, #tpu.memory_space<vmem>>, %arg13: memref<48x1024xf32, #tpu.memory_space<vmem>>, %arg14: memref<48x256xf32, #tpu.memory_space<vmem>>, %arg15: memref<1x256x1024xbf16, #tpu.memory_space<vmem>>, %arg16: memref<1x256x1024xbf16, #tpu.memory_space<vmem>>, %arg17: memref<1x2x!tpu.dma_semaphore, #tpu.memory_space<semaphore_mem>>) attributes {dimension_semantics = [], scalar_prefetch = 0 : i64, scratch_operands = 5 : i64, tpu.core_type = #tpu.core_type<tc>} {
    %c0_i32 = arith.constant 0 : i32
    %c0_i32_0 = arith.constant 0 : i32
    %c0_i32_1 = arith.constant 0 : i32
    %c0_i32_2 = arith.constant 0 : i32
    %c0_i32_3 = arith.constant 0 : i32
    %0 = tpu.memref_slice %arg15[%c0_i32, %c0_i32_2, %c0_i32_3] : memref<1x256x1024xbf16, #tpu.memory_space<vmem>> -> memref<1x256x1024xbf16, #tpu.memory_space<vmem>>
    %1 = tpu.memref_squeeze %0 : memref<1x256x1024xbf16, #tpu.memory_space<vmem>> -> memref<256x1024xbf16, #tpu.memory_space<vmem>>
    %2 = tpu.memref_slice %arg17[%c0_i32_0, %c0_i32_1] : memref<1x2x!tpu.dma_semaphore, #tpu.memory_space<semaphore_mem>> -> memref<1x1x!tpu.dma_semaphore, #tpu.memory_space<semaphore_mem>>
    %3 = tpu.memref_squeeze %2 : memref<1x1x!tpu.dma_semaphore, #tpu.memory_space<semaphore_mem>> -> memref<!tpu.dma_semaphore, #tpu.memory_space<semaphore_mem>>
    tpu.enqueue_dma source(%arg5 : memref<256x1024xbf16, #tpu.memory_space<any>>) target(%1 : memref<256x1024xbf16, #tpu.memory_space<vmem>>) target_semaphore(%3 : memref<!tpu.dma_semaphore, #tpu.memory_space<semaphore_mem>>)
    %c0_i32_4 = arith.constant 0 : i32
    %c0_i32_5 = arith.constant 0 : i32
    %c1_i32 = arith.constant 1 : i32
    %c0_i32_6 = arith.constant 0 : i32
    %c0_i32_7 = arith.constant 0 : i32
    %4 = tpu.memref_slice %arg16[%c0_i32_4, %c0_i32_6, %c0_i32_7] : memref<1x256x1024xbf16, #tpu.memory_space<vmem>> -> memref<1x256x1024xbf16, #tpu.memory_space<vmem>>
    %5 = tpu.memref_squeeze %4 : memref<1x256x1024xbf16, #tpu.memory_space<vmem>> -> memref<256x1024xbf16, #tpu.memory_space<vmem>>
    %6 = tpu.memref_slice %arg17[%c0_i32_5, %c1_i32] : memref<1x2x!tpu.dma_semaphore, #tpu.memory_space<semaphore_mem>> -> memref<1x1x!tpu.dma_semaphore, #tpu.memory_space<semaphore_mem>>
    %7 = tpu.memref_squeeze %6 : memref<1x1x!tpu.dma_semaphore, #tpu.memory_space<semaphore_mem>> -> memref<!tpu.dma_semaphore, #tpu.memory_space<semaphore_mem>>
    tpu.enqueue_dma source(%arg6 : memref<256x1024xbf16, #tpu.memory_space<any>>) target(%5 : memref<256x1024xbf16, #tpu.memory_space<vmem>>) target_semaphore(%7 : memref<!tpu.dma_semaphore, #tpu.memory_space<semaphore_mem>>)
    %c0 = arith.constant 0 : index
    %c0_8 = arith.constant 0 : index
    %8 = vector.load %arg0[%c0, %c0_8] : memref<48x20xf32, #tpu.memory_space<vmem>>, vector<48x20xf32>
    %9 = arith.truncf %8 : vector<48x20xf32> to vector<48x20xbf16>
    %c0_9 = arith.constant 0 : index
    %c0_10 = arith.constant 0 : index
    %10 = vector.load %arg2[%c0_9, %c0_10] : memref<20x1024xbf16, #tpu.memory_space<vmem>>, vector<20x256xbf16>
    %cst = arith.constant dense<0.000000e+00> : vector<48x256xf32>
    %11 = tpu.matmul %9, %10, %cst {dimension_numbers = #tpu.dot_dimension_numbers<[1], [0], [0], [1], [0, 0, 1, 1], [], []>} : vector<48x20xbf16>, vector<20x256xbf16>, vector<48x256xf32> -> vector<48x256xf32>
    %c0_11 = arith.constant 0 : index
    %c0_12 = arith.constant 0 : index
    %12 = vector.load %arg3[%c0_11, %c0_12] : memref<1x1024xf32, #tpu.memory_space<vmem>>, vector<1x256xf32>
    %13 = vector.broadcast %12 : vector<1x256xf32> to vector<48x256xf32>
    %14 = arith.addf %11, %13 : vector<48x256xf32>
    %c0_13 = arith.constant 0 : index
    %c0_14 = arith.constant 0 : index
    %15 = vector.load %arg13[%c0_13, %c0_14] : memref<48x1024xf32, #tpu.memory_space<vmem>>, vector<48x256xf32>
    tpu.vector_store %arg13[%c0_13, %c0_14], %14 {strides = array<i32>} : memref<48x1024xf32, #tpu.memory_space<vmem>>, vector<48x256xf32>,
    %c0_15 = arith.constant 0 : index
    %c256 = arith.constant 256 : index
    %16 = vector.load %arg2[%c0_15, %c256] : memref<20x1024xbf16, #tpu.memory_space<vmem>>, vector<20x256xbf16>
    %cst_16 = arith.constant dense<0.000000e+00> : vector<48x256xf32>
    %17 = tpu.matmul %9, %16, %cst_16 {dimension_numbers = #tpu.dot_dimension_numbers<[1], [0], [0], [1], [0, 0, 1, 1], [], []>} : vector<48x20xbf16>, vector<20x256xbf16>, vector<48x256xf32> -> vector<48x256xf32>
    %c0_17 = arith.constant 0 : index
    %c256_18 = arith.constant 256 : index
    %18 = vector.load %arg3[%c0_17, %c256_18] : memref<1x1024xf32, #tpu.memory_space<vmem>>, vector<1x256xf32>
    %19 = vector.broadcast %18 : vector<1x256xf32> to vector<48x256xf32>
    %20 = arith.addf %17, %19 : vector<48x256xf32>
    %c0_19 = arith.constant 0 : index
    %c256_20 = arith.constant 256 : index
    %21 = vector.load %arg13[%c0_19, %c256_20] : memref<48x1024xf32, #tpu.memory_space<vmem>>, vector<48x256xf32>
    tpu.vector_store %arg13[%c0_19, %c256_20], %20 {strides = array<i32>} : memref<48x1024xf32, #tpu.memory_space<vmem>>, vector<48x256xf32>,
    %c0_21 = arith.constant 0 : index
    %c512 = arith.constant 512 : index
    %22 = vector.load %arg2[%c0_21, %c512] : memref<20x1024xbf16, #tpu.memory_space<vmem>>, vector<20x256xbf16>
    %cst_22 = arith.constant dense<0.000000e+00> : vector<48x256xf32>
    %23 = tpu.matmul %9, %22, %cst_22 {dimension_numbers = #tpu.dot_dimension_numbers<[1], [0], [0], [1], [0, 0, 1, 1], [], []>} : vector<48x20xbf16>, vector<20x256xbf16>, vector<48x256xf32> -> vector<48x256xf32>
    %c0_23 = arith.constant 0 : index
    %c512_24 = arith.constant 512 : index
    %24 = vector.load %arg3[%c0_23, %c512_24] : memref<1x1024xf32, #tpu.memory_space<vmem>>, vector<1x256xf32>
    %25 = vector.broadcast %24 : vector<1x256xf32> to vector<48x256xf32>
    %26 = arith.addf %23, %25 : vector<48x256xf32>
    %c0_25 = arith.constant 0 : index
    %c512_26 = arith.constant 512 : index
    %27 = vector.load %arg13[%c0_25, %c512_26] : memref<48x1024xf32, #tpu.memory_space<vmem>>, vector<48x256xf32>
    tpu.vector_store %arg13[%c0_25, %c512_26], %26 {strides = array<i32>} : memref<48x1024xf32, #tpu.memory_space<vmem>>, vector<48x256xf32>,
    %c0_27 = arith.constant 0 : index
    %c768 = arith.constant 768 : index
    %28 = vector.load %arg2[%c0_27, %c768] : memref<20x1024xbf16, #tpu.memory_space<vmem>>, vector<20x256xbf16>
    %cst_28 = arith.constant dense<0.000000e+00> : vector<48x256xf32>
    %29 = tpu.matmul %9, %28, %cst_28 {dimension_numbers = #tpu.dot_dimension_numbers<[1], [0], [0], [1], [0, 0, 1, 1], [], []>} : vector<48x20xbf16>, vector<20x256xbf16>, vector<48x256xf32> -> vector<48x256xf32>
    %c0_29 = arith.constant 0 : index
    %c768_30 = arith.constant 768 : index
    %30 = vector.load %arg3[%c0_29, %c768_30] : memref<1x1024xf32, #tpu.memory_space<vmem>>, vector<1x256xf32>
    %31 = vector.broadcast %30 : vector<1x256xf32> to vector<48x256xf32>
    %32 = arith.addf %29, %31 : vector<48x256xf32>
    %c0_31 = arith.constant 0 : index
    %c768_32 = arith.constant 768 : index
    %33 = vector.load %arg13[%c0_31, %c768_32] : memref<48x1024xf32, #tpu.memory_space<vmem>>, vector<48x256xf32>
    tpu.vector_store %arg13[%c0_31, %c768_32], %32 {strides = array<i32>} : memref<48x1024xf32, #tpu.memory_space<vmem>>, vector<48x256xf32>,
    %cst_33 = arith.constant 0.000000e+00 : f32
    %34 = vector.broadcast %cst_33 : f32 to vector<8x256xf32>
    %cst_34 = arith.constant 0.000000e+00 : f32
    %35 = vector.broadcast %cst_34 : f32 to vector<8x256xf32>
    %c0_i32_35 = arith.constant 0 : i32
    %c8_i32 = arith.constant 8 : i32
    %36 = arith.muli %c0_i32_35, %c8_i32 : i32
    %37 = tpu.assume_multiple %36, 8 : i32
    %38 = arith.index_cast %37 : i32 to index
    %c0_36 = arith.constant 0 : index
    %39 = vector.load %arg13[%38, %c0_36] : memref<48x1024xf32, #tpu.memory_space<vmem>>, vector<8x1024xf32>
    %40 = arith.truncf %34 : vector<8x256xf32> to vector<8x256xbf16>
    %c0_37 = arith.constant 0 : index
    %c0_38 = arith.constant 0 : index
    %41 = vector.load %arg4[%c0_37, %c0_38] : memref<256x1024xbf16, #tpu.memory_space<vmem>>, vector<256x1024xbf16>
    %cst_39 = arith.constant dense<0.000000e+00> : vector<8x1024xf32>
    %42 = tpu.matmul %40, %41, %cst_39 {dimension_numbers = #tpu.dot_dimension_numbers<[1], [0], [0], [1], [0, 0, 1, 1], [], []>} : vector<8x256xbf16>, vector<256x1024xbf16>, vector<8x1024xf32> -> vector<8x1024xf32>
    %43 = arith.addf %39, %42 : vector<8x1024xf32>
    %44 = vector.extract_strided_slice %43 {offsets = [0, 0], sizes = [8, 256], strides = [1, 1]} : vector<8x1024xf32> to vector<8x256xf32>
    %cst_40 = arith.constant 5.000000e-01 : f32
    %45 = vector.broadcast %cst_40 : f32 to vector<8x256xf32>
    %46 = arith.mulf %45, %44 : vector<8x256xf32>
    %47 = math.tanh %46 : vector<8x256xf32>
    %cst_41 = arith.constant 5.000000e-01 : f32
    %48 = vector.broadcast %cst_41 : f32 to vector<8x256xf32>
    %49 = arith.mulf %48, %47 : vector<8x256xf32>
    %cst_42 = arith.constant 5.000000e-01 : f32
    %50 = vector.broadcast %cst_42 : f32 to vector<8x256xf32>
    %51 = arith.addf %49, %50 : vector<8x256xf32>
    %52 = vector.extract_strided_slice %43 {offsets = [0, 256], sizes = [8, 256], strides = [1, 1]} : vector<8x1024xf32> to vector<8x256xf32>
    %cst_43 = arith.constant 5.000000e-01 : f32
    %53 = vector.broadcast %cst_43 : f32 to vector<8x256xf32>
    %54 = arith.mulf %53, %52 : vector<8x256xf32>
    %55 = math.tanh %54 : vector<8x256xf32>
    %cst_44 = arith.constant 5.000000e-01 : f32
    %56 = vector.broadcast %cst_44 : f32 to vector<8x256xf32>
    %57 = arith.mulf %56, %55 : vector<8x256xf32>
    %cst_45 = arith.constant 5.000000e-01 : f32
    %58 = vector.broadcast %cst_45 : f32 to vector<8x256xf32>
    %59 = arith.addf %57, %58 : vector<8x256xf32>
    %60 = vector.extract_strided_slice %43 {offsets = [0, 512], sizes = [8, 256], strides = [1, 1]} : vector<8x1024xf32> to vector<8x256xf32>
    %61 = math.tanh %60 : vector<8x256xf32>
    %62 = vector.extract_strided_slice %43 {offsets = [0, 768], sizes = [8, 256], strides = [1, 1]} : vector<8x1024xf32> to vector<8x256xf32>
    %cst_46 = arith.constant 5.000000e-01 : f32
    %63 = vector.broadcast %cst_46 : f32 to vector<8x256xf32>
    %64 = arith.mulf %63, %62 : vector<8x256xf32>
    %65 = math.tanh %64 : vector<8x256xf32>
    %cst_47 = arith.constant 5.000000e-01 : f32
    %66 = vector.broadcast %cst_47 : f32 to vector<8x256xf32>
    %67 = arith.mulf %66, %65 : vector<8x256xf32>
    %cst_48 = arith.constant 5.000000e-01 : f32
    %68 = vector.broadcast %cst_48 : f32 to vector<8x256xf32>
    %69 = arith.addf %67, %68 : vector<8x256xf32>
    %70 = arith.mulf %59, %35 : vector<8x256xf32>
    %71 = arith.mulf %51, %61 : vector<8x256xf32>
    %72 = arith.addf %70, %71 : vector<8x256xf32>
    %73 = math.tanh %72 : vector<8x256xf32>
    %74 = arith.mulf %69, %73 : vector<8x256xf32>
    %75 = arith.index_cast %37 : i32 to index
    %c0_49 = arith.constant 0 : index
    %76 = vector.load %arg14[%75, %c0_49] : memref<48x256xf32, #tpu.memory_space<vmem>>, vector<8x256xf32>
    tpu.vector_store %arg14[%75, %c0_49], %74 {strides = array<i32>} : memref<48x256xf32, #tpu.memory_space<vmem>>, vector<8x256xf32>,
    %c1_i32_50 = arith.constant 1 : i32
    %c8_i32_51 = arith.constant 8 : i32
    %77 = arith.muli %c1_i32_50, %c8_i32_51 : i32
    %78 = tpu.assume_multiple %77, 8 : i32
    %79 = arith.index_cast %78 : i32 to index
    %c0_52 = arith.constant 0 : index
    %80 = vector.load %arg13[%79, %c0_52] : memref<48x1024xf32, #tpu.memory_space<vmem>>, vector<8x1024xf32>
    %81 = arith.truncf %74 : vector<8x256xf32> to vector<8x256xbf16>
    %c0_53 = arith.constant 0 : index
    %c0_54 = arith.constant 0 : index
    %82 = vector.load %arg4[%c0_53, %c0_54] : memref<256x1024xbf16, #tpu.memory_space<vmem>>, vector<256x1024xbf16>
    %cst_55 = arith.constant dense<0.000000e+00> : vector<8x1024xf32>
    %83 = tpu.matmul %81, %82, %cst_55 {dimension_numbers = #tpu.dot_dimension_numbers<[1], [0], [0], [1], [0, 0, 1, 1], [], []>} : vector<8x256xbf16>, vector<256x1024xbf16>, vector<8x1024xf32> -> vector<8x1024xf32>
    %84 = arith.addf %80, %83 : vector<8x1024xf32>
    %85 = vector.extract_strided_slice %84 {offsets = [0, 0], sizes = [8, 256], strides = [1, 1]} : vector<8x1024xf32> to vector<8x256xf32>
    %cst_56 = arith.constant 5.000000e-01 : f32
    %86 = vector.broadcast %cst_56 : f32 to vector<8x256xf32>
    %87 = arith.mulf %86, %85 : vector<8x256xf32>
    %88 = math.tanh %87 : vector<8x256xf32>
    %cst_57 = arith.constant 5.000000e-01 : f32
    %89 = vector.broadcast %cst_57 : f32 to vector<8x256xf32>
    %90 = arith.mulf %89, %88 : vector<8x256xf32>
    %cst_58 = arith.constant 5.000000e-01 : f32
    %91 = vector.broadcast %cst_58 : f32 to vector<8x256xf32>
    %92 = arith.addf %90, %91 : vector<8x256xf32>
    %93 = vector.extract_strided_slice %84 {offsets = [0, 256], sizes = [8, 256], strides = [1, 1]} : vector<8x1024xf32> to vector<8x256xf32>
    %cst_59 = arith.constant 5.000000e-01 : f32
    %94 = vector.broadcast %cst_59 : f32 to vector<8x256xf32>
    %95 = arith.mulf %94, %93 : vector<8x256xf32>
    %96 = math.tanh %95 : vector<8x256xf32>
    %cst_60 = arith.constant 5.000000e-01 : f32
    %97 = vector.broadcast %cst_60 : f32 to vector<8x256xf32>
    %98 = arith.mulf %97, %96 : vector<8x256xf32>
    %cst_61 = arith.constant 5.000000e-01 : f32
    %99 = vector.broadcast %cst_61 : f32 to vector<8x256xf32>
    %100 = arith.addf %98, %99 : vector<8x256xf32>
    %101 = vector.extract_strided_slice %84 {offsets = [0, 512], sizes = [8, 256], strides = [1, 1]} : vector<8x1024xf32> to vector<8x256xf32>
    %102 = math.tanh %101 : vector<8x256xf32>
    %103 = vector.extract_strided_slice %84 {offsets = [0, 768], sizes = [8, 256], strides = [1, 1]} : vector<8x1024xf32> to vector<8x256xf32>
    %cst_62 = arith.constant 5.000000e-01 : f32
    %104 = vector.broadcast %cst_62 : f32 to vector<8x256xf32>
    %105 = arith.mulf %104, %103 : vector<8x256xf32>
    %106 = math.tanh %105 : vector<8x256xf32>
    %cst_63 = arith.constant 5.000000e-01 : f32
    %107 = vector.broadcast %cst_63 : f32 to vector<8x256xf32>
    %108 = arith.mulf %107, %106 : vector<8x256xf32>
    %cst_64 = arith.constant 5.000000e-01 : f32
    %109 = vector.broadcast %cst_64 : f32 to vector<8x256xf32>
    %110 = arith.addf %108, %109 : vector<8x256xf32>
    %111 = arith.mulf %100, %72 : vector<8x256xf32>
    %112 = arith.mulf %92, %102 : vector<8x256xf32>
    %113 = arith.addf %111, %112 : vector<8x256xf32>
    %114 = math.tanh %113 : vector<8x256xf32>
    %115 = arith.mulf %110, %114 : vector<8x256xf32>
    %116 = arith.index_cast %78 : i32 to index
    %c0_65 = arith.constant 0 : index
    %117 = vector.load %arg14[%116, %c0_65] : memref<48x256xf32, #tpu.memory_space<vmem>>, vector<8x256xf32>
    tpu.vector_store %arg14[%116, %c0_65], %115 {strides = array<i32>} : memref<48x256xf32, #tpu.memory_space<vmem>>, vector<8x256xf32>,
    %c2_i32 = arith.constant 2 : i32
    %c8_i32_66 = arith.constant 8 : i32
    %118 = arith.muli %c2_i32, %c8_i32_66 : i32
    %119 = tpu.assume_multiple %118, 8 : i32
    %120 = arith.index_cast %119 : i32 to index
    %c0_67 = arith.constant 0 : index
    %121 = vector.load %arg13[%120, %c0_67] : memref<48x1024xf32, #tpu.memory_space<vmem>>, vector<8x1024xf32>
    %122 = arith.truncf %115 : vector<8x256xf32> to vector<8x256xbf16>
    %c0_68 = arith.constant 0 : index
    %c0_69 = arith.constant 0 : index
    %123 = vector.load %arg4[%c0_68, %c0_69] : memref<256x1024xbf16, #tpu.memory_space<vmem>>, vector<256x1024xbf16>
    %cst_70 = arith.constant dense<0.000000e+00> : vector<8x1024xf32>
    %124 = tpu.matmul %122, %123, %cst_70 {dimension_numbers = #tpu.dot_dimension_numbers<[1], [0], [0], [1], [0, 0, 1, 1], [], []>} : vector<8x256xbf16>, vector<256x1024xbf16>, vector<8x1024xf32> -> vector<8x1024xf32>
    %125 = arith.addf %121, %124 : vector<8x1024xf32>
    %126 = vector.extract_strided_slice %125 {offsets = [0, 0], sizes = [8, 256], strides = [1, 1]} : vector<8x1024xf32> to vector<8x256xf32>
    %cst_71 = arith.constant 5.000000e-01 : f32
    %127 = vector.broadcast %cst_71 : f32 to vector<8x256xf32>
    %128 = arith.mulf %127, %126 : vector<8x256xf32>
    %129 = math.tanh %128 : vector<8x256xf32>
    %cst_72 = arith.constant 5.000000e-01 : f32
    %130 = vector.broadcast %cst_72 : f32 to vector<8x256xf32>
    %131 = arith.mulf %130, %129 : vector<8x256xf32>
    %cst_73 = arith.constant 5.000000e-01 : f32
    %132 = vector.broadcast %cst_73 : f32 to vector<8x256xf32>
    %133 = arith.addf %131, %132 : vector<8x256xf32>
    %134 = vector.extract_strided_slice %125 {offsets = [0, 256], sizes = [8, 256], strides = [1, 1]} : vector<8x1024xf32> to vector<8x256xf32>
    %cst_74 = arith.constant 5.000000e-01 : f32
    %135 = vector.broadcast %cst_74 : f32 to vector<8x256xf32>
    %136 = arith.mulf %135, %134 : vector<8x256xf32>
    %137 = math.tanh %136 : vector<8x256xf32>
    %cst_75 = arith.constant 5.000000e-01 : f32
    %138 = vector.broadcast %cst_75 : f32 to vector<8x256xf32>
    %139 = arith.mulf %138, %137 : vector<8x256xf32>
    %cst_76 = arith.constant 5.000000e-01 : f32
    %140 = vector.broadcast %cst_76 : f32 to vector<8x256xf32>
    %141 = arith.addf %139, %140 : vector<8x256xf32>
    %142 = vector.extract_strided_slice %125 {offsets = [0, 512], sizes = [8, 256], strides = [1, 1]} : vector<8x1024xf32> to vector<8x256xf32>
    %143 = math.tanh %142 : vector<8x256xf32>
    %144 = vector.extract_strided_slice %125 {offsets = [0, 768], sizes = [8, 256], strides = [1, 1]} : vector<8x1024xf32> to vector<8x256xf32>
    %cst_77 = arith.constant 5.000000e-01 : f32
    %145 = vector.broadcast %cst_77 : f32 to vector<8x256xf32>
    %146 = arith.mulf %145, %144 : vector<8x256xf32>
    %147 = math.tanh %146 : vector<8x256xf32>
    %cst_78 = arith.constant 5.000000e-01 : f32
    %148 = vector.broadcast %cst_78 : f32 to vector<8x256xf32>
    %149 = arith.mulf %148, %147 : vector<8x256xf32>
    %cst_79 = arith.constant 5.000000e-01 : f32
    %150 = vector.broadcast %cst_79 : f32 to vector<8x256xf32>
    %151 = arith.addf %149, %150 : vector<8x256xf32>
    %152 = arith.mulf %141, %113 : vector<8x256xf32>
    %153 = arith.mulf %133, %143 : vector<8x256xf32>
    %154 = arith.addf %152, %153 : vector<8x256xf32>
    %155 = math.tanh %154 : vector<8x256xf32>
    %156 = arith.mulf %151, %155 : vector<8x256xf32>
    %157 = arith.index_cast %119 : i32 to index
    %c0_80 = arith.constant 0 : index
    %158 = vector.load %arg14[%157, %c0_80] : memref<48x256xf32, #tpu.memory_space<vmem>>, vector<8x256xf32>
    tpu.vector_store %arg14[%157, %c0_80], %156 {strides = array<i32>} : memref<48x256xf32, #tpu.memory_space<vmem>>, vector<8x256xf32>,
    %c3_i32 = arith.constant 3 : i32
    %c8_i32_81 = arith.constant 8 : i32
    %159 = arith.muli %c3_i32, %c8_i32_81 : i32
    %160 = tpu.assume_multiple %159, 8 : i32
    %161 = arith.index_cast %160 : i32 to index
    %c0_82 = arith.constant 0 : index
    %162 = vector.load %arg13[%161, %c0_82] : memref<48x1024xf32, #tpu.memory_space<vmem>>, vector<8x1024xf32>
    %163 = arith.truncf %156 : vector<8x256xf32> to vector<8x256xbf16>
    %c0_83 = arith.constant 0 : index
    %c0_84 = arith.constant 0 : index
    %164 = vector.load %arg4[%c0_83, %c0_84] : memref<256x1024xbf16, #tpu.memory_space<vmem>>, vector<256x1024xbf16>
    %cst_85 = arith.constant dense<0.000000e+00> : vector<8x1024xf32>
    %165 = tpu.matmul %163, %164, %cst_85 {dimension_numbers = #tpu.dot_dimension_numbers<[1], [0], [0], [1], [0, 0, 1, 1], [], []>} : vector<8x256xbf16>, vector<256x1024xbf16>, vector<8x1024xf32> -> vector<8x1024xf32>
    %166 = arith.addf %162, %165 : vector<8x1024xf32>
    %167 = vector.extract_strided_slice %166 {offsets = [0, 0], sizes = [8, 256], strides = [1, 1]} : vector<8x1024xf32> to vector<8x256xf32>
    %cst_86 = arith.constant 5.000000e-01 : f32
    %168 = vector.broadcast %cst_86 : f32 to vector<8x256xf32>
    %169 = arith.mulf %168, %167 : vector<8x256xf32>
    %170 = math.tanh %169 : vector<8x256xf32>
    %cst_87 = arith.constant 5.000000e-01 : f32
    %171 = vector.broadcast %cst_87 : f32 to vector<8x256xf32>
    %172 = arith.mulf %171, %170 : vector<8x256xf32>
    %cst_88 = arith.constant 5.000000e-01 : f32
    %173 = vector.broadcast %cst_88 : f32 to vector<8x256xf32>
    %174 = arith.addf %172, %173 : vector<8x256xf32>
    %175 = vector.extract_strided_slice %166 {offsets = [0, 256], sizes = [8, 256], strides = [1, 1]} : vector<8x1024xf32> to vector<8x256xf32>
    %cst_89 = arith.constant 5.000000e-01 : f32
    %176 = vector.broadcast %cst_89 : f32 to vector<8x256xf32>
    %177 = arith.mulf %176, %175 : vector<8x256xf32>
    %178 = math.tanh %177 : vector<8x256xf32>
    %cst_90 = arith.constant 5.000000e-01 : f32
    %179 = vector.broadcast %cst_90 : f32 to vector<8x256xf32>
    %180 = arith.mulf %179, %178 : vector<8x256xf32>
    %cst_91 = arith.constant 5.000000e-01 : f32
    %181 = vector.broadcast %cst_91 : f32 to vector<8x256xf32>
    %182 = arith.addf %180, %181 : vector<8x256xf32>
    %183 = vector.extract_strided_slice %166 {offsets = [0, 512], sizes = [8, 256], strides = [1, 1]} : vector<8x1024xf32> to vector<8x256xf32>
    %184 = math.tanh %183 : vector<8x256xf32>
    %185 = vector.extract_strided_slice %166 {offsets = [0, 768], sizes = [8, 256], strides = [1, 1]} : vector<8x1024xf32> to vector<8x256xf32>
    %cst_92 = arith.constant 5.000000e-01 : f32
    %186 = vector.broadcast %cst_92 : f32 to vector<8x256xf32>
    %187 = arith.mulf %186, %185 : vector<8x256xf32>
    %188 = math.tanh %187 : vector<8x256xf32>
    %cst_93 = arith.constant 5.000000e-01 : f32
    %189 = vector.broadcast %cst_93 : f32 to vector<8x256xf32>
    %190 = arith.mulf %189, %188 : vector<8x256xf32>
    %cst_94 = arith.constant 5.000000e-01 : f32
    %191 = vector.broadcast %cst_94 : f32 to vector<8x256xf32>
    %192 = arith.addf %190, %191 : vector<8x256xf32>
    %193 = arith.mulf %182, %154 : vector<8x256xf32>
    %194 = arith.mulf %174, %184 : vector<8x256xf32>
    %195 = arith.addf %193, %194 : vector<8x256xf32>
    %196 = math.tanh %195 : vector<8x256xf32>
    %197 = arith.mulf %192, %196 : vector<8x256xf32>
    %198 = arith.index_cast %160 : i32 to index
    %c0_95 = arith.constant 0 : index
    %199 = vector.load %arg14[%198, %c0_95] : memref<48x256xf32, #tpu.memory_space<vmem>>, vector<8x256xf32>
    tpu.vector_store %arg14[%198, %c0_95], %197 {strides = array<i32>} : memref<48x256xf32, #tpu.memory_space<vmem>>, vector<8x256xf32>,
    %c4_i32 = arith.constant 4 : i32
    %c8_i32_96 = arith.constant 8 : i32
    %200 = arith.muli %c4_i32, %c8_i32_96 : i32
    %201 = tpu.assume_multiple %200, 8 : i32
    %202 = arith.index_cast %201 : i32 to index
    %c0_97 = arith.constant 0 : index
    %203 = vector.load %arg13[%202, %c0_97] : memref<48x1024xf32, #tpu.memory_space<vmem>>, vector<8x1024xf32>
    %204 = arith.truncf %197 : vector<8x256xf32> to vector<8x256xbf16>
    %c0_98 = arith.constant 0 : index
    %c0_99 = arith.constant 0 : index
    %205 = vector.load %arg4[%c0_98, %c0_99] : memref<256x1024xbf16, #tpu.memory_space<vmem>>, vector<256x1024xbf16>
    %cst_100 = arith.constant dense<0.000000e+00> : vector<8x1024xf32>
    %206 = tpu.matmul %204, %205, %cst_100 {dimension_numbers = #tpu.dot_dimension_numbers<[1], [0], [0], [1], [0, 0, 1, 1], [], []>} : vector<8x256xbf16>, vector<256x1024xbf16>, vector<8x1024xf32> -> vector<8x1024xf32>
    %207 = arith.addf %203, %206 : vector<8x1024xf32>
    %208 = vector.extract_strided_slice %207 {offsets = [0, 0], sizes = [8, 256], strides = [1, 1]} : vector<8x1024xf32> to vector<8x256xf32>
    %cst_101 = arith.constant 5.000000e-01 : f32
    %209 = vector.broadcast %cst_101 : f32 to vector<8x256xf32>
    %210 = arith.mulf %209, %208 : vector<8x256xf32>
    %211 = math.tanh %210 : vector<8x256xf32>
    %cst_102 = arith.constant 5.000000e-01 : f32
    %212 = vector.broadcast %cst_102 : f32 to vector<8x256xf32>
    %213 = arith.mulf %212, %211 : vector<8x256xf32>
    %cst_103 = arith.constant 5.000000e-01 : f32
    %214 = vector.broadcast %cst_103 : f32 to vector<8x256xf32>
    %215 = arith.addf %213, %214 : vector<8x256xf32>
    %216 = vector.extract_strided_slice %207 {offsets = [0, 256], sizes = [8, 256], strides = [1, 1]} : vector<8x1024xf32> to vector<8x256xf32>
    %cst_104 = arith.constant 5.000000e-01 : f32
    %217 = vector.broadcast %cst_104 : f32 to vector<8x256xf32>
    %218 = arith.mulf %217, %216 : vector<8x256xf32>
    %219 = math.tanh %218 : vector<8x256xf32>
    %cst_105 = arith.constant 5.000000e-01 : f32
    %220 = vector.broadcast %cst_105 : f32 to vector<8x256xf32>
    %221 = arith.mulf %220, %219 : vector<8x256xf32>
    %cst_106 = arith.constant 5.000000e-01 : f32
    %222 = vector.broadcast %cst_106 : f32 to vector<8x256xf32>
    %223 = arith.addf %221, %222 : vector<8x256xf32>
    %224 = vector.extract_strided_slice %207 {offsets = [0, 512], sizes = [8, 256], strides = [1, 1]} : vector<8x1024xf32> to vector<8x256xf32>
    %225 = math.tanh %224 : vector<8x256xf32>
    %226 = vector.extract_strided_slice %207 {offsets = [0, 768], sizes = [8, 256], strides = [1, 1]} : vector<8x1024xf32> to vector<8x256xf32>
    %cst_107 = arith.constant 5.000000e-01 : f32
    %227 = vector.broadcast %cst_107 : f32 to vector<8x256xf32>
    %228 = arith.mulf %227, %226 : vector<8x256xf32>
    %229 = math.tanh %228 : vector<8x256xf32>
    %cst_108 = arith.constant 5.000000e-01 : f32
    %230 = vector.broadcast %cst_108 : f32 to vector<8x256xf32>
    %231 = arith.mulf %230, %229 : vector<8x256xf32>
    %cst_109 = arith.constant 5.000000e-01 : f32
    %232 = vector.broadcast %cst_109 : f32 to vector<8x256xf32>
    %233 = arith.addf %231, %232 : vector<8x256xf32>
    %234 = arith.mulf %223, %195 : vector<8x256xf32>
    %235 = arith.mulf %215, %225 : vector<8x256xf32>
    %236 = arith.addf %234, %235 : vector<8x256xf32>
    %237 = math.tanh %236 : vector<8x256xf32>
    %238 = arith.mulf %233, %237 : vector<8x256xf32>
    %239 = arith.index_cast %201 : i32 to index
    %c0_110 = arith.constant 0 : index
    %240 = vector.load %arg14[%239, %c0_110] : memref<48x256xf32, #tpu.memory_space<vmem>>, vector<8x256xf32>
    tpu.vector_store %arg14[%239, %c0_110], %238 {strides = array<i32>} : memref<48x256xf32, #tpu.memory_space<vmem>>, vector<8x256xf32>,
    %c5_i32 = arith.constant 5 : i32
    %c8_i32_111 = arith.constant 8 : i32
    %241 = arith.muli %c5_i32, %c8_i32_111 : i32
    %242 = tpu.assume_multiple %241, 8 : i32
    %243 = arith.index_cast %242 : i32 to index
    %c0_112 = arith.constant 0 : index
    %244 = vector.load %arg13[%243, %c0_112] : memref<48x1024xf32, #tpu.memory_space<vmem>>, vector<8x1024xf32>
    %245 = arith.truncf %238 : vector<8x256xf32> to vector<8x256xbf16>
    %c0_113 = arith.constant 0 : index
    %c0_114 = arith.constant 0 : index
    %246 = vector.load %arg4[%c0_113, %c0_114] : memref<256x1024xbf16, #tpu.memory_space<vmem>>, vector<256x1024xbf16>
    %cst_115 = arith.constant dense<0.000000e+00> : vector<8x1024xf32>
    %247 = tpu.matmul %245, %246, %cst_115 {dimension_numbers = #tpu.dot_dimension_numbers<[1], [0], [0], [1], [0, 0, 1, 1], [], []>} : vector<8x256xbf16>, vector<256x1024xbf16>, vector<8x1024xf32> -> vector<8x1024xf32>
    %248 = arith.addf %244, %247 : vector<8x1024xf32>
    %249 = vector.extract_strided_slice %248 {offsets = [0, 0], sizes = [8, 256], strides = [1, 1]} : vector<8x1024xf32> to vector<8x256xf32>
    %cst_116 = arith.constant 5.000000e-01 : f32
    %250 = vector.broadcast %cst_116 : f32 to vector<8x256xf32>
    %251 = arith.mulf %250, %249 : vector<8x256xf32>
    %252 = math.tanh %251 : vector<8x256xf32>
    %cst_117 = arith.constant 5.000000e-01 : f32
    %253 = vector.broadcast %cst_117 : f32 to vector<8x256xf32>
    %254 = arith.mulf %253, %252 : vector<8x256xf32>
    %cst_118 = arith.constant 5.000000e-01 : f32
    %255 = vector.broadcast %cst_118 : f32 to vector<8x256xf32>
    %256 = arith.addf %254, %255 : vector<8x256xf32>
    %257 = vector.extract_strided_slice %248 {offsets = [0, 256], sizes = [8, 256], strides = [1, 1]} : vector<8x1024xf32> to vector<8x256xf32>
    %cst_119 = arith.constant 5.000000e-01 : f32
    %258 = vector.broadcast %cst_119 : f32 to vector<8x256xf32>
    %259 = arith.mulf %258, %257 : vector<8x256xf32>
    %260 = math.tanh %259 : vector<8x256xf32>
    %cst_120 = arith.constant 5.000000e-01 : f32
    %261 = vector.broadcast %cst_120 : f32 to vector<8x256xf32>
    %262 = arith.mulf %261, %260 : vector<8x256xf32>
    %cst_121 = arith.constant 5.000000e-01 : f32
    %263 = vector.broadcast %cst_121 : f32 to vector<8x256xf32>
    %264 = arith.addf %262, %263 : vector<8x256xf32>
    %265 = vector.extract_strided_slice %248 {offsets = [0, 512], sizes = [8, 256], strides = [1, 1]} : vector<8x1024xf32> to vector<8x256xf32>
    %266 = math.tanh %265 : vector<8x256xf32>
    %267 = vector.extract_strided_slice %248 {offsets = [0, 768], sizes = [8, 256], strides = [1, 1]} : vector<8x1024xf32> to vector<8x256xf32>
    %cst_122 = arith.constant 5.000000e-01 : f32
    %268 = vector.broadcast %cst_122 : f32 to vector<8x256xf32>
    %269 = arith.mulf %268, %267 : vector<8x256xf32>
    %270 = math.tanh %269 : vector<8x256xf32>
    %cst_123 = arith.constant 5.000000e-01 : f32
    %271 = vector.broadcast %cst_123 : f32 to vector<8x256xf32>
    %272 = arith.mulf %271, %270 : vector<8x256xf32>
    %cst_124 = arith.constant 5.000000e-01 : f32
    %273 = vector.broadcast %cst_124 : f32 to vector<8x256xf32>
    %274 = arith.addf %272, %273 : vector<8x256xf32>
    %275 = arith.mulf %264, %236 : vector<8x256xf32>
    %276 = arith.mulf %256, %266 : vector<8x256xf32>
    %277 = arith.addf %275, %276 : vector<8x256xf32>
    %278 = math.tanh %277 : vector<8x256xf32>
    %279 = arith.mulf %274, %278 : vector<8x256xf32>
    %280 = arith.index_cast %242 : i32 to index
    %c0_125 = arith.constant 0 : index
    %281 = vector.load %arg14[%280, %c0_125] : memref<48x256xf32, #tpu.memory_space<vmem>>, vector<8x256xf32>
    tpu.vector_store %arg14[%280, %c0_125], %279 {strides = array<i32>} : memref<48x256xf32, #tpu.memory_space<vmem>>, vector<8x256xf32>,
    %c6_i32 = arith.constant 6 : i32
    %c0_126 = arith.constant 0 : index
    %c0_127 = arith.constant 0 : index
    %282 = vector.load %arg14[%c0_126, %c0_127] : memref<48x256xf32, #tpu.memory_space<vmem>>, vector<48x256xf32>
    %283 = arith.truncf %282 : vector<48x256xf32> to vector<48x256xbf16>
    %c0_i32_128 = arith.constant 0 : i32
    %c0_i32_129 = arith.constant 0 : i32
    %c0_i32_130 = arith.constant 0 : i32
    %c0_i32_131 = arith.constant 0 : i32
    %c0_i32_132 = arith.constant 0 : i32
    %284 = tpu.memref_slice %arg15[%c0_i32_128, %c0_i32_131, %c0_i32_132] : memref<1x256x1024xbf16, #tpu.memory_space<vmem>> -> memref<1x256x1024xbf16, #tpu.memory_space<vmem>>
    %285 = tpu.memref_squeeze %284 : memref<1x256x1024xbf16, #tpu.memory_space<vmem>> -> memref<256x1024xbf16, #tpu.memory_space<vmem>>
    %286 = tpu.memref_slice %arg17[%c0_i32_129, %c0_i32_130] : memref<1x2x!tpu.dma_semaphore, #tpu.memory_space<semaphore_mem>> -> memref<1x1x!tpu.dma_semaphore, #tpu.memory_space<semaphore_mem>>
    %287 = tpu.memref_squeeze %286 : memref<1x1x!tpu.dma_semaphore, #tpu.memory_space<semaphore_mem>> -> memref<!tpu.dma_semaphore, #tpu.memory_space<semaphore_mem>>
    tpu.wait_dma2 semaphore(%287 : memref<!tpu.dma_semaphore, #tpu.memory_space<semaphore_mem>>) src(%arg5 : memref<256x1024xbf16, #tpu.memory_space<any>>) dst(%285 : memref<256x1024xbf16, #tpu.memory_space<vmem>>)
    %c0_i32_133 = arith.constant 0 : i32
    %c0_i32_134 = arith.constant 0 : i32
    %c1_i32_135 = arith.constant 1 : i32
    %c0_i32_136 = arith.constant 0 : i32
    %c0_i32_137 = arith.constant 0 : i32
    %288 = tpu.memref_slice %arg16[%c0_i32_133, %c0_i32_136, %c0_i32_137] : memref<1x256x1024xbf16, #tpu.memory_space<vmem>> -> memref<1x256x1024xbf16, #tpu.memory_space<vmem>>
    %289 = tpu.memref_squeeze %288 : memref<1x256x1024xbf16, #tpu.memory_space<vmem>> -> memref<256x1024xbf16, #tpu.memory_space<vmem>>
    %290 = tpu.memref_slice %arg17[%c0_i32_134, %c1_i32_135] : memref<1x2x!tpu.dma_semaphore, #tpu.memory_space<semaphore_mem>> -> memref<1x1x!tpu.dma_semaphore, #tpu.memory_space<semaphore_mem>>
    %291 = tpu.memref_squeeze %290 : memref<1x1x!tpu.dma_semaphore, #tpu.memory_space<semaphore_mem>> -> memref<!tpu.dma_semaphore, #tpu.memory_space<semaphore_mem>>
    tpu.wait_dma2 semaphore(%291 : memref<!tpu.dma_semaphore, #tpu.memory_space<semaphore_mem>>) src(%arg6 : memref<256x1024xbf16, #tpu.memory_space<any>>) dst(%289 : memref<256x1024xbf16, #tpu.memory_space<vmem>>)
    %c0_138 = arith.constant 0 : index
    %c0_139 = arith.constant 0 : index
    %c0_140 = arith.constant 0 : index
    %292 = vector.load %arg15[%c0_138, %c0_139, %c0_140] : memref<1x256x1024xbf16, #tpu.memory_space<vmem>>, vector<1x256x256xbf16>
    %293 = vector.shape_cast %292 : vector<1x256x256xbf16> to vector<256x256xbf16>
    %cst_141 = arith.constant dense<0.000000e+00> : vector<48x256xf32>
    %294 = tpu.matmul %283, %293, %cst_141 {dimension_numbers = #tpu.dot_dimension_numbers<[1], [0], [0], [1], [0, 0, 1, 1], [], []>} : vector<48x256xbf16>, vector<256x256xbf16>, vector<48x256xf32> -> vector<48x256xf32>
    %c0_142 = arith.constant 0 : index
    %c0_143 = arith.constant 0 : index
    %295 = vector.load %arg7[%c0_142, %c0_143] : memref<1x1024xf32, #tpu.memory_space<vmem>>, vector<1x256xf32>
    %296 = vector.broadcast %295 : vector<1x256xf32> to vector<48x256xf32>
    %297 = arith.addf %294, %296 : vector<48x256xf32>
    %c0_144 = arith.constant 0 : index
    %c0_145 = arith.constant 0 : index
    %298 = vector.load %arg13[%c0_144, %c0_145] : memref<48x1024xf32, #tpu.memory_space<vmem>>, vector<48x256xf32>
    tpu.vector_store %arg13[%c0_144, %c0_145], %297 {strides = array<i32>} : memref<48x1024xf32, #tpu.memory_space<vmem>>, vector<48x256xf32>,
    %c0_146 = arith.constant 0 : index
    %c0_147 = arith.constant 0 : index
    %c256_148 = arith.constant 256 : index
    %299 = vector.load %arg15[%c0_146, %c0_147, %c256_148] : memref<1x256x1024xbf16, #tpu.memory_space<vmem>>, vector<1x256x256xbf16>
    %300 = vector.shape_cast %299 : vector<1x256x256xbf16> to vector<256x256xbf16>
    %cst_149 = arith.constant dense<0.000000e+00> : vector<48x256xf32>
    %301 = tpu.matmul %283, %300, %cst_149 {dimension_numbers = #tpu.dot_dimension_numbers<[1], [0], [0], [1], [0, 0, 1, 1], [], []>} : vector<48x256xbf16>, vector<256x256xbf16>, vector<48x256xf32> -> vector<48x256xf32>
    %c0_150 = arith.constant 0 : index
    %c256_151 = arith.constant 256 : index
    %302 = vector.load %arg7[%c0_150, %c256_151] : memref<1x1024xf32, #tpu.memory_space<vmem>>, vector<1x256xf32>
    %303 = vector.broadcast %302 : vector<1x256xf32> to vector<48x256xf32>
    %304 = arith.addf %301, %303 : vector<48x256xf32>
    %c0_152 = arith.constant 0 : index
    %c256_153 = arith.constant 256 : index
    %305 = vector.load %arg13[%c0_152, %c256_153] : memref<48x1024xf32, #tpu.memory_space<vmem>>, vector<48x256xf32>
    tpu.vector_store %arg13[%c0_152, %c256_153], %304 {strides = array<i32>} : memref<48x1024xf32, #tpu.memory_space<vmem>>, vector<48x256xf32>,
    %c0_154 = arith.constant 0 : index
    %c0_155 = arith.constant 0 : index
    %c512_156 = arith.constant 512 : index
    %306 = vector.load %arg15[%c0_154, %c0_155, %c512_156] : memref<1x256x1024xbf16, #tpu.memory_space<vmem>>, vector<1x256x256xbf16>
    %307 = vector.shape_cast %306 : vector<1x256x256xbf16> to vector<256x256xbf16>
    %cst_157 = arith.constant dense<0.000000e+00> : vector<48x256xf32>
    %308 = tpu.matmul %283, %307, %cst_157 {dimension_numbers = #tpu.dot_dimension_numbers<[1], [0], [0], [1], [0, 0, 1, 1], [], []>} : vector<48x256xbf16>, vector<256x256xbf16>, vector<48x256xf32> -> vector<48x256xf32>
    %c0_158 = arith.constant 0 : index
    %c512_159 = arith.constant 512 : index
    %309 = vector.load %arg7[%c0_158, %c512_159] : memref<1x1024xf32, #tpu.memory_space<vmem>>, vector<1x256xf32>
    %310 = vector.broadcast %309 : vector<1x256xf32> to vector<48x256xf32>
    %311 = arith.addf %308, %310 : vector<48x256xf32>
    %c0_160 = arith.constant 0 : index
    %c512_161 = arith.constant 512 : index
    %312 = vector.load %arg13[%c0_160, %c512_161] : memref<48x1024xf32, #tpu.memory_space<vmem>>, vector<48x256xf32>
    tpu.vector_store %arg13[%c0_160, %c512_161], %311 {strides = array<i32>} : memref<48x1024xf32, #tpu.memory_space<vmem>>, vector<48x256xf32>,
    %c0_162 = arith.constant 0 : index
    %c0_163 = arith.constant 0 : index
    %c768_164 = arith.constant 768 : index
    %313 = vector.load %arg15[%c0_162, %c0_163, %c768_164] : memref<1x256x1024xbf16, #tpu.memory_space<vmem>>, vector<1x256x256xbf16>
    %314 = vector.shape_cast %313 : vector<1x256x256xbf16> to vector<256x256xbf16>
    %cst_165 = arith.constant dense<0.000000e+00> : vector<48x256xf32>
    %315 = tpu.matmul %283, %314, %cst_165 {dimension_numbers = #tpu.dot_dimension_numbers<[1], [0], [0], [1], [0, 0, 1, 1], [], []>} : vector<48x256xbf16>, vector<256x256xbf16>, vector<48x256xf32> -> vector<48x256xf32>
    %c0_166 = arith.constant 0 : index
    %c768_167 = arith.constant 768 : index
    %316 = vector.load %arg7[%c0_166, %c768_167] : memref<1x1024xf32, #tpu.memory_space<vmem>>, vector<1x256xf32>
    %317 = vector.broadcast %316 : vector<1x256xf32> to vector<48x256xf32>
    %318 = arith.addf %315, %317 : vector<48x256xf32>
    %c0_168 = arith.constant 0 : index
    %c768_169 = arith.constant 768 : index
    %319 = vector.load %arg13[%c0_168, %c768_169] : memref<48x1024xf32, #tpu.memory_space<vmem>>, vector<48x256xf32>
    tpu.vector_store %arg13[%c0_168, %c768_169], %318 {strides = array<i32>} : memref<48x1024xf32, #tpu.memory_space<vmem>>, vector<48x256xf32>,
    %cst_170 = arith.constant 0.000000e+00 : f32
    %320 = vector.broadcast %cst_170 : f32 to vector<8x256xf32>
    %cst_171 = arith.constant 0.000000e+00 : f32
    %321 = vector.broadcast %cst_171 : f32 to vector<8x256xf32>
    %c0_i32_172 = arith.constant 0 : i32
    %c0_i32_173 = arith.constant 0 : i32
    %c8_i32_174 = arith.constant 8 : i32
    %322 = arith.muli %c0_i32_173, %c8_i32_174 : i32
    %323 = tpu.assume_multiple %322, 8 : i32
    %324 = arith.index_cast %323 : i32 to index
    %c0_175 = arith.constant 0 : index
    %325 = vector.load %arg13[%324, %c0_175] : memref<48x1024xf32, #tpu.memory_space<vmem>>, vector<8x1024xf32>
    %326 = arith.truncf %320 : vector<8x256xf32> to vector<8x256xbf16>
    %327 = arith.index_cast %c0_i32_172 : i32 to index
    %c0_176 = arith.constant 0 : index
    %c0_177 = arith.constant 0 : index
    %328 = vector.load %arg16[%327, %c0_176, %c0_177] : memref<1x256x1024xbf16, #tpu.memory_space<vmem>>, vector<1x256x1024xbf16>
    %329 = vector.shape_cast %328 : vector<1x256x1024xbf16> to vector<256x1024xbf16>
    %cst_178 = arith.constant dense<0.000000e+00> : vector<8x1024xf32>
    %330 = tpu.matmul %326, %329, %cst_178 {dimension_numbers = #tpu.dot_dimension_numbers<[1], [0], [0], [1], [0, 0, 1, 1], [], []>} : vector<8x256xbf16>, vector<256x1024xbf16>, vector<8x1024xf32> -> vector<8x1024xf32>
    %331 = arith.addf %325, %330 : vector<8x1024xf32>
    %332 = vector.extract_strided_slice %331 {offsets = [0, 0], sizes = [8, 256], strides = [1, 1]} : vector<8x1024xf32> to vector<8x256xf32>
    %cst_179 = arith.constant 5.000000e-01 : f32
    %333 = vector.broadcast %cst_179 : f32 to vector<8x256xf32>
    %334 = arith.mulf %333, %332 : vector<8x256xf32>
    %335 = math.tanh %334 : vector<8x256xf32>
    %cst_180 = arith.constant 5.000000e-01 : f32
    %336 = vector.broadcast %cst_180 : f32 to vector<8x256xf32>
    %337 = arith.mulf %336, %335 : vector<8x256xf32>
    %cst_181 = arith.constant 5.000000e-01 : f32
    %338 = vector.broadcast %cst_181 : f32 to vector<8x256xf32>
    %339 = arith.addf %337, %338 : vector<8x256xf32>
    %340 = vector.extract_strided_slice %331 {offsets = [0, 256], sizes = [8, 256], strides = [1, 1]} : vector<8x1024xf32> to vector<8x256xf32>
    %cst_182 = arith.constant 5.000000e-01 : f32
    %341 = vector.broadcast %cst_182 : f32 to vector<8x256xf32>
    %342 = arith.mulf %341, %340 : vector<8x256xf32>
    %343 = math.tanh %342 : vector<8x256xf32>
    %cst_183 = arith.constant 5.000000e-01 : f32
    %344 = vector.broadcast %cst_183 : f32 to vector<8x256xf32>
    %345 = arith.mulf %344, %343 : vector<8x256xf32>
    %cst_184 = arith.constant 5.000000e-01 : f32
    %346 = vector.broadcast %cst_184 : f32 to vector<8x256xf32>
    %347 = arith.addf %345, %346 : vector<8x256xf32>
    %348 = vector.extract_strided_slice %331 {offsets = [0, 512], sizes = [8, 256], strides = [1, 1]} : vector<8x1024xf32> to vector<8x256xf32>
    %349 = math.tanh %348 : vector<8x256xf32>
    %350 = vector.extract_strided_slice %331 {offsets = [0, 768], sizes = [8, 256], strides = [1, 1]} : vector<8x1024xf32> to vector<8x256xf32>
    %cst_185 = arith.constant 5.000000e-01 : f32
    %351 = vector.broadcast %cst_185 : f32 to vector<8x256xf32>
    %352 = arith.mulf %351, %350 : vector<8x256xf32>
    %353 = math.tanh %352 : vector<8x256xf32>
    %cst_186 = arith.constant 5.000000e-01 : f32
    %354 = vector.broadcast %cst_186 : f32 to vector<8x256xf32>
    %355 = arith.mulf %354, %353 : vector<8x256xf32>
    %cst_187 = arith.constant 5.000000e-01 : f32
    %356 = vector.broadcast %cst_187 : f32 to vector<8x256xf32>
    %357 = arith.addf %355, %356 : vector<8x256xf32>
    %358 = arith.mulf %347, %321 : vector<8x256xf32>
    %359 = arith.mulf %339, %349 : vector<8x256xf32>
    %360 = arith.addf %358, %359 : vector<8x256xf32>
    %361 = math.tanh %360 : vector<8x256xf32>
    %362 = arith.mulf %357, %361 : vector<8x256xf32>
    %c1_i32_188 = arith.constant 1 : i32
    %c8_i32_189 = arith.constant 8 : i32
    %363 = arith.muli %c1_i32_188, %c8_i32_189 : i32
    %364 = tpu.assume_multiple %363, 8 : i32
    %365 = arith.index_cast %364 : i32 to index
    %c0_190 = arith.constant 0 : index
    %366 = vector.load %arg13[%365, %c0_190] : memref<48x1024xf32, #tpu.memory_space<vmem>>, vector<8x1024xf32>
    %367 = arith.truncf %362 : vector<8x256xf32> to vector<8x256xbf16>
    %368 = arith.index_cast %c0_i32_172 : i32 to index
    %c0_191 = arith.constant 0 : index
    %c0_192 = arith.constant 0 : index
    %369 = vector.load %arg16[%368, %c0_191, %c0_192] : memref<1x256x1024xbf16, #tpu.memory_space<vmem>>, vector<1x256x1024xbf16>
    %370 = vector.shape_cast %369 : vector<1x256x1024xbf16> to vector<256x1024xbf16>
    %cst_193 = arith.constant dense<0.000000e+00> : vector<8x1024xf32>
    %371 = tpu.matmul %367, %370, %cst_193 {dimension_numbers = #tpu.dot_dimension_numbers<[1], [0], [0], [1], [0, 0, 1, 1], [], []>} : vector<8x256xbf16>, vector<256x1024xbf16>, vector<8x1024xf32> -> vector<8x1024xf32>
    %372 = arith.addf %366, %371 : vector<8x1024xf32>
    %373 = vector.extract_strided_slice %372 {offsets = [0, 0], sizes = [8, 256], strides = [1, 1]} : vector<8x1024xf32> to vector<8x256xf32>
    %cst_194 = arith.constant 5.000000e-01 : f32
    %374 = vector.broadcast %cst_194 : f32 to vector<8x256xf32>
    %375 = arith.mulf %374, %373 : vector<8x256xf32>
    %376 = math.tanh %375 : vector<8x256xf32>
    %cst_195 = arith.constant 5.000000e-01 : f32
    %377 = vector.broadcast %cst_195 : f32 to vector<8x256xf32>
    %378 = arith.mulf %377, %376 : vector<8x256xf32>
    %cst_196 = arith.constant 5.000000e-01 : f32
    %379 = vector.broadcast %cst_196 : f32 to vector<8x256xf32>
    %380 = arith.addf %378, %379 : vector<8x256xf32>
    %381 = vector.extract_strided_slice %372 {offsets = [0, 256], sizes = [8, 256], strides = [1, 1]} : vector<8x1024xf32> to vector<8x256xf32>
    %cst_197 = arith.constant 5.000000e-01 : f32
    %382 = vector.broadcast %cst_197 : f32 to vector<8x256xf32>
    %383 = arith.mulf %382, %381 : vector<8x256xf32>
    %384 = math.tanh %383 : vector<8x256xf32>
    %cst_198 = arith.constant 5.000000e-01 : f32
    %385 = vector.broadcast %cst_198 : f32 to vector<8x256xf32>
    %386 = arith.mulf %385, %384 : vector<8x256xf32>
    %cst_199 = arith.constant 5.000000e-01 : f32
    %387 = vector.broadcast %cst_199 : f32 to vector<8x256xf32>
    %388 = arith.addf %386, %387 : vector<8x256xf32>
    %389 = vector.extract_strided_slice %372 {offsets = [0, 512], sizes = [8, 256], strides = [1, 1]} : vector<8x1024xf32> to vector<8x256xf32>
    %390 = math.tanh %389 : vector<8x256xf32>
    %391 = vector.extract_strided_slice %372 {offsets = [0, 768], sizes = [8, 256], strides = [1, 1]} : vector<8x1024xf32> to vector<8x256xf32>
    %cst_200 = arith.constant 5.000000e-01 : f32
    %392 = vector.broadcast %cst_200 : f32 to vector<8x256xf32>
    %393 = arith.mulf %392, %391 : vector<8x256xf32>
    %394 = math.tanh %393 : vector<8x256xf32>
    %cst_201 = arith.constant 5.000000e-01 : f32
    %395 = vector.broadcast %cst_201 : f32 to vector<8x256xf32>
    %396 = arith.mulf %395, %394 : vector<8x256xf32>
    %cst_202 = arith.constant 5.000000e-01 : f32
    %397 = vector.broadcast %cst_202 : f32 to vector<8x256xf32>
    %398 = arith.addf %396, %397 : vector<8x256xf32>
    %399 = arith.mulf %388, %360 : vector<8x256xf32>
    %400 = arith.mulf %380, %390 : vector<8x256xf32>
    %401 = arith.addf %399, %400 : vector<8x256xf32>
    %402 = math.tanh %401 : vector<8x256xf32>
    %403 = arith.mulf %398, %402 : vector<8x256xf32>
    %c2_i32_203 = arith.constant 2 : i32
    %c8_i32_204 = arith.constant 8 : i32
    %404 = arith.muli %c2_i32_203, %c8_i32_204 : i32
    %405 = tpu.assume_multiple %404, 8 : i32
    %406 = arith.index_cast %405 : i32 to index
    %c0_205 = arith.constant 0 : index
    %407 = vector.load %arg13[%406, %c0_205] : memref<48x1024xf32, #tpu.memory_space<vmem>>, vector<8x1024xf32>
    %408 = arith.truncf %403 : vector<8x256xf32> to vector<8x256xbf16>
    %409 = arith.index_cast %c0_i32_172 : i32 to index
    %c0_206 = arith.constant 0 : index
    %c0_207 = arith.constant 0 : index
    %410 = vector.load %arg16[%409, %c0_206, %c0_207] : memref<1x256x1024xbf16, #tpu.memory_space<vmem>>, vector<1x256x1024xbf16>
    %411 = vector.shape_cast %410 : vector<1x256x1024xbf16> to vector<256x1024xbf16>
    %cst_208 = arith.constant dense<0.000000e+00> : vector<8x1024xf32>
    %412 = tpu.matmul %408, %411, %cst_208 {dimension_numbers = #tpu.dot_dimension_numbers<[1], [0], [0], [1], [0, 0, 1, 1], [], []>} : vector<8x256xbf16>, vector<256x1024xbf16>, vector<8x1024xf32> -> vector<8x1024xf32>
    %413 = arith.addf %407, %412 : vector<8x1024xf32>
    %414 = vector.extract_strided_slice %413 {offsets = [0, 0], sizes = [8, 256], strides = [1, 1]} : vector<8x1024xf32> to vector<8x256xf32>
    %cst_209 = arith.constant 5.000000e-01 : f32
    %415 = vector.broadcast %cst_209 : f32 to vector<8x256xf32>
    %416 = arith.mulf %415, %414 : vector<8x256xf32>
    %417 = math.tanh %416 : vector<8x256xf32>
    %cst_210 = arith.constant 5.000000e-01 : f32
    %418 = vector.broadcast %cst_210 : f32 to vector<8x256xf32>
    %419 = arith.mulf %418, %417 : vector<8x256xf32>
    %cst_211 = arith.constant 5.000000e-01 : f32
    %420 = vector.broadcast %cst_211 : f32 to vector<8x256xf32>
    %421 = arith.addf %419, %420 : vector<8x256xf32>
    %422 = vector.extract_strided_slice %413 {offsets = [0, 256], sizes = [8, 256], strides = [1, 1]} : vector<8x1024xf32> to vector<8x256xf32>
    %cst_212 = arith.constant 5.000000e-01 : f32
    %423 = vector.broadcast %cst_212 : f32 to vector<8x256xf32>
    %424 = arith.mulf %423, %422 : vector<8x256xf32>
    %425 = math.tanh %424 : vector<8x256xf32>
    %cst_213 = arith.constant 5.000000e-01 : f32
    %426 = vector.broadcast %cst_213 : f32 to vector<8x256xf32>
    %427 = arith.mulf %426, %425 : vector<8x256xf32>
    %cst_214 = arith.constant 5.000000e-01 : f32
    %428 = vector.broadcast %cst_214 : f32 to vector<8x256xf32>
    %429 = arith.addf %427, %428 : vector<8x256xf32>
    %430 = vector.extract_strided_slice %413 {offsets = [0, 512], sizes = [8, 256], strides = [1, 1]} : vector<8x1024xf32> to vector<8x256xf32>
    %431 = math.tanh %430 : vector<8x256xf32>
    %432 = vector.extract_strided_slice %413 {offsets = [0, 768], sizes = [8, 256], strides = [1, 1]} : vector<8x1024xf32> to vector<8x256xf32>
    %cst_215 = arith.constant 5.000000e-01 : f32
    %433 = vector.broadcast %cst_215 : f32 to vector<8x256xf32>
    %434 = arith.mulf %433, %432 : vector<8x256xf32>
    %435 = math.tanh %434 : vector<8x256xf32>
    %cst_216 = arith.constant 5.000000e-01 : f32
    %436 = vector.broadcast %cst_216 : f32 to vector<8x256xf32>
    %437 = arith.mulf %436, %435 : vector<8x256xf32>
    %cst_217 = arith.constant 5.000000e-01 : f32
    %438 = vector.broadcast %cst_217 : f32 to vector<8x256xf32>
    %439 = arith.addf %437, %438 : vector<8x256xf32>
    %440 = arith.mulf %429, %401 : vector<8x256xf32>
    %441 = arith.mulf %421, %431 : vector<8x256xf32>
    %442 = arith.addf %440, %441 : vector<8x256xf32>
    %443 = math.tanh %442 : vector<8x256xf32>
    %444 = arith.mulf %439, %443 : vector<8x256xf32>
    %c3_i32_218 = arith.constant 3 : i32
    %c8_i32_219 = arith.constant 8 : i32
    %445 = arith.muli %c3_i32_218, %c8_i32_219 : i32
    %446 = tpu.assume_multiple %445, 8 : i32
    %447 = arith.index_cast %446 : i32 to index
    %c0_220 = arith.constant 0 : index
    %448 = vector.load %arg13[%447, %c0_220] : memref<48x1024xf32, #tpu.memory_space<vmem>>, vector<8x1024xf32>
    %449 = arith.truncf %444 : vector<8x256xf32> to vector<8x256xbf16>
    %450 = arith.index_cast %c0_i32_172 : i32 to index
    %c0_221 = arith.constant 0 : index
    %c0_222 = arith.constant 0 : index
    %451 = vector.load %arg16[%450, %c0_221, %c0_222] : memref<1x256x1024xbf16, #tpu.memory_space<vmem>>, vector<1x256x1024xbf16>
    %452 = vector.shape_cast %451 : vector<1x256x1024xbf16> to vector<256x1024xbf16>
    %cst_223 = arith.constant dense<0.000000e+00> : vector<8x1024xf32>
    %453 = tpu.matmul %449, %452, %cst_223 {dimension_numbers = #tpu.dot_dimension_numbers<[1], [0], [0], [1], [0, 0, 1, 1], [], []>} : vector<8x256xbf16>, vector<256x1024xbf16>, vector<8x1024xf32> -> vector<8x1024xf32>
    %454 = arith.addf %448, %453 : vector<8x1024xf32>
    %455 = vector.extract_strided_slice %454 {offsets = [0, 0], sizes = [8, 256], strides = [1, 1]} : vector<8x1024xf32> to vector<8x256xf32>
    %cst_224 = arith.constant 5.000000e-01 : f32
    %456 = vector.broadcast %cst_224 : f32 to vector<8x256xf32>
    %457 = arith.mulf %456, %455 : vector<8x256xf32>
    %458 = math.tanh %457 : vector<8x256xf32>
    %cst_225 = arith.constant 5.000000e-01 : f32
    %459 = vector.broadcast %cst_225 : f32 to vector<8x256xf32>
    %460 = arith.mulf %459, %458 : vector<8x256xf32>
    %cst_226 = arith.constant 5.000000e-01 : f32
    %461 = vector.broadcast %cst_226 : f32 to vector<8x256xf32>
    %462 = arith.addf %460, %461 : vector<8x256xf32>
    %463 = vector.extract_strided_slice %454 {offsets = [0, 256], sizes = [8, 256], strides = [1, 1]} : vector<8x1024xf32> to vector<8x256xf32>
    %cst_227 = arith.constant 5.000000e-01 : f32
    %464 = vector.broadcast %cst_227 : f32 to vector<8x256xf32>
    %465 = arith.mulf %464, %463 : vector<8x256xf32>
    %466 = math.tanh %465 : vector<8x256xf32>
    %cst_228 = arith.constant 5.000000e-01 : f32
    %467 = vector.broadcast %cst_228 : f32 to vector<8x256xf32>
    %468 = arith.mulf %467, %466 : vector<8x256xf32>
    %cst_229 = arith.constant 5.000000e-01 : f32
    %469 = vector.broadcast %cst_229 : f32 to vector<8x256xf32>
    %470 = arith.addf %468, %469 : vector<8x256xf32>
    %471 = vector.extract_strided_slice %454 {offsets = [0, 512], sizes = [8, 256], strides = [1, 1]} : vector<8x1024xf32> to vector<8x256xf32>
    %472 = math.tanh %471 : vector<8x256xf32>
    %473 = vector.extract_strided_slice %454 {offsets = [0, 768], sizes = [8, 256], strides = [1, 1]} : vector<8x1024xf32> to vector<8x256xf32>
    %cst_230 = arith.constant 5.000000e-01 : f32
    %474 = vector.broadcast %cst_230 : f32 to vector<8x256xf32>
    %475 = arith.mulf %474, %473 : vector<8x256xf32>
    %476 = math.tanh %475 : vector<8x256xf32>
    %cst_231 = arith.constant 5.000000e-01 : f32
    %477 = vector.broadcast %cst_231 : f32 to vector<8x256xf32>
    %478 = arith.mulf %477, %476 : vector<8x256xf32>
    %cst_232 = arith.constant 5.000000e-01 : f32
    %479 = vector.broadcast %cst_232 : f32 to vector<8x256xf32>
    %480 = arith.addf %478, %479 : vector<8x256xf32>
    %481 = arith.mulf %470, %442 : vector<8x256xf32>
    %482 = arith.mulf %462, %472 : vector<8x256xf32>
    %483 = arith.addf %481, %482 : vector<8x256xf32>
    %484 = math.tanh %483 : vector<8x256xf32>
    %485 = arith.mulf %480, %484 : vector<8x256xf32>
    %c4_i32_233 = arith.constant 4 : i32
    %c8_i32_234 = arith.constant 8 : i32
    %486 = arith.muli %c4_i32_233, %c8_i32_234 : i32
    %487 = tpu.assume_multiple %486, 8 : i32
    %488 = arith.index_cast %487 : i32 to index
    %c0_235 = arith.constant 0 : index
    %489 = vector.load %arg13[%488, %c0_235] : memref<48x1024xf32, #tpu.memory_space<vmem>>, vector<8x1024xf32>
    %490 = arith.truncf %485 : vector<8x256xf32> to vector<8x256xbf16>
    %491 = arith.index_cast %c0_i32_172 : i32 to index
    %c0_236 = arith.constant 0 : index
    %c0_237 = arith.constant 0 : index
    %492 = vector.load %arg16[%491, %c0_236, %c0_237] : memref<1x256x1024xbf16, #tpu.memory_space<vmem>>, vector<1x256x1024xbf16>
    %493 = vector.shape_cast %492 : vector<1x256x1024xbf16> to vector<256x1024xbf16>
    %cst_238 = arith.constant dense<0.000000e+00> : vector<8x1024xf32>
    %494 = tpu.matmul %490, %493, %cst_238 {dimension_numbers = #tpu.dot_dimension_numbers<[1], [0], [0], [1], [0, 0, 1, 1], [], []>} : vector<8x256xbf16>, vector<256x1024xbf16>, vector<8x1024xf32> -> vector<8x1024xf32>
    %495 = arith.addf %489, %494 : vector<8x1024xf32>
    %496 = vector.extract_strided_slice %495 {offsets = [0, 0], sizes = [8, 256], strides = [1, 1]} : vector<8x1024xf32> to vector<8x256xf32>
    %cst_239 = arith.constant 5.000000e-01 : f32
    %497 = vector.broadcast %cst_239 : f32 to vector<8x256xf32>
    %498 = arith.mulf %497, %496 : vector<8x256xf32>
    %499 = math.tanh %498 : vector<8x256xf32>
    %cst_240 = arith.constant 5.000000e-01 : f32
    %500 = vector.broadcast %cst_240 : f32 to vector<8x256xf32>
    %501 = arith.mulf %500, %499 : vector<8x256xf32>
    %cst_241 = arith.constant 5.000000e-01 : f32
    %502 = vector.broadcast %cst_241 : f32 to vector<8x256xf32>
    %503 = arith.addf %501, %502 : vector<8x256xf32>
    %504 = vector.extract_strided_slice %495 {offsets = [0, 256], sizes = [8, 256], strides = [1, 1]} : vector<8x1024xf32> to vector<8x256xf32>
    %cst_242 = arith.constant 5.000000e-01 : f32
    %505 = vector.broadcast %cst_242 : f32 to vector<8x256xf32>
    %506 = arith.mulf %505, %504 : vector<8x256xf32>
    %507 = math.tanh %506 : vector<8x256xf32>
    %cst_243 = arith.constant 5.000000e-01 : f32
    %508 = vector.broadcast %cst_243 : f32 to vector<8x256xf32>
    %509 = arith.mulf %508, %507 : vector<8x256xf32>
    %cst_244 = arith.constant 5.000000e-01 : f32
    %510 = vector.broadcast %cst_244 : f32 to vector<8x256xf32>
    %511 = arith.addf %509, %510 : vector<8x256xf32>
    %512 = vector.extract_strided_slice %495 {offsets = [0, 512], sizes = [8, 256], strides = [1, 1]} : vector<8x1024xf32> to vector<8x256xf32>
    %513 = math.tanh %512 : vector<8x256xf32>
    %514 = vector.extract_strided_slice %495 {offsets = [0, 768], sizes = [8, 256], strides = [1, 1]} : vector<8x1024xf32> to vector<8x256xf32>
    %cst_245 = arith.constant 5.000000e-01 : f32
    %515 = vector.broadcast %cst_245 : f32 to vector<8x256xf32>
    %516 = arith.mulf %515, %514 : vector<8x256xf32>
    %517 = math.tanh %516 : vector<8x256xf32>
    %cst_246 = arith.constant 5.000000e-01 : f32
    %518 = vector.broadcast %cst_246 : f32 to vector<8x256xf32>
    %519 = arith.mulf %518, %517 : vector<8x256xf32>
    %cst_247 = arith.constant 5.000000e-01 : f32
    %520 = vector.broadcast %cst_247 : f32 to vector<8x256xf32>
    %521 = arith.addf %519, %520 : vector<8x256xf32>
    %522 = arith.mulf %511, %483 : vector<8x256xf32>
    %523 = arith.mulf %503, %513 : vector<8x256xf32>
    %524 = arith.addf %522, %523 : vector<8x256xf32>
    %525 = math.tanh %524 : vector<8x256xf32>
    %526 = arith.mulf %521, %525 : vector<8x256xf32>
    %c5_i32_248 = arith.constant 5 : i32
    %c8_i32_249 = arith.constant 8 : i32
    %527 = arith.muli %c5_i32_248, %c8_i32_249 : i32
    %528 = tpu.assume_multiple %527, 8 : i32
    %529 = arith.index_cast %528 : i32 to index
    %c0_250 = arith.constant 0 : index
    %530 = vector.load %arg13[%529, %c0_250] : memref<48x1024xf32, #tpu.memory_space<vmem>>, vector<8x1024xf32>
    %531 = arith.truncf %526 : vector<8x256xf32> to vector<8x256xbf16>
    %532 = arith.index_cast %c0_i32_172 : i32 to index
    %c0_251 = arith.constant 0 : index
    %c0_252 = arith.constant 0 : index
    %533 = vector.load %arg16[%532, %c0_251, %c0_252] : memref<1x256x1024xbf16, #tpu.memory_space<vmem>>, vector<1x256x1024xbf16>
    %534 = vector.shape_cast %533 : vector<1x256x1024xbf16> to vector<256x1024xbf16>
    %cst_253 = arith.constant dense<0.000000e+00> : vector<8x1024xf32>
    %535 = tpu.matmul %531, %534, %cst_253 {dimension_numbers = #tpu.dot_dimension_numbers<[1], [0], [0], [1], [0, 0, 1, 1], [], []>} : vector<8x256xbf16>, vector<256x1024xbf16>, vector<8x1024xf32> -> vector<8x1024xf32>
    %536 = arith.addf %530, %535 : vector<8x1024xf32>
    %537 = vector.extract_strided_slice %536 {offsets = [0, 0], sizes = [8, 256], strides = [1, 1]} : vector<8x1024xf32> to vector<8x256xf32>
    %cst_254 = arith.constant 5.000000e-01 : f32
    %538 = vector.broadcast %cst_254 : f32 to vector<8x256xf32>
    %539 = arith.mulf %538, %537 : vector<8x256xf32>
    %540 = math.tanh %539 : vector<8x256xf32>
    %cst_255 = arith.constant 5.000000e-01 : f32
    %541 = vector.broadcast %cst_255 : f32 to vector<8x256xf32>
    %542 = arith.mulf %541, %540 : vector<8x256xf32>
    %cst_256 = arith.constant 5.000000e-01 : f32
    %543 = vector.broadcast %cst_256 : f32 to vector<8x256xf32>
    %544 = arith.addf %542, %543 : vector<8x256xf32>
    %545 = vector.extract_strided_slice %536 {offsets = [0, 256], sizes = [8, 256], strides = [1, 1]} : vector<8x1024xf32> to vector<8x256xf32>
    %cst_257 = arith.constant 5.000000e-01 : f32
    %546 = vector.broadcast %cst_257 : f32 to vector<8x256xf32>
    %547 = arith.mulf %546, %545 : vector<8x256xf32>
    %548 = math.tanh %547 : vector<8x256xf32>
    %cst_258 = arith.constant 5.000000e-01 : f32
    %549 = vector.broadcast %cst_258 : f32 to vector<8x256xf32>
    %550 = arith.mulf %549, %548 : vector<8x256xf32>
    %cst_259 = arith.constant 5.000000e-01 : f32
    %551 = vector.broadcast %cst_259 : f32 to vector<8x256xf32>
    %552 = arith.addf %550, %551 : vector<8x256xf32>
    %553 = vector.extract_strided_slice %536 {offsets = [0, 512], sizes = [8, 256], strides = [1, 1]} : vector<8x1024xf32> to vector<8x256xf32>
    %554 = math.tanh %553 : vector<8x256xf32>
    %555 = vector.extract_strided_slice %536 {offsets = [0, 768], sizes = [8, 256], strides = [1, 1]} : vector<8x1024xf32> to vector<8x256xf32>
    %cst_260 = arith.constant 5.000000e-01 : f32
    %556 = vector.broadcast %cst_260 : f32 to vector<8x256xf32>
    %557 = arith.mulf %556, %555 : vector<8x256xf32>
    %558 = math.tanh %557 : vector<8x256xf32>
    %cst_261 = arith.constant 5.000000e-01 : f32
    %559 = vector.broadcast %cst_261 : f32 to vector<8x256xf32>
    %560 = arith.mulf %559, %558 : vector<8x256xf32>
    %cst_262 = arith.constant 5.000000e-01 : f32
    %561 = vector.broadcast %cst_262 : f32 to vector<8x256xf32>
    %562 = arith.addf %560, %561 : vector<8x256xf32>
    %563 = arith.mulf %552, %524 : vector<8x256xf32>
    %564 = arith.mulf %544, %554 : vector<8x256xf32>
    %565 = arith.addf %563, %564 : vector<8x256xf32>
    %566 = math.tanh %565 : vector<8x256xf32>
    %567 = arith.mulf %562, %566 : vector<8x256xf32>
    %c6_i32_263 = arith.constant 6 : i32
    %c0_264 = arith.constant 0 : index
    %c0_265 = arith.constant 0 : index
    %568 = vector.load %arg1[%c0_264, %c0_265] : memref<8x4xf32, #tpu.memory_space<vmem>>, vector<8x4xf32>
    %569 = arith.truncf %568 : vector<8x4xf32> to vector<8x4xbf16>
    %c0_266 = arith.constant 0 : index
    %c0_267 = arith.constant 0 : index
    %570 = vector.load %arg8[%c0_266, %c0_267] : memref<4x128xbf16, #tpu.memory_space<vmem>>, vector<4x128xbf16>
    %cst_268 = arith.constant dense<0.000000e+00> : vector<8x128xf32>
    %571 = tpu.matmul %569, %570, %cst_268 {dimension_numbers = #tpu.dot_dimension_numbers<[1], [0], [0], [1], [0, 0, 1, 1], [], []>} : vector<8x4xbf16>, vector<4x128xbf16>, vector<8x128xf32> -> vector<8x128xf32>
    %c0_269 = arith.constant 0 : index
    %c0_270 = arith.constant 0 : index
    %572 = vector.load %arg9[%c0_269, %c0_270] : memref<1x128xf32, #tpu.memory_space<vmem>>, vector<1x128xf32>
    %573 = vector.broadcast %572 : vector<1x128xf32> to vector<8x128xf32>
    %574 = arith.addf %571, %573 : vector<8x128xf32>
    %575 = arith.truncf %567 : vector<8x256xf32> to vector<8x256xbf16>
    %c0_271 = arith.constant 0 : index
    %c0_272 = arith.constant 0 : index
    %576 = vector.load %arg10[%c0_271, %c0_272] : memref<384x128xbf16, #tpu.memory_space<vmem>>, vector<256x128xbf16>
    %cst_273 = arith.constant dense<0.000000e+00> : vector<8x128xf32>
    %577 = tpu.matmul %575, %576, %cst_273 {dimension_numbers = #tpu.dot_dimension_numbers<[1], [0], [0], [1], [0, 0, 1, 1], [], []>} : vector<8x256xbf16>, vector<256x128xbf16>, vector<8x128xf32> -> vector<8x128xf32>
    %578 = arith.truncf %574 : vector<8x128xf32> to vector<8x128xbf16>
    %c256_274 = arith.constant 256 : index
    %c0_275 = arith.constant 0 : index
    %579 = vector.load %arg10[%c256_274, %c0_275] : memref<384x128xbf16, #tpu.memory_space<vmem>>, vector<128x128xbf16>
    %cst_276 = arith.constant dense<0.000000e+00> : vector<8x128xf32>
    %580 = tpu.matmul %578, %579, %cst_276 {dimension_numbers = #tpu.dot_dimension_numbers<[1], [0], [0], [1], [0, 0, 1, 1], [], []>} : vector<8x128xbf16>, vector<128x128xbf16>, vector<8x128xf32> -> vector<8x128xf32>
    %581 = arith.addf %577, %580 : vector<8x128xf32>
    %c0_277 = arith.constant 0 : index
    %c0_278 = arith.constant 0 : index
    %582 = vector.load %arg11[%c0_277, %c0_278] : memref<1x128xf32, #tpu.memory_space<vmem>>, vector<1x128xf32>
    %583 = vector.broadcast %582 : vector<1x128xf32> to vector<8x128xf32>
    %584 = arith.addf %581, %583 : vector<8x128xf32>
    %c0_279 = arith.constant 0 : index
    %c0_280 = arith.constant 0 : index
    %585 = vector.load %arg12[%c0_279, %c0_280] : memref<8x128xf32, #tpu.memory_space<vmem>>, vector<8x128xf32>
    tpu.vector_store %arg12[%c0_279, %c0_280], %584 {strides = array<i32>} : memref<8x128xf32, #tpu.memory_space<vmem>>, vector<8x128xf32>,
    return
  }
}

</mosaic_0001>

<bundles_post_ra>
// kernel: lstm_model_forward.1
= control target key start
LH: loop header
LB: loop body
LE: loop exit
PB: predicated region body
PF: predicated region fallthrough
CT: control target
= control target key end

     0   :  { %17 = vsyncpa [#allocation8], 0  ;;  %s14677_s0 = inlined_call_operand.vmem [shape: f32[48,20], index: 0, kind: input, shape index: {}]   ;;  %s14678_s1 = inlined_call_operand.vmem [shape: f32[8,4], index: 1, kind: input, shape index: {}]   ;;  %s14679_s2 = inlined_call_operand.vmem [shape: bf16[20,1024], index: 2, kind: input, shape index: {}]   ;;  %s14680_s3 = inlined_call_operand.hbm [shape: f32[1,1024], index: 3, kind: input, shape index: {}]   ;;  %s14681_s4 = inlined_call_operand.hbm [shape: bf16[256,1024], index: 4, kind: input, shape index: {}]   ;;  %s14682_s5 = inlined_call_operand.hbm [shape: bf16[256,1024], index: 5, kind: input, shape index: {}]   ;;  %s14683_s6 = inlined_call_operand.hbm [shape: bf16[256,1024], index: 6, kind: input, shape index: {}]   ;;  %s14684_s7 = inlined_call_operand.hbm [shape: f32[1,1024], index: 7, kind: input, shape index: {}]   ;;  %s14685_s8 = inlined_call_operand.vmem [shape: bf16[4,128], index: 8, kind: input, shape index: {}]   ;;  %s14686_s9 = inlined_call_operand.vmem [shape: f32[1,128], index: 9, kind: input, shape index: {}]   ;;  %s14687_s10 = inlined_call_operand.vmem [shape: bf16[384,128], index: 10, kind: input, shape index: {}]   ;;  %s14688_s11 = inlined_call_operand.hbm [shape: f32[1,128], index: 11, kind: input, shape index: {}]   ;;  %s14689_s12 = inlined_call_operand.vmem [shape: f32[8,128], index: 12, kind: output, shape index: {}]  }
   0x1   :  { %18 = vsyncpa [#allocation10], 0 }
   0x2   :  { %19 = vsyncpa [#allocation13], 0  ;;  %s11678_s21 = smov [#allocation9]  }
   0x3   :  { %s41_s22 = sshll.u32 %s11678_s21, 4  ;;  %s42_s22 = int_to_ptr.vmem [resolvable:$true] %s41_s22 }
   0x4   :  { %s11556_s23 = scalar_lea.vmem %s42_s22, 16384  ;;  %p11561_p1 = scmp.lt.s32.totalorder %s42_s22, %s42_s22 }
   0x5   :  { %p11557_p0 = scmp.ne.s32.totalorder %s42_s22, %s11556_s23  ;;  %p11562_p2 = scmp.lt.s32.totalorder %s11556_s23, %s11556_s23 }
   0x7   :  { %p11563_p3 = por %p11562_p2, %p11561_p1 }
   0x9   :  { %p11564_p4 = pnand %p11563_p3, %p11557_p0 }
   0xb   :  { %11567 = shalt.err (!%p11564_p4)
}
   0xc   :  { %s11679_s24 = smov 512   ;;  %s11680_s25 = smov 32  }
   0xd   :  { %47 = dma.hbm_to_vmem [thread:$0]  %s14681_s4, 16384, %s42_s22, [#allocation10], %s11679_s24, %s11679_s24, %s11680_s25  }
   0xe   :  { %s11681_s28 = smov [#allocation7]   ;;  %s11682_s30 = smov [#allocation11]  }
   0xf   :  { %s32_s29 = sshll.u32 %s11681_s28, 4  ;;  %s54_s13 = sshll.u32 %s11682_s30, 4  ;;  %s33_s29 = int_to_ptr.vmem [resolvable:$true] %s32_s29  ;;  %s55_s13 = int_to_ptr.vmem [resolvable:$true] %s54_s13 }
  0x10   :  { %s11576_s14 = scalar_lea.vmem %s33_s29, 128  ;;  %p11581_p6 = scmp.lt.s32.totalorder %s33_s29, %s33_s29 }
  0x11   :  { %p11577_p5 = scmp.ne.s32.totalorder %s33_s29, %s11576_s14  ;;  %p11582_p7 = scmp.lt.s32.totalorder %s11576_s14, %s11576_s14 }
  0x13   :  { %p11583_p8 = por %p11582_p7, %p11581_p6 }
  0x15   :  { %p11584_p9 = pnand %p11583_p8, %p11577_p5 }
  0x17   :  { %11587 = shalt.err (!%p11584_p9)
}
  0x18   :  { %35 = dma.hbm_to_vmem [thread:$0]  %s14680_s3, 128, %s33_s29, [#allocation8]  }
  0x19   :  { %s11596_s17 = scalar_lea.vmem %s55_s13, 128  ;;  %p11601_p11 = scmp.lt.s32.totalorder %s55_s13, %s55_s13 }
  0x1a   :  { %p11597_p10 = scmp.ne.s32.totalorder %s55_s13, %s11596_s17  ;;  %p11602_p12 = scmp.lt.s32.totalorder %s11596_s17, %s11596_s17 }
  0x1c   :  { %p11603_p13 = por %p11602_p12, %p11601_p11 }
  0x1e   :  { %p11604_p0 = pnand %p11603_p13, %p11597_p10 }
  0x20   :  { %11607 = shalt.err (!%p11604_p0)
}
  0x21   :  { %57 = dma.hbm_to_vmem [thread:$0]  %s14684_s7, 128, %s55_s13, [#allocation10]  }
  0x22   :  { %s11683_s19 = smov [#allocation12]  }
  0x23   :  { %s70_s20 = sshll.u32 %s11683_s19, 4  ;;  %s71_s20 = int_to_ptr.vmem [resolvable:$true] %s70_s20 }
  0x24   :  { %s11616_s21 = scalar_lea.vmem %s71_s20, 16  ;;  %s11620_s22 = scalar_lea.vmem %s71_s20, 32 }
  0x25   :  { %p11617_p1 = scmp.ne.s32.totalorder %s71_s20, %s11616_s21  ;;  %p11621_p2 = scmp.lt.s32.totalorder %s71_s20, %s71_s20 }
  0x26   :  { %p11622_p3 = scmp.lt.s32.totalorder %s11620_s22, %s11616_s21 }
  0x28   :  { %p11623_p4 = por %p11622_p3, %p11621_p2 }
  0x2a   :  { %p11624_p5 = pnand %p11623_p4, %p11617_p1 }
  0x2c   :  { %11627 = shalt.err (!%p11624_p5)
}
  0x2d   :  { %73 = dma.hbm_to_vmem [thread:$0]  %s14688_s11, 16, %s71_s20, [#allocation13]  }
  0x2e   :  { %11668 = dma.done.wait [#allocation8], 128  }
  0x2f   :  { %11669 = vsyncadd [#allocation8], 4294967168 }
  0x30   :  { %11670 = dma.done.wait [#allocation10], 16512  }
  0x31   :  { %11671 = vsyncadd [#allocation10], 4294950784 }
  0x32   :  { %11672 = dma.done.wait [#allocation13], 16  }
  0x33   :  { %11673 = vsyncadd [#allocation13], 4294967280  ;;  %v14690_v0 = vmov 0   ;;  %v121_v1 = vld [vmem:[%s14679_s2 + $0x40] sm:$0x33]  ;;  %vm159_vm0 = vcmask 1041408  }
  0x34   :  { %198 = vmatprep.mubr.bf16.mxu0 %v14690_v0  ;;  %309 = vmatprep.mubr.bf16.mxu1 %v14690_v0  ;;  %v243_v2 = vld [vmem:[%s14679_s2 + $0x48] sm:$0x33]  ;;  %v119_v3 = vld [vmem:[%s14679_s2] sm:$0xff]  ;;  %v10124_v4 = vcombine.high %v121_v1, %v121_v1  ;;  %v10123_v6 = vcombine.low %v121_v1, %v121_v1  ;;  %v354_v13 = vld [vmem:[%s14679_s2 + $0x50] sm:$0x33]  ;;  %vm149_vm1 = vcmask 162816  }
  0x35   :  { %v10132_v5 = vcombine.high %v243_v2, %v243_v2  ;;  %v10131_v7 = vcombine.low %v243_v2, %v243_v2  ;;  %v120_v8 = vld [vmem:[%s14679_s2 + $0x20] sm:$0xff]  ;;  %v241_v9 = vld [vmem:[%s14679_s2 + $0x8] sm:$0xff]  ;;  %v465_v20 = vld [vmem:[%s14679_s2 + $0x58] sm:$0x33]  ;;  %v10140_v21 = vcombine.high %v354_v13, %v354_v13  ;;  %v10139_v22 = vcombine.low %v354_v13, %v354_v13  ;;  %s11686_s4 = smov [#allocation5]  }
  0x36   :  { %v242_v10 = vld [vmem:[%s14679_s2 + $0x28] sm:$0xff]  ;;  %v10122_v11 = vcombine.high %v119_v3, %v120_v8  ;;  %10125 = vmatprep.subr.msk.bf16.mxu0 %vm159_vm0, %v10124_v4  ;;  %v161_v14 = vsel %vm159_vm0, %v10123_v6, 0  ;;  %v10121_v16 = vcombine.low %v119_v3, %v120_v8  ;;  %v110_v18 = vld [vmem:[%s14677_s0] sm:$0xff]  ;;  %v10148_v23 = vcombine.high %v465_v20, %v465_v20  ;;  %v352_v24 = vld [vmem:[%s14679_s2 + $0x10] sm:$0xff]  ;;  %s106_s18 = sshll.u32 %s11686_s4, 4  ;;  %s107_s18 = int_to_ptr.vmem [resolvable:$true] %s106_s18 }
  0x37   :  { %v10130_v12 = vcombine.high %v241_v9, %v242_v10  ;;  %10133 = vmatprep.subr.msk.bf16.mxu1 %vm159_vm0, %v10132_v5  ;;  %v272_v15 = vsel %vm159_vm0, %v10131_v7, 0  ;;  %179 = vmatpush1.bf16.msra.mxu0 %v161_v14  ;;  %v10129_v17 = vcombine.low %v241_v9, %v242_v10  ;;  %v111_v19 = vld [vmem:[%s14677_s0 + $0x8] sm:$0xff]  ;;  %v353_v25 = vld [vmem:[%s14679_s2 + $0x30] sm:$0xff]  ;;  %v10147_v27 = vcombine.low %v465_v20, %v465_v20  ;;  %v463_v28 = vld [vmem:[%s14679_s2 + $0x18] sm:$0xff] }
  0x38   :  { %290 = vmatpush1.bf16.msra.mxu1 %v272_v15  ;;  %180 = vmatprep.subr.bf16.mxu0 %v10122_v11  ;;  %v116_v26 = vpack.c.bf16 %v111_v19, %v110_v18  ;;  %v464_v29 = vld [vmem:[%s14679_s2 + $0x38] sm:$0xff]  ;;  %v383_v30 = vsel %vm159_vm0, %v10139_v22, 0  ;;  %v10138_v31 = vcombine.high %v352_v24, %v353_v25  ;;  %v641_v32 = vld [vmem:[#allocation9 + $0x1c0] sm:$0xff]  ;;  %v112_v36 = vld [vmem:[%s14677_s0 + $0x10] sm:$0xff]  ;;  %v10137_v38 = vcombine.low %v352_v24, %v353_v25 }
  0x39   :  { %291 = vmatprep.subr.bf16.mxu1 %v10130_v12  ;;  %v645_v33 = vld [vmem:[#allocation9 + $0x1e0] sm:$0xff]  ;;  %v494_v34 = vsel %vm159_vm0, %v10147_v27, 0  ;;  %v10146_v35 = vcombine.high %v463_v28, %v464_v29  ;;  %v113_v37 = vld [vmem:[%s14677_s0 + $0x18] sm:$0xff]  ;;  %v10145_v40 = vcombine.low %v463_v28, %v464_v29  ;;  %v642_v41 = vld [vmem:[#allocation9 + $0x1c8] sm:$0xff] }
  0x3a   :  { %v10210_v39 = vcombine.high %v641_v32, %v645_v33  ;;  %v646_v42 = vld [vmem:[#allocation9 + $0x1e8] sm:$0xff]  ;;  %v117_v43 = vpack.c.bf16 %v113_v37, %v112_v36  ;;  %v114_v45 = vld [vmem:[%s14677_s0 + $0x20] sm:$0xff]  ;;  %v115_v46 = vld [vmem:[%s14677_s0 + $0x28] sm:$0xff]  ;;  %v10209_v52 = vcombine.low %v641_v32, %v645_v33  ;;  %s11685_s0 = smov [#allocation4]  }
  0x3b   :  { %181 = vmatpush1.bf16.msra.mxu0 %v10121_v16  ;;  %v10212_v44 = vcombine.high %v642_v41, %v646_v42  ;;  %v11838_v47 = vpack.c.bf16 %v115_v46, %v114_v45  ;;  %v633_v48 = vld [vmem:[#allocation9 + $0x180] sm:$0xff]  ;;  %v634_v50 = vld [vmem:[#allocation9 + $0x188] sm:$0xff]  ;;  %v10211_v53 = vcombine.low %v642_v41, %v646_v42  ;;  %s94_s17 = sshll.u32 %s11685_s0, 4  ;;  %s95_s17 = int_to_ptr.vmem [resolvable:$true] %s94_s17 }
  0x3c   :  { %292 = vmatpush1.bf16.msra.mxu1 %v10129_v17  ;;  %10141 = vmatprep.subr.msk.bf16.mxu0 %vm159_vm0, %v10140_v21  ;;  %v637_v49 = vld [vmem:[#allocation9 + $0x1a0] sm:$0xff]  ;;  %v638_v51 = vld [vmem:[#allocation9 + $0x1a8] sm:$0xff]  ;;  %s11636_s19 = scalar_lea.vmem %s95_s17, 16384  ;;  %p11641_p7 = scmp.lt.s32.totalorder %s95_s17, %s95_s17 }
  0x3d   :  { %10149 = vmatprep.subr.msk.bf16.mxu1 %vm159_vm0, %v10148_v23  ;;  %v10202_v54 = vcombine.high %v633_v48, %v637_v49  ;;  %v10204_v55 = vcombine.high %v634_v50, %v638_v51  ;;  %v625_v56 = vld [vmem:[#allocation9 + $0x140] sm:$0xff]  ;;  %v626_v58 = vld [vmem:[#allocation9 + $0x148] sm:$0xff]  ;;  %v10201_v60 = vcombine.low %v633_v48, %v637_v49  ;;  %v10203_v61 = vcombine.low %v634_v50, %v638_v51  ;;  %p11637_p6 = scmp.ne.s32.totalorder %s95_s17, %s11636_s19  ;;  %p11642_p8 = scmp.lt.s32.totalorder %s11636_s19, %s11636_s19 }
  0x3e   :  { %10126 = vmatmul.mubr.msk.bf16.vlgmr.msra.gmra.mxu0 %vm149_vm1, %v116_v26  ;;  %v629_v57 = vld [vmem:[#allocation9 + $0x160] sm:$0xff]  ;;  %v630_v59 = vld [vmem:[#allocation9 + $0x168] sm:$0xff] }
  0x3f   :  { %10134 = vmatmul.mubr.msk.bf16.vlgmr.msra.gmra.mxu1 %vm149_vm1, %v116_v26  ;;  %401 = vmatpush1.bf16.msra.mxu0 %v383_v30  ;;  %v10194_v62 = vcombine.high %v625_v56, %v629_v57  ;;  %v10196_v63 = vcombine.high %v626_v58, %v630_v59  ;;  %v617_v1 = vld [vmem:[#allocation9 + $0x100] sm:$0xff]  ;;  %v618_v3 = vld [vmem:[#allocation9 + $0x108] sm:$0xff]  ;;  %v10193_v5 = vcombine.low %v625_v56, %v629_v57  ;;  %p11643_p9 = por %p11642_p8, %p11641_p7 }
  0x40   :  { %208 = vmatprep.mubr.bf16.mxu0 %v14690_v0  ;;  %319 = vmatprep.mubr.bf16.mxu1 %v14690_v0  ;;  %v621_v2 = vld [vmem:[#allocation9 + $0x120] sm:$0xff]  ;;  %v622_v4 = vld [vmem:[#allocation9 + $0x128] sm:$0xff]  ;;  %v10195_v6 = vcombine.low %v626_v58, %v630_v59 }
  0x41   :  { %402 = vmatprep.subr.bf16.mxu0 %v10138_v31  ;;  %512 = vmatpush1.bf16.msra.mxu1 %v494_v34  ;;  %v10186_v7 = vcombine.high %v617_v1, %v621_v2  ;;  %v10188_v8 = vcombine.high %v618_v3, %v622_v4  ;;  %v609_v9 = vld [vmem:[#allocation9 + $0xc0] sm:$0xff]  ;;  %v610_v11 = vld [vmem:[#allocation9 + $0xc8] sm:$0xff]  ;;  %v10185_v13 = vcombine.low %v617_v1, %v621_v2  ;;  %p11644_p10 = pnand %p11643_p9, %p11637_p6 }
  0x42   :  { %513 = vmatprep.subr.bf16.mxu1 %v10146_v35  ;;  %v613_v10 = vld [vmem:[#allocation9 + $0xe0] sm:$0xff]  ;;  %v614_v12 = vld [vmem:[#allocation9 + $0xe8] sm:$0xff]  ;;  %v10187_v14 = vcombine.low %v618_v3, %v622_v4 }
  0x43   :  { %403 = vmatpush1.bf16.msra.mxu0 %v10137_v38  ;;  %v10178_v15 = vcombine.high %v609_v9, %v613_v10  ;;  %v10180_v16 = vcombine.high %v610_v11, %v614_v12  ;;  %v601_v17 = vld [vmem:[#allocation9 + $0x80] sm:$0xff]  ;;  %v602_v19 = vld [vmem:[#allocation9 + $0x88] sm:$0xff]  ;;  %v10177_v21 = vcombine.low %v609_v9, %v613_v10  ;;  %v10179_v22 = vcombine.low %v610_v11, %v614_v12 }
  0x44   :  { %1353 = vmatprep.subr.bf16.mxu0 %v10210_v39  ;;  %v605_v18 = vld [vmem:[#allocation9 + $0xa0] sm:$0xff]  ;;  %v606_v20 = vld [vmem:[#allocation9 + $0xa8] sm:$0xff] }
  0x45   :  { %514 = vmatpush1.bf16.msra.mxu1 %v10145_v40  ;;  %v10170_v23 = vcombine.high %v601_v17, %v605_v18  ;;  %v10172_v24 = vcombine.high %v602_v19, %v606_v20  ;;  %v593_v25 = vld [vmem:[#allocation9 + $0x40] sm:$0xff]  ;;  %v594_v27 = vld [vmem:[#allocation9 + $0x48] sm:$0xff]  ;;  %v10169_v29 = vcombine.low %v601_v17, %v605_v18  ;;  %v10171_v30 = vcombine.low %v602_v19, %v606_v20 }
  0x46   :  { %10127 = vmatmul.mubr.msk.bf16.gmra.mxu0 %vm149_vm1, %v117_v43  ;;  %1394 = vmatprep.subr.bf16.mxu1 %v10212_v44  ;;  %v598_v28 = vld [vmem:[#allocation9 + $0x68] sm:$0xff]  ;;  %v585_v33 = vld [vmem:[#allocation9] sm:$0xff] }
  0x47   :  { %10135 = vmatmul.mubr.msk.bf16.gmra.mxu1 %vm149_vm1, %v117_v43  ;;  %218 = vmatprep.mubr.bf16.mxu0 %v14690_v0  ;;  %v10164_v32 = vcombine.high %v594_v27, %v598_v28  ;;  %v589_v34 = vld [vmem:[#allocation9 + $0x20] sm:$0xff]  ;;  %v586_v35 = vld [vmem:[#allocation9 + $0x8] sm:$0xff]  ;;  %v10163_v38 = vcombine.low %v594_v27, %v598_v28 }
  0x48   :  { %329 = vmatprep.mubr.bf16.mxu1 %v14690_v0  ;;  %v590_v36 = vld [vmem:[#allocation9 + $0x28] sm:$0xff]  ;;  %v10154_v39 = vcombine.high %v585_v33, %v589_v34  ;;  %v705_v41 = vld [vmem:[#allocation9 + $0x3c0] sm:$0xff]  ;;  %v10153_v45 = vcombine.low %v585_v33, %v589_v34 }
  0x49   :  { %v10156_v40 = vcombine.high %v586_v35, %v590_v36  ;;  %v709_v42 = vld [vmem:[#allocation9 + $0x3e0] sm:$0xff]  ;;  %v710_v44 = vld [vmem:[#allocation9 + $0x3e8] sm:$0xff]  ;;  %v10155_v46 = vcombine.low %v586_v35, %v590_v36 }
  0x4a   :  { %v697_v49 = vld [vmem:[#allocation9 + $0x380] sm:$0xff]  ;;  %v698_v51 = vld [vmem:[#allocation9 + $0x388] sm:$0xff] }
  0x4b   :  { %v701_v50 = vld [vmem:[#allocation9 + $0x3a0] sm:$0xff]  ;;  %v690_v59 = vld [vmem:[#allocation9 + $0x348] sm:$0xff] }
  0x4c   :  { %v689_v57 = vld [vmem:[#allocation9 + $0x340] sm:$0xff]  ;;  %v682_v4 = vld [vmem:[#allocation9 + $0x308] sm:$0xff] }
  0x4d   :  { %v693_v58 = vld [vmem:[#allocation9 + $0x360] sm:$0xff]  ;;  %v674_v12 = vld [vmem:[#allocation9 + $0x2c8] sm:$0xff] }
  0x4e   :  { %10128 = vmatmul.mubr.msk.bf16.gmra.mxu0 %vm149_vm1, %v11838_v47  ;;  %v681_v2 = vld [vmem:[#allocation9 + $0x300] sm:$0xff]  ;;  %v666_v20 = vld [vmem:[#allocation9 + $0x288] sm:$0xff] }
  0x4f   :  { %10136 = vmatmul.mubr.msk.bf16.gmra.mxu1 %vm149_vm1, %v11838_v47  ;;  %420 = vmatprep.mubr.bf16.mxu0 %v14690_v0  ;;  %v685_v3 = vld [vmem:[#allocation9 + $0x320] sm:$0xff]  ;;  %v658_v28 = vld [vmem:[#allocation9 + $0x248] sm:$0xff] }
  0x50   :  { %531 = vmatprep.mubr.bf16.mxu1 %v14690_v0  ;;  %v673_v10 = vld [vmem:[#allocation9 + $0x2c0] sm:$0xff]  ;;  %v650_v36 = vld [vmem:[#allocation9 + $0x208] sm:$0xff] }
  0x51   :  { %v677_v11 = vld [vmem:[#allocation9 + $0x2e0] sm:$0xff] }
  0x52   :  { %v665_v18 = vld [vmem:[#allocation9 + $0x280] sm:$0xff] }
  0x53   :  { %v669_v19 = vld [vmem:[#allocation9 + $0x2a0] sm:$0xff] }
  0x54   :  { %v661_v27 = vld [vmem:[#allocation9 + $0x260] sm:$0xff] }
  0x55   :  { %v649_v34 = vld [vmem:[#allocation9 + $0x200] sm:$0xff] }
  0x56   :  { %10142 = vmatmul.mubr.msk.bf16.vlgmr.msra.gmra.mxu0 %vm149_vm1, %v116_v26  ;;  %v653_v35 = vld [vmem:[#allocation9 + $0x220] sm:$0xff] }
  0x57   :  { %10150 = vmatmul.mubr.msk.bf16.vlgmr.msra.gmra.mxu1 %vm149_vm1, %v116_v26  ;;  %1354 = vmatpush1.bf16.msra.mxu0 %v10209_v52  ;;  %v597_v26 = vld [vmem:[#allocation9 + $0x60] sm:$0xff]  ;;  %v702_v52 = vld [vmem:[#allocation9 + $0x3a8] sm:$0xff] }
  0x58   :  { %1395 = vmatpush1.bf16.msra.mxu1 %v10211_v53  ;;  %1355 = vmatprep.subr.bf16.mxu0 %v10202_v54  ;;  %v10162_v31 = vcombine.high %v593_v25, %v597_v26  ;;  %v10161_v37 = vcombine.low %v593_v25, %v597_v26  ;;  %v10273_v53 = vcombine.low %v705_v41, %v709_v42  ;;  %v657_v26 = vld [vmem:[#allocation9 + $0x240] sm:$0xff] }
  0x59   :  { %1396 = vmatprep.subr.bf16.mxu1 %v10204_v55  ;;  %430 = vmatprep.mubr.bf16.mxu0 %v14690_v0  ;;  %v10266_v55 = vcombine.high %v697_v49, %v701_v50  ;;  %v10268_v56 = vcombine.high %v698_v51, %v702_v52 }
  0x5a   :  { %541 = vmatprep.mubr.bf16.mxu1 %v14690_v0 }
  0x5b   :  { %1356 = vmatpush1.bf16.msra.mxu0 %v10201_v60  ;;  %v694_v60 = vld [vmem:[#allocation9 + $0x368] sm:$0xff] }
  0x5c   :  { %1397 = vmatpush1.bf16.msra.mxu1 %v10203_v61  ;;  %1357 = vmatprep.subr.bf16.mxu0 %v10194_v62  ;;  %v10265_v61 = vcombine.low %v697_v49, %v701_v50  ;;  %v10267_v62 = vcombine.low %v698_v51, %v702_v52  ;;  %v10260_v1 = vcombine.high %v690_v59, %v694_v60  ;;  %v635_v50 = vld [vmem:[#allocation9 + $0x190] sm:$0xff]  ;;  %v636_v52 = vld [vmem:[#allocation9 + $0x198] sm:$0xff] }
  0x5d   :  { %1398 = vmatprep.subr.bf16.mxu1 %v10196_v63  ;;  %v10258_v63 = vcombine.high %v689_v57, %v693_v58  ;;  %v639_v51 = vld [vmem:[#allocation9 + $0x1b0] sm:$0xff] }
  0x5e   :  { %10143 = vmatmul.mubr.msk.bf16.gmra.mxu0 %vm149_vm1, %v117_v43 }
  0x5f   :  { %10151 = vmatmul.mubr.msk.bf16.gmra.mxu1 %vm149_vm1, %v117_v43  ;;  %1358 = vmatpush1.bf16.msra.mxu0 %v10193_v5  ;;  %v706_v43 = vld [vmem:[#allocation9 + $0x3c8] sm:$0xff] }
  0x60   :  { %1399 = vmatpush1.bf16.msra.mxu1 %v10195_v6  ;;  %1359 = vmatprep.subr.bf16.mxu0 %v10186_v7  ;;  %v10276_v48 = vcombine.high %v706_v43, %v710_v44  ;;  %v10275_v54 = vcombine.low %v706_v43, %v710_v44  ;;  %v686_v5 = vld [vmem:[#allocation9 + $0x328] sm:$0xff]  ;;  %v10257_v6 = vcombine.low %v689_v57, %v693_v58  ;;  %v647_v43 = vld [vmem:[#allocation9 + $0x1f0] sm:$0xff]  ;;  %v644_v44 = vld [vmem:[#allocation9 + $0x1d8] sm:$0xff] }
  0x61   :  { %1400 = vmatprep.subr.bf16.mxu1 %v10188_v8  ;;  %440 = vmatprep.mubr.bf16.mxu0 %v14690_v0  ;;  %v10259_v7 = vcombine.low %v690_v59, %v694_v60  ;;  %v10250_v8 = vcombine.high %v681_v2, %v685_v3  ;;  %v10252_v9 = vcombine.high %v682_v4, %v686_v5  ;;  %v627_v58 = vld [vmem:[#allocation9 + $0x150] sm:$0xff]  ;;  %v628_v60 = vld [vmem:[#allocation9 + $0x158] sm:$0xff] }
  0x62   :  { %551 = vmatprep.mubr.bf16.mxu1 %v14690_v0  ;;  %v631_v59 = vld [vmem:[#allocation9 + $0x170] sm:$0xff] }
  0x63   :  { %1360 = vmatpush1.bf16.msra.mxu0 %v10185_v13  ;;  %v678_v13 = vld [vmem:[#allocation9 + $0x2e8] sm:$0xff] }
  0x64   :  { %1401 = vmatpush1.bf16.msra.mxu1 %v10187_v14  ;;  %1361 = vmatprep.subr.bf16.mxu0 %v10178_v15  ;;  %v10249_v14 = vcombine.low %v681_v2, %v685_v3  ;;  %v10251_v15 = vcombine.low %v682_v4, %v686_v5  ;;  %v10244_v17 = vcombine.high %v674_v12, %v678_v13  ;;  %v619_v3 = vld [vmem:[#allocation9 + $0x110] sm:$0xff]  ;;  %v620_v5 = vld [vmem:[#allocation9 + $0x118] sm:$0xff] }
  0x65   :  { %1402 = vmatprep.subr.bf16.mxu1 %v10180_v16  ;;  %v10242_v16 = vcombine.high %v673_v10, %v677_v11  ;;  %v623_v4 = vld [vmem:[#allocation9 + $0x130] sm:$0xff] }
  0x66   :  { %10144 = vmatmul.mubr.msk.bf16.gmra.mxu0 %vm149_vm1, %v11838_v47 }
  0x67   :  { %10152 = vmatmul.mubr.msk.bf16.gmra.mxu1 %vm149_vm1, %v11838_v47  ;;  %1362 = vmatpush1.bf16.msra.mxu0 %v10177_v21  ;;  %v10274_v47 = vcombine.high %v705_v41, %v709_v42  ;;  %v670_v21 = vld [vmem:[#allocation9 + $0x2a8] sm:$0xff]  ;;  %v643_v42 = vld [vmem:[#allocation9 + $0x1d0] sm:$0xff] }
  0x68   :  { %1403 = vmatpush1.bf16.msra.mxu1 %v10179_v22  ;;  %1363 = vmatprep.subr.bf16.mxu0 %v10170_v23  ;;  %v10241_v22 = vcombine.low %v673_v10, %v677_v11  ;;  %v10243_v23 = vcombine.low %v674_v12, %v678_v13  ;;  %v10236_v25 = vcombine.high %v666_v20, %v670_v21  ;;  %v611_v11 = vld [vmem:[#allocation9 + $0xd0] sm:$0xff]  ;;  %v612_v13 = vld [vmem:[#allocation9 + $0xd8] sm:$0xff] }
  0x69   :  { %1404 = vmatprep.subr.bf16.mxu1 %v10172_v24  ;;  %1385 = vmatprep.mubr.bf16.mxu0 %v14690_v0  ;;  %v10234_v24 = vcombine.high %v665_v18, %v669_v19  ;;  %v615_v12 = vld [vmem:[#allocation9 + $0xf0] sm:$0xff] }
  0x6a   :  { %1426 = vmatprep.mubr.bf16.mxu1 %v14690_v0 }
  0x6b   :  { %1364 = vmatpush1.bf16.msra.mxu0 %v10169_v29  ;;  %v662_v29 = vld [vmem:[#allocation9 + $0x268] sm:$0xff] }
  0x6c   :  { %1405 = vmatpush1.bf16.msra.mxu1 %v10171_v30  ;;  %1365 = vmatprep.subr.bf16.mxu0 %v10162_v31  ;;  %v10233_v30 = vcombine.low %v665_v18, %v669_v19  ;;  %v10235_v31 = vcombine.low %v666_v20, %v670_v21  ;;  %v10228_v33 = vcombine.high %v658_v28, %v662_v29  ;;  %v603_v19 = vld [vmem:[#allocation9 + $0x90] sm:$0xff]  ;;  %v604_v21 = vld [vmem:[#allocation9 + $0x98] sm:$0xff] }
  0x6d   :  { %1406 = vmatprep.subr.bf16.mxu1 %v10164_v32  ;;  %v10226_v32 = vcombine.high %v657_v26, %v661_v27  ;;  %v607_v20 = vld [vmem:[#allocation9 + $0xb0] sm:$0xff] }
  0x6f   :  { %1366 = vmatpush1.bf16.msra.mxu0 %v10161_v37  ;;  %v654_v37 = vld [vmem:[#allocation9 + $0x228] sm:$0xff] }
  0x70   :  { %1407 = vmatpush1.bf16.msra.mxu1 %v10163_v38  ;;  %1367 = vmatprep.subr.bf16.mxu0 %v10154_v39  ;;  %v10225_v38 = vcombine.low %v657_v26, %v661_v27  ;;  %v10227_v39 = vcombine.low %v658_v28, %v662_v29  ;;  %v10220_v41 = vcombine.high %v650_v36, %v654_v37  ;;  %v595_v27 = vld [vmem:[#allocation9 + $0x50] sm:$0xff]  ;;  %v596_v29 = vld [vmem:[#allocation9 + $0x58] sm:$0xff] }
  0x71   :  { %1408 = vmatprep.subr.bf16.mxu1 %v10156_v40  ;;  %v10218_v40 = vcombine.high %v649_v34, %v653_v35  ;;  %v599_v28 = vld [vmem:[#allocation9 + $0x70] sm:$0xff] }
  0x73   :  { %1368 = vmatpush1.bf16.msra.mxu0 %v10153_v45  ;;  %v648_v45 = vld [vmem:[#allocation9 + $0x1f8] sm:$0xff] }
  0x74   :  { %1409 = vmatpush1.bf16.msra.mxu1 %v10155_v46  ;;  %1369 = vmatprep.subr.bf16.mxu0 %v10274_v47  ;;  %v10217_v46 = vcombine.low %v649_v34, %v653_v35  ;;  %v10219_v47 = vcombine.low %v650_v36, %v654_v37  ;;  %v10216_v49 = vcombine.high %v644_v44, %v648_v45  ;;  %v587_v35 = vld [vmem:[#allocation9 + $0x10] sm:$0xff]  ;;  %v588_v37 = vld [vmem:[#allocation9 + $0x18] sm:$0xff] }
  0x75   :  { %1410 = vmatprep.subr.bf16.mxu1 %v10276_v48  ;;  %v10214_v48 = vcombine.high %v643_v42, %v647_v43  ;;  %v591_v36 = vld [vmem:[#allocation9 + $0x30] sm:$0xff] }
  0x77   :  { %1370 = vmatpush2.bf16.msra.mxu0 %v10273_v53  ;;  %v640_v53 = vld [vmem:[#allocation9 + $0x1b8] sm:$0xff] }
  0x78   :  { %1411 = vmatpush2.bf16.msra.mxu1 %v10275_v54  ;;  %1371 = vmatprep.subr.bf16.mxu0 %v10266_v55  ;;  %v10213_v54 = vcombine.low %v643_v42, %v647_v43  ;;  %v10215_v55 = vcombine.low %v644_v44, %v648_v45  ;;  %v10208_v57 = vcombine.high %v636_v52, %v640_v53  ;;  %v707_v43 = vld [vmem:[#allocation9 + $0x3d0] sm:$0xff]  ;;  %v708_v45 = vld [vmem:[#allocation9 + $0x3d8] sm:$0xff] }
  0x79   :  { %1412 = vmatprep.subr.bf16.mxu1 %v10268_v56  ;;  %v10206_v56 = vcombine.high %v635_v50, %v639_v51  ;;  %v711_v44 = vld [vmem:[#allocation9 + $0x3f0] sm:$0xff] }
  0x7b   :  { %1372 = vmatpush2.bf16.msra.mxu0 %v10265_v61  ;;  %v632_v61 = vld [vmem:[#allocation9 + $0x178] sm:$0xff] }
  0x7c   :  { %1413 = vmatpush2.bf16.msra.mxu1 %v10267_v62  ;;  %1373 = vmatprep.subr.bf16.mxu0 %v10258_v63  ;;  %v10205_v62 = vcombine.low %v635_v50, %v639_v51  ;;  %v10207_v63 = vcombine.low %v636_v52, %v640_v53  ;;  %v10200_v2 = vcombine.high %v628_v60, %v632_v61  ;;  %v699_v51 = vld [vmem:[#allocation9 + $0x390] sm:$0xff]  ;;  %v700_v53 = vld [vmem:[#allocation9 + $0x398] sm:$0xff] }
  0x7d   :  { %1414 = vmatprep.subr.bf16.mxu1 %v10260_v1  ;;  %v10198_v1 = vcombine.high %v627_v58, %v631_v59  ;;  %v703_v52 = vld [vmem:[#allocation9 + $0x3b0] sm:$0xff] }
  0x7f   :  { %1374 = vmatpush2.bf16.msra.mxu0 %v10257_v6  ;;  %v624_v6 = vld [vmem:[#allocation9 + $0x138] sm:$0xff] }
  0x80   :  { %1415 = vmatpush2.bf16.msra.mxu1 %v10259_v7  ;;  %1375 = vmatprep.subr.bf16.mxu0 %v10250_v8  ;;  %v10197_v7 = vcombine.low %v627_v58, %v631_v59  ;;  %v10199_v8 = vcombine.low %v628_v60, %v632_v61  ;;  %v10192_v10 = vcombine.high %v620_v5, %v624_v6  ;;  %v691_v59 = vld [vmem:[#allocation9 + $0x350] sm:$0xff]  ;;  %v692_v61 = vld [vmem:[#allocation9 + $0x358] sm:$0xff] }
  0x81   :  { %1416 = vmatprep.subr.bf16.mxu1 %v10252_v9  ;;  %v10190_v9 = vcombine.high %v619_v3, %v623_v4  ;;  %v695_v60 = vld [vmem:[#allocation9 + $0x370] sm:$0xff] }
  0x83   :  { %1376 = vmatpush2.bf16.msra.mxu0 %v10249_v14  ;;  %v616_v14 = vld [vmem:[#allocation9 + $0xf8] sm:$0xff] }
  0x84   :  { %1417 = vmatpush2.bf16.msra.mxu1 %v10251_v15  ;;  %1377 = vmatprep.subr.bf16.mxu0 %v10242_v16  ;;  %v10189_v15 = vcombine.low %v619_v3, %v623_v4  ;;  %v10191_v16 = vcombine.low %v620_v5, %v624_v6  ;;  %v10184_v18 = vcombine.high %v612_v13, %v616_v14  ;;  %v683_v4 = vld [vmem:[#allocation9 + $0x310] sm:$0xff]  ;;  %v684_v6 = vld [vmem:[#allocation9 + $0x318] sm:$0xff] }
  0x85   :  { %1418 = vmatprep.subr.bf16.mxu1 %v10244_v17  ;;  %v10182_v17 = vcombine.high %v611_v11, %v615_v12  ;;  %v687_v5 = vld [vmem:[#allocation9 + $0x330] sm:$0xff] }
  0x87   :  { %1378 = vmatpush2.bf16.msra.mxu0 %v10241_v22  ;;  %v608_v22 = vld [vmem:[#allocation9 + $0xb8] sm:$0xff] }
  0x88   :  { %1419 = vmatpush2.bf16.msra.mxu1 %v10243_v23  ;;  %1379 = vmatprep.subr.bf16.mxu0 %v10234_v24  ;;  %v10181_v23 = vcombine.low %v611_v11, %v615_v12  ;;  %v10183_v24 = vcombine.low %v612_v13, %v616_v14  ;;  %v10176_v26 = vcombine.high %v604_v21, %v608_v22  ;;  %v675_v12 = vld [vmem:[#allocation9 + $0x2d0] sm:$0xff]  ;;  %v676_v14 = vld [vmem:[#allocation9 + $0x2d8] sm:$0xff] }
  0x89   :  { %1420 = vmatprep.subr.bf16.mxu1 %v10236_v25  ;;  %v10174_v25 = vcombine.high %v603_v19, %v607_v20  ;;  %v679_v13 = vld [vmem:[#allocation9 + $0x2f0] sm:$0xff] }
  0x8b   :  { %1380 = vmatpush2.bf16.msra.mxu0 %v10233_v30  ;;  %v600_v30 = vld [vmem:[#allocation9 + $0x78] sm:$0xff] }
  0x8c   :  { %1421 = vmatpush2.bf16.msra.mxu1 %v10235_v31  ;;  %1381 = vmatprep.subr.bf16.mxu0 %v10226_v32  ;;  %v10173_v31 = vcombine.low %v603_v19, %v607_v20  ;;  %v10175_v32 = vcombine.low %v604_v21, %v608_v22  ;;  %v10168_v34 = vcombine.high %v596_v29, %v600_v30  ;;  %v667_v20 = vld [vmem:[#allocation9 + $0x290] sm:$0xff]  ;;  %v668_v22 = vld [vmem:[#allocation9 + $0x298] sm:$0xff] }
  0x8d   :  { %1422 = vmatprep.subr.bf16.mxu1 %v10228_v33  ;;  %v10166_v33 = vcombine.high %v595_v27, %v599_v28  ;;  %v671_v21 = vld [vmem:[#allocation9 + $0x2b0] sm:$0xff] }
  0x8f   :  { %1382 = vmatpush2.bf16.msra.mxu0 %v10225_v38  ;;  %v592_v38 = vld [vmem:[#allocation9 + $0x38] sm:$0xff] }
  0x90   :  { %1423 = vmatpush2.bf16.msra.mxu1 %v10227_v39  ;;  %1383 = vmatprep.subr.bf16.mxu0 %v10218_v40  ;;  %v10165_v39 = vcombine.low %v595_v27, %v599_v28  ;;  %v10167_v40 = vcombine.low %v596_v29, %v600_v30  ;;  %v10160_v42 = vcombine.high %v588_v37, %v592_v38  ;;  %v659_v28 = vld [vmem:[#allocation9 + $0x250] sm:$0xff]  ;;  %v660_v30 = vld [vmem:[#allocation9 + $0x258] sm:$0xff] }
  0x91   :  { %1424 = vmatprep.subr.bf16.mxu1 %v10220_v41  ;;  %v10158_v41 = vcombine.high %v587_v35, %v591_v36  ;;  %v663_v29 = vld [vmem:[#allocation9 + $0x270] sm:$0xff] }
  0x93   :  { %1384 = vmatpush2.bf16.msra.mxu0 %v10217_v46  ;;  %v712_v46 = vld [vmem:[#allocation9 + $0x3f8] sm:$0xff] }
  0x94   :  { %1425 = vmatpush2.bf16.msra.mxu1 %v10219_v47  ;;  %1435 = vmatprep.subr.bf16.mxu0 %v10214_v48  ;;  %v10157_v47 = vcombine.low %v587_v35, %v591_v36  ;;  %v10159_v48 = vcombine.low %v588_v37, %v592_v38  ;;  %v10280_v50 = vcombine.high %v708_v45, %v712_v46  ;;  %v651_v36 = vld [vmem:[#allocation9 + $0x210] sm:$0xff]  ;;  %v652_v38 = vld [vmem:[#allocation9 + $0x218] sm:$0xff] }
  0x95   :  { %1476 = vmatprep.subr.bf16.mxu1 %v10216_v49  ;;  %v10278_v49 = vcombine.high %v707_v43, %v711_v44  ;;  %v655_v37 = vld [vmem:[#allocation9 + $0x230] sm:$0xff] }
  0x96   :  { %1386 = vmatmul.mubr.bf16.vlgmr.msra.gmra.mxu0 %v14690_v0 }
  0x97   :  { %1427 = vmatmul.mubr.bf16.vlgmr.msra.gmra.mxu1 %v14690_v0  ;;  %1436 = vmatpush1.bf16.msra.mxu0 %v10213_v54  ;;  %v704_v54 = vld [vmem:[#allocation9 + $0x3b8] sm:$0xff] }
  0x98   :  { %1477 = vmatpush1.bf16.msra.mxu1 %v10215_v55  ;;  %1437 = vmatprep.subr.bf16.mxu0 %v10206_v56  ;;  %v10277_v55 = vcombine.low %v707_v43, %v711_v44  ;;  %v10279_v56 = vcombine.low %v708_v45, %v712_v46  ;;  %v10272_v58 = vcombine.high %v700_v53, %v704_v54  ;;  %v1635_v46 = vld [vmem:[#allocation9 + $0x1c0] sm:$0xff] }
  0x99   :  { %1478 = vmatprep.subr.bf16.mxu1 %v10208_v57  ;;  %1467 = vmatprep.mubr.bf16.mxu0 %v14690_v0  ;;  %v10270_v57 = vcombine.high %v699_v51, %v703_v52  ;;  %v10221_v44 = vcombine.low %v651_v36, %v655_v37 }
  0x9a   :  { %1508 = vmatprep.mubr.bf16.mxu1 %v14690_v0 }
  0x9b   :  { %1438 = vmatpush1.bf16.msra.mxu0 %v10205_v62  ;;  %v696_v62 = vld [vmem:[#allocation9 + $0x378] sm:$0xff] }
  0x9c   :  { %1479 = vmatpush1.bf16.msra.mxu1 %v10207_v63  ;;  %1439 = vmatprep.subr.bf16.mxu0 %v10198_v1  ;;  %v10269_v63 = vcombine.low %v699_v51, %v703_v52  ;;  %v10271_v1 = vcombine.low %v700_v53, %v704_v54  ;;  %v10264_v3 = vcombine.high %v692_v61, %v696_v62  ;;  %v1640_v51 = vld [vmem:[#allocation9 + $0x1e8] sm:$0xff]  ;;  %v1627_v52 = vld [vmem:[#allocation9 + $0x180] sm:$0xff] }
  0x9d   :  { %1480 = vmatprep.subr.bf16.mxu1 %v10200_v2  ;;  %v10262_v2 = vcombine.high %v691_v59, %v695_v60  ;;  %v1631_v53 = vld [vmem:[#allocation9 + $0x1a0] sm:$0xff] }
  0x9f   :  { %1440 = vmatpush1.bf16.msra.mxu0 %v10197_v7  ;;  %v688_v7 = vld [vmem:[#allocation9 + $0x338] sm:$0xff] }
  0xa0   :  { %1481 = vmatpush1.bf16.msra.mxu1 %v10199_v8  ;;  %1441 = vmatprep.subr.bf16.mxu0 %v10190_v9  ;;  %v10261_v8 = vcombine.low %v691_v59, %v695_v60  ;;  %v10263_v9 = vcombine.low %v692_v61, %v696_v62  ;;  %v10256_v11 = vcombine.high %v684_v6, %v688_v7  ;;  %v1619_v59 = vld [vmem:[#allocation9 + $0x140] sm:$0xff]  ;;  %v1620_v62 = vld [vmem:[#allocation9 + $0x148] sm:$0xff] }
  0xa1   :  { %1482 = vmatprep.subr.bf16.mxu1 %v10192_v10  ;;  %v10254_v10 = vcombine.high %v683_v4, %v687_v5  ;;  %v1623_v61 = vld [vmem:[#allocation9 + $0x160] sm:$0xff] }
  0xa3   :  { %1442 = vmatpush1.bf16.msra.mxu0 %v10189_v15  ;;  %v680_v15 = vld [vmem:[#allocation9 + $0x2f8] sm:$0xff] }
  0xa4   :  { %1483 = vmatpush1.bf16.msra.mxu1 %v10191_v16  ;;  %1443 = vmatprep.subr.bf16.mxu0 %v10182_v17  ;;  %v10253_v16 = vcombine.low %v683_v4, %v687_v5  ;;  %v10255_v17 = vcombine.low %v684_v6, %v688_v7  ;;  %v10248_v19 = vcombine.high %v676_v14, %v680_v15  ;;  %v1611_v6 = vld [vmem:[#allocation9 + $0x100] sm:$0xff] }
  0xa5   :  { %1484 = vmatprep.subr.bf16.mxu1 %v10184_v18  ;;  %v10246_v18 = vcombine.high %v675_v12, %v679_v13  ;;  %v11887_v4 = vcombine.high %v1619_v59, %v1623_v61  ;;  %v1615_v7 = vld [vmem:[#allocation9 + $0x120] sm:$0xff] }
  0xa7   :  { %1444 = vmatpush1.bf16.msra.mxu0 %v10181_v23  ;;  %v672_v23 = vld [vmem:[#allocation9 + $0x2b8] sm:$0xff] }
  0xa8   :  { %1485 = vmatpush1.bf16.msra.mxu1 %v10183_v24  ;;  %1445 = vmatprep.subr.bf16.mxu0 %v10174_v25  ;;  %v10245_v24 = vcombine.low %v675_v12, %v679_v13  ;;  %v10247_v25 = vcombine.low %v676_v14, %v680_v15  ;;  %v10240_v27 = vcombine.high %v668_v22, %v672_v23  ;;  %v1603_v15 = vld [vmem:[#allocation9 + $0xc0] sm:$0xff] }
  0xa9   :  { %1486 = vmatprep.subr.bf16.mxu1 %v10176_v26  ;;  %v10238_v26 = vcombine.high %v667_v20, %v671_v21  ;;  %v11899_v13 = vcombine.high %v1611_v6, %v1615_v7 }
  0xab   :  { %1446 = vmatpush1.bf16.msra.mxu0 %v10173_v31  ;;  %v664_v31 = vld [vmem:[#allocation9 + $0x278] sm:$0xff] }
  0xac   :  { %1487 = vmatpush1.bf16.msra.mxu1 %v10175_v32  ;;  %1447 = vmatprep.subr.bf16.mxu0 %v10166_v33  ;;  %v10237_v32 = vcombine.low %v667_v20, %v671_v21  ;;  %v10239_v33 = vcombine.low %v668_v22, %v672_v23  ;;  %v10232_v35 = vcombine.high %v660_v30, %v664_v31  ;;  %v244_v20 = vld [vmem:[#allocation7 + $0x2] sm:$0x3]  ;;  %v122_v22 = vld [vmem:[#allocation7] sm:$0x3] }
  0xad   :  { %1488 = vmatprep.subr.bf16.mxu1 %v10168_v34  ;;  %v10230_v34 = vcombine.high %v659_v28, %v663_v29  ;;  %v11907_v21 = vcombine.low %v1611_v6, %v1615_v7 }
  0xaf   :  { %1448 = vmatpush1.bf16.msra.mxu0 %v10165_v39  ;;  %v656_v39 = vld [vmem:[#allocation9 + $0x238] sm:$0xff] }
  0xb0   :  { %1489 = vmatpush1.bf16.msra.mxu1 %v10167_v40  ;;  %1449 = vmatprep.subr.bf16.mxu0 %v10158_v41  ;;  %v10229_v40 = vcombine.low %v659_v28, %v663_v29  ;;  %v10231_v41 = vcombine.low %v660_v30, %v664_v31  ;;  %v10224_v43 = vcombine.high %v652_v38, %v656_v39  ;;  %v1595_v28 = vld [vmem:[#allocation9 + $0x80] sm:$0xff] }
  0xb1   :  { %1490 = vmatprep.subr.bf16.mxu1 %v10160_v42  ;;  %v10222_v42 = vcombine.high %v651_v36, %v655_v37  ;;  %v10223_v45 = vcombine.low %v652_v38, %v656_v39  ;;  %v1599_v29 = vld [vmem:[#allocation9 + $0xa0] sm:$0xff] }
  0xb3   :  { %1450 = vmatpush1.bf16.msra.mxu0 %v10157_v47  ;;  %v1639_v47 = vld [vmem:[#allocation9 + $0x1e0] sm:$0xff] }
  0xb4   :  { %1491 = vmatpush1.bf16.msra.mxu1 %v10159_v48  ;;  %1451 = vmatprep.subr.bf16.mxu0 %v10278_v49  ;;  %v1636_v48 = vld [vmem:[#allocation9 + $0x1c8] sm:$0xff]  ;;  %v11866_v49 = vcombine.low %v1635_v46, %v1639_v47 }
  0xb5   :  { %1492 = vmatprep.subr.bf16.mxu1 %v10280_v50  ;;  %v11868_v50 = vcombine.high %v1635_v46, %v1639_v47  ;;  %v11870_v54 = vcombine.low %v1636_v48, %v1640_v51 }
  0xb7   :  { %1452 = vmatpush2.bf16.msra.mxu0 %v10277_v55  ;;  %v11872_v55 = vcombine.high %v1636_v48, %v1640_v51  ;;  %v11959_v51 = vcombine.low %v1595_v28, %v1599_v29 }
  0xb8   :  { %1493 = vmatpush2.bf16.msra.mxu1 %v10279_v56  ;;  %1453 = vmatprep.subr.bf16.mxu0 %v10270_v57  ;;  %v11874_v56 = vcombine.high %v1627_v52, %v1631_v53  ;;  %v1628_v57 = vld [vmem:[#allocation9 + $0x188] sm:$0xff] }
  0xb9   :  { %1494 = vmatprep.subr.bf16.mxu1 %v10272_v58  ;;  %v1632_v58 = vld [vmem:[#allocation9 + $0x1a8] sm:$0xff] }
  0xba   :  { %v11877_v60 = vcombine.high %v1628_v57, %v1632_v58 }
  0xbb   :  { %1454 = vmatpush2.bf16.msra.mxu0 %v10269_v63  ;;  %v1624_v63 = vld [vmem:[#allocation9 + $0x168] sm:$0xff] }
  0xbc   :  { %1495 = vmatpush2.bf16.msra.mxu1 %v10271_v1  ;;  %1455 = vmatprep.subr.bf16.mxu0 %v10262_v2  ;;  %v124_v1 = vlaneseq  ;;  %v11881_v2 = vcombine.low %v1627_v52, %v1631_v53  ;;  %v11890_v5 = vcombine.high %v1620_v62, %v1624_v63  ;;  %v11897_v12 = vcombine.low %v1620_v62, %v1624_v63 }
  0xbd   :  { %1496 = vmatprep.subr.bf16.mxu1 %v10264_v3  ;;  %v11885_v3 = vcombine.low %v1628_v57, %v1632_v58 }
  0xbf   :  { %1456 = vmatpush2.bf16.msra.mxu0 %v10261_v8  ;;  %v1612_v8 = vld [vmem:[#allocation9 + $0x108] sm:$0xff] }
  0xc0   :  { %1497 = vmatpush2.bf16.msra.mxu1 %v10263_v9  ;;  %1457 = vmatprep.subr.bf16.mxu0 %v10254_v10  ;;  %v1616_v9 = vld [vmem:[#allocation9 + $0x128] sm:$0xff]  ;;  %v125_v10 = vshrl.u32 %v124_v1, 7 }
  0xc1   :  { %1498 = vmatprep.subr.bf16.mxu1 %v10256_v11  ;;  %v11893_v11 = vcombine.low %v1619_v59, %v1623_v61  ;;  %v11902_v14 = vcombine.high %v1612_v8, %v1616_v9  ;;  %v11911_v23 = vcombine.low %v1612_v8, %v1616_v9 }
  0xc2   :  { %v11922_v30 = vsub.s32 1, %v125_v10 }
  0xc3   :  { %1458 = vmatpush2.bf16.msra.mxu0 %v10253_v16  ;;  %v1607_v16 = vld [vmem:[#allocation9 + $0xe0] sm:$0xff] }
  0xc4   :  { %1499 = vmatpush2.bf16.msra.mxu1 %v10255_v17  ;;  %1459 = vmatprep.subr.bf16.mxu0 %v10246_v18  ;;  %v1604_v17 = vld [vmem:[#allocation9 + $0xc8] sm:$0xff]  ;;  %15126 = vst [vmem:[#allocation26_spill] sm:$0xff] %v11922_v30  ;;  %v11935_v37 = vcombine.low %v1603_v15, %v1607_v16  ;;  %v11938_v38 = vrot.slane %v244_v20, %v11922_v30 }
  0xc5   :  { %1500 = vmatprep.subr.bf16.mxu1 %v10248_v19  ;;  %v1608_v18 = vld [vmem:[#allocation9 + $0xe8] sm:$0xff]  ;;  %v11904_v19 = vsub.s32 0, %v125_v10 }
  0xc6   :  { %v11942_v39 = vcombine.low %v1604_v17, %v1608_v18 }
  0xc7   :  { %1460 = vmatpush2.bf16.msra.mxu0 %v10245_v24  ;;  %15125 = vst [vmem:[#allocation25_spill] sm:$0xff] %v11904_v19  ;;  %v11913_v24 = vcombine.high %v1603_v15, %v1607_v16  ;;  %v11925_v31 = vrot.slane %v244_v20, %v11904_v19 }
  0xc8   :  { %1501 = vmatpush2.bf16.msra.mxu1 %v10247_v25  ;;  %1461 = vmatprep.subr.bf16.mxu0 %v10238_v26 }
  0xc9   :  { %1502 = vmatprep.subr.bf16.mxu1 %v10240_v27  ;;  %v11920_v27 = vcombine.high %v1604_v17, %v1608_v18 }
  0xcb   :  { %1462 = vmatpush2.bf16.msra.mxu0 %v10237_v32  ;;  %v1596_v32 = vld [vmem:[#allocation9 + $0x88] sm:$0xff] }
  0xcc   :  { %1503 = vmatpush2.bf16.msra.mxu1 %v10239_v33  ;;  %1463 = vmatprep.subr.bf16.mxu0 %v10230_v34  ;;  %v1600_v33 = vld [vmem:[#allocation9 + $0xa8] sm:$0xff]  ;;  %v11928_v34 = vrot.slane %v122_v22, %v11904_v19 }
  0xcd   :  { %1504 = vmatprep.subr.bf16.mxu1 %v10232_v35  ;;  %v11969_v57 = vcombine.low %v1596_v32, %v1600_v33 }
  0xcf   :  { %1464 = vmatpush2.bf16.msra.mxu0 %v10229_v40  ;;  %v11944_v40 = vcombine.high %v1595_v28, %v1599_v29 }
  0xd0   :  { %1505 = vmatpush2.bf16.msra.mxu1 %v10231_v41  ;;  %1465 = vmatprep.subr.bf16.mxu0 %v10222_v42 }
  0xd1   :  { %1506 = vmatprep.subr.bf16.mxu1 %v10224_v43  ;;  %v11947_v43 = vcombine.high %v1596_v32, %v1600_v33 }
  0xd3   :  { %1466 = vmatpush2.bf16.msra.mxu0 %v10221_v44  ;;  %v11950_v44 = vrot.slane %v122_v22, %v11922_v30 }
  0xd4   :  { %1507 = vmatpush2.bf16.msra.mxu1 %v10223_v45  ;;  %2347 = vmatprep.subr.bf16.mxu0 %v11868_v50 }
  0xd5   :  { %2388 = vmatprep.subr.bf16.mxu1 %v11872_v55 }
  0xd6   :  { %1468 = vmatmul.mubr.bf16.vlgmr.msra.gmra.mxu0 %v14690_v0 }
  0xd7   :  { %1509 = vmatmul.mubr.bf16.vlgmr.msra.gmra.mxu1 %v14690_v0  ;;  %2348 = vmatpush1.bf16.msra.mxu0 %v11866_v49 }
  0xd8   :  { %2389 = vmatpush1.bf16.msra.mxu1 %v11870_v54  ;;  %2349 = vmatprep.subr.bf16.mxu0 %v11874_v56 }
  0xd9   :  { %2390 = vmatprep.subr.bf16.mxu1 %v11877_v60 }
  0xdb   :  { %2350 = vmatpush1.bf16.msra.mxu0 %v11881_v2 }
  0xdc   :  { %2391 = vmatpush1.bf16.msra.mxu1 %v11885_v3  ;;  %2351 = vmatprep.subr.bf16.mxu0 %v11887_v4 }
  0xdd   :  { %2392 = vmatprep.subr.bf16.mxu1 %v11890_v5 }
  0xdf   :  { %2352 = vmatpush1.bf16.msra.mxu0 %v11893_v11 }
  0xe0   :  { %2393 = vmatpush1.bf16.msra.mxu1 %v11897_v12  ;;  %2353 = vmatprep.subr.bf16.mxu0 %v11899_v13 }
  0xe1   :  { %2394 = vmatprep.subr.bf16.mxu1 %v11902_v14 }
  0xe3   :  { %2354 = vmatpush1.bf16.msra.mxu0 %v11907_v21 }
  0xe4   :  { %2395 = vmatpush1.bf16.msra.mxu1 %v11911_v23  ;;  %2355 = vmatprep.subr.bf16.mxu0 %v11913_v24 }
  0xe5   :  { %2396 = vmatprep.subr.bf16.mxu1 %v11920_v27 }
  0xe7   :  { %2356 = vmatpush1.bf16.msra.mxu0 %v11935_v37 }
  0xe8   :  { %2397 = vmatpush1.bf16.msra.mxu1 %v11942_v39  ;;  %2357 = vmatprep.subr.bf16.mxu0 %v11944_v40 }
  0xe9   :  { %2398 = vmatprep.subr.bf16.mxu1 %v11947_v43 }
  0xeb   :  { %2358 = vmatpush1.bf16.msra.mxu0 %v11959_v51 }
  0xec   :  { %2399 = vmatpush1.bf16.msra.mxu1 %v11969_v57 }
  0xfe   :  { %v11915_v25 = vpop.f32.mrf.mxu0 }
  0xff   :  { %v11917_v26 = vpop.f32.mrf.mxu1 }
 0x100   :  { %v11930_v35 = vpop.f32.mrf.mxu0 }
 0x101   :  { %v11932_v36 = vpop.f32.mrf.mxu1 }
 0x102   :  { %v204_v41 = vpop.f32.mrf.mxu0 }
 0x103   :  { %v315_v42 = vpop.f32.mrf.mxu1  ;;  %v11953_v45 = vadd.f32 %v204_v41, %v11928_v34 }
 0x104   :  { %v11956_v46 = vadd.f32 %v315_v42, %v11925_v31  ;;  %v206_v47 = vpop.f32.mrf.mxu0 }
 0x105   :  { %15127 = vst [vmem:[#allocation27_spill] sm:$0xff] %v11953_v45  ;;  %v317_v48 = vpop.f32.mrf.mxu1  ;;  %v11962_v52 = vadd.f32 %v206_v47, %v11950_v44 }
 0x106   :  { %15128 = vst [vmem:[#allocation28_spill] sm:$0xff] %v11956_v46  ;;  %v11965_v53 = vadd.f32 %v317_v48, %v11938_v38  ;;  %v210_v58 = vpop.f32.mrf.mxu0 }
 0x107   :  { %15129 = vst [vmem:[#allocation29_spill] sm:$0xff] %v11962_v52  ;;  %v321_v59 = vpop.f32.mrf.mxu1  ;;  %v11973_v61 = vadd.f32 %v210_v58, %v11928_v34  ;;  %v1704_v52 = vld [vmem:[#allocation9 + $0x3e8] sm:$0xff] }
 0x108   :  { %15130 = vst [vmem:[#allocation30_spill] sm:$0xff] %v11965_v53  ;;  %v11976_v62 = vadd.f32 %v321_v59, %v11925_v31  ;;  %v212_v63 = vpop.f32.mrf.mxu0 }
 0x109   :  { %15131 = vst [vmem:[#allocation31_spill] sm:$0xff] %v11973_v61  ;;  %v323_v1 = vpop.f32.mrf.mxu1  ;;  %v11980_v6 = vadd.f32 %v212_v63, %v11950_v44 }
 0x10a   :  { %15132 = vst [vmem:[#allocation32_spill] sm:$0xff] %v11976_v62  ;;  %v11983_v7 = vadd.f32 %v323_v1, %v11938_v38  ;;  %v214_v8 = vpop.f32.mrf.mxu0  ;;  %v1703_v62 = vld [vmem:[#allocation9 + $0x3e0] sm:$0xff] }
 0x10b   :  { %15133 = vst [vmem:[#allocation33_spill] sm:$0xff] %v11980_v6  ;;  %v325_v9 = vpop.f32.mrf.mxu1  ;;  %v11987_v10 = vadd.f32 %v214_v8, %v11928_v34 }
 0x10c   :  { %15134 = vst [vmem:[#allocation34_spill] sm:$0xff] %v11983_v7  ;;  %v11990_v15 = vadd.f32 %v325_v9, %v11925_v31  ;;  %v216_v16 = vpop.f32.mrf.mxu0  ;;  %v466_v9 = vld [vmem:[#allocation7 + $0x6] sm:$0x3] }
 0x10d   :  { %15135 = vst [vmem:[#allocation35_spill] sm:$0xff] %v11987_v10  ;;  %v327_v17 = vpop.f32.mrf.mxu1  ;;  %v11993_v18 = vadd.f32 %v216_v16, %v11950_v44 }
 0x10e   :  { %15136 = vst [vmem:[#allocation36_spill] sm:$0xff] %v11990_v15  ;;  %v11996_v20 = vadd.f32 %v327_v17, %v11938_v38  ;;  %v220_v22 = vpop.f32.mrf.mxu0 }
 0x10f   :  { %15137 = vst [vmem:[#allocation37_spill] sm:$0xff] %v11993_v18  ;;  %v331_v28 = vpop.f32.mrf.mxu1  ;;  %v11999_v29 = vadd.f32 %v220_v22, %v11928_v34  ;;  %v1587_v22 = vld [vmem:[#allocation9 + $0x40] sm:$0xff] }
 0x110   :  { %15138 = vst [vmem:[#allocation38_spill] sm:$0xff] %v11996_v20  ;;  %v12002_v32 = vadd.f32 %v331_v28, %v11925_v31  ;;  %v222_v33 = vpop.f32.mrf.mxu0  ;;  %v1591_v28 = vld [vmem:[#allocation9 + $0x60] sm:$0xff] }
 0x111   :  { %15139 = vst [vmem:[#allocation39_spill] sm:$0xff] %v11999_v29  ;;  %v333_v41 = vpop.f32.mrf.mxu1  ;;  %v12005_v42 = vadd.f32 %v222_v33, %v11950_v44  ;;  %v1588_v33 = vld [vmem:[#allocation9 + $0x48] sm:$0xff]  ;;  %v12046_v29 = vrot.slane %v466_v9, %v11922_v30 }
 0x112   :  { %15140 = vst [vmem:[#allocation40_spill] sm:$0xff] %v12002_v32  ;;  %v12008_v47 = vadd.f32 %v333_v41, %v11938_v38  ;;  %v224_v48 = vpop.f32.mrf.mxu0  ;;  %v355_v41 = vld [vmem:[#allocation7 + $0x4] sm:$0x3]  ;;  %v1580_v32 = vld [vmem:[#allocation9 + $0x8] sm:$0xff] }
 0x113   :  { %15141 = vst [vmem:[#allocation41_spill] sm:$0xff] %v12005_v42  ;;  %v335_v58 = vpop.f32.mrf.mxu1  ;;  %v12011_v59 = vadd.f32 %v224_v48, %v11928_v34  ;;  %v12031_v42 = vcombine.low %v1587_v22, %v1591_v28  ;;  %v12050_v18 = vrot.slane %v355_v41, %v11922_v30 }
 0x114   :  { %15142 = vst [vmem:[#allocation42_spill] sm:$0xff] %v12008_v47  ;;  %v12014_v63 = vadd.f32 %v335_v58, %v11925_v31  ;;  %v226_v1 = vpop.f32.mrf.mxu0  ;;  %v1592_v58 = vld [vmem:[#allocation9 + $0x68] sm:$0xff]  ;;  %v12043_v47 = vrot.slane %v355_v41, %v11904_v19 }
 0x115   :  { %15143 = vst [vmem:[#allocation43_spill] sm:$0xff] %v12011_v59  ;;  %v337_v8 = vpop.f32.mrf.mxu1  ;;  %v12017_v16 = vadd.f32 %v226_v1, %v11950_v44  ;;  %v12026_v59 = vcombine.high %v1587_v22, %v1591_v28  ;;  %v12033_v1 = vcombine.low %v1588_v33, %v1592_v58  ;;  %v1579_v22 = vld [vmem:[#allocation9] sm:$0xff] }
 0x116   :  { %15144 = vst [vmem:[#allocation44_spill] sm:$0xff] %v12014_v63  ;;  %v12020_v17 = vadd.f32 %v337_v8, %v11938_v38  ;;  %v12022_v0 = vpop.f32.mrf.mxu0  ;;  %v12029_v63 = vrot.slane %v466_v9, %v11904_v19  ;;  %v1583_v28 = vld [vmem:[#allocation9 + $0x20] sm:$0xff] }
 0x117   :  { %15145 = vst [vmem:[#allocation45_spill] sm:$0xff] %v12017_v16  ;;  %v12024_v48 = vpop.f32.mrf.mxu1  ;;  %2359 = vmatprep.subr.bf16.mxu0 %v12026_v59  ;;  %v12062_v15 = vcombine.low %v1579_v22, %v1583_v28 }
 0x118   :  { %15146 = vst [vmem:[#allocation46_spill] sm:$0xff] %v12020_v17  ;;  %v12035_v8 = vpop.f32.mrf.mxu0  ;;  %v12040_v17 = vcombine.high %v1588_v33, %v1592_v58  ;;  %2360 = vmatpush1.bf16.msra.mxu0 %v12031_v42  ;;  %v12053_v33 = vcombine.high %v1579_v22, %v1583_v28  ;;  %v1584_v58 = vld [vmem:[#allocation9 + $0x28] sm:$0xff] }
 0x119   :  { %v12037_v16 = vpop.f32.mrf.mxu1  ;;  %15149 = vst [vmem:[#allocation49_spill] sm:$0xff] %v12062_v15  ;;  %v12064_v6 = vcombine.low %v1580_v32, %v1584_v58  ;;  %v12067_v7 = vcombine.high %v1580_v32, %v1584_v58  ;;  %v1700_v22 = vld [vmem:[#allocation9 + $0x3c8] sm:$0xff] }
 0x11a   :  { %v426_v20 = vpop.f32.mrf.mxu0  ;;  %2400 = vmatprep.subr.bf16.mxu1 %v12040_v17  ;;  %2361 = vmatprep.subr.bf16.mxu0 %v12053_v33  ;;  %v12091_v53 = vcombine.high %v1700_v22, %v1704_v52 }
 0x11b   :  { %v537_v10 = vpop.f32.mrf.mxu1  ;;  %v12056_v19 = vadd.f32 %v426_v20, %v12043_v47  ;;  %2401 = vmatpush1.bf16.msra.mxu1 %v12033_v1  ;;  %15150 = vst [vmem:[#allocation50_spill] sm:$0xff] %v12064_v6 }
 0x11c   :  { %v12059_v9 = vadd.f32 %v537_v10, %v12029_v63  ;;  %v428_v41 = vpop.f32.mrf.mxu0  ;;  %2362 = vmatpush1.bf16.msra.mxu0 %v12062_v15  ;;  %v1699_v10 = vld [vmem:[#allocation9 + $0x3c0] sm:$0xff]  ;;  %2402 = vmatprep.subr.bf16.mxu1 %v12067_v7  ;;  %15158 = vst [vmem:[#allocation58_spill] sm:$0xff] %v12091_v53 }
 0x11d   :  { %15147 = vst [vmem:[#allocation47_spill] sm:$0xff] %v12056_v19  ;;  %v539_v30 = vpop.f32.mrf.mxu1  ;;  %v12070_v61 = vadd.f32 %v428_v41, %v12050_v18  ;;  %v12077_v19 = vcombine.high %v1699_v10, %v1703_v62  ;;  %v12088_v41 = vcombine.low %v1700_v22, %v1704_v52 }
 0x11e   :  { %15148 = vst [vmem:[#allocation48_spill] sm:$0xff] %v12059_v9  ;;  %v12073_v20 = vadd.f32 %v539_v30, %v12046_v29  ;;  %v432_v28 = vpop.f32.mrf.mxu0  ;;  %v12086_v30 = vcombine.low %v1699_v10, %v1703_v62  ;;  %v1692_v62 = vld [vmem:[#allocation9 + $0x388] sm:$0xff] }
 0x11f   :  { %15151 = vst [vmem:[#allocation51_spill] sm:$0xff] %v12070_v61  ;;  %v543_v9 = vpop.f32.mrf.mxu1  ;;  %15153 = vst [vmem:[#allocation53_spill] sm:$0xff] %v12077_v19  ;;  %v12080_v32 = vadd.f32 %v432_v28, %v12043_v47  ;;  %2403 = vmatpush1.bf16.msra.mxu1 %v12064_v6  ;;  %2363 = vmatprep.subr.bf16.mxu0 %v12077_v19  ;;  %v1696_v19 = vld [vmem:[#allocation9 + $0x3a8] sm:$0xff] }
 0x120   :  { %15152 = vst [vmem:[#allocation52_spill] sm:$0xff] %v12073_v20  ;;  %v12083_v58 = vadd.f32 %v543_v9, %v12029_v63  ;;  %15156 = vst [vmem:[#allocation56_spill] sm:$0xff] %v12086_v30  ;;  %v434_v20 = vpop.f32.mrf.mxu0  ;;  %2364 = vmatpush2.bf16.msra.mxu0 %v12086_v30  ;;  %v1691_v9 = vld [vmem:[#allocation9 + $0x380] sm:$0xff]  ;;  %2404 = vmatprep.subr.bf16.mxu1 %v12091_v53  ;;  %v12112_v22 = vcombine.low %v1692_v62, %v1696_v19 }
 0x121   :  { %15154 = vst [vmem:[#allocation54_spill] sm:$0xff] %v12080_v32  ;;  %15157 = vst [vmem:[#allocation57_spill] sm:$0xff] %v12088_v41  ;;  %v545_v61 = vpop.f32.mrf.mxu1  ;;  %v12094_v45 = vadd.f32 %v434_v20, %v12050_v18  ;;  %v12115_v30 = vcombine.high %v1692_v62, %v1696_v19 }
 0x122   :  { %15155 = vst [vmem:[#allocation55_spill] sm:$0xff] %v12083_v58  ;;  %v12097_v28 = vadd.f32 %v545_v61, %v12046_v29  ;;  %v1695_v58 = vld [vmem:[#allocation9 + $0x3a0] sm:$0xff]  ;;  %v436_v10 = vpop.f32.mrf.mxu0  ;;  %15165 = vst [vmem:[#allocation65_spill] sm:$0xff] %v12112_v22 }
 0x123   :  { %15159 = vst [vmem:[#allocation59_spill] sm:$0xff] %v12094_v45  ;;  %v547_v32 = vpop.f32.mrf.mxu1  ;;  %v12101_v46 = vcombine.high %v1691_v9, %v1695_v58  ;;  %v12104_v52 = vadd.f32 %v436_v10, %v12043_v47  ;;  %2405 = vmatpush2.bf16.msra.mxu1 %v12088_v41  ;;  %v12110_v61 = vcombine.low %v1691_v9, %v1695_v58  ;;  %15166 = vst [vmem:[#allocation66_spill] sm:$0xff] %v12115_v30  ;;  %v1684_v58 = vld [vmem:[#allocation9 + $0x348] sm:$0xff] }
 0x124   :  { %15160 = vst [vmem:[#allocation60_spill] sm:$0xff] %v12097_v28  ;;  %v12107_v20 = vadd.f32 %v547_v32, %v12029_v63  ;;  %v438_v28 = vpop.f32.mrf.mxu0  ;;  %v1683_v32 = vld [vmem:[#allocation9 + $0x340] sm:$0xff]  ;;  %2406 = vmatprep.subr.bf16.mxu1 %v12115_v30 }
 0x125   :  { %15161 = vst [vmem:[#allocation61_spill] sm:$0xff] %v12101_v46  ;;  %15162 = vst [vmem:[#allocation62_spill] sm:$0xff] %v12104_v52  ;;  %v549_v45 = vpop.f32.mrf.mxu1  ;;  %2365 = vmatprep.subr.bf16.mxu0 %v12101_v46  ;;  %v12118_v53 = vadd.f32 %v438_v28, %v12050_v18  ;;  %v1688_v46 = vld [vmem:[#allocation9 + $0x368] sm:$0xff] }
 0x126   :  { %15163 = vst [vmem:[#allocation63_spill] sm:$0xff] %v12107_v20  ;;  %15164 = vst [vmem:[#allocation64_spill] sm:$0xff] %v12110_v61  ;;  %v12121_v10 = vadd.f32 %v549_v45, %v12046_v29  ;;  %2366 = vmatpush2.bf16.msra.mxu0 %v12110_v61  ;;  %v1687_v20 = vld [vmem:[#allocation9 + $0x360] sm:$0xff]  ;;  %v442_v9 = vpop.f32.mrf.mxu0  ;;  %v12136_v62 = vcombine.low %v1684_v58, %v1688_v46  ;;  %v12139_v61 = vcombine.high %v1684_v58, %v1688_v46 }
 0x127   :  { %15167 = vst [vmem:[#allocation67_spill] sm:$0xff] %v12118_v53  ;;  %v553_v52 = vpop.f32.mrf.mxu1  ;;  %v12125_v41 = vcombine.high %v1683_v32, %v1687_v20  ;;  %v12128_v19 = vadd.f32 %v442_v9, %v12043_v47  ;;  %2407 = vmatpush2.bf16.msra.mxu1 %v12112_v22  ;;  %v12134_v45 = vcombine.low %v1683_v32, %v1687_v20  ;;  %v1676_v20 = vld [vmem:[#allocation9 + $0x308] sm:$0xff] }
 0x128   :  { %15168 = vst [vmem:[#allocation68_spill] sm:$0xff] %v12121_v10  ;;  %v12131_v28 = vadd.f32 %v553_v52, %v12029_v63  ;;  %15173 = vst [vmem:[#allocation73_spill] sm:$0xff] %v12136_v62  ;;  %v444_v10 = vpop.f32.mrf.mxu0  ;;  %v1675_v52 = vld [vmem:[#allocation9 + $0x300] sm:$0xff]  ;;  %2408 = vmatprep.subr.bf16.mxu1 %v12139_v61 }
 0x129   :  { %15169 = vst [vmem:[#allocation69_spill] sm:$0xff] %v12125_v41  ;;  %15170 = vst [vmem:[#allocation70_spill] sm:$0xff] %v12128_v19  ;;  %v555_v53 = vpop.f32.mrf.mxu1  ;;  %2367 = vmatprep.subr.bf16.mxu0 %v12125_v41  ;;  %v12142_v30 = vadd.f32 %v444_v10, %v12050_v18  ;;  %v1680_v41 = vld [vmem:[#allocation9 + $0x328] sm:$0xff] }
 0x12a   :  { %15171 = vst [vmem:[#allocation71_spill] sm:$0xff] %v12131_v28  ;;  %15172 = vst [vmem:[#allocation72_spill] sm:$0xff] %v12134_v45  ;;  %v12145_v9 = vadd.f32 %v555_v53, %v12046_v29  ;;  %2368 = vmatpush2.bf16.msra.mxu0 %v12134_v45  ;;  %v1679_v28 = vld [vmem:[#allocation9 + $0x320] sm:$0xff]  ;;  %v446_v32 = vpop.f32.mrf.mxu0  ;;  %v12160_v58 = vcombine.low %v1676_v20, %v1680_v41  ;;  %v12163_v45 = vcombine.high %v1676_v20, %v1680_v41 }
 0x12b   :  { %15174 = vst [vmem:[#allocation74_spill] sm:$0xff] %v12139_v61  ;;  %15175 = vst [vmem:[#allocation75_spill] sm:$0xff] %v12142_v30  ;;  %v557_v19 = vpop.f32.mrf.mxu1  ;;  %v12149_v22 = vcombine.high %v1675_v52, %v1679_v28  ;;  %v12152_v46 = vadd.f32 %v446_v32, %v12043_v47  ;;  %2409 = vmatpush2.bf16.msra.mxu1 %v12136_v62  ;;  %v12158_v53 = vcombine.low %v1675_v52, %v1679_v28  ;;  %v1668_v28 = vld [vmem:[#allocation9 + $0x2c8] sm:$0xff] }
 0x12c   :  { %15176 = vst [vmem:[#allocation76_spill] sm:$0xff] %v12145_v9  ;;  %v12155_v10 = vadd.f32 %v557_v19, %v12029_v63  ;;  %15181 = vst [vmem:[#allocation81_spill] sm:$0xff] %v12160_v58  ;;  %v448_v9 = vpop.f32.mrf.mxu0  ;;  %v1667_v19 = vld [vmem:[#allocation9 + $0x2c0] sm:$0xff]  ;;  %2410 = vmatprep.subr.bf16.mxu1 %v12163_v45 }
 0x12d   :  { %15177 = vst [vmem:[#allocation77_spill] sm:$0xff] %v12149_v22  ;;  %15178 = vst [vmem:[#allocation78_spill] sm:$0xff] %v12152_v46  ;;  %v559_v30 = vpop.f32.mrf.mxu1  ;;  %2369 = vmatprep.subr.bf16.mxu0 %v12149_v22  ;;  %v12166_v61 = vadd.f32 %v448_v9, %v12050_v18  ;;  %v1672_v46 = vld [vmem:[#allocation9 + $0x2e8] sm:$0xff] }
 0x12e   :  { %15179 = vst [vmem:[#allocation79_spill] sm:$0xff] %v12155_v10  ;;  %15180 = vst [vmem:[#allocation80_spill] sm:$0xff] %v12158_v53  ;;  %v12169_v32 = vadd.f32 %v559_v30, %v12046_v29  ;;  %2370 = vmatpush2.bf16.msra.mxu0 %v12158_v53  ;;  %v1671_v10 = vld [vmem:[#allocation9 + $0x2e0] sm:$0xff]  ;;  %v12178_v20 = vcombine.low %v1668_v28, %v1672_v46  ;;  %v12180_v9 = vcombine.high %v1668_v28, %v1672_v46 }
 0x12f   :  { %15182 = vst [vmem:[#allocation82_spill] sm:$0xff] %v12163_v45  ;;  %15183 = vst [vmem:[#allocation83_spill] sm:$0xff] %v12166_v61  ;;  %v12173_v52 = vcombine.high %v1667_v19, %v1671_v10  ;;  %2411 = vmatpush2.bf16.msra.mxu1 %v12160_v58  ;;  %v12176_v41 = vcombine.low %v1667_v19, %v1671_v10  ;;  %v1659_v30 = vld [vmem:[#allocation9 + $0x280] sm:$0xff]  ;;  %v1660_v61 = vld [vmem:[#allocation9 + $0x288] sm:$0xff] }
 0x130   :  { %15184 = vst [vmem:[#allocation84_spill] sm:$0xff] %v12169_v32  ;;  %15187 = vst [vmem:[#allocation87_spill] sm:$0xff] %v12178_v20  ;;  %2412 = vmatprep.subr.bf16.mxu1 %v12180_v9  ;;  %v1663_v32 = vld [vmem:[#allocation9 + $0x2a0] sm:$0xff]  ;;  %v1664_v45 = vld [vmem:[#allocation9 + $0x2a8] sm:$0xff] }
 0x131   :  { %15185 = vst [vmem:[#allocation85_spill] sm:$0xff] %v12173_v52  ;;  %15186 = vst [vmem:[#allocation86_spill] sm:$0xff] %v12176_v41  ;;  %2371 = vmatprep.subr.bf16.mxu0 %v12173_v52  ;;  %v12185_v53 = vcombine.high %v1659_v30, %v1663_v32  ;;  %v12188_v10 = vcombine.low %v1659_v30, %v1663_v32  ;;  %v12190_v19 = vcombine.low %v1660_v61, %v1664_v45  ;;  %v1651_v28 = vld [vmem:[#allocation9 + $0x240] sm:$0xff]  ;;  %v1656_v58 = vld [vmem:[#allocation9 + $0x268] sm:$0xff] }
 0x132   :  { %15188 = vst [vmem:[#allocation88_spill] sm:$0xff] %v12180_v9  ;;  %2372 = vmatpush2.bf16.msra.mxu0 %v12176_v41  ;;  %v12192_v46 = vcombine.high %v1660_v61, %v1664_v45  ;;  %v1655_v41 = vld [vmem:[#allocation9 + $0x260] sm:$0xff]  ;;  %v1652_v9 = vld [vmem:[#allocation9 + $0x248] sm:$0xff] }
 0x133   :  { %15189 = vst [vmem:[#allocation89_spill] sm:$0xff] %v12185_v53  ;;  %2413 = vmatpush2.bf16.msra.mxu1 %v12178_v20  ;;  %15190 = vst [vmem:[#allocation90_spill] sm:$0xff] %v12188_v10  ;;  %2373 = vmatprep.subr.bf16.mxu0 %v12185_v53  ;;  %v12197_v52 = vcombine.high %v1651_v28, %v1655_v41  ;;  %v12200_v32 = vcombine.low %v1651_v28, %v1655_v41  ;;  %v1643_v45 = vld [vmem:[#allocation9 + $0x200] sm:$0xff]  ;;  %v1648_v20 = vld [vmem:[#allocation9 + $0x228] sm:$0xff] }
 0x134   :  { %15191 = vst [vmem:[#allocation91_spill] sm:$0xff] %v12190_v19  ;;  %15192 = vst [vmem:[#allocation92_spill] sm:$0xff] %v12192_v46  ;;  %2414 = vmatprep.subr.bf16.mxu1 %v12192_v46  ;;  %v12202_v30 = vcombine.low %v1652_v9, %v1656_v58  ;;  %v12204_v61 = vcombine.high %v1652_v9, %v1656_v58  ;;  %v1644_v46 = vld [vmem:[#allocation9 + $0x208] sm:$0xff]  ;;  %v1637_v9 = vld [vmem:[#allocation9 + $0x1d0] sm:$0xff] }
 0x135   :  { %15193 = vst [vmem:[#allocation93_spill] sm:$0xff] %v12197_v52  ;;  %15194 = vst [vmem:[#allocation94_spill] sm:$0xff] %v12200_v32  ;;  %v12214_v28 = vcombine.low %v1644_v46, %v1648_v20  ;;  %v12216_v58 = vcombine.high %v1644_v46, %v1648_v20 }
 0x136   :  { %2374 = vmatpush2.bf16.msra.mxu0 %v12188_v10  ;;  %15195 = vst [vmem:[#allocation95_spill] sm:$0xff] %v12202_v30  ;;  %15196 = vst [vmem:[#allocation96_spill] sm:$0xff] %v12204_v61  ;;  %v1647_v10 = vld [vmem:[#allocation9 + $0x220] sm:$0xff] }
 0x137   :  { %2415 = vmatpush2.bf16.msra.mxu1 %v12190_v19  ;;  %2375 = vmatprep.subr.bf16.mxu0 %v12197_v52  ;;  %v12209_v53 = vcombine.high %v1643_v45, %v1647_v10  ;;  %v12212_v41 = vcombine.low %v1643_v45, %v1647_v10  ;;  %15199 = vst [vmem:[#allocation99_spill] sm:$0xff] %v12214_v28  ;;  %15200 = vst [vmem:[#allocation100_spill] sm:$0xff] %v12216_v58  ;;  %v1642_v19 = vld [vmem:[#allocation9 + $0x1f8] sm:$0xff] }
 0x138   :  { %2416 = vmatprep.subr.bf16.mxu1 %v12204_v61  ;;  %v1638_v61 = vld [vmem:[#allocation9 + $0x1d8] sm:$0xff] }
 0x139   :  { %15197 = vst [vmem:[#allocation97_spill] sm:$0xff] %v12209_v53  ;;  %15198 = vst [vmem:[#allocation98_spill] sm:$0xff] %v12212_v41  ;;  %v12226_v45 = vcombine.low %v1638_v61, %v1642_v19  ;;  %v12228_v20 = vcombine.high %v1638_v61, %v1642_v19  ;;  %v314_v61 = vadd.f32 %v11932_v36, %v11938_v38 }
 0x13a   :  { %2376 = vmatpush2.bf16.msra.mxu0 %v12200_v32  ;;  %v1641_v32 = vld [vmem:[#allocation9 + $0x1f0] sm:$0xff] }
 0x13b   :  { %2417 = vmatpush2.bf16.msra.mxu1 %v12202_v30  ;;  %2377 = vmatprep.subr.bf16.mxu0 %v12209_v53  ;;  %v12221_v52 = vcombine.high %v1637_v9, %v1641_v32  ;;  %v12224_v10 = vcombine.low %v1637_v9, %v1641_v32  ;;  %15202 = vst [vmem:[#allocation102_spill] sm:$0xff] %v12228_v20 }
 0x13c   :  { %2418 = vmatprep.subr.bf16.mxu1 %v12216_v58  ;;  %v312_v32 = vadd.f32 %v11917_v26, %v11925_v31  ;;  %v201_v9 = vadd.f32 %v11915_v25, %v11928_v34  ;;  %v423_v25 = vadd.f32 %v12022_v0, %v12043_v47  ;;  %v425_v34 = vadd.f32 %v12035_v8, %v12050_v18 }
 0x13d   :  { %15201 = vst [vmem:[#allocation101_spill] sm:$0xff] %v12221_v52 }
 0x13e   :  { %2378 = vmatpush2.bf16.msra.mxu0 %v12212_v41 }
 0x13f   :  { %2419 = vmatpush2.bf16.msra.mxu1 %v12214_v28  ;;  %2429 = vmatprep.subr.bf16.mxu0 %v12221_v52 }
 0x140   :  { %2470 = vmatprep.subr.bf16.mxu1 %v12228_v20  ;;  %v203_v20 = vadd.f32 %v11930_v35, %v11950_v44 }
 0x156   :  { %v1387_v46 = vpop.f32.mrf.mxu0 }
 0x157   :  { %v1428_v41 = vpop.f32.mrf.mxu1  ;;  %v1517_v52 = vadd.f32 %v1387_v46, %v201_v9 }
 0x158   :  { %v1389_v58 = vpop.f32.mrf.mxu0  ;;  %v1519_v19 = vadd.f32 %v1428_v41, %v312_v32 }
 0x159   :  { %v1430_v53 = vpop.f32.mrf.mxu1 }
 0x15a   :  { %v1391_v30 = vpop.f32.mrf.mxu0  ;;  %v1520_v28 = vadd.f32 %v1430_v53, %v314_v61  ;;  %v1533_v15 = vmul.f32 0.5, %v1519_v19 }
 0x15b   :  { %v1432_v22 = vpop.f32.mrf.mxu1  ;;  %v1518_v30 = vadd.f32 %v1389_v58, %v203_v20 }
 0x15c   :  { %v1392_v62 = vpop.f32.mrf.mxu0  ;;  %v1525_v22 = vmul.f32 0.5, %v1517_v52  ;;  %11284 = vtanh.f32 %v1533_v15  ;;  %v534_v15 = vadd.f32 %v12024_v48, %v12029_v63 }
 0x15d   :  { %v1433_v6 = vpop.f32.mrf.mxu1  ;;  %v1534_v62 = vmul.f32 0.5, %v1520_v28  ;;  %v536_v28 = vadd.f32 %v12037_v16, %v12046_v29 }
 0x15e   :  { %v1526_v6 = vmul.f32 0.5, %v1518_v30  ;;  %11286 = vtanh.f32 %v1525_v22 }
 0x15f   :  { %11288 = vtanh.f32 %v1534_v62 }
 0x160   :  { %11290 = vtanh.f32 %v1526_v6 }
 0x169   :  { %v11285_v41 = vpop.eup %11284 }
 0x16a   :  { %v1537_v46 = vmul.f32 0.5, %v11285_v41 }
 0x16b   :  { %v11287_v20 = vpop.eup %11286 }
 0x16c   :  { %v11289_v8 = vpop.eup %11288  ;;  %v1529_v9 = vmul.f32 0.5, %v11287_v20  ;;  %v1539_v22 = vadd.f32 0.5, %v1537_v46  ;;  %v1629_v20 = vld [vmem:[#allocation9 + $0x190] sm:$0xff]  ;;  %v1634_v46 = vld [vmem:[#allocation9 + $0x1b8] sm:$0xff] }
 0x16d   :  { %v11291_v32 = vpop.eup %11290  ;;  %v1538_v61 = vmul.f32 0.5, %v11289_v8  ;;  %v1630_v8 = vld [vmem:[#allocation9 + $0x198] sm:$0xff] }
 0x16e   :  { %v1530_v62 = vmul.f32 0.5, %v11291_v32  ;;  %v1531_v63 = vadd.f32 0.5, %v1529_v9  ;;  %v1551_v29 = vmul.f32 0.0, %v1539_v22  ;;  %v1625_v22 = vld [vmem:[#allocation9 + $0x170] sm:$0xff] }
 0x16f   :  { %v1540_v6 = vadd.f32 0.5, %v1538_v61 }
 0x196   :  { %v1469_v26 = vpop.f32.mrf.mxu0 }
 0x197   :  { %v1510_v31 = vpop.f32.mrf.mxu1  ;;  %v1521_v36 = vadd.f32 %v1469_v26, %v423_v25  ;;  %v1532_v25 = vadd.f32 0.5, %v1530_v62  ;;  %v1622_v62 = vld [vmem:[#allocation9 + $0x158] sm:$0xff] }
 0x198   :  { %v1471_v35 = vpop.f32.mrf.mxu0  ;;  %v1523_v58 = vadd.f32 %v1510_v31, %v534_v15 }
 0x199   :  { %v1512_v38 = vpop.f32.mrf.mxu1  ;;  %11292 = vtanh.f32 %v1521_v36  ;;  %v1522_v44 = vadd.f32 %v1471_v35, %v425_v34  ;;  %v1552_v34 = vmul.f32 0.0, %v1540_v6  ;;  %v12274_v6 = vcombine.low %v1630_v8, %v1634_v46 }
 0x19a   :  { %v1473_v53 = vpop.f32.mrf.mxu0  ;;  %v1524_v18 = vadd.f32 %v1512_v38, %v536_v28  ;;  %v1543_v19 = vmul.f32 0.5, %v1523_v58 }
 0x19b   :  { %v1514_v52 = vpop.f32.mrf.mxu1  ;;  %11294 = vtanh.f32 %v1522_v44 }
 0x19c   :  { %v1474_v0 = vpop.f32.mrf.mxu0  ;;  %v1544_v30 = vmul.f32 0.5, %v1524_v18  ;;  %11296 = vtanh.f32 %v1543_v19  ;;  %v1633_v18 = vld [vmem:[#allocation9 + $0x1b0] sm:$0xff] }
 0x19d   :  { %v1515_v47 = vpop.f32.mrf.mxu1  ;;  %v1621_v19 = vld [vmem:[#allocation9 + $0x150] sm:$0xff]  ;;  %v12264_v61 = vcombine.high %v1629_v20, %v1633_v18 }
 0x19e   :  { %11298 = vtanh.f32 %v1544_v30  ;;  %v12266_v30 = vcombine.high %v1630_v8, %v1634_v46 }
 0x1a6   :  { %v11293_v48 = vpop.eup %11292 }
 0x1a7   :  { %v1553_v16 = vmul.f32 %v11293_v48, %v1531_v63  ;;  %v1626_v63 = vld [vmem:[#allocation9 + $0x178] sm:$0xff]  ;;  %v12272_v48 = vcombine.low %v1629_v20, %v1633_v18 }
 0x1a8   :  { %v11295_v26 = vpop.eup %11294 }
 0x1a9   :  { %v12248_v31 = vadd.f32 %v1553_v16, %v1551_v29  ;;  %v1554_v36 = vmul.f32 %v11295_v26, %v1532_v25  ;;  %v11297_v38 = vpop.eup %11296  ;;  %v12276_v29 = vcombine.high %v1621_v19, %v1625_v22  ;;  %v12278_v16 = vcombine.high %v1622_v62, %v1626_v63  ;;  %v1613_v25 = vld [vmem:[#allocation9 + $0x110] sm:$0xff] }
 0x1aa   :  { %v1547_v53 = vmul.f32 0.5, %v11297_v38  ;;  %v1617_v26 = vld [vmem:[#allocation9 + $0x130] sm:$0xff]  ;;  %v12284_v38 = vcombine.low %v1621_v19, %v1625_v22  ;;  %v1598_v22 = vld [vmem:[#allocation9 + $0x98] sm:$0xff] }
 0x1ab   :  { %11300 = vtanh.f32 %v12248_v31  ;;  %v12251_v35 = vadd.f32 %v1554_v36, %v1552_v34  ;;  %v11299_v44 = vpop.eup %11298  ;;  %v1614_v34 = vld [vmem:[#allocation9 + $0x118] sm:$0xff]  ;;  %v12296_v20 = vcombine.low %v1613_v25, %v1617_v26  ;;  %v1601_v19 = vld [vmem:[#allocation9 + $0xb0] sm:$0xff] }
 0x1ac   :  { %v1548_v52 = vmul.f32 0.5, %v11299_v44  ;;  %v1549_v41 = vadd.f32 0.5, %v1547_v53  ;;  %v1618_v36 = vld [vmem:[#allocation9 + $0x138] sm:$0xff]  ;;  %v12286_v44 = vcombine.low %v1622_v62, %v1626_v63  ;;  %v12290_v53 = vcombine.high %v1613_v25, %v1617_v26 }
 0x1ad   :  { %11302 = vtanh.f32 %v12251_v35  ;;  %15206 = vst [vmem:[#allocation106_spill] sm:$0xff] %v12296_v20  ;;  %v12298_v18 = vcombine.low %v1614_v34, %v1618_v36  ;;  %v1602_v62 = vld [vmem:[#allocation9 + $0xb8] sm:$0xff] }
 0x1ae   :  { %v1550_v28 = vadd.f32 0.5, %v1548_v52  ;;  %15203 = vst [vmem:[#allocation103_spill] sm:$0xff] %v12286_v44  ;;  %15204 = vst [vmem:[#allocation104_spill] sm:$0xff] %v12290_v53  ;;  %v12292_v52 = vcombine.high %v1614_v34, %v1618_v36  ;;  %v12316_v34 = vcombine.high %v1598_v22, %v1602_v62  ;;  %v1589_v36 = vld [vmem:[#allocation9 + $0x50] sm:$0xff] }
 0x1af   :  { %15207 = vst [vmem:[#allocation107_spill] sm:$0xff] %v12298_v18 }
 0x1b0   :  { %15205 = vst [vmem:[#allocation105_spill] sm:$0xff] %v12292_v52  ;;  %15213 = vst [vmem:[#allocation113_spill] sm:$0xff] %v12316_v34 }
 0x1b8   :  { %v11301_v15 = vpop.eup %11300 }
 0x1b9   :  { %v12254_v47 = vmul.f32 %v11301_v15, %v1549_v41  ;;  %v1605_v15 = vld [vmem:[#allocation9 + $0xd0] sm:$0xff] }
 0x1ba   :  { %v11303_v0 = vpop.eup %11302  ;;  %v1609_v41 = vld [vmem:[#allocation9 + $0xf0] sm:$0xff] }
 0x1bb   :  { %v12256_v58 = vmul.f32 %v11303_v0, %v1550_v28  ;;  %v12262_v9 = vpack.c.bf16 %v12254_v47, %v12254_v47  ;;  %v1606_v28 = vld [vmem:[#allocation9 + $0xd8] sm:$0xff]  ;;  %v12302_v8 = vcombine.high %v1605_v15, %v1609_v41  ;;  %v12308_v63 = vcombine.low %v1605_v15, %v1609_v41 }
 0x1bc   :  { %v1610_v0 = vld [vmem:[#allocation9 + $0xf8] sm:$0xff]  ;;  %v12322_v41 = vcombine.low %v1598_v22, %v1602_v62 }
 0x1bd   :  { %v1578_v32 = vpack.c.bf16 %v12256_v58, %v12256_v58  ;;  %15208 = vst [vmem:[#allocation108_spill] sm:$0xff] %v12302_v8  ;;  %v12304_v46 = vcombine.high %v1606_v28, %v1610_v0  ;;  %15210 = vst [vmem:[#allocation110_spill] sm:$0xff] %v12308_v63  ;;  %v12310_v25 = vcombine.low %v1606_v28, %v1610_v0 }
 0x1be   :  { %15215 = vst [vmem:[#allocation115_spill] sm:$0xff] %v12322_v41 }
 0x1bf   :  { %2379 = vmatprep.mubr.bf16.mxu0 %v1578_v32  ;;  %2420 = vmatprep.mubr.bf16.mxu1 %v1578_v32  ;;  %15209 = vst [vmem:[#allocation109_spill] sm:$0xff] %v12304_v46  ;;  %15211 = vst [vmem:[#allocation111_spill] sm:$0xff] %v12310_v25 }
 0x1c0   :  { %2380 = vmatmul.mubr.bf16.vlgmr.msra.gmra.mxu0 %v12262_v9  ;;  %2421 = vmatmul.mubr.bf16.vlgmr.msra.gmra.mxu1 %v12262_v9 }
 0x1c1   :  { %2430 = vmatpush1.bf16.msra.mxu0 %v12224_v10  ;;  %2471 = vmatpush1.bf16.msra.mxu1 %v12226_v45 }
 0x1c2   :  { %2461 = vmatprep.mubr.bf16.mxu0 %v1578_v32  ;;  %2502 = vmatprep.mubr.bf16.mxu1 %v1578_v32  ;;  %v1597_v32 = vld [vmem:[#allocation9 + $0x90] sm:$0xff] }
 0x1c3   :  { %2431 = vmatprep.subr.bf16.mxu0 %v12264_v61  ;;  %2472 = vmatprep.subr.bf16.mxu1 %v12266_v30  ;;  %v12314_v26 = vcombine.high %v1597_v32, %v1601_v19  ;;  %v12320_v15 = vcombine.low %v1597_v32, %v1601_v19 }
 0x1c5   :  { %2432 = vmatpush1.bf16.msra.mxu0 %v12272_v48  ;;  %2473 = vmatpush1.bf16.msra.mxu1 %v12274_v6  ;;  %15212 = vst [vmem:[#allocation112_spill] sm:$0xff] %v12314_v26  ;;  %15214 = vst [vmem:[#allocation114_spill] sm:$0xff] %v12320_v15 }
 0x1c6   :  { %2433 = vmatprep.subr.bf16.mxu0 %v12276_v29  ;;  %2474 = vmatprep.subr.bf16.mxu1 %v12278_v16 }
 0x1c9   :  { %2434 = vmatpush1.bf16.msra.mxu0 %v12284_v38  ;;  %2475 = vmatpush1.bf16.msra.mxu1 %v12286_v44  ;;  %v1594_v44 = vld [vmem:[#allocation9 + $0x78] sm:$0xff] }
 0x1ca   :  { %2435 = vmatprep.subr.bf16.mxu0 %v12290_v53  ;;  %2476 = vmatprep.subr.bf16.mxu1 %v12292_v52  ;;  %v1593_v52 = vld [vmem:[#allocation9 + $0x70] sm:$0xff]  ;;  %v1590_v53 = vld [vmem:[#allocation9 + $0x58] sm:$0xff] }
 0x1cb   :  { %v12326_v28 = vcombine.high %v1589_v36, %v1593_v52  ;;  %v12328_v0 = vcombine.high %v1590_v53, %v1594_v44  ;;  %v12332_v32 = vcombine.low %v1589_v36, %v1593_v52  ;;  %v12334_v19 = vcombine.low %v1590_v53, %v1594_v44 }
 0x1cd   :  { %2436 = vmatpush1.bf16.msra.mxu0 %v12296_v20  ;;  %2477 = vmatpush1.bf16.msra.mxu1 %v12298_v18  ;;  %15216 = vst [vmem:[#allocation116_spill] sm:$0xff] %v12326_v28  ;;  %15217 = vst [vmem:[#allocation117_spill] sm:$0xff] %v12328_v0  ;;  %v1582_v18 = vld [vmem:[#allocation9 + $0x18] sm:$0xff] }
 0x1ce   :  { %2437 = vmatprep.subr.bf16.mxu0 %v12302_v8  ;;  %2478 = vmatprep.subr.bf16.mxu1 %v12304_v46  ;;  %v1581_v46 = vld [vmem:[#allocation9 + $0x10] sm:$0xff]  ;;  %v1586_v20 = vld [vmem:[#allocation9 + $0x38] sm:$0xff]  ;;  %15218 = vst [vmem:[#allocation118_spill] sm:$0xff] %v12332_v32  ;;  %15219 = vst [vmem:[#allocation119_spill] sm:$0xff] %v12334_v19 }
 0x1cf   :  { %v1585_v8 = vld [vmem:[#allocation9 + $0x30] sm:$0xff]  ;;  %v12340_v62 = vcombine.high %v1582_v18, %v1586_v20  ;;  %v12346_v44 = vcombine.low %v1582_v18, %v1586_v20 }
 0x1d0   :  { %v12338_v22 = vcombine.high %v1581_v46, %v1585_v8  ;;  %v12344_v52 = vcombine.low %v1581_v46, %v1585_v8 }
 0x1d1   :  { %2438 = vmatpush1.bf16.msra.mxu0 %v12308_v63  ;;  %2479 = vmatpush1.bf16.msra.mxu1 %v12310_v25  ;;  %15221 = vst [vmem:[#allocation121_spill] sm:$0xff] %v12340_v62  ;;  %v1702_v25 = vld [vmem:[#allocation9 + $0x3d8] sm:$0xff]  ;;  %15223 = vst [vmem:[#allocation123_spill] sm:$0xff] %v12346_v44 }
 0x1d2   :  { %2439 = vmatprep.subr.bf16.mxu0 %v12314_v26  ;;  %2480 = vmatprep.subr.bf16.mxu1 %v12316_v34  ;;  %15220 = vst [vmem:[#allocation120_spill] sm:$0xff] %v12338_v22  ;;  %v1701_v34 = vld [vmem:[#allocation9 + $0x3d0] sm:$0xff]  ;;  %v1706_v63 = vld [vmem:[#allocation9 + $0x3f8] sm:$0xff]  ;;  %15222 = vst [vmem:[#allocation122_spill] sm:$0xff] %v12344_v52 }
 0x1d3   :  { %v1705_v26 = vld [vmem:[#allocation9 + $0x3f0] sm:$0xff]  ;;  %v12352_v36 = vcombine.high %v1702_v25, %v1706_v63  ;;  %v12358_v20 = vcombine.low %v1702_v25, %v1706_v63 }
 0x1d4   :  { %v12350_v53 = vcombine.high %v1701_v34, %v1705_v26  ;;  %v12356_v8 = vcombine.low %v1701_v34, %v1705_v26 }
 0x1d5   :  { %2440 = vmatpush1.bf16.msra.mxu0 %v12320_v15  ;;  %2481 = vmatpush1.bf16.msra.mxu1 %v12322_v41  ;;  %15225 = vst [vmem:[#allocation125_spill] sm:$0xff] %v12352_v36  ;;  %v1694_v41 = vld [vmem:[#allocation9 + $0x398] sm:$0xff]  ;;  %15227 = vst [vmem:[#allocation127_spill] sm:$0xff] %v12358_v20 }
 0x1d6   :  { %2441 = vmatprep.subr.bf16.mxu0 %v12326_v28  ;;  %2482 = vmatprep.subr.bf16.mxu1 %v12328_v0  ;;  %15224 = vst [vmem:[#allocation124_spill] sm:$0xff] %v12350_v53  ;;  %v1693_v0 = vld [vmem:[#allocation9 + $0x390] sm:$0xff]  ;;  %v1698_v15 = vld [vmem:[#allocation9 + $0x3b8] sm:$0xff]  ;;  %15226 = vst [vmem:[#allocation126_spill] sm:$0xff] %v12356_v8 }
 0x1d7   :  { %v1697_v28 = vld [vmem:[#allocation9 + $0x3b0] sm:$0xff]  ;;  %v12364_v46 = vcombine.high %v1694_v41, %v1698_v15  ;;  %v12370_v63 = vcombine.low %v1694_v41, %v1698_v15 }
 0x1d8   :  { %v12362_v18 = vcombine.high %v1693_v0, %v1697_v28  ;;  %v12368_v26 = vcombine.low %v1693_v0, %v1697_v28 }
 0x1d9   :  { %2442 = vmatpush1.bf16.msra.mxu0 %v12332_v32  ;;  %2483 = vmatpush1.bf16.msra.mxu1 %v12334_v19  ;;  %15229 = vst [vmem:[#allocation129_spill] sm:$0xff] %v12364_v46  ;;  %v1686_v19 = vld [vmem:[#allocation9 + $0x358] sm:$0xff]  ;;  %15231 = vst [vmem:[#allocation131_spill] sm:$0xff] %v12370_v63 }
 0x1da   :  { %2443 = vmatprep.subr.bf16.mxu0 %v12338_v22  ;;  %2484 = vmatprep.subr.bf16.mxu1 %v12340_v62  ;;  %15228 = vst [vmem:[#allocation128_spill] sm:$0xff] %v12362_v18  ;;  %v1685_v62 = vld [vmem:[#allocation9 + $0x350] sm:$0xff]  ;;  %v1690_v32 = vld [vmem:[#allocation9 + $0x378] sm:$0xff]  ;;  %15230 = vst [vmem:[#allocation130_spill] sm:$0xff] %v12368_v26 }
 0x1db   :  { %v1689_v22 = vld [vmem:[#allocation9 + $0x370] sm:$0xff]  ;;  %v12376_v34 = vcombine.high %v1686_v19, %v1690_v32  ;;  %v12382_v15 = vcombine.low %v1686_v19, %v1690_v32 }
 0x1dc   :  { %v12374_v25 = vcombine.high %v1685_v62, %v1689_v22  ;;  %v12380_v28 = vcombine.low %v1685_v62, %v1689_v22 }
 0x1dd   :  { %2444 = vmatpush1.bf16.msra.mxu0 %v12344_v52  ;;  %2485 = vmatpush1.bf16.msra.mxu1 %v12346_v44  ;;  %15233 = vst [vmem:[#allocation133_spill] sm:$0xff] %v12376_v34  ;;  %v1678_v44 = vld [vmem:[#allocation9 + $0x318] sm:$0xff]  ;;  %15235 = vst [vmem:[#allocation135_spill] sm:$0xff] %v12382_v15 }
 0x1de   :  { %2445 = vmatprep.subr.bf16.mxu0 %v12350_v53  ;;  %2486 = vmatprep.subr.bf16.mxu1 %v12352_v36  ;;  %15232 = vst [vmem:[#allocation132_spill] sm:$0xff] %v12374_v25  ;;  %v1677_v36 = vld [vmem:[#allocation9 + $0x310] sm:$0xff]  ;;  %v1682_v52 = vld [vmem:[#allocation9 + $0x338] sm:$0xff]  ;;  %15234 = vst [vmem:[#allocation134_spill] sm:$0xff] %v12380_v28 }
 0x1df   :  { %v1681_v53 = vld [vmem:[#allocation9 + $0x330] sm:$0xff]  ;;  %v12388_v0 = vcombine.high %v1678_v44, %v1682_v52  ;;  %v12394_v32 = vcombine.low %v1678_v44, %v1682_v52 }
 0x1e0   :  { %v12386_v41 = vcombine.high %v1677_v36, %v1681_v53  ;;  %v12392_v22 = vcombine.low %v1677_v36, %v1681_v53 }
 0x1e1   :  { %2446 = vmatpush2.bf16.msra.mxu0 %v12356_v8  ;;  %2487 = vmatpush2.bf16.msra.mxu1 %v12358_v20  ;;  %15237 = vst [vmem:[#allocation137_spill] sm:$0xff] %v12388_v0  ;;  %v1670_v20 = vld [vmem:[#allocation9 + $0x2d8] sm:$0xff]  ;;  %15239 = vst [vmem:[#allocation139_spill] sm:$0xff] %v12394_v32 }
 0x1e2   :  { %2447 = vmatprep.subr.bf16.mxu0 %v12362_v18  ;;  %2488 = vmatprep.subr.bf16.mxu1 %v12364_v46  ;;  %15236 = vst [vmem:[#allocation136_spill] sm:$0xff] %v12386_v41  ;;  %v1669_v46 = vld [vmem:[#allocation9 + $0x2d0] sm:$0xff]  ;;  %v1674_v8 = vld [vmem:[#allocation9 + $0x2f8] sm:$0xff]  ;;  %15238 = vst [vmem:[#allocation138_spill] sm:$0xff] %v12392_v22 }
 0x1e3   :  { %v1673_v18 = vld [vmem:[#allocation9 + $0x2f0] sm:$0xff]  ;;  %v12400_v62 = vcombine.high %v1670_v20, %v1674_v8  ;;  %v12406_v52 = vcombine.low %v1670_v20, %v1674_v8 }
 0x1e4   :  { %v12398_v19 = vcombine.high %v1669_v46, %v1673_v18  ;;  %v12404_v53 = vcombine.low %v1669_v46, %v1673_v18 }
 0x1e5   :  { %2448 = vmatpush2.bf16.msra.mxu0 %v12368_v26  ;;  %2489 = vmatpush2.bf16.msra.mxu1 %v12370_v63  ;;  %15241 = vst [vmem:[#allocation141_spill] sm:$0xff] %v12400_v62  ;;  %v1662_v63 = vld [vmem:[#allocation9 + $0x298] sm:$0xff] }
 0x1e6   :  { %2449 = vmatprep.subr.bf16.mxu0 %v12374_v25  ;;  %2490 = vmatprep.subr.bf16.mxu1 %v12376_v34  ;;  %15240 = vst [vmem:[#allocation140_spill] sm:$0xff] %v12398_v19  ;;  %v1661_v34 = vld [vmem:[#allocation9 + $0x290] sm:$0xff]  ;;  %v1666_v26 = vld [vmem:[#allocation9 + $0x2b8] sm:$0xff] }
 0x1e7   :  { %v1665_v25 = vld [vmem:[#allocation9 + $0x2b0] sm:$0xff]  ;;  %v12412_v36 = vcombine.high %v1662_v63, %v1666_v26  ;;  %v12418_v8 = vcombine.low %v1662_v63, %v1666_v26 }
 0x1e8   :  { %v12410_v44 = vcombine.high %v1661_v34, %v1665_v25  ;;  %v12416_v18 = vcombine.low %v1661_v34, %v1665_v25 }
 0x1e9   :  { %2450 = vmatpush2.bf16.msra.mxu0 %v12380_v28  ;;  %2491 = vmatpush2.bf16.msra.mxu1 %v12382_v15  ;;  %15242 = vst [vmem:[#allocation142_spill] sm:$0xff] %v12412_v36  ;;  %v1654_v15 = vld [vmem:[#allocation9 + $0x258] sm:$0xff] }
 0x1ea   :  { %2451 = vmatprep.subr.bf16.mxu0 %v12386_v41  ;;  %2492 = vmatprep.subr.bf16.mxu1 %v12388_v0  ;;  %v1653_v0 = vld [vmem:[#allocation9 + $0x250] sm:$0xff]  ;;  %v1658_v28 = vld [vmem:[#allocation9 + $0x278] sm:$0xff]  ;;  %15243 = vst [vmem:[#allocation143_spill] sm:$0xff] %v12416_v18 }
 0x1eb   :  { %v1657_v41 = vld [vmem:[#allocation9 + $0x270] sm:$0xff]  ;;  %v12424_v46 = vcombine.high %v1654_v15, %v1658_v28  ;;  %v12430_v26 = vcombine.low %v1654_v15, %v1658_v28  ;;  %v15275_v28 = vld [vmem:[#allocation100_spill] sm:$0xff] }
 0x1ec   :  { %v12422_v20 = vcombine.high %v1653_v0, %v1657_v41  ;;  %v12428_v25 = vcombine.low %v1653_v0, %v1657_v41  ;;  %v15276_v15 = vld [vmem:[#allocation98_spill] sm:$0xff]  ;;  %v15277_v41 = vld [vmem:[#allocation99_spill] sm:$0xff]  ;;  %v15278_v0 = vld [vmem:[#allocation101_spill] sm:$0xff] }
 0x1ed   :  { %2452 = vmatpush2.bf16.msra.mxu0 %v12392_v22  ;;  %2493 = vmatpush2.bf16.msra.mxu1 %v12394_v32  ;;  %v1646_v32 = vld [vmem:[#allocation9 + $0x218] sm:$0xff] }
 0x1ee   :  { %2453 = vmatprep.subr.bf16.mxu0 %v12398_v19  ;;  %2494 = vmatprep.subr.bf16.mxu1 %v12400_v62  ;;  %v1645_v62 = vld [vmem:[#allocation9 + $0x210] sm:$0xff]  ;;  %v1650_v22 = vld [vmem:[#allocation9 + $0x238] sm:$0xff] }
 0x1ef   :  { %v1649_v19 = vld [vmem:[#allocation9 + $0x230] sm:$0xff]  ;;  %v12436_v34 = vcombine.high %v1646_v32, %v1650_v22 }
 0x1f0   :  { %v12434_v63 = vcombine.high %v1645_v62, %v1649_v19 }
 0x1f1   :  { %2454 = vmatpush2.bf16.msra.mxu0 %v12404_v53  ;;  %2495 = vmatpush2.bf16.msra.mxu1 %v12406_v52 }
 0x1f2   :  { %2455 = vmatprep.subr.bf16.mxu0 %v12410_v44  ;;  %2496 = vmatprep.subr.bf16.mxu1 %v12412_v36  ;;  %v12440_v36 = vcombine.low %v1645_v62, %v1649_v19 }
 0x1f5   :  { %2456 = vmatpush2.bf16.msra.mxu0 %v12416_v18  ;;  %2497 = vmatpush2.bf16.msra.mxu1 %v12418_v8  ;;  %v12442_v18 = vcombine.low %v1646_v32, %v1650_v22  ;;  %v15279_v22 = vld [vmem:[#allocation102_spill] sm:$0xff] }
 0x1f6   :  { %2457 = vmatprep.subr.bf16.mxu0 %v12422_v20  ;;  %2498 = vmatprep.subr.bf16.mxu1 %v12424_v46 }
 0x1f9   :  { %2458 = vmatpush2.bf16.msra.mxu0 %v12428_v25  ;;  %2499 = vmatpush2.bf16.msra.mxu1 %v12430_v26 }
 0x1fa   :  { %2459 = vmatprep.subr.bf16.mxu0 %v12434_v63  ;;  %2500 = vmatprep.subr.bf16.mxu1 %v12436_v34 }
 0x1fd   :  { %2460 = vmatpush2.bf16.msra.mxu0 %v12440_v36  ;;  %2501 = vmatpush2.bf16.msra.mxu1 %v12442_v18 }
 0x1fe   :  { %3341 = vmatprep.subr.bf16.mxu0 %v11868_v50  ;;  %3382 = vmatprep.subr.bf16.mxu1 %v11872_v55  ;;  %v15245_v50 = vld [vmem:[#allocation50_spill] sm:$0xff] }
 0x1ff   :  { %v15247_v55 = vld [vmem:[#allocation58_spill] sm:$0xff] }
 0x200   :  { %2462 = vmatmul.mubr.bf16.vlgmr.msra.gmra.mxu0 %v12262_v9  ;;  %2503 = vmatmul.mubr.bf16.vlgmr.msra.gmra.mxu1 %v12262_v9  ;;  %v15274_v9 = vld [vmem:[#allocation97_spill] sm:$0xff] }
 0x201   :  { %3342 = vmatpush1.bf16.msra.mxu0 %v11866_v49  ;;  %3383 = vmatpush1.bf16.msra.mxu1 %v11870_v54  ;;  %v15244_v49 = vld [vmem:[#allocation49_spill] sm:$0xff] }
 0x202   :  { %3343 = vmatprep.subr.bf16.mxu0 %v11874_v56  ;;  %3384 = vmatprep.subr.bf16.mxu1 %v11877_v60  ;;  %v15246_v54 = vld [vmem:[#allocation53_spill] sm:$0xff]  ;;  %v15248_v56 = vld [vmem:[#allocation56_spill] sm:$0xff] }
 0x203   :  { %v15249_v60 = vld [vmem:[#allocation57_spill] sm:$0xff] }
 0x205   :  { %3344 = vmatpush1.bf16.msra.mxu0 %v11881_v2  ;;  %3385 = vmatpush1.bf16.msra.mxu1 %v11885_v3  ;;  %v15250_v2 = vld [vmem:[#allocation61_spill] sm:$0xff]  ;;  %v15251_v3 = vld [vmem:[#allocation66_spill] sm:$0xff] }
 0x206   :  { %3345 = vmatprep.subr.bf16.mxu0 %v11887_v4  ;;  %3386 = vmatprep.subr.bf16.mxu1 %v11890_v5  ;;  %v15252_v4 = vld [vmem:[#allocation64_spill] sm:$0xff]  ;;  %v15253_v5 = vld [vmem:[#allocation65_spill] sm:$0xff] }
 0x209   :  { %3346 = vmatpush1.bf16.msra.mxu0 %v11893_v11  ;;  %3387 = vmatpush1.bf16.msra.mxu1 %v11897_v12  ;;  %v15254_v11 = vld [vmem:[#allocation69_spill] sm:$0xff]  ;;  %v15255_v12 = vld [vmem:[#allocation74_spill] sm:$0xff] }
 0x20a   :  { %3347 = vmatprep.subr.bf16.mxu0 %v11899_v13  ;;  %3388 = vmatprep.subr.bf16.mxu1 %v11902_v14  ;;  %v15256_v13 = vld [vmem:[#allocation72_spill] sm:$0xff]  ;;  %v15257_v14 = vld [vmem:[#allocation73_spill] sm:$0xff] }
 0x20d   :  { %3348 = vmatpush1.bf16.msra.mxu0 %v11907_v21  ;;  %3389 = vmatpush1.bf16.msra.mxu1 %v11911_v23  ;;  %v15258_v21 = vld [vmem:[#allocation77_spill] sm:$0xff]  ;;  %v15259_v23 = vld [vmem:[#allocation82_spill] sm:$0xff] }
 0x20e   :  { %3349 = vmatprep.subr.bf16.mxu0 %v11913_v24  ;;  %3390 = vmatprep.subr.bf16.mxu1 %v11920_v27  ;;  %v15260_v24 = vld [vmem:[#allocation80_spill] sm:$0xff]  ;;  %v15261_v27 = vld [vmem:[#allocation81_spill] sm:$0xff] }
 0x211   :  { %3350 = vmatpush1.bf16.msra.mxu0 %v11935_v37  ;;  %3391 = vmatpush1.bf16.msra.mxu1 %v11942_v39  ;;  %v15262_v37 = vld [vmem:[#allocation85_spill] sm:$0xff]  ;;  %v15263_v39 = vld [vmem:[#allocation88_spill] sm:$0xff] }
 0x212   :  { %3351 = vmatprep.subr.bf16.mxu0 %v11944_v40  ;;  %3392 = vmatprep.subr.bf16.mxu1 %v11947_v43  ;;  %v15264_v40 = vld [vmem:[#allocation86_spill] sm:$0xff]  ;;  %v15265_v43 = vld [vmem:[#allocation87_spill] sm:$0xff] }
 0x215   :  { %3352 = vmatpush1.bf16.msra.mxu0 %v11959_v51  ;;  %3393 = vmatpush1.bf16.msra.mxu1 %v11969_v57  ;;  %v15266_v51 = vld [vmem:[#allocation89_spill] sm:$0xff]  ;;  %v15267_v57 = vld [vmem:[#allocation92_spill] sm:$0xff] }
 0x216   :  { %3353 = vmatprep.subr.bf16.mxu0 %v12026_v59  ;;  %3394 = vmatprep.subr.bf16.mxu1 %v12040_v17  ;;  %v15270_v59 = vld [vmem:[#allocation93_spill] sm:$0xff]  ;;  %v15271_v17 = vld [vmem:[#allocation96_spill] sm:$0xff] }
 0x219   :  { %3354 = vmatpush1.bf16.msra.mxu0 %v12031_v42  ;;  %3395 = vmatpush1.bf16.msra.mxu1 %v12033_v1  ;;  %v15269_v42 = vld [vmem:[#allocation91_spill] sm:$0xff]  ;;  %v15272_v1 = vld [vmem:[#allocation94_spill] sm:$0xff] }
 0x21a   :  { %3355 = vmatprep.subr.bf16.mxu0 %v12053_v33  ;;  %3396 = vmatprep.subr.bf16.mxu1 %v12067_v7  ;;  %v15268_v7 = vld [vmem:[#allocation90_spill] sm:$0xff]  ;;  %v15273_v33 = vld [vmem:[#allocation95_spill] sm:$0xff] }
 0x21d   :  { %3356 = vmatpush1.bf16.msra.mxu0 %v15244_v49  ;;  %3397 = vmatpush1.bf16.msra.mxu1 %v15245_v50 }
 0x21e   :  { %3357 = vmatprep.subr.bf16.mxu0 %v15246_v54  ;;  %3398 = vmatprep.subr.bf16.mxu1 %v15247_v55 }
 0x221   :  { %3358 = vmatpush2.bf16.msra.mxu0 %v15248_v56  ;;  %3399 = vmatpush2.bf16.msra.mxu1 %v15249_v60  ;;  %v15280_v60 = vld [vmem:[#allocation28_spill] sm:$0xff] }
 0x222   :  { %3359 = vmatprep.subr.bf16.mxu0 %v15250_v2  ;;  %3400 = vmatprep.subr.bf16.mxu1 %v15251_v3  ;;  %v15281_v3 = vld [vmem:[#allocation27_spill] sm:$0xff] }
 0x225   :  { %3360 = vmatpush2.bf16.msra.mxu0 %v15252_v4  ;;  %3401 = vmatpush2.bf16.msra.mxu1 %v15253_v5  ;;  %v15282_v5 = vld [vmem:[#allocation30_spill] sm:$0xff] }
 0x226   :  { %3361 = vmatprep.subr.bf16.mxu0 %v15254_v11  ;;  %3402 = vmatprep.subr.bf16.mxu1 %v15255_v12 }
 0x229   :  { %3362 = vmatpush2.bf16.msra.mxu0 %v15256_v13  ;;  %3403 = vmatpush2.bf16.msra.mxu1 %v15257_v14  ;;  %v15283_v13 = vld [vmem:[#allocation29_spill] sm:$0xff] }
 0x22a   :  { %3363 = vmatprep.subr.bf16.mxu0 %v15258_v21  ;;  %3404 = vmatprep.subr.bf16.mxu1 %v15259_v23 }
 0x22d   :  { %3364 = vmatpush2.bf16.msra.mxu0 %v15260_v24  ;;  %3405 = vmatpush2.bf16.msra.mxu1 %v15261_v27 }
 0x22e   :  { %3365 = vmatprep.subr.bf16.mxu0 %v15262_v37  ;;  %3406 = vmatprep.subr.bf16.mxu1 %v15263_v39  ;;  %v15284_v39 = vld [vmem:[#allocation47_spill] sm:$0xff] }
 0x231   :  { %3366 = vmatpush2.bf16.msra.mxu0 %v15264_v40  ;;  %3407 = vmatpush2.bf16.msra.mxu1 %v15265_v43 }
 0x232   :  { %3367 = vmatprep.subr.bf16.mxu0 %v15266_v51  ;;  %3408 = vmatprep.subr.bf16.mxu1 %v15267_v57  ;;  %v15285_v57 = vld [vmem:[#allocation51_spill] sm:$0xff] }
 0x235   :  { %3368 = vmatpush2.bf16.msra.mxu0 %v15268_v7  ;;  %3409 = vmatpush2.bf16.msra.mxu1 %v15269_v42 }
 0x236   :  { %3369 = vmatprep.subr.bf16.mxu0 %v15270_v59  ;;  %3410 = vmatprep.subr.bf16.mxu1 %v15271_v17  ;;  %v15286_v17 = vld [vmem:[#allocation48_spill] sm:$0xff] }
 0x239   :  { %3370 = vmatpush2.bf16.msra.mxu0 %v15272_v1  ;;  %3411 = vmatpush2.bf16.msra.mxu1 %v15273_v33 }
 0x23a   :  { %3371 = vmatprep.subr.bf16.mxu0 %v15274_v9  ;;  %3412 = vmatprep.subr.bf16.mxu1 %v15275_v28 }
 0x23d   :  { %3372 = vmatpush2.bf16.msra.mxu0 %v15276_v15  ;;  %3413 = vmatpush2.bf16.msra.mxu1 %v15277_v41  ;;  %v15287_v41 = vld [vmem:[#allocation52_spill] sm:$0xff] }
 0x23e   :  { %3423 = vmatprep.subr.bf16.mxu0 %v15278_v0  ;;  %3464 = vmatprep.subr.bf16.mxu1 %v15279_v22 }
 0x280   :  { %v2381_v32 = vpop.f32.mrf.mxu0  ;;  %v2422_v19 = vpop.f32.mrf.mxu1 }
 0x281   :  { %v2513_v2 = vadd.f32 %v2422_v19, %v15280_v60  ;;  %v2511_v4 = vadd.f32 %v2381_v32, %v15281_v3 }
 0x282   :  { %v2383_v62 = vpop.f32.mrf.mxu0  ;;  %v2424_v49 = vpop.f32.mrf.mxu1 }
 0x283   :  { %v2514_v11 = vadd.f32 %v2424_v49, %v15282_v5  ;;  %v2527_v12 = vmul.f32 0.5, %v2513_v2  ;;  %v2512_v14 = vadd.f32 %v2383_v62, %v15283_v13  ;;  %v2519_v21 = vmul.f32 0.5, %v2511_v4 }
 0x284   :  { %v2385_v50 = vpop.f32.mrf.mxu0  ;;  %v2426_v54 = vpop.f32.mrf.mxu1 }
 0x285   :  { %v2528_v23 = vmul.f32 0.5, %v2514_v11  ;;  %11304 = vtanh.f32 %v2527_v12  ;;  %v2520_v24 = vmul.f32 0.5, %v2512_v14 }
 0x286   :  { %v2386_v55 = vpop.f32.mrf.mxu0  ;;  %v2427_v56 = vpop.f32.mrf.mxu1  ;;  %11306 = vtanh.f32 %v2519_v21 }
 0x287   :  { %11308 = vtanh.f32 %v2528_v23 }
 0x288   :  { %11310 = vtanh.f32 %v2520_v24 }
 0x292   :  { %v11305_v33 = vpop.eup %11304 }
 0x293   :  { %v11307_v15 = vpop.eup %11306  ;;  %v2531_v32 = vmul.f32 0.5, %v11305_v33  ;;  %v15302_v33 = vld [vmem:[#allocation115_spill] sm:$0xff] }
 0x294   :  { %v11309_v22 = vpop.eup %11308  ;;  %v2523_v49 = vmul.f32 0.5, %v11307_v15  ;;  %v15305_v15 = vld [vmem:[#allocation118_spill] sm:$0xff] }
 0x295   :  { %v11311_v62 = vpop.eup %11310  ;;  %v2532_v50 = vmul.f32 0.5, %v11309_v22  ;;  %v2533_v55 = vadd.f32 0.5, %v2531_v32  ;;  %v15308_v22 = vld [vmem:[#allocation121_spill] sm:$0xff]  ;;  %v15309_v32 = vld [vmem:[#allocation122_spill] sm:$0xff] }
 0x296   :  { %v2524_v56 = vmul.f32 0.5, %v11311_v62  ;;  %v2525_v60 = vadd.f32 0.5, %v2523_v49  ;;  %v15311_v62 = vld [vmem:[#allocation124_spill] sm:$0xff]  ;;  %v15312_v49 = vld [vmem:[#allocation125_spill] sm:$0xff] }
 0x297   :  { %v2534_v3 = vadd.f32 0.5, %v2532_v50  ;;  %v2545_v4 = vmul.f32 %v2533_v55, %v12248_v31  ;;  %v15313_v50 = vld [vmem:[#allocation126_spill] sm:$0xff]  ;;  %v15315_v55 = vld [vmem:[#allocation128_spill] sm:$0xff] }
 0x298   :  { %v2526_v11 = vadd.f32 0.5, %v2524_v56  ;;  %v15316_v56 = vld [vmem:[#allocation129_spill] sm:$0xff] }
 0x299   :  { %v2546_v14 = vmul.f32 %v2534_v3, %v12251_v35  ;;  %v15319_v3 = vld [vmem:[#allocation132_spill] sm:$0xff] }
 0x2c0   :  { %v2463_v27 = vpop.f32.mrf.mxu0  ;;  %v2504_v37 = vpop.f32.mrf.mxu1 }
 0x2c1   :  { %v2515_v40 = vadd.f32 %v2463_v27, %v15284_v39  ;;  %v2517_v1 = vadd.f32 %v2504_v37, %v15286_v17 }
 0x2c2   :  { %v2465_v43 = vpop.f32.mrf.mxu0  ;;  %v2506_v51 = vpop.f32.mrf.mxu1 }
 0x2c3   :  { %11312 = vtanh.f32 %v2515_v40  ;;  %v2516_v7 = vadd.f32 %v2465_v43, %v15285_v57  ;;  %v2518_v0 = vadd.f32 %v2506_v51, %v15287_v41  ;;  %v2537_v19 = vmul.f32 0.5, %v2517_v1  ;;  %v15301_v1 = vld [vmem:[#allocation114_spill] sm:$0xff]  ;;  %v15306_v41 = vld [vmem:[#allocation119_spill] sm:$0xff] }
 0x2c4   :  { %v2467_v42 = vpop.f32.mrf.mxu0  ;;  %v2508_v59 = vpop.f32.mrf.mxu1 }
 0x2c5   :  { %11314 = vtanh.f32 %v2516_v7  ;;  %v2538_v54 = vmul.f32 0.5, %v2518_v0  ;;  %v15307_v0 = vld [vmem:[#allocation120_spill] sm:$0xff] }
 0x2c6   :  { %v2468_v9 = vpop.f32.mrf.mxu0  ;;  %v2509_v28 = vpop.f32.mrf.mxu1  ;;  %11316 = vtanh.f32 %v2537_v19  ;;  %v15310_v19 = vld [vmem:[#allocation123_spill] sm:$0xff] }
 0x2c7   :  { %11318 = vtanh.f32 %v2538_v54  ;;  %v15303_v9 = vld [vmem:[#allocation116_spill] sm:$0xff]  ;;  %v15304_v28 = vld [vmem:[#allocation117_spill] sm:$0xff]  ;;  %v15314_v54 = vld [vmem:[#allocation127_spill] sm:$0xff] }
 0x2d0   :  { %v11313_v2 = vpop.eup %11312 }
 0x2d1   :  { %v2547_v5 = vmul.f32 %v11313_v2, %v2525_v60  ;;  %v15317_v60 = vld [vmem:[#allocation130_spill] sm:$0xff]  ;;  %v15318_v2 = vld [vmem:[#allocation131_spill] sm:$0xff] }
 0x2d2   :  { %v11315_v12 = vpop.eup %11314 }
 0x2d3   :  { %v12525_v13 = vadd.f32 %v2547_v5, %v2545_v4  ;;  %v2548_v21 = vmul.f32 %v11315_v12, %v2526_v11  ;;  %v11317_v24 = vpop.eup %11316  ;;  %v15320_v4 = vld [vmem:[#allocation133_spill] sm:$0xff]  ;;  %v15321_v5 = vld [vmem:[#allocation134_spill] sm:$0xff]  ;;  %v15322_v11 = vld [vmem:[#allocation135_spill] sm:$0xff] }
 0x2d4   :  { %v11319_v27 = vpop.eup %11318  ;;  %v2541_v37 = vmul.f32 0.5, %v11317_v24  ;;  %v15323_v12 = vld [vmem:[#allocation136_spill] sm:$0xff]  ;;  %v15326_v24 = vld [vmem:[#allocation139_spill] sm:$0xff] }
 0x2d5   :  { %11320 = vtanh.f32 %v12525_v13  ;;  %v12529_v23 = vadd.f32 %v2548_v21, %v2546_v14  ;;  %v2542_v39 = vmul.f32 0.5, %v11319_v27  ;;  %v15324_v14 = vld [vmem:[#allocation137_spill] sm:$0xff]  ;;  %v15325_v21 = vld [vmem:[#allocation138_spill] sm:$0xff]  ;;  %v15327_v27 = vld [vmem:[#allocation140_spill] sm:$0xff] }
 0x2d6   :  { %v2543_v40 = vadd.f32 0.5, %v2541_v37  ;;  %v15328_v37 = vld [vmem:[#allocation141_spill] sm:$0xff] }
 0x2d7   :  { %11322 = vtanh.f32 %v12529_v23  ;;  %v2544_v51 = vadd.f32 0.5, %v2542_v39  ;;  %v15329_v39 = vld [vmem:[#allocation142_spill] sm:$0xff] }
 0x2e2   :  { %v11321_v31 = vpop.eup %11320 }
 0x2e3   :  { %v2553_v43 = vmul.f32 %v11321_v31, %v2543_v40  ;;  %v15330_v40 = vld [vmem:[#allocation143_spill] sm:$0xff]  ;;  %v3620_v31 = vld [vmem:[#allocation9 + $0x1a8] sm:$0xff] }
 0x2e4   :  { %v11323_v57 = vpop.eup %11322 }
 0x2e5   :  { %v12533_v7 = vpack.c.bf16 %v2553_v43, %v12254_v47  ;;  %v2554_v35 = vmul.f32 %v11323_v57, %v2544_v51  ;;  %v12538_v17 = vpack.c.bf16 %v2553_v43, %v2553_v43  ;;  %v15290_v47 = vld [vmem:[#allocation103_spill] sm:$0xff] }
 0x2e6   :  { %v3607_v43 = vld [vmem:[#allocation9 + $0x140] sm:$0xff] }
 0x2e7   :  { %15288 = vst [vmem:[#allocation49_spill] sm:$0xff] %v12533_v7  ;;  %v12536_v42 = vpack.c.bf16 %v2554_v35, %v12256_v58  ;;  %v2572_v59 = vpack.c.bf16 %v2554_v35, %v2554_v35  ;;  %v15293_v58 = vld [vmem:[#allocation106_spill] sm:$0xff]  ;;  %v3611_v57 = vld [vmem:[#allocation9 + $0x160] sm:$0xff]  ;;  %v3608_v35 = vld [vmem:[#allocation9 + $0x148] sm:$0xff] }
 0x2e8   :  { %v3652_v7 = vld [vmem:[#allocation9 + $0x2a8] sm:$0xff] }
 0x2e9   :  { %15289 = vst [vmem:[#allocation50_spill] sm:$0xff] %v12536_v42  ;;  %3373 = vmatprep.mubr.bf16.mxu0 %v2572_v59  ;;  %3414 = vmatprep.mubr.bf16.mxu1 %v2572_v59  ;;  %v3643_v42 = vld [vmem:[#allocation9 + $0x260] sm:$0xff] }
 0x2ea   :  { %3374 = vmatmul.mubr.bf16.vlgmr.msra.gmra.mxu0 %v12538_v17  ;;  %3415 = vmatmul.mubr.bf16.vlgmr.msra.gmra.mxu1 %v12538_v17 }
 0x2eb   :  { %3424 = vmatpush1.bf16.msra.mxu0 %v12224_v10  ;;  %3465 = vmatpush1.bf16.msra.mxu1 %v12226_v45  ;;  %v15291_v10 = vld [vmem:[#allocation104_spill] sm:$0xff]  ;;  %v15292_v45 = vld [vmem:[#allocation105_spill] sm:$0xff] }
 0x2ec   :  { %3455 = vmatprep.mubr.bf16.mxu0 %v2572_v59  ;;  %3496 = vmatprep.mubr.bf16.mxu1 %v2572_v59  ;;  %v3612_v59 = vld [vmem:[#allocation9 + $0x168] sm:$0xff] }
 0x2ed   :  { %3425 = vmatprep.subr.bf16.mxu0 %v12264_v61  ;;  %3466 = vmatprep.subr.bf16.mxu1 %v12266_v30  ;;  %v15294_v61 = vld [vmem:[#allocation107_spill] sm:$0xff]  ;;  %v15295_v30 = vld [vmem:[#allocation108_spill] sm:$0xff] }
 0x2ef   :  { %3426 = vmatpush1.bf16.msra.mxu0 %v12272_v48  ;;  %3467 = vmatpush1.bf16.msra.mxu1 %v12274_v6  ;;  %v15296_v48 = vld [vmem:[#allocation109_spill] sm:$0xff]  ;;  %v15297_v6 = vld [vmem:[#allocation110_spill] sm:$0xff] }
 0x2f0   :  { %3427 = vmatprep.subr.bf16.mxu0 %v12276_v29  ;;  %3468 = vmatprep.subr.bf16.mxu1 %v12278_v16  ;;  %v15298_v29 = vld [vmem:[#allocation111_spill] sm:$0xff]  ;;  %v15299_v16 = vld [vmem:[#allocation112_spill] sm:$0xff] }
 0x2f3   :  { %3428 = vmatpush1.bf16.msra.mxu0 %v12284_v38  ;;  %3469 = vmatpush1.bf16.msra.mxu1 %v15290_v47  ;;  %v15300_v38 = vld [vmem:[#allocation113_spill] sm:$0xff] }
 0x2f4   :  { %3429 = vmatprep.subr.bf16.mxu0 %v15291_v10  ;;  %3470 = vmatprep.subr.bf16.mxu1 %v15292_v45  ;;  %v12627_v10 = vcombine.high %v3607_v43, %v3611_v57  ;;  %v12630_v45 = vcombine.high %v3608_v35, %v3612_v59 }
 0x2f7   :  { %3430 = vmatpush1.bf16.msra.mxu0 %v15293_v58  ;;  %3471 = vmatpush1.bf16.msra.mxu1 %v15294_v61  ;;  %v3599_v58 = vld [vmem:[#allocation9 + $0x100] sm:$0xff] }
 0x2f8   :  { %3431 = vmatprep.subr.bf16.mxu0 %v15295_v30  ;;  %3472 = vmatprep.subr.bf16.mxu1 %v15296_v48  ;;  %v3603_v61 = vld [vmem:[#allocation9 + $0x120] sm:$0xff]  ;;  %v3600_v30 = vld [vmem:[#allocation9 + $0x108] sm:$0xff] }
 0x2f9   :  { %v3604_v48 = vld [vmem:[#allocation9 + $0x128] sm:$0xff] }
 0x2fb   :  { %3432 = vmatpush1.bf16.msra.mxu0 %v15297_v6  ;;  %3473 = vmatpush1.bf16.msra.mxu1 %v15298_v29  ;;  %v12633_v6 = vcombine.low %v3607_v43, %v3611_v57  ;;  %v12637_v29 = vcombine.low %v3608_v35, %v3612_v59  ;;  %v3692_v43 = vld [vmem:[#allocation9 + $0x3e8] sm:$0xff] }
 0x2fc   :  { %3433 = vmatprep.subr.bf16.mxu0 %v15299_v16  ;;  %3474 = vmatprep.subr.bf16.mxu1 %v15300_v38  ;;  %v12639_v16 = vcombine.high %v3599_v58, %v3603_v61  ;;  %v12642_v38 = vcombine.high %v3600_v30, %v3604_v48 }
 0x2ff   :  { %3434 = vmatpush1.bf16.msra.mxu0 %v15301_v1  ;;  %3475 = vmatpush1.bf16.msra.mxu1 %v15302_v33  ;;  %v3591_v1 = vld [vmem:[#allocation9 + $0xc0] sm:$0xff] }
 0x300   :  { %3435 = vmatprep.subr.bf16.mxu0 %v15303_v9  ;;  %3476 = vmatprep.subr.bf16.mxu1 %v15304_v28  ;;  %v3595_v33 = vld [vmem:[#allocation9 + $0xe0] sm:$0xff]  ;;  %v3592_v9 = vld [vmem:[#allocation9 + $0xc8] sm:$0xff] }
 0x301   :  { %v3596_v28 = vld [vmem:[#allocation9 + $0xe8] sm:$0xff] }
 0x303   :  { %3436 = vmatpush1.bf16.msra.mxu0 %v15305_v15  ;;  %3477 = vmatpush1.bf16.msra.mxu1 %v15306_v41  ;;  %v12645_v15 = vcombine.low %v3599_v58, %v3603_v61  ;;  %v12649_v41 = vcombine.low %v3600_v30, %v3604_v48  ;;  %v3679_v58 = vld [vmem:[#allocation9 + $0x380] sm:$0xff]  ;;  %v3680_v30 = vld [vmem:[#allocation9 + $0x388] sm:$0xff] }
 0x304   :  { %3437 = vmatprep.subr.bf16.mxu0 %v15307_v0  ;;  %3478 = vmatprep.subr.bf16.mxu1 %v15308_v22  ;;  %v12651_v0 = vcombine.high %v3591_v1, %v3595_v33  ;;  %v12654_v22 = vcombine.high %v3592_v9, %v3596_v28  ;;  %v3683_v61 = vld [vmem:[#allocation9 + $0x3a0] sm:$0xff] }
 0x305   :  { %v12714_v48 = vcombine.high %v3679_v58, %v3683_v61 }
 0x307   :  { %3438 = vmatpush1.bf16.msra.mxu0 %v15309_v32  ;;  %3479 = vmatpush1.bf16.msra.mxu1 %v15310_v19  ;;  %v3583_v32 = vld [vmem:[#allocation9 + $0x80] sm:$0xff] }
 0x308   :  { %3439 = vmatprep.subr.bf16.mxu0 %v15311_v62  ;;  %3480 = vmatprep.subr.bf16.mxu1 %v15312_v49  ;;  %v3587_v19 = vld [vmem:[#allocation9 + $0xa0] sm:$0xff]  ;;  %v3584_v62 = vld [vmem:[#allocation9 + $0x88] sm:$0xff] }
 0x309   :  { %v3588_v49 = vld [vmem:[#allocation9 + $0xa8] sm:$0xff] }
 0x30b   :  { %3440 = vmatpush2.bf16.msra.mxu0 %v15313_v50  ;;  %3481 = vmatpush2.bf16.msra.mxu1 %v15314_v54  ;;  %v12657_v50 = vcombine.low %v3591_v1, %v3595_v33  ;;  %v12661_v54 = vcombine.low %v3592_v9, %v3596_v28  ;;  %v3684_v1 = vld [vmem:[#allocation9 + $0x3a8] sm:$0xff]  ;;  %v12716_v33 = vcombine.low %v3679_v58, %v3683_v61  ;;  %v3655_v58 = vld [vmem:[#allocation9 + $0x2c0] sm:$0xff] }
 0x30c   :  { %3441 = vmatprep.subr.bf16.mxu0 %v15315_v55  ;;  %3482 = vmatprep.subr.bf16.mxu1 %v15316_v56  ;;  %v12663_v55 = vcombine.high %v3583_v32, %v3587_v19  ;;  %v12666_v56 = vcombine.high %v3584_v62, %v3588_v49  ;;  %v12718_v9 = vcombine.low %v3680_v30, %v3684_v1  ;;  %v3659_v61 = vld [vmem:[#allocation9 + $0x2e0] sm:$0xff] }
 0x30d   :  { %15331 = vst [vmem:[#allocation53_spill] sm:$0xff] %v12716_v33  ;;  %v12720_v28 = vcombine.high %v3680_v30, %v3684_v1  ;;  %v3656_v30 = vld [vmem:[#allocation9 + $0x2c8] sm:$0xff]  ;;  %v12750_v1 = vcombine.high %v3655_v58, %v3659_v61 }
 0x30e   :  { %15332 = vst [vmem:[#allocation58_spill] sm:$0xff] %v12718_v9 }
 0x30f   :  { %3442 = vmatpush2.bf16.msra.mxu0 %v15317_v60  ;;  %3483 = vmatpush2.bf16.msra.mxu1 %v15318_v2  ;;  %v12669_v60 = vcombine.low %v3583_v32, %v3587_v19  ;;  %v12673_v2 = vcombine.low %v3584_v62, %v3588_v49  ;;  %15333 = vst [vmem:[#allocation56_spill] sm:$0xff] %v12720_v28  ;;  %v3671_v32 = vld [vmem:[#allocation9 + $0x340] sm:$0xff]  ;;  %v3672_v62 = vld [vmem:[#allocation9 + $0x348] sm:$0xff]  ;;  %15342 = vst [vmem:[#allocation73_spill] sm:$0xff] %v12750_v1 }
 0x310   :  { %3443 = vmatprep.subr.bf16.mxu0 %v15319_v3  ;;  %3484 = vmatprep.subr.bf16.mxu1 %v15320_v4  ;;  %v3575_v3 = vld [vmem:[#allocation9 + $0x40] sm:$0xff] }
 0x311   :  { %v3579_v4 = vld [vmem:[#allocation9 + $0x60] sm:$0xff] }
 0x312   :  { %v3675_v19 = vld [vmem:[#allocation9 + $0x360] sm:$0xff] }
 0x313   :  { %3444 = vmatpush2.bf16.msra.mxu0 %v15321_v5  ;;  %3485 = vmatpush2.bf16.msra.mxu1 %v15322_v11  ;;  %v3576_v5 = vld [vmem:[#allocation9 + $0x48] sm:$0xff]  ;;  %v12678_v11 = vcombine.high %v3575_v3, %v3579_v4  ;;  %v12726_v49 = vcombine.high %v3671_v32, %v3675_v19 }
 0x314   :  { %3445 = vmatprep.subr.bf16.mxu0 %v15323_v12  ;;  %3486 = vmatprep.subr.bf16.mxu1 %v15324_v14  ;;  %v3580_v12 = vld [vmem:[#allocation9 + $0x68] sm:$0xff]  ;;  %v12680_v14 = vcombine.low %v3575_v3, %v3579_v4  ;;  %v12728_v4 = vcombine.low %v3671_v32, %v3675_v19  ;;  %v12752_v19 = vcombine.low %v3655_v58, %v3659_v61 }
 0x315   :  { %15334 = vst [vmem:[#allocation57_spill] sm:$0xff] %v12726_v49  ;;  %v3676_v3 = vld [vmem:[#allocation9 + $0x368] sm:$0xff] }
 0x316   :  { %15335 = vst [vmem:[#allocation61_spill] sm:$0xff] %v12728_v4  ;;  %v3660_v32 = vld [vmem:[#allocation9 + $0x2e8] sm:$0xff]  ;;  %15343 = vst [vmem:[#allocation77_spill] sm:$0xff] %v12752_v19 }
 0x317   :  { %3446 = vmatpush2.bf16.msra.mxu0 %v15325_v21  ;;  %3487 = vmatpush2.bf16.msra.mxu1 %v15326_v24  ;;  %v12682_v21 = vcombine.low %v3576_v5, %v3580_v12  ;;  %v12684_v24 = vcombine.high %v3576_v5, %v3580_v12  ;;  %v12730_v5 = vcombine.low %v3672_v62, %v3676_v3 }
 0x318   :  { %3447 = vmatprep.subr.bf16.mxu0 %v15327_v27  ;;  %3488 = vmatprep.subr.bf16.mxu1 %v15328_v37  ;;  %v3567_v27 = vld [vmem:[#allocation9] sm:$0xff]  ;;  %v12732_v12 = vcombine.high %v3672_v62, %v3676_v3  ;;  %v12754_v62 = vcombine.low %v3656_v30, %v3660_v32  ;;  %v12756_v3 = vcombine.high %v3656_v30, %v3660_v32 }
 0x319   :  { %v3571_v37 = vld [vmem:[#allocation9 + $0x20] sm:$0xff]  ;;  %15336 = vst [vmem:[#allocation66_spill] sm:$0xff] %v12730_v5 }
 0x31a   :  { %15337 = vst [vmem:[#allocation64_spill] sm:$0xff] %v12732_v12  ;;  %15344 = vst [vmem:[#allocation82_spill] sm:$0xff] %v12754_v62  ;;  %v3639_v32 = vld [vmem:[#allocation9 + $0x240] sm:$0xff] }
 0x31b   :  { %3448 = vmatpush2.bf16.msra.mxu0 %v12404_v53  ;;  %3489 = vmatpush2.bf16.msra.mxu1 %v12406_v52  ;;  %v3623_v53 = vld [vmem:[#allocation9 + $0x1c0] sm:$0xff]  ;;  %15345 = vst [vmem:[#allocation80_spill] sm:$0xff] %v12756_v3 }
 0x31c   :  { %3449 = vmatprep.subr.bf16.mxu0 %v12410_v44  ;;  %3490 = vmatprep.subr.bf16.mxu1 %v15329_v39  ;;  %v3627_v52 = vld [vmem:[#allocation9 + $0x1e0] sm:$0xff]  ;;  %v3624_v44 = vld [vmem:[#allocation9 + $0x1c8] sm:$0xff] }
 0x31d   :  { %v3568_v39 = vld [vmem:[#allocation9 + $0x8] sm:$0xff] }
 0x31f   :  { %3450 = vmatpush2.bf16.msra.mxu0 %v15330_v40  ;;  %3491 = vmatpush2.bf16.msra.mxu1 %v12418_v8  ;;  %v12606_v8 = vcombine.low %v3623_v53, %v3627_v52  ;;  %v12690_v40 = vcombine.high %v3567_v27, %v3571_v37 }
 0x320   :  { %3451 = vmatprep.subr.bf16.mxu0 %v12422_v20  ;;  %3492 = vmatprep.subr.bf16.mxu1 %v12424_v46  ;;  %v12608_v20 = vcombine.high %v3623_v53, %v3627_v52  ;;  %v3628_v46 = vld [vmem:[#allocation9 + $0x1e8] sm:$0xff]  ;;  %v12692_v52 = vcombine.low %v3567_v27, %v3571_v37  ;;  %v3663_v27 = vld [vmem:[#allocation9 + $0x300] sm:$0xff] }
 0x321   :  { %v3572_v53 = vld [vmem:[#allocation9 + $0x28] sm:$0xff]  ;;  %v3667_v37 = vld [vmem:[#allocation9 + $0x320] sm:$0xff] }
 0x323   :  { %3452 = vmatpush2.bf16.msra.mxu0 %v12428_v25  ;;  %3493 = vmatpush2.bf16.msra.mxu1 %v12430_v26  ;;  %v3615_v25 = vld [vmem:[#allocation9 + $0x180] sm:$0xff] }
 0x324   :  { %3453 = vmatprep.subr.bf16.mxu0 %v12434_v63  ;;  %3494 = vmatprep.subr.bf16.mxu1 %v12436_v34  ;;  %v3619_v26 = vld [vmem:[#allocation9 + $0x1a0] sm:$0xff]  ;;  %v12610_v63 = vcombine.low %v3624_v44, %v3628_v46  ;;  %v12612_v34 = vcombine.high %v3624_v44, %v3628_v46  ;;  %v12694_v44 = vcombine.low %v3568_v39, %v3572_v53 }
 0x325   :  { %v12696_v46 = vcombine.high %v3568_v39, %v3572_v53  ;;  %v3664_v39 = vld [vmem:[#allocation9 + $0x308] sm:$0xff]  ;;  %v12738_v53 = vcombine.high %v3663_v27, %v3667_v37 }
 0x327   :  { %3454 = vmatpush2.bf16.msra.mxu0 %v12440_v36  ;;  %3495 = vmatpush2.bf16.msra.mxu1 %v12442_v18  ;;  %v12614_v36 = vcombine.high %v3615_v25, %v3619_v26  ;;  %v3616_v18 = vld [vmem:[#allocation9 + $0x188] sm:$0xff]  ;;  %15338 = vst [vmem:[#allocation65_spill] sm:$0xff] %v12738_v53 }
 0x328   :  { %4335 = vmatprep.subr.bf16.mxu0 %v12608_v20  ;;  %v12617_v51 = vcombine.high %v3616_v18, %v3620_v31  ;;  %4376 = vmatprep.subr.bf16.mxu1 %v12612_v34  ;;  %v12625_v47 = vcombine.low %v3616_v18, %v3620_v31  ;;  %v3688_v18 = vld [vmem:[#allocation9 + $0x3c8] sm:$0xff] }
 0x329   :  { %v12706_v35 = vcombine.low %v3688_v18, %v3692_v43  ;;  %v12708_v59 = vcombine.high %v3688_v18, %v3692_v43 }
 0x32a   :  { %3456 = vmatmul.mubr.bf16.vlgmr.msra.gmra.mxu0 %v12538_v17  ;;  %3497 = vmatmul.mubr.bf16.vlgmr.msra.gmra.mxu1 %v12538_v17  ;;  %v12621_v17 = vcombine.low %v3615_v25, %v3619_v26  ;;  %v3687_v25 = vld [vmem:[#allocation9 + $0x3c0] sm:$0xff] }
 0x32b   :  { %4336 = vmatpush1.bf16.msra.mxu0 %v12606_v8  ;;  %4377 = vmatpush1.bf16.msra.mxu1 %v12610_v63  ;;  %v3691_v26 = vld [vmem:[#allocation9 + $0x3e0] sm:$0xff] }
 0x32c   :  { %4337 = vmatprep.subr.bf16.mxu0 %v12614_v36  ;;  %4378 = vmatprep.subr.bf16.mxu1 %v12617_v51  ;;  %v12702_v31 = vcombine.high %v3687_v25, %v3691_v26  ;;  %v12704_v57 = vcombine.low %v3687_v25, %v3691_v26  ;;  %v3668_v25 = vld [vmem:[#allocation9 + $0x328] sm:$0xff]  ;;  %v12740_v26 = vcombine.low %v3663_v27, %v3667_v37  ;;  %v3647_v27 = vld [vmem:[#allocation9 + $0x280] sm:$0xff] }
 0x32d   :  { %v12742_v18 = vcombine.low %v3664_v39, %v3668_v25  ;;  %v12744_v43 = vcombine.high %v3664_v39, %v3668_v25  ;;  %v3651_v37 = vld [vmem:[#allocation9 + $0x2a0] sm:$0xff]  ;;  %v3648_v39 = vld [vmem:[#allocation9 + $0x288] sm:$0xff] }
 0x32e   :  { %15339 = vst [vmem:[#allocation69_spill] sm:$0xff] %v12740_v26  ;;  %v12762_v25 = vcombine.high %v3647_v27, %v3651_v37  ;;  %v12764_v58 = vcombine.low %v3647_v27, %v3651_v37  ;;  %v12766_v61 = vcombine.low %v3648_v39, %v3652_v7  ;;  %v12768_v30 = vcombine.high %v3648_v39, %v3652_v7  ;;  %v3631_v39 = vld [vmem:[#allocation9 + $0x200] sm:$0xff] }
 0x32f   :  { %4338 = vmatpush1.bf16.msra.mxu0 %v12621_v17  ;;  %4379 = vmatpush1.bf16.msra.mxu1 %v12625_v47  ;;  %15340 = vst [vmem:[#allocation74_spill] sm:$0xff] %v12742_v18  ;;  %15341 = vst [vmem:[#allocation72_spill] sm:$0xff] %v12744_v43  ;;  %v12776_v27 = vcombine.low %v3639_v32, %v3643_v42 }
 0x330   :  { %4339 = vmatprep.subr.bf16.mxu0 %v12627_v10  ;;  %4380 = vmatprep.subr.bf16.mxu1 %v12630_v45  ;;  %15346 = vst [vmem:[#allocation81_spill] sm:$0xff] %v12762_v25  ;;  %15347 = vst [vmem:[#allocation85_spill] sm:$0xff] %v12764_v58 }
 0x331   :  { %15348 = vst [vmem:[#allocation88_spill] sm:$0xff] %v12766_v61  ;;  %15349 = vst [vmem:[#allocation86_spill] sm:$0xff] %v12768_v30 }
 0x332   :  { %15351 = vst [vmem:[#allocation89_spill] sm:$0xff] %v12776_v27 }
 0x333   :  { %4340 = vmatpush1.bf16.msra.mxu0 %v12633_v6  ;;  %4381 = vmatpush1.bf16.msra.mxu1 %v12637_v29 }
 0x334   :  { %4341 = vmatprep.subr.bf16.mxu0 %v12639_v16  ;;  %4382 = vmatprep.subr.bf16.mxu1 %v12642_v38 }
 0x337   :  { %4342 = vmatpush1.bf16.msra.mxu0 %v12645_v15  ;;  %4383 = vmatpush1.bf16.msra.mxu1 %v12649_v41 }
 0x338   :  { %4343 = vmatprep.subr.bf16.mxu0 %v12651_v0  ;;  %4384 = vmatprep.subr.bf16.mxu1 %v12654_v22 }
 0x33b   :  { %4344 = vmatpush1.bf16.msra.mxu0 %v12657_v50  ;;  %4385 = vmatpush1.bf16.msra.mxu1 %v12661_v54 }
 0x33c   :  { %4345 = vmatprep.subr.bf16.mxu0 %v12663_v55  ;;  %4386 = vmatprep.subr.bf16.mxu1 %v12666_v56 }
 0x33f   :  { %4346 = vmatpush1.bf16.msra.mxu0 %v12669_v60  ;;  %4387 = vmatpush1.bf16.msra.mxu1 %v12673_v2 }
 0x340   :  { %4347 = vmatprep.subr.bf16.mxu0 %v12678_v11  ;;  %4388 = vmatprep.subr.bf16.mxu1 %v12684_v24 }
 0x343   :  { %4348 = vmatpush1.bf16.msra.mxu0 %v12680_v14  ;;  %4389 = vmatpush1.bf16.msra.mxu1 %v12682_v21 }
 0x344   :  { %4349 = vmatprep.subr.bf16.mxu0 %v12690_v40  ;;  %4390 = vmatprep.subr.bf16.mxu1 %v12696_v46 }
 0x347   :  { %4350 = vmatpush1.bf16.msra.mxu0 %v12692_v52  ;;  %4391 = vmatpush1.bf16.msra.mxu1 %v12694_v44 }
 0x348   :  { %4351 = vmatprep.subr.bf16.mxu0 %v12702_v31  ;;  %4392 = vmatprep.subr.bf16.mxu1 %v12708_v59 }
 0x34b   :  { %4352 = vmatpush2.bf16.msra.mxu0 %v12704_v57  ;;  %4393 = vmatpush2.bf16.msra.mxu1 %v12706_v35 }
 0x34c   :  { %4353 = vmatprep.subr.bf16.mxu0 %v12714_v48  ;;  %4394 = vmatprep.subr.bf16.mxu1 %v12720_v28 }
 0x34f   :  { %4354 = vmatpush2.bf16.msra.mxu0 %v12716_v33  ;;  %4395 = vmatpush2.bf16.msra.mxu1 %v12718_v9 }
 0x350   :  { %4355 = vmatprep.subr.bf16.mxu0 %v12726_v49  ;;  %4396 = vmatprep.subr.bf16.mxu1 %v12732_v12 }
 0x353   :  { %4356 = vmatpush2.bf16.msra.mxu0 %v12728_v4  ;;  %4397 = vmatpush2.bf16.msra.mxu1 %v12730_v5  ;;  %v15362_v5 = vld [vmem:[#allocation34_spill] sm:$0xff] }
 0x354   :  { %4357 = vmatprep.subr.bf16.mxu0 %v12738_v53  ;;  %4398 = vmatprep.subr.bf16.mxu1 %v12744_v43  ;;  %v15360_v43 = vld [vmem:[#allocation32_spill] sm:$0xff] }
 0x357   :  { %4358 = vmatpush2.bf16.msra.mxu0 %v12740_v26  ;;  %4399 = vmatpush2.bf16.msra.mxu1 %v12742_v18 }
 0x358   :  { %4359 = vmatprep.subr.bf16.mxu0 %v12750_v1  ;;  %4400 = vmatprep.subr.bf16.mxu1 %v12756_v3  ;;  %v3644_v3 = vld [vmem:[#allocation9 + $0x268] sm:$0xff] }
 0x35b   :  { %4360 = vmatpush2.bf16.msra.mxu0 %v12752_v19  ;;  %4401 = vmatpush2.bf16.msra.mxu1 %v12754_v62  ;;  %v3640_v19 = vld [vmem:[#allocation9 + $0x248] sm:$0xff]  ;;  %v12774_v62 = vcombine.high %v3639_v32, %v3643_v42 }
 0x35c   :  { %4361 = vmatprep.subr.bf16.mxu0 %v12762_v25  ;;  %4402 = vmatprep.subr.bf16.mxu1 %v12768_v30  ;;  %v12778_v37 = vcombine.low %v3640_v19, %v3644_v3  ;;  %v12780_v7 = vcombine.high %v3640_v19, %v3644_v3  ;;  %v3632_v30 = vld [vmem:[#allocation9 + $0x208] sm:$0xff]  ;;  %v3625_v3 = vld [vmem:[#allocation9 + $0x1d0] sm:$0xff] }
 0x35d   :  { %15350 = vst [vmem:[#allocation87_spill] sm:$0xff] %v12774_v62  ;;  %v3636_v25 = vld [vmem:[#allocation9 + $0x228] sm:$0xff] }
 0x35e   :  { %15352 = vst [vmem:[#allocation92_spill] sm:$0xff] %v12778_v37  ;;  %15353 = vst [vmem:[#allocation90_spill] sm:$0xff] %v12780_v7  ;;  %v12790_v32 = vcombine.low %v3632_v30, %v3636_v25  ;;  %v12792_v19 = vcombine.high %v3632_v30, %v3636_v25 }
 0x35f   :  { %4362 = vmatpush2.bf16.msra.mxu0 %v12764_v58  ;;  %4403 = vmatpush2.bf16.msra.mxu1 %v12766_v61  ;;  %v3635_v58 = vld [vmem:[#allocation9 + $0x220] sm:$0xff] }
 0x360   :  { %4363 = vmatprep.subr.bf16.mxu0 %v12774_v62  ;;  %4404 = vmatprep.subr.bf16.mxu1 %v12780_v7  ;;  %v12786_v61 = vcombine.high %v3631_v39, %v3635_v58  ;;  %v12788_v42 = vcombine.low %v3631_v39, %v3635_v58  ;;  %15356 = vst [vmem:[#allocation96_spill] sm:$0xff] %v12790_v32  ;;  %15357 = vst [vmem:[#allocation94_spill] sm:$0xff] %v12792_v19  ;;  %v3626_v7 = vld [vmem:[#allocation9 + $0x1d8] sm:$0xff] }
 0x361   :  { %v3630_v62 = vld [vmem:[#allocation9 + $0x1f8] sm:$0xff] }
 0x362   :  { %15354 = vst [vmem:[#allocation91_spill] sm:$0xff] %v12786_v61  ;;  %15355 = vst [vmem:[#allocation93_spill] sm:$0xff] %v12788_v42  ;;  %v12802_v39 = vcombine.low %v3626_v7, %v3630_v62  ;;  %v12804_v25 = vcombine.high %v3626_v7, %v3630_v62  ;;  %v15363_v7 = vld [vmem:[#allocation33_spill] sm:$0xff] }
 0x363   :  { %4364 = vmatpush2.bf16.msra.mxu0 %v12776_v27  ;;  %4405 = vmatpush2.bf16.msra.mxu1 %v12778_v37  ;;  %v3629_v27 = vld [vmem:[#allocation9 + $0x1f0] sm:$0xff] }
 0x364   :  { %4365 = vmatprep.subr.bf16.mxu0 %v12786_v61  ;;  %4406 = vmatprep.subr.bf16.mxu1 %v12792_v19  ;;  %v12798_v37 = vcombine.high %v3625_v3, %v3629_v27  ;;  %v12800_v58 = vcombine.low %v3625_v3, %v3629_v27  ;;  %15359 = vst [vmem:[#allocation97_spill] sm:$0xff] %v12804_v25  ;;  %v15361_v27 = vld [vmem:[#allocation31_spill] sm:$0xff] }
 0x366   :  { %15358 = vst [vmem:[#allocation95_spill] sm:$0xff] %v12798_v37 }
 0x367   :  { %4366 = vmatpush2.bf16.msra.mxu0 %v12788_v42  ;;  %4407 = vmatpush2.bf16.msra.mxu1 %v12790_v32 }
 0x368   :  { %4417 = vmatprep.subr.bf16.mxu0 %v12798_v37  ;;  %4458 = vmatprep.subr.bf16.mxu1 %v12804_v25 }
 0x3aa   :  { %v3375_v30 = vpop.f32.mrf.mxu0  ;;  %v3416_v42 = vpop.f32.mrf.mxu1 }
 0x3ab   :  { %v3507_v53 = vadd.f32 %v3416_v42, %v15360_v43  ;;  %v3505_v3 = vadd.f32 %v3375_v30, %v15361_v27  ;;  %v15365_v42 = vld [vmem:[#allocation59_spill] sm:$0xff] }
 0x3ac   :  { %v3377_v19 = vpop.f32.mrf.mxu0  ;;  %v3418_v61 = vpop.f32.mrf.mxu1  ;;  %v15366_v27 = vld [vmem:[#allocation55_spill] sm:$0xff] }
 0x3ad   :  { %v3508_v4 = vadd.f32 %v3418_v61, %v15362_v5  ;;  %v3521_v62 = vmul.f32 0.5, %v3507_v53  ;;  %v3506_v12 = vadd.f32 %v3377_v19, %v15363_v7  ;;  %v3513_v37 = vmul.f32 0.5, %v3505_v3 }
 0x3ae   :  { %v3379_v1 = vpop.f32.mrf.mxu0  ;;  %v3420_v18 = vpop.f32.mrf.mxu1 }
 0x3af   :  { %v3522_v49 = vmul.f32 0.5, %v3508_v4  ;;  %11324 = vtanh.f32 %v3521_v62  ;;  %v3514_v25 = vmul.f32 0.5, %v3506_v12 }
 0x3b0   :  { %v3380_v32 = vpop.f32.mrf.mxu0  ;;  %v3421_v26 = vpop.f32.mrf.mxu1  ;;  %11326 = vtanh.f32 %v3513_v37 }
 0x3b1   :  { %11328 = vtanh.f32 %v3522_v49  ;;  %v15364_v32 = vld [vmem:[#allocation54_spill] sm:$0xff]  ;;  %v15367_v49 = vld [vmem:[#allocation60_spill] sm:$0xff] }
 0x3b2   :  { %11330 = vtanh.f32 %v3514_v25 }
 0x3bc   :  { %v11325_v61 = vpop.eup %11324 }
 0x3bd   :  { %v11327_v37 = vpop.eup %11326  ;;  %v3525_v62 = vmul.f32 0.5, %v11325_v61 }
 0x3be   :  { %v11329_v3 = vpop.eup %11328 }
 0x3bf   :  { %v11331_v7 = vpop.eup %11330  ;;  %v3526_v33 = vmul.f32 0.5, %v11329_v3  ;;  %v3527_v28 = vadd.f32 0.5, %v3525_v62 }
 0x3ea   :  { %v3457_v1 = vpop.f32.mrf.mxu0  ;;  %v3498_v18 = vpop.f32.mrf.mxu1 }
 0x3eb   :  { %v3509_v26 = vadd.f32 %v3457_v1, %v15364_v32  ;;  %v3511_v12 = vadd.f32 %v3498_v18, %v15366_v27  ;;  %v3517_v1 = vmul.f32 0.5, %v11327_v37 }
 0x3ec   :  { %v3459_v9 = vpop.f32.mrf.mxu0  ;;  %v3500_v43 = vpop.f32.mrf.mxu1 }
 0x3ed   :  { %11332 = vtanh.f32 %v3509_v26  ;;  %v3510_v30 = vadd.f32 %v3459_v9, %v15365_v42  ;;  %v3512_v25 = vadd.f32 %v3500_v43, %v15367_v49  ;;  %v3531_v32 = vmul.f32 0.5, %v3511_v12 }
 0x3ee   :  { %v3461_v5 = vpop.f32.mrf.mxu0  ;;  %v3502_v53 = vpop.f32.mrf.mxu1  ;;  %v3518_v9 = vmul.f32 0.5, %v11331_v7  ;;  %v3519_v42 = vadd.f32 0.5, %v3517_v1 }
 0x3ef   :  { %11334 = vtanh.f32 %v3510_v30  ;;  %v3532_v26 = vmul.f32 0.5, %v3512_v25  ;;  %v3528_v30 = vadd.f32 0.5, %v3526_v33  ;;  %v3539_v53 = vmul.f32 %v3527_v28, %v12525_v13 }
 0x3f0   :  { %v3462_v19 = vpop.f32.mrf.mxu0  ;;  %v3503_v4 = vpop.f32.mrf.mxu1  ;;  %11336 = vtanh.f32 %v3531_v32  ;;  %v3621_v32 = vld [vmem:[#allocation9 + $0x1b0] sm:$0xff] }
 0x3f1   :  { %11338 = vtanh.f32 %v3532_v26  ;;  %v3520_v19 = vadd.f32 0.5, %v3518_v9  ;;  %v3540_v61 = vmul.f32 %v3528_v30, %v12529_v23  ;;  %v3617_v23 = vld [vmem:[#allocation9 + $0x190] sm:$0xff]  ;;  %v3618_v26 = vld [vmem:[#allocation9 + $0x198] sm:$0xff] }
 0x3f2   :  { %v3622_v9 = vld [vmem:[#allocation9 + $0x1b8] sm:$0xff]  ;;  %v3609_v30 = vld [vmem:[#allocation9 + $0x150] sm:$0xff] }
 0x3fa   :  { %v11333_v5 = vpop.eup %11332 }
 0x3fb   :  { %v3541_v18 = vmul.f32 %v11333_v5, %v3519_v42 }
 0x3fc   :  { %v11335_v4 = vpop.eup %11334 }
 0x3fd   :  { %v12817_v43 = vadd.f32 %v3541_v18, %v3539_v53  ;;  %v3542_v27 = vmul.f32 %v11335_v4, %v3520_v19  ;;  %v11337_v37 = vpop.eup %11336  ;;  %v12834_v53 = vcombine.high %v3617_v23, %v3621_v32  ;;  %v12836_v18 = vcombine.high %v3618_v26, %v3622_v9  ;;  %v3613_v19 = vld [vmem:[#allocation9 + $0x170] sm:$0xff]  ;;  %v3610_v4 = vld [vmem:[#allocation9 + $0x158] sm:$0xff] }
 0x3fe   :  { %v11339_v49 = vpop.eup %11338  ;;  %v3535_v33 = vmul.f32 0.5, %v11337_v37  ;;  %v12844_v37 = vcombine.low %v3618_v26, %v3622_v9  ;;  %v3593_v9 = vld [vmem:[#allocation9 + $0xd0] sm:$0xff] }
 0x3ff   :  { %11340 = vtanh.f32 %v12817_v43  ;;  %v12821_v12 = vadd.f32 %v3542_v27, %v3540_v61  ;;  %v3536_v25 = vmul.f32 0.5, %v11339_v49  ;;  %15368 = vst [vmem:[#allocation100_spill] sm:$0xff] %v12834_v53  ;;  %15369 = vst [vmem:[#allocation98_spill] sm:$0xff] %v12836_v18  ;;  %v3614_v61 = vld [vmem:[#allocation9 + $0x178] sm:$0xff]  ;;  %v12842_v27 = vcombine.low %v3617_v23, %v3621_v32 }
 0x400   :  { %v3537_v13 = vadd.f32 0.5, %v3535_v33  ;;  %15371 = vst [vmem:[#allocation101_spill] sm:$0xff] %v12844_v37  ;;  %v12846_v49 = vcombine.high %v3609_v30, %v3613_v19  ;;  %v12848_v33 = vcombine.high %v3610_v4, %v3614_v61  ;;  %v12856_v23 = vcombine.low %v3610_v4, %v3614_v61 }
 0x401   :  { %11342 = vtanh.f32 %v12821_v12  ;;  %v3538_v28 = vadd.f32 0.5, %v3536_v25  ;;  %15370 = vst [vmem:[#allocation99_spill] sm:$0xff] %v12842_v27  ;;  %v3601_v25 = vld [vmem:[#allocation9 + $0x110] sm:$0xff] }
 0x402   :  { %15372 = vst [vmem:[#allocation102_spill] sm:$0xff] %v12846_v49  ;;  %15373 = vst [vmem:[#allocation28_spill] sm:$0xff] %v12848_v33 }
 0x403   :  { %15375 = vst [vmem:[#allocation30_spill] sm:$0xff] %v12856_v23 }
 0x40c   :  { %v11341_v3 = vpop.eup %11340 }
 0x40d   :  { %v12824_v7 = vmul.f32 %v11341_v3, %v3537_v13  ;;  %v3605_v3 = vld [vmem:[#allocation9 + $0x130] sm:$0xff]  ;;  %v3602_v13 = vld [vmem:[#allocation9 + $0x118] sm:$0xff] }
 0x40e   :  { %v11343_v62 = vpop.eup %11342  ;;  %v12860_v32 = vcombine.high %v3601_v25, %v3605_v3 }
 0x40f   :  { %v12826_v1 = vmul.f32 %v11343_v62, %v3538_v28  ;;  %v12832_v5 = vpack.c.bf16 %v12824_v7, %v12824_v7  ;;  %v3606_v28 = vld [vmem:[#allocation9 + $0x138] sm:$0xff]  ;;  %v12854_v62 = vcombine.low %v3609_v30, %v3613_v19  ;;  %v12866_v30 = vcombine.low %v3601_v25, %v3605_v3 }
 0x410   :  { %15376 = vst [vmem:[#allocation29_spill] sm:$0xff] %v12860_v32  ;;  %v12862_v26 = vcombine.high %v3602_v13, %v3606_v28  ;;  %v12868_v19 = vcombine.low %v3602_v13, %v3606_v28 }
 0x411   :  { %v3566_v42 = vpack.c.bf16 %v12826_v1, %v12826_v1  ;;  %15374 = vst [vmem:[#allocation27_spill] sm:$0xff] %v12854_v62  ;;  %15378 = vst [vmem:[#allocation51_spill] sm:$0xff] %v12866_v30 }
 0x412   :  { %15377 = vst [vmem:[#allocation47_spill] sm:$0xff] %v12862_v26  ;;  %15379 = vst [vmem:[#allocation48_spill] sm:$0xff] %v12868_v19 }
 0x413   :  { %4367 = vmatprep.mubr.bf16.mxu0 %v3566_v42  ;;  %4408 = vmatprep.mubr.bf16.mxu1 %v3566_v42 }
 0x414   :  { %4368 = vmatmul.mubr.bf16.vlgmr.msra.gmra.mxu0 %v12832_v5  ;;  %4409 = vmatmul.mubr.bf16.vlgmr.msra.gmra.mxu1 %v12832_v5 }
 0x415   :  { %4418 = vmatpush1.bf16.msra.mxu0 %v12800_v58  ;;  %4459 = vmatpush1.bf16.msra.mxu1 %v12802_v39 }
 0x416   :  { %4449 = vmatprep.mubr.bf16.mxu0 %v3566_v42  ;;  %4490 = vmatprep.mubr.bf16.mxu1 %v3566_v42  ;;  %v3597_v42 = vld [vmem:[#allocation9 + $0xf0] sm:$0xff] }
 0x417   :  { %4419 = vmatprep.subr.bf16.mxu0 %v12834_v53  ;;  %4460 = vmatprep.subr.bf16.mxu1 %v12836_v18  ;;  %v3594_v18 = vld [vmem:[#allocation9 + $0xd8] sm:$0xff]  ;;  %v12872_v4 = vcombine.high %v3593_v9, %v3597_v42  ;;  %v12878_v25 = vcombine.low %v3593_v9, %v3597_v42 }
 0x418   :  { %v3598_v53 = vld [vmem:[#allocation9 + $0xf8] sm:$0xff] }
 0x419   :  { %4420 = vmatpush1.bf16.msra.mxu0 %v12842_v27  ;;  %4461 = vmatpush1.bf16.msra.mxu1 %v12844_v37  ;;  %15380 = vst [vmem:[#allocation52_spill] sm:$0xff] %v12872_v4  ;;  %v12874_v61 = vcombine.high %v3594_v18, %v3598_v53  ;;  %v3586_v37 = vld [vmem:[#allocation9 + $0x98] sm:$0xff]  ;;  %15382 = vst [vmem:[#allocation104_spill] sm:$0xff] %v12878_v25  ;;  %v12880_v3 = vcombine.low %v3594_v18, %v3598_v53 }
 0x41a   :  { %4421 = vmatprep.subr.bf16.mxu0 %v12846_v49  ;;  %4462 = vmatprep.subr.bf16.mxu1 %v12848_v33  ;;  %v3585_v33 = vld [vmem:[#allocation9 + $0x90] sm:$0xff]  ;;  %v3590_v27 = vld [vmem:[#allocation9 + $0xb8] sm:$0xff] }
 0x41b   :  { %15381 = vst [vmem:[#allocation103_spill] sm:$0xff] %v12874_v61  ;;  %v3589_v49 = vld [vmem:[#allocation9 + $0xb0] sm:$0xff]  ;;  %15383 = vst [vmem:[#allocation105_spill] sm:$0xff] %v12880_v3  ;;  %v12886_v28 = vcombine.high %v3586_v37, %v3590_v27  ;;  %v12892_v53 = vcombine.low %v3586_v37, %v3590_v27 }
 0x41c   :  { %v12884_v13 = vcombine.high %v3585_v33, %v3589_v49  ;;  %v12890_v9 = vcombine.low %v3585_v33, %v3589_v49 }
 0x41d   :  { %4422 = vmatpush1.bf16.msra.mxu0 %v12854_v62  ;;  %4463 = vmatpush1.bf16.msra.mxu1 %v12856_v23  ;;  %15385 = vst [vmem:[#allocation107_spill] sm:$0xff] %v12886_v28  ;;  %v3578_v23 = vld [vmem:[#allocation9 + $0x58] sm:$0xff]  ;;  %15387 = vst [vmem:[#allocation109_spill] sm:$0xff] %v12892_v53 }
 0x41e   :  { %4423 = vmatprep.subr.bf16.mxu0 %v12860_v32  ;;  %4464 = vmatprep.subr.bf16.mxu1 %v12862_v26  ;;  %15384 = vst [vmem:[#allocation106_spill] sm:$0xff] %v12884_v13  ;;  %v3577_v26 = vld [vmem:[#allocation9 + $0x50] sm:$0xff]  ;;  %v3582_v62 = vld [vmem:[#allocation9 + $0x78] sm:$0xff]  ;;  %15386 = vst [vmem:[#allocation108_spill] sm:$0xff] %v12890_v9 }
 0x41f   :  { %v3581_v32 = vld [vmem:[#allocation9 + $0x70] sm:$0xff]  ;;  %v12898_v42 = vcombine.high %v3578_v23, %v3582_v62  ;;  %v12904_v27 = vcombine.low %v3578_v23, %v3582_v62 }
 0x420   :  { %v12896_v18 = vcombine.high %v3577_v26, %v3581_v32  ;;  %v12902_v49 = vcombine.low %v3577_v26, %v3581_v32 }
 0x421   :  { %4424 = vmatpush1.bf16.msra.mxu0 %v12866_v30  ;;  %4465 = vmatpush1.bf16.msra.mxu1 %v12868_v19  ;;  %15389 = vst [vmem:[#allocation111_spill] sm:$0xff] %v12898_v42  ;;  %v3570_v19 = vld [vmem:[#allocation9 + $0x18] sm:$0xff]  ;;  %15391 = vst [vmem:[#allocation113_spill] sm:$0xff] %v12904_v27 }
 0x422   :  { %4425 = vmatprep.subr.bf16.mxu0 %v12872_v4  ;;  %4466 = vmatprep.subr.bf16.mxu1 %v12874_v61  ;;  %15388 = vst [vmem:[#allocation110_spill] sm:$0xff] %v12896_v18  ;;  %v3569_v61 = vld [vmem:[#allocation9 + $0x10] sm:$0xff]  ;;  %v3574_v30 = vld [vmem:[#allocation9 + $0x38] sm:$0xff]  ;;  %15390 = vst [vmem:[#allocation112_spill] sm:$0xff] %v12902_v49 }
 0x423   :  { %v3573_v4 = vld [vmem:[#allocation9 + $0x30] sm:$0xff]  ;;  %v12910_v33 = vcombine.high %v3570_v19, %v3574_v30  ;;  %v12916_v62 = vcombine.low %v3570_v19, %v3574_v30 }
 0x424   :  { %v12908_v37 = vcombine.high %v3569_v61, %v3573_v4  ;;  %v12914_v32 = vcombine.low %v3569_v61, %v3573_v4 }
 0x425   :  { %4426 = vmatpush1.bf16.msra.mxu0 %v12878_v25  ;;  %4467 = vmatpush1.bf16.msra.mxu1 %v12880_v3  ;;  %15393 = vst [vmem:[#allocation115_spill] sm:$0xff] %v12910_v33  ;;  %v3690_v3 = vld [vmem:[#allocation9 + $0x3d8] sm:$0xff]  ;;  %15395 = vst [vmem:[#allocation117_spill] sm:$0xff] %v12916_v62 }
 0x426   :  { %4427 = vmatprep.subr.bf16.mxu0 %v12884_v13  ;;  %4468 = vmatprep.subr.bf16.mxu1 %v12886_v28  ;;  %15392 = vst [vmem:[#allocation114_spill] sm:$0xff] %v12908_v37  ;;  %v3689_v28 = vld [vmem:[#allocation9 + $0x3d0] sm:$0xff]  ;;  %v3694_v25 = vld [vmem:[#allocation9 + $0x3f8] sm:$0xff]  ;;  %15394 = vst [vmem:[#allocation116_spill] sm:$0xff] %v12914_v32 }
 0x427   :  { %v3693_v13 = vld [vmem:[#allocation9 + $0x3f0] sm:$0xff]  ;;  %v12922_v26 = vcombine.high %v3690_v3, %v3694_v25  ;;  %v12928_v30 = vcombine.low %v3690_v3, %v3694_v25 }
 0x428   :  { %v12920_v23 = vcombine.high %v3689_v28, %v3693_v13  ;;  %v12926_v4 = vcombine.low %v3689_v28, %v3693_v13 }
 0x429   :  { %4428 = vmatpush1.bf16.msra.mxu0 %v12890_v9  ;;  %4469 = vmatpush1.bf16.msra.mxu1 %v12892_v53  ;;  %15397 = vst [vmem:[#allocation119_spill] sm:$0xff] %v12922_v26  ;;  %v3682_v53 = vld [vmem:[#allocation9 + $0x398] sm:$0xff]  ;;  %15399 = vst [vmem:[#allocation121_spill] sm:$0xff] %v12928_v30 }
 0x42a   :  { %4429 = vmatprep.subr.bf16.mxu0 %v12896_v18  ;;  %4470 = vmatprep.subr.bf16.mxu1 %v12898_v42  ;;  %15396 = vst [vmem:[#allocation118_spill] sm:$0xff] %v12920_v23  ;;  %v3681_v42 = vld [vmem:[#allocation9 + $0x390] sm:$0xff]  ;;  %v3686_v9 = vld [vmem:[#allocation9 + $0x3b8] sm:$0xff]  ;;  %15398 = vst [vmem:[#allocation120_spill] sm:$0xff] %v12926_v4 }
 0x42b   :  { %v3685_v18 = vld [vmem:[#allocation9 + $0x3b0] sm:$0xff]  ;;  %v12934_v61 = vcombine.high %v3682_v53, %v3686_v9  ;;  %v12940_v25 = vcombine.low %v3682_v53, %v3686_v9 }
 0x42c   :  { %v12932_v19 = vcombine.high %v3681_v42, %v3685_v18  ;;  %v12938_v13 = vcombine.low %v3681_v42, %v3685_v18 }
 0x42d   :  { %4430 = vmatpush1.bf16.msra.mxu0 %v12902_v49  ;;  %4471 = vmatpush1.bf16.msra.mxu1 %v12904_v27  ;;  %15401 = vst [vmem:[#allocation123_spill] sm:$0xff] %v12934_v61  ;;  %v3674_v27 = vld [vmem:[#allocation9 + $0x358] sm:$0xff]  ;;  %15403 = vst [vmem:[#allocation125_spill] sm:$0xff] %v12940_v25 }
 0x42e   :  { %4431 = vmatprep.subr.bf16.mxu0 %v12908_v37  ;;  %4472 = vmatprep.subr.bf16.mxu1 %v12910_v33  ;;  %15400 = vst [vmem:[#allocation122_spill] sm:$0xff] %v12932_v19  ;;  %v3673_v33 = vld [vmem:[#allocation9 + $0x350] sm:$0xff]  ;;  %v3678_v49 = vld [vmem:[#allocation9 + $0x378] sm:$0xff]  ;;  %15402 = vst [vmem:[#allocation124_spill] sm:$0xff] %v12938_v13 }
 0x42f   :  { %v3677_v37 = vld [vmem:[#allocation9 + $0x370] sm:$0xff]  ;;  %v12946_v28 = vcombine.high %v3674_v27, %v3678_v49  ;;  %v12952_v9 = vcombine.low %v3674_v27, %v3678_v49 }
 0x430   :  { %v12944_v3 = vcombine.high %v3673_v33, %v3677_v37  ;;  %v12950_v18 = vcombine.low %v3673_v33, %v3677_v37 }
 0x431   :  { %4432 = vmatpush1.bf16.msra.mxu0 %v12914_v32  ;;  %4473 = vmatpush1.bf16.msra.mxu1 %v12916_v62  ;;  %15405 = vst [vmem:[#allocation127_spill] sm:$0xff] %v12946_v28  ;;  %v3666_v62 = vld [vmem:[#allocation9 + $0x318] sm:$0xff]  ;;  %15407 = vst [vmem:[#allocation129_spill] sm:$0xff] %v12952_v9 }
 0x432   :  { %4433 = vmatprep.subr.bf16.mxu0 %v12920_v23  ;;  %4474 = vmatprep.subr.bf16.mxu1 %v12922_v26  ;;  %15404 = vst [vmem:[#allocation126_spill] sm:$0xff] %v12944_v3  ;;  %v3665_v26 = vld [vmem:[#allocation9 + $0x310] sm:$0xff]  ;;  %v3670_v32 = vld [vmem:[#allocation9 + $0x338] sm:$0xff]  ;;  %15406 = vst [vmem:[#allocation128_spill] sm:$0xff] %v12950_v18 }
 0x433   :  { %v3669_v23 = vld [vmem:[#allocation9 + $0x330] sm:$0xff]  ;;  %v12958_v42 = vcombine.high %v3666_v62, %v3670_v32  ;;  %v12964_v49 = vcombine.low %v3666_v62, %v3670_v32 }
 0x434   :  { %v12956_v53 = vcombine.high %v3665_v26, %v3669_v23  ;;  %v12962_v37 = vcombine.low %v3665_v26, %v3669_v23 }
 0x435   :  { %4434 = vmatpush2.bf16.msra.mxu0 %v12926_v4  ;;  %4475 = vmatpush2.bf16.msra.mxu1 %v12928_v30  ;;  %15409 = vst [vmem:[#allocation131_spill] sm:$0xff] %v12958_v42  ;;  %v3658_v30 = vld [vmem:[#allocation9 + $0x2d8] sm:$0xff]  ;;  %15411 = vst [vmem:[#allocation133_spill] sm:$0xff] %v12964_v49 }
 0x436   :  { %4435 = vmatprep.subr.bf16.mxu0 %v12932_v19  ;;  %4476 = vmatprep.subr.bf16.mxu1 %v12934_v61  ;;  %15408 = vst [vmem:[#allocation130_spill] sm:$0xff] %v12956_v53  ;;  %v3657_v61 = vld [vmem:[#allocation9 + $0x2d0] sm:$0xff]  ;;  %v3662_v4 = vld [vmem:[#allocation9 + $0x2f8] sm:$0xff]  ;;  %15410 = vst [vmem:[#allocation132_spill] sm:$0xff] %v12962_v37 }
 0x437   :  { %v3661_v19 = vld [vmem:[#allocation9 + $0x2f0] sm:$0xff]  ;;  %v12970_v33 = vcombine.high %v3658_v30, %v3662_v4  ;;  %v12976_v32 = vcombine.low %v3658_v30, %v3662_v4 }
 0x438   :  { %v12968_v27 = vcombine.high %v3657_v61, %v3661_v19  ;;  %v12974_v23 = vcombine.low %v3657_v61, %v3661_v19 }
 0x439   :  { %4436 = vmatpush2.bf16.msra.mxu0 %v12938_v13  ;;  %4477 = vmatpush2.bf16.msra.mxu1 %v12940_v25  ;;  %15413 = vst [vmem:[#allocation135_spill] sm:$0xff] %v12970_v33  ;;  %v3650_v25 = vld [vmem:[#allocation9 + $0x298] sm:$0xff] }
 0x43a   :  { %4437 = vmatprep.subr.bf16.mxu0 %v12944_v3  ;;  %4478 = vmatprep.subr.bf16.mxu1 %v12946_v28  ;;  %15412 = vst [vmem:[#allocation134_spill] sm:$0xff] %v12968_v27  ;;  %v3649_v28 = vld [vmem:[#allocation9 + $0x290] sm:$0xff]  ;;  %v3654_v13 = vld [vmem:[#allocation9 + $0x2b8] sm:$0xff] }
 0x43b   :  { %v3653_v3 = vld [vmem:[#allocation9 + $0x2b0] sm:$0xff]  ;;  %v12982_v26 = vcombine.high %v3650_v25, %v3654_v13  ;;  %v12988_v4 = vcombine.low %v3650_v25, %v3654_v13 }
 0x43c   :  { %v12980_v62 = vcombine.high %v3649_v28, %v3653_v3  ;;  %v12986_v19 = vcombine.low %v3649_v28, %v3653_v3 }
 0x43d   :  { %4438 = vmatpush2.bf16.msra.mxu0 %v12950_v18  ;;  %4479 = vmatpush2.bf16.msra.mxu1 %v12952_v9  ;;  %15414 = vst [vmem:[#allocation136_spill] sm:$0xff] %v12982_v26  ;;  %v3642_v9 = vld [vmem:[#allocation9 + $0x258] sm:$0xff] }
 0x43e   :  { %4439 = vmatprep.subr.bf16.mxu0 %v12956_v53  ;;  %4480 = vmatprep.subr.bf16.mxu1 %v12958_v42  ;;  %v3641_v42 = vld [vmem:[#allocation9 + $0x250] sm:$0xff]  ;;  %v3646_v18 = vld [vmem:[#allocation9 + $0x278] sm:$0xff]  ;;  %15415 = vst [vmem:[#allocation137_spill] sm:$0xff] %v12986_v19 }
 0x43f   :  { %v3645_v53 = vld [vmem:[#allocation9 + $0x270] sm:$0xff]  ;;  %v12994_v61 = vcombine.high %v3642_v9, %v3646_v18  ;;  %v13000_v13 = vcombine.low %v3642_v9, %v3646_v18  ;;  %v15446_v9 = vld [vmem:[#allocation35_spill] sm:$0xff] }
 0x440   :  { %v12992_v30 = vcombine.high %v3641_v42, %v3645_v53  ;;  %v12998_v3 = vcombine.low %v3641_v42, %v3645_v53  ;;  %v15447_v42 = vld [vmem:[#allocation38_spill] sm:$0xff] }
 0x441   :  { %4440 = vmatpush2.bf16.msra.mxu0 %v12962_v37  ;;  %4481 = vmatpush2.bf16.msra.mxu1 %v12964_v49  ;;  %v3634_v49 = vld [vmem:[#allocation9 + $0x218] sm:$0xff] }
 0x442   :  { %4441 = vmatprep.subr.bf16.mxu0 %v12968_v27  ;;  %4482 = vmatprep.subr.bf16.mxu1 %v12970_v33  ;;  %v3633_v33 = vld [vmem:[#allocation9 + $0x210] sm:$0xff]  ;;  %v3638_v37 = vld [vmem:[#allocation9 + $0x238] sm:$0xff] }
 0x443   :  { %v3637_v27 = vld [vmem:[#allocation9 + $0x230] sm:$0xff]  ;;  %v13006_v28 = vcombine.high %v3634_v49, %v3638_v37 }
 0x444   :  { %v13004_v25 = vcombine.high %v3633_v33, %v3637_v27 }
 0x445   :  { %4442 = vmatpush2.bf16.msra.mxu0 %v12974_v23  ;;  %4483 = vmatpush2.bf16.msra.mxu1 %v12976_v32 }
 0x446   :  { %4443 = vmatprep.subr.bf16.mxu0 %v12980_v62  ;;  %4484 = vmatprep.subr.bf16.mxu1 %v12982_v26  ;;  %v13010_v26 = vcombine.low %v3633_v33, %v3637_v27  ;;  %v15448_v27 = vld [vmem:[#allocation37_spill] sm:$0xff] }
 0x449   :  { %4444 = vmatpush2.bf16.msra.mxu0 %v12986_v19  ;;  %4485 = vmatpush2.bf16.msra.mxu1 %v12988_v4  ;;  %v13012_v19 = vcombine.low %v3634_v49, %v3638_v37 }
 0x44a   :  { %4445 = vmatprep.subr.bf16.mxu0 %v12992_v30  ;;  %4486 = vmatprep.subr.bf16.mxu1 %v12994_v61 }
 0x44d   :  { %4446 = vmatpush2.bf16.msra.mxu0 %v12998_v3  ;;  %4487 = vmatpush2.bf16.msra.mxu1 %v13000_v13 }
 0x44e   :  { %4447 = vmatprep.subr.bf16.mxu0 %v13004_v25  ;;  %4488 = vmatprep.subr.bf16.mxu1 %v13006_v28 }
 0x451   :  { %4448 = vmatpush2.bf16.msra.mxu0 %v13010_v26  ;;  %4489 = vmatpush2.bf16.msra.mxu1 %v13012_v19 }
 0x452   :  { %5329 = vmatprep.subr.bf16.mxu0 %v12608_v20  ;;  %5370 = vmatprep.subr.bf16.mxu1 %v12612_v34  ;;  %v15417_v20 = vld [vmem:[#allocation53_spill] sm:$0xff] }
 0x453   :  { %v15419_v34 = vld [vmem:[#allocation57_spill] sm:$0xff] }
 0x454   :  { %4450 = vmatmul.mubr.bf16.vlgmr.msra.gmra.mxu0 %v12832_v5  ;;  %4491 = vmatmul.mubr.bf16.vlgmr.msra.gmra.mxu1 %v12832_v5  ;;  %v15445_v5 = vld [vmem:[#allocation36_spill] sm:$0xff] }
 0x455   :  { %5330 = vmatpush1.bf16.msra.mxu0 %v12606_v8  ;;  %5371 = vmatpush1.bf16.msra.mxu1 %v12610_v63  ;;  %v15416_v8 = vld [vmem:[#allocation56_spill] sm:$0xff]  ;;  %v15418_v63 = vld [vmem:[#allocation58_spill] sm:$0xff] }
 0x456   :  { %5331 = vmatprep.subr.bf16.mxu0 %v12614_v36  ;;  %5372 = vmatprep.subr.bf16.mxu1 %v12617_v51  ;;  %v15420_v36 = vld [vmem:[#allocation64_spill] sm:$0xff]  ;;  %v15421_v51 = vld [vmem:[#allocation61_spill] sm:$0xff] }
 0x459   :  { %5332 = vmatpush1.bf16.msra.mxu0 %v12621_v17  ;;  %5373 = vmatpush1.bf16.msra.mxu1 %v12625_v47  ;;  %v15422_v17 = vld [vmem:[#allocation66_spill] sm:$0xff]  ;;  %v15423_v47 = vld [vmem:[#allocation65_spill] sm:$0xff] }
 0x45a   :  { %5333 = vmatprep.subr.bf16.mxu0 %v12627_v10  ;;  %5374 = vmatprep.subr.bf16.mxu1 %v12630_v45  ;;  %v15424_v10 = vld [vmem:[#allocation72_spill] sm:$0xff]  ;;  %v15425_v45 = vld [vmem:[#allocation69_spill] sm:$0xff] }
 0x45d   :  { %5334 = vmatpush1.bf16.msra.mxu0 %v12633_v6  ;;  %5375 = vmatpush1.bf16.msra.mxu1 %v12637_v29  ;;  %v15426_v6 = vld [vmem:[#allocation74_spill] sm:$0xff]  ;;  %v15427_v29 = vld [vmem:[#allocation73_spill] sm:$0xff] }
 0x45e   :  { %5335 = vmatprep.subr.bf16.mxu0 %v12639_v16  ;;  %5376 = vmatprep.subr.bf16.mxu1 %v12642_v38  ;;  %v15428_v16 = vld [vmem:[#allocation80_spill] sm:$0xff]  ;;  %v15429_v38 = vld [vmem:[#allocation77_spill] sm:$0xff] }
 0x461   :  { %5336 = vmatpush1.bf16.msra.mxu0 %v12645_v15  ;;  %5377 = vmatpush1.bf16.msra.mxu1 %v12649_v41  ;;  %v15430_v15 = vld [vmem:[#allocation82_spill] sm:$0xff]  ;;  %v15431_v41 = vld [vmem:[#allocation81_spill] sm:$0xff] }
 0x462   :  { %5337 = vmatprep.subr.bf16.mxu0 %v12651_v0  ;;  %5378 = vmatprep.subr.bf16.mxu1 %v12654_v22  ;;  %v15432_v0 = vld [vmem:[#allocation86_spill] sm:$0xff]  ;;  %v15433_v22 = vld [vmem:[#allocation85_spill] sm:$0xff] }
 0x465   :  { %5338 = vmatpush1.bf16.msra.mxu0 %v12657_v50  ;;  %5379 = vmatpush1.bf16.msra.mxu1 %v12661_v54  ;;  %v15434_v50 = vld [vmem:[#allocation88_spill] sm:$0xff]  ;;  %v15435_v54 = vld [vmem:[#allocation87_spill] sm:$0xff] }
 0x466   :  { %5339 = vmatprep.subr.bf16.mxu0 %v12663_v55  ;;  %5380 = vmatprep.subr.bf16.mxu1 %v12666_v56  ;;  %v15436_v55 = vld [vmem:[#allocation90_spill] sm:$0xff]  ;;  %v15437_v56 = vld [vmem:[#allocation89_spill] sm:$0xff] }
 0x469   :  { %5340 = vmatpush1.bf16.msra.mxu0 %v12669_v60  ;;  %5381 = vmatpush1.bf16.msra.mxu1 %v12673_v2  ;;  %v15438_v60 = vld [vmem:[#allocation92_spill] sm:$0xff]  ;;  %v15439_v2 = vld [vmem:[#allocation91_spill] sm:$0xff] }
 0x46a   :  { %5341 = vmatprep.subr.bf16.mxu0 %v12678_v11  ;;  %5382 = vmatprep.subr.bf16.mxu1 %v12684_v24  ;;  %v15440_v11 = vld [vmem:[#allocation94_spill] sm:$0xff]  ;;  %v15443_v24 = vld [vmem:[#allocation95_spill] sm:$0xff] }
 0x46d   :  { %5342 = vmatpush1.bf16.msra.mxu0 %v12680_v14  ;;  %5383 = vmatpush1.bf16.msra.mxu1 %v12682_v21  ;;  %v15441_v14 = vld [vmem:[#allocation93_spill] sm:$0xff]  ;;  %v15442_v21 = vld [vmem:[#allocation96_spill] sm:$0xff] }
 0x46e   :  { %5343 = vmatprep.subr.bf16.mxu0 %v12690_v40  ;;  %5384 = vmatprep.subr.bf16.mxu1 %v12696_v46  ;;  %v15444_v40 = vld [vmem:[#allocation97_spill] sm:$0xff] }
 0x471   :  { %5344 = vmatpush1.bf16.msra.mxu0 %v12692_v52  ;;  %5385 = vmatpush1.bf16.msra.mxu1 %v12694_v44 }
 0x472   :  { %5345 = vmatprep.subr.bf16.mxu0 %v12702_v31  ;;  %5386 = vmatprep.subr.bf16.mxu1 %v12708_v59 }
 0x475   :  { %5346 = vmatpush2.bf16.msra.mxu0 %v12704_v57  ;;  %5387 = vmatpush2.bf16.msra.mxu1 %v12706_v35 }
 0x476   :  { %5347 = vmatprep.subr.bf16.mxu0 %v12714_v48  ;;  %5388 = vmatprep.subr.bf16.mxu1 %v15416_v8 }
 0x479   :  { %5348 = vmatpush2.bf16.msra.mxu0 %v15417_v20  ;;  %5389 = vmatpush2.bf16.msra.mxu1 %v15418_v63 }
 0x47a   :  { %5349 = vmatprep.subr.bf16.mxu0 %v15419_v34  ;;  %5390 = vmatprep.subr.bf16.mxu1 %v15420_v36 }
 0x47d   :  { %5350 = vmatpush2.bf16.msra.mxu0 %v15421_v51  ;;  %5391 = vmatpush2.bf16.msra.mxu1 %v15422_v17  ;;  %v15449_v51 = vld [vmem:[#allocation62_spill] sm:$0xff] }
 0x47e   :  { %5351 = vmatprep.subr.bf16.mxu0 %v15423_v47  ;;  %5392 = vmatprep.subr.bf16.mxu1 %v15424_v10 }
 0x481   :  { %5352 = vmatpush2.bf16.msra.mxu0 %v15425_v45  ;;  %5393 = vmatpush2.bf16.msra.mxu1 %v15426_v6  ;;  %v15450_v45 = vld [vmem:[#allocation67_spill] sm:$0xff] }
 0x482   :  { %5353 = vmatprep.subr.bf16.mxu0 %v15427_v29  ;;  %5394 = vmatprep.subr.bf16.mxu1 %v15428_v16 }
 0x485   :  { %5354 = vmatpush2.bf16.msra.mxu0 %v15429_v38  ;;  %5395 = vmatpush2.bf16.msra.mxu1 %v15430_v15  ;;  %v15451_v38 = vld [vmem:[#allocation63_spill] sm:$0xff] }
 0x486   :  { %5355 = vmatprep.subr.bf16.mxu0 %v15431_v41  ;;  %5396 = vmatprep.subr.bf16.mxu1 %v15432_v0 }
 0x489   :  { %5356 = vmatpush2.bf16.msra.mxu0 %v15433_v22  ;;  %5397 = vmatpush2.bf16.msra.mxu1 %v15434_v50 }
 0x48a   :  { %5357 = vmatprep.subr.bf16.mxu0 %v15435_v54  ;;  %5398 = vmatprep.subr.bf16.mxu1 %v15436_v55  ;;  %v15452_v54 = vld [vmem:[#allocation68_spill] sm:$0xff] }
 0x48d   :  { %5358 = vmatpush2.bf16.msra.mxu0 %v15437_v56  ;;  %5399 = vmatpush2.bf16.msra.mxu1 %v15438_v60 }
 0x48e   :  { %5359 = vmatprep.subr.bf16.mxu0 %v15439_v2  ;;  %5400 = vmatprep.subr.bf16.mxu1 %v15440_v11 }
 0x491   :  { %5360 = vmatpush2.bf16.msra.mxu0 %v15441_v14  ;;  %5401 = vmatpush2.bf16.msra.mxu1 %v15442_v21 }
 0x492   :  { %5411 = vmatprep.subr.bf16.mxu0 %v15443_v24  ;;  %5452 = vmatprep.subr.bf16.mxu1 %v15444_v40 }
 0x4d4   :  { %v4369_v52 = vpop.f32.mrf.mxu0  ;;  %v4410_v44 = vpop.f32.mrf.mxu1 }
 0x4d5   :  { %v4501_v18 = vadd.f32 %v4410_v44, %v15445_v5  ;;  %v4499_v53 = vadd.f32 %v4369_v52, %v15446_v9 }
 0x4d6   :  { %v4371_v46 = vpop.f32.mrf.mxu0  ;;  %v4412_v31 = vpop.f32.mrf.mxu1 }
 0x4d7   :  { %v4502_v37 = vadd.f32 %v4412_v31, %v15447_v42  ;;  %v4515_v49 = vmul.f32 0.5, %v4501_v18  ;;  %v4500_v33 = vadd.f32 %v4371_v46, %v15448_v27  ;;  %v4507_v8 = vmul.f32 0.5, %v4499_v53 }
 0x4d8   :  { %v4373_v57 = vpop.f32.mrf.mxu0  ;;  %v4414_v35 = vpop.f32.mrf.mxu1 }
 0x4d9   :  { %v4516_v20 = vmul.f32 0.5, %v4502_v37  ;;  %11344 = vtanh.f32 %v4515_v49  ;;  %v4508_v63 = vmul.f32 0.5, %v4500_v33 }
 0x4da   :  { %v4374_v59 = vpop.f32.mrf.mxu0  ;;  %v4415_v48 = vpop.f32.mrf.mxu1  ;;  %11346 = vtanh.f32 %v4507_v8 }
 0x4db   :  { %11348 = vtanh.f32 %v4516_v20 }
 0x4dc   :  { %11350 = vtanh.f32 %v4508_v63 }
 0x4e6   :  { %v11345_v41 = vpop.eup %11344 }
 0x4e7   :  { %v11347_v50 = vpop.eup %11346  ;;  %v4519_v60 = vmul.f32 0.5, %v11345_v41  ;;  %v15465_v41 = vld [vmem:[#allocation52_spill] sm:$0xff] }
 0x4e8   :  { %v11349_v56 = vpop.eup %11348  ;;  %v4511_v14 = vmul.f32 0.5, %v11347_v50  ;;  %v15468_v50 = vld [vmem:[#allocation105_spill] sm:$0xff] }
 0x4e9   :  { %v11351_v11 = vpop.eup %11350  ;;  %v4520_v21 = vmul.f32 0.5, %v11349_v56  ;;  %v4521_v40 = vadd.f32 0.5, %v4519_v60  ;;  %v15471_v56 = vld [vmem:[#allocation108_spill] sm:$0xff]  ;;  %v15472_v60 = vld [vmem:[#allocation109_spill] sm:$0xff] }
 0x4ea   :  { %v4512_v52 = vmul.f32 0.5, %v11351_v11  ;;  %v4513_v44 = vadd.f32 0.5, %v4511_v14  ;;  %v15474_v11 = vld [vmem:[#allocation111_spill] sm:$0xff]  ;;  %v15475_v14 = vld [vmem:[#allocation112_spill] sm:$0xff] }
 0x4eb   :  { %v4522_v31 = vadd.f32 0.5, %v4520_v21  ;;  %v4533_v57 = vmul.f32 %v4521_v40, %v12817_v43  ;;  %v15476_v21 = vld [vmem:[#allocation113_spill] sm:$0xff]  ;;  %v15478_v40 = vld [vmem:[#allocation115_spill] sm:$0xff] }
 0x4ec   :  { %v4514_v59 = vadd.f32 0.5, %v4512_v52  ;;  %v15479_v52 = vld [vmem:[#allocation116_spill] sm:$0xff] }
 0x4ed   :  { %v4534_v18 = vmul.f32 %v4522_v31, %v12821_v12  ;;  %v15482_v31 = vld [vmem:[#allocation119_spill] sm:$0xff] }
 0x514   :  { %v4451_v34 = vpop.f32.mrf.mxu0  ;;  %v4492_v36 = vpop.f32.mrf.mxu1 }
 0x515   :  { %v4503_v17 = vadd.f32 %v4451_v34, %v15449_v51  ;;  %v4505_v15 = vadd.f32 %v4492_v36, %v15451_v38  ;;  %v15463_v38 = vld [vmem:[#allocation51_spill] sm:$0xff] }
 0x516   :  { %v4453_v47 = vpop.f32.mrf.mxu0  ;;  %v4494_v10 = vpop.f32.mrf.mxu1 }
 0x517   :  { %11352 = vtanh.f32 %v4503_v17  ;;  %v4504_v6 = vadd.f32 %v4453_v47, %v15450_v45  ;;  %v4506_v55 = vadd.f32 %v4494_v10, %v15452_v54  ;;  %v4525_v2 = vmul.f32 0.5, %v4505_v15  ;;  %v15454_v47 = vld [vmem:[#allocation98_spill] sm:$0xff]  ;;  %v15456_v10 = vld [vmem:[#allocation101_spill] sm:$0xff]  ;;  %v15464_v15 = vld [vmem:[#allocation48_spill] sm:$0xff] }
 0x518   :  { %v4455_v29 = vpop.f32.mrf.mxu0  ;;  %v4496_v16 = vpop.f32.mrf.mxu1  ;;  %v15457_v45 = vld [vmem:[#allocation102_spill] sm:$0xff] }
 0x519   :  { %11354 = vtanh.f32 %v4504_v6  ;;  %v4526_v24 = vmul.f32 0.5, %v4506_v55  ;;  %v15458_v6 = vld [vmem:[#allocation28_spill] sm:$0xff]  ;;  %v15459_v29 = vld [vmem:[#allocation27_spill] sm:$0xff]  ;;  %v15460_v16 = vld [vmem:[#allocation30_spill] sm:$0xff] }
 0x51a   :  { %v4456_v0 = vpop.f32.mrf.mxu0  ;;  %v4497_v22 = vpop.f32.mrf.mxu1  ;;  %11356 = vtanh.f32 %v4525_v2  ;;  %v15469_v54 = vld [vmem:[#allocation106_spill] sm:$0xff]  ;;  %v15470_v55 = vld [vmem:[#allocation107_spill] sm:$0xff] }
 0x51b   :  { %11358 = vtanh.f32 %v4526_v24  ;;  %v15466_v0 = vld [vmem:[#allocation103_spill] sm:$0xff]  ;;  %v15467_v22 = vld [vmem:[#allocation104_spill] sm:$0xff]  ;;  %v15473_v2 = vld [vmem:[#allocation110_spill] sm:$0xff] }
 0x51c   :  { %v15477_v24 = vld [vmem:[#allocation114_spill] sm:$0xff] }
 0x524   :  { %v11353_v46 = vpop.eup %11352 }
 0x525   :  { %v4535_v35 = vmul.f32 %v11353_v46, %v4513_v44  ;;  %v15480_v44 = vld [vmem:[#allocation117_spill] sm:$0xff]  ;;  %v15481_v46 = vld [vmem:[#allocation118_spill] sm:$0xff] }
 0x526   :  { %v11355_v48 = vpop.eup %11354 }
 0x527   :  { %v13095_v5 = vadd.f32 %v4535_v35, %v4533_v57  ;;  %v4536_v9 = vmul.f32 %v11355_v48, %v4514_v59  ;;  %v11357_v42 = vpop.eup %11356  ;;  %v15483_v57 = vld [vmem:[#allocation120_spill] sm:$0xff]  ;;  %v15484_v35 = vld [vmem:[#allocation121_spill] sm:$0xff]  ;;  %v15485_v59 = vld [vmem:[#allocation122_spill] sm:$0xff] }
 0x528   :  { %v11359_v37 = vpop.eup %11358  ;;  %v4529_v49 = vmul.f32 0.5, %v11357_v42  ;;  %v15486_v48 = vld [vmem:[#allocation123_spill] sm:$0xff]  ;;  %v15489_v42 = vld [vmem:[#allocation126_spill] sm:$0xff] }
 0x529   :  { %11360 = vtanh.f32 %v13095_v5  ;;  %v13099_v53 = vadd.f32 %v4536_v9, %v4534_v18  ;;  %v4530_v27 = vmul.f32 0.5, %v11359_v37  ;;  %v15487_v18 = vld [vmem:[#allocation124_spill] sm:$0xff]  ;;  %v15488_v9 = vld [vmem:[#allocation125_spill] sm:$0xff]  ;;  %v15490_v37 = vld [vmem:[#allocation127_spill] sm:$0xff] }
 0x52a   :  { %v4531_v33 = vadd.f32 0.5, %v4529_v49  ;;  %v15491_v49 = vld [vmem:[#allocation128_spill] sm:$0xff] }
 0x52b   :  { %11362 = vtanh.f32 %v13099_v53  ;;  %v4532_v20 = vadd.f32 0.5, %v4530_v27  ;;  %v15492_v27 = vld [vmem:[#allocation129_spill] sm:$0xff] }
 0x536   :  { %v11361_v43 = vpop.eup %11360 }
 0x537   :  { %v4541_v8 = vmul.f32 %v11361_v43, %v4531_v33  ;;  %v15493_v33 = vld [vmem:[#allocation130_spill] sm:$0xff]  ;;  %v15494_v43 = vld [vmem:[#allocation131_spill] sm:$0xff] }
 0x538   :  { %v11363_v63 = vpop.eup %11362 }
 0x539   :  { %v13103_v34 = vpack.c.bf16 %v4541_v8, %v12824_v7  ;;  %v4542_v12 = vmul.f32 %v11363_v63, %v4532_v20  ;;  %v13108_v17 = vpack.c.bf16 %v4541_v8, %v4541_v8  ;;  %v15453_v7 = vld [vmem:[#allocation100_spill] sm:$0xff]  ;;  %v15496_v20 = vld [vmem:[#allocation133_spill] sm:$0xff]  ;;  %v15497_v63 = vld [vmem:[#allocation134_spill] sm:$0xff] }
 0x53a   :  { %v15495_v8 = vld [vmem:[#allocation132_spill] sm:$0xff] }
 0x53b   :  { %v13106_v36 = vpack.c.bf16 %v4542_v12, %v12826_v1  ;;  %v4560_v51 = vpack.c.bf16 %v4542_v12, %v4542_v12  ;;  %v15455_v1 = vld [vmem:[#allocation99_spill] sm:$0xff] }
 0x53c   :  { %v15498_v12 = vld [vmem:[#allocation135_spill] sm:$0xff] }
 0x53d   :  { %5361 = vmatprep.mubr.bf16.mxu0 %v4560_v51  ;;  %5402 = vmatprep.mubr.bf16.mxu1 %v4560_v51 }
 0x53e   :  { %5362 = vmatmul.mubr.bf16.vlgmr.msra.gmra.mxu0 %v13108_v17  ;;  %5403 = vmatmul.mubr.bf16.vlgmr.msra.gmra.mxu1 %v13108_v17 }
 0x53f   :  { %5412 = vmatpush1.bf16.msra.mxu0 %v12800_v58  ;;  %5453 = vmatpush1.bf16.msra.mxu1 %v12802_v39  ;;  %v15461_v58 = vld [vmem:[#allocation29_spill] sm:$0xff]  ;;  %v15462_v39 = vld [vmem:[#allocation47_spill] sm:$0xff] }
 0x540   :  { %5443 = vmatprep.mubr.bf16.mxu0 %v4560_v51  ;;  %5484 = vmatprep.mubr.bf16.mxu1 %v4560_v51  ;;  %v15499_v51 = vld [vmem:[#allocation136_spill] sm:$0xff] }
 0x541   :  { %5413 = vmatprep.subr.bf16.mxu0 %v15453_v7  ;;  %5454 = vmatprep.subr.bf16.mxu1 %v15454_v47  ;;  %v15500_v7 = vld [vmem:[#allocation137_spill] sm:$0xff] }
 0x543   :  { %5414 = vmatpush1.bf16.msra.mxu0 %v15455_v1  ;;  %5455 = vmatpush1.bf16.msra.mxu1 %v15456_v10  ;;  %v5608_v10 = vld [vmem:[#allocation9 + $0x1a8] sm:$0xff] }
 0x544   :  { %5415 = vmatprep.subr.bf16.mxu0 %v15457_v45  ;;  %5456 = vmatprep.subr.bf16.mxu1 %v15458_v6  ;;  %v5599_v45 = vld [vmem:[#allocation9 + $0x160] sm:$0xff]  ;;  %v5596_v6 = vld [vmem:[#allocation9 + $0x148] sm:$0xff] }
 0x547   :  { %5416 = vmatpush1.bf16.msra.mxu0 %v15459_v29  ;;  %5457 = vmatpush1.bf16.msra.mxu1 %v15460_v16  ;;  %v5600_v29 = vld [vmem:[#allocation9 + $0x168] sm:$0xff] }
 0x548   :  { %5417 = vmatprep.subr.bf16.mxu0 %v15461_v58  ;;  %5458 = vmatprep.subr.bf16.mxu1 %v15462_v39  ;;  %v10836_v39 = vcombine.high %v5596_v6, %v5600_v29 }
 0x54b   :  { %5418 = vmatpush1.bf16.msra.mxu0 %v15463_v38  ;;  %5459 = vmatpush1.bf16.msra.mxu1 %v15464_v15  ;;  %v5587_v38 = vld [vmem:[#allocation9 + $0x100] sm:$0xff] }
 0x54c   :  { %5419 = vmatprep.subr.bf16.mxu0 %v15465_v41  ;;  %5460 = vmatprep.subr.bf16.mxu1 %v15466_v0  ;;  %v5591_v15 = vld [vmem:[#allocation9 + $0x120] sm:$0xff]  ;;  %v5588_v41 = vld [vmem:[#allocation9 + $0x108] sm:$0xff] }
 0x54d   :  { %v5592_v0 = vld [vmem:[#allocation9 + $0x128] sm:$0xff] }
 0x54f   :  { %5420 = vmatpush1.bf16.msra.mxu0 %v15467_v22  ;;  %5461 = vmatpush1.bf16.msra.mxu1 %v15468_v50  ;;  %v10835_v50 = vcombine.low %v5596_v6, %v5600_v29  ;;  %v5672_v6 = vld [vmem:[#allocation9 + $0x3a8] sm:$0xff] }
 0x550   :  { %5421 = vmatprep.subr.bf16.mxu0 %v15469_v54  ;;  %5462 = vmatprep.subr.bf16.mxu1 %v15470_v55  ;;  %v10826_v54 = vcombine.high %v5587_v38, %v5591_v15  ;;  %v10828_v55 = vcombine.high %v5588_v41, %v5592_v0 }
 0x553   :  { %5422 = vmatpush1.bf16.msra.mxu0 %v15471_v56  ;;  %5463 = vmatpush1.bf16.msra.mxu1 %v15472_v60  ;;  %v5579_v56 = vld [vmem:[#allocation9 + $0xc0] sm:$0xff] }
 0x554   :  { %5423 = vmatprep.subr.bf16.mxu0 %v15473_v2  ;;  %5464 = vmatprep.subr.bf16.mxu1 %v15474_v11  ;;  %v5583_v60 = vld [vmem:[#allocation9 + $0xe0] sm:$0xff]  ;;  %v5580_v2 = vld [vmem:[#allocation9 + $0xc8] sm:$0xff] }
 0x555   :  { %v5584_v11 = vld [vmem:[#allocation9 + $0xe8] sm:$0xff] }
 0x557   :  { %5424 = vmatpush1.bf16.msra.mxu0 %v15475_v14  ;;  %5465 = vmatpush1.bf16.msra.mxu1 %v15476_v21  ;;  %v10825_v14 = vcombine.low %v5587_v38, %v5591_v15  ;;  %v10827_v21 = vcombine.low %v5588_v41, %v5592_v0  ;;  %v5660_v38 = vld [vmem:[#allocation9 + $0x348] sm:$0xff] }
 0x558   :  { %5425 = vmatprep.subr.bf16.mxu0 %v15477_v24  ;;  %5466 = vmatprep.subr.bf16.mxu1 %v15478_v40  ;;  %v10818_v24 = vcombine.high %v5579_v56, %v5583_v60  ;;  %v10820_v40 = vcombine.high %v5580_v2, %v5584_v11  ;;  %v5664_v41 = vld [vmem:[#allocation9 + $0x368] sm:$0xff] }
 0x55b   :  { %5426 = vmatpush1.bf16.msra.mxu0 %v15479_v52  ;;  %5467 = vmatpush1.bf16.msra.mxu1 %v15480_v44  ;;  %v5571_v52 = vld [vmem:[#allocation9 + $0x80] sm:$0xff] }
 0x55c   :  { %5427 = vmatprep.subr.bf16.mxu0 %v15481_v46  ;;  %5468 = vmatprep.subr.bf16.mxu1 %v15482_v31  ;;  %v5575_v44 = vld [vmem:[#allocation9 + $0xa0] sm:$0xff]  ;;  %v5572_v46 = vld [vmem:[#allocation9 + $0x88] sm:$0xff] }
 0x55d   :  { %v5576_v31 = vld [vmem:[#allocation9 + $0xa8] sm:$0xff] }
 0x55f   :  { %5428 = vmatpush2.bf16.msra.mxu0 %v15483_v57  ;;  %5469 = vmatpush2.bf16.msra.mxu1 %v15484_v35  ;;  %v10817_v57 = vcombine.low %v5579_v56, %v5583_v60  ;;  %v10819_v35 = vcombine.low %v5580_v2, %v5584_v11  ;;  %v5652_v56 = vld [vmem:[#allocation9 + $0x308] sm:$0xff] }
 0x560   :  { %5429 = vmatprep.subr.bf16.mxu0 %v15485_v59  ;;  %5470 = vmatprep.subr.bf16.mxu1 %v15486_v48  ;;  %v10810_v59 = vcombine.high %v5571_v52, %v5575_v44  ;;  %v10812_v48 = vcombine.high %v5572_v46, %v5576_v31  ;;  %v5656_v2 = vld [vmem:[#allocation9 + $0x328] sm:$0xff] }
 0x563   :  { %5430 = vmatpush2.bf16.msra.mxu0 %v15487_v18  ;;  %5471 = vmatpush2.bf16.msra.mxu1 %v15488_v9  ;;  %v10809_v18 = vcombine.low %v5571_v52, %v5575_v44  ;;  %v10811_v9 = vcombine.low %v5572_v46, %v5576_v31  ;;  %v5644_v52 = vld [vmem:[#allocation9 + $0x2c8] sm:$0xff] }
 0x564   :  { %5431 = vmatprep.subr.bf16.mxu0 %v15489_v42  ;;  %5472 = vmatprep.subr.bf16.mxu1 %v15490_v37  ;;  %v5563_v42 = vld [vmem:[#allocation9 + $0x40] sm:$0xff]  ;;  %v5648_v46 = vld [vmem:[#allocation9 + $0x2e8] sm:$0xff] }
 0x565   :  { %v5567_v37 = vld [vmem:[#allocation9 + $0x60] sm:$0xff] }
 0x567   :  { %5432 = vmatpush2.bf16.msra.mxu0 %v15491_v49  ;;  %5473 = vmatpush2.bf16.msra.mxu1 %v15492_v27  ;;  %v5564_v49 = vld [vmem:[#allocation9 + $0x48] sm:$0xff]  ;;  %v10802_v27 = vcombine.high %v5563_v42, %v5567_v37 }
 0x568   :  { %5433 = vmatprep.subr.bf16.mxu0 %v15493_v33  ;;  %5474 = vmatprep.subr.bf16.mxu1 %v15494_v43  ;;  %v5568_v33 = vld [vmem:[#allocation9 + $0x68] sm:$0xff]  ;;  %v10801_v43 = vcombine.low %v5563_v42, %v5567_v37 }
 0x569   :  { %v5640_v42 = vld [vmem:[#allocation9 + $0x2a8] sm:$0xff] }
 0x56b   :  { %5434 = vmatpush2.bf16.msra.mxu0 %v15495_v8  ;;  %5475 = vmatpush2.bf16.msra.mxu1 %v15496_v20  ;;  %v10803_v8 = vcombine.low %v5564_v49, %v5568_v33  ;;  %v10804_v20 = vcombine.high %v5564_v49, %v5568_v33  ;;  %v5627_v33 = vld [vmem:[#allocation9 + $0x240] sm:$0xff] }
 0x56c   :  { %5435 = vmatprep.subr.bf16.mxu0 %v15497_v63  ;;  %5476 = vmatprep.subr.bf16.mxu1 %v15498_v12  ;;  %v5555_v63 = vld [vmem:[#allocation9] sm:$0xff] }
 0x56d   :  { %v5559_v12 = vld [vmem:[#allocation9 + $0x20] sm:$0xff] }
 0x56f   :  { %5436 = vmatpush2.bf16.msra.mxu0 %v12974_v23  ;;  %5477 = vmatpush2.bf16.msra.mxu1 %v12976_v32  ;;  %v5611_v23 = vld [vmem:[#allocation9 + $0x1c0] sm:$0xff] }
 0x570   :  { %5437 = vmatprep.subr.bf16.mxu0 %v12980_v62  ;;  %5478 = vmatprep.subr.bf16.mxu1 %v15499_v51  ;;  %v5615_v32 = vld [vmem:[#allocation9 + $0x1e0] sm:$0xff]  ;;  %v5612_v62 = vld [vmem:[#allocation9 + $0x1c8] sm:$0xff] }
 0x571   :  { %v5556_v51 = vld [vmem:[#allocation9 + $0x8] sm:$0xff] }
 0x573   :  { %5438 = vmatpush2.bf16.msra.mxu0 %v15500_v7  ;;  %5479 = vmatpush2.bf16.msra.mxu1 %v12988_v4  ;;  %v10849_v4 = vcombine.low %v5611_v23, %v5615_v32  ;;  %v10794_v7 = vcombine.high %v5555_v63, %v5559_v12 }
 0x574   :  { %5439 = vmatprep.subr.bf16.mxu0 %v12992_v30  ;;  %5480 = vmatprep.subr.bf16.mxu1 %v12994_v61  ;;  %v10850_v30 = vcombine.high %v5611_v23, %v5615_v32  ;;  %v5616_v61 = vld [vmem:[#allocation9 + $0x1e8] sm:$0xff]  ;;  %v10793_v32 = vcombine.low %v5555_v63, %v5559_v12 }
 0x575   :  { %v10851_v47 = vcombine.low %v5612_v62, %v5616_v61  ;;  %v5560_v23 = vld [vmem:[#allocation9 + $0x28] sm:$0xff] }
 0x576   :  { %v5632_v63 = vld [vmem:[#allocation9 + $0x268] sm:$0xff] }
 0x577   :  { %5440 = vmatpush2.bf16.msra.mxu0 %v12998_v3  ;;  %5481 = vmatpush2.bf16.msra.mxu1 %v13000_v13  ;;  %v5603_v3 = vld [vmem:[#allocation9 + $0x180] sm:$0xff] }
 0x578   :  { %5441 = vmatprep.subr.bf16.mxu0 %v13004_v25  ;;  %5482 = vmatprep.subr.bf16.mxu1 %v13006_v28  ;;  %v5607_v13 = vld [vmem:[#allocation9 + $0x1a0] sm:$0xff]  ;;  %v10852_v25 = vcombine.high %v5612_v62, %v5616_v61  ;;  %v5604_v28 = vld [vmem:[#allocation9 + $0x188] sm:$0xff]  ;;  %v10795_v62 = vcombine.low %v5556_v51, %v5560_v23 }
 0x579   :  { %v10842_v1 = vcombine.high %v5603_v3, %v5607_v13  ;;  %v10843_v16 = vcombine.low %v5604_v28, %v5608_v10  ;;  %v5679_v61 = vld [vmem:[#allocation9 + $0x3e0] sm:$0xff] }
 0x57b   :  { %5442 = vmatpush2.bf16.msra.mxu0 %v13010_v26  ;;  %5483 = vmatpush2.bf16.msra.mxu1 %v13012_v19  ;;  %v5595_v26 = vld [vmem:[#allocation9 + $0x140] sm:$0xff]  ;;  %v10844_v19 = vcombine.high %v5604_v28, %v5608_v10 }
 0x57c   :  { %6323 = vmatprep.subr.bf16.mxu0 %v10850_v30  ;;  %6364 = vmatprep.subr.bf16.mxu1 %v10852_v25  ;;  %v10834_v58 = vcombine.high %v5595_v26, %v5599_v45  ;;  %v10833_v22 = vcombine.low %v5595_v26, %v5599_v45  ;;  %v5675_v30 = vld [vmem:[#allocation9 + $0x3c0] sm:$0xff] }
 0x57d   :  { %v10913_v25 = vcombine.low %v5675_v30, %v5679_v61  ;;  %v5667_v10 = vld [vmem:[#allocation9 + $0x380] sm:$0xff] }
 0x57e   :  { %5444 = vmatmul.mubr.bf16.vlgmr.msra.gmra.mxu0 %v13108_v17  ;;  %5485 = vmatmul.mubr.bf16.vlgmr.msra.gmra.mxu1 %v13108_v17  ;;  %v10841_v17 = vcombine.low %v5603_v3, %v5607_v13  ;;  %v5676_v3 = vld [vmem:[#allocation9 + $0x3c8] sm:$0xff]  ;;  %v10914_v13 = vcombine.high %v5675_v30, %v5679_v61  ;;  %v5671_v26 = vld [vmem:[#allocation9 + $0x3a0] sm:$0xff] }
 0x57f   :  { %6324 = vmatpush1.bf16.msra.mxu0 %v10849_v4  ;;  %6365 = vmatpush1.bf16.msra.mxu1 %v10851_v47  ;;  %v10796_v4 = vcombine.high %v5556_v51, %v5560_v23  ;;  %v5680_v47 = vld [vmem:[#allocation9 + $0x3e8] sm:$0xff]  ;;  %v10906_v45 = vcombine.high %v5667_v10, %v5671_v26  ;;  %v10905_v29 = vcombine.low %v5667_v10, %v5671_v26  ;;  %v5619_v23 = vld [vmem:[#allocation9 + $0x200] sm:$0xff]  ;;  %v13184_v10 = vld [vmem:[#allocation9 + $0x1f8] sm:$0xff] }
 0x580   :  { %6325 = vmatprep.subr.bf16.mxu0 %v10842_v1  ;;  %6366 = vmatprep.subr.bf16.mxu1 %v10844_v19  ;;  %v10915_v1 = vcombine.low %v5676_v3, %v5680_v47  ;;  %v10916_v28 = vcombine.high %v5676_v3, %v5680_v47  ;;  %v5668_v19 = vld [vmem:[#allocation9 + $0x388] sm:$0xff]  ;;  %v13176_v47 = vld [vmem:[#allocation9 + $0x1d0] sm:$0xff] }
 0x581   :  { %v5624_v30 = vld [vmem:[#allocation9 + $0x228] sm:$0xff] }
 0x583   :  { %6326 = vmatpush1.bf16.msra.mxu0 %v10841_v17  ;;  %6367 = vmatpush1.bf16.msra.mxu1 %v10843_v16  ;;  %v10907_v17 = vcombine.low %v5668_v19, %v5672_v6  ;;  %v10908_v16 = vcombine.high %v5668_v19, %v5672_v6 }
 0x584   :  { %6327 = vmatprep.subr.bf16.mxu0 %v10834_v58  ;;  %6368 = vmatprep.subr.bf16.mxu1 %v10836_v39  ;;  %v5659_v58 = vld [vmem:[#allocation9 + $0x340] sm:$0xff] }
 0x585   :  { %v5663_v39 = vld [vmem:[#allocation9 + $0x360] sm:$0xff] }
 0x586   :  { %v10898_v15 = vcombine.high %v5659_v58, %v5663_v39  ;;  %v10897_v0 = vcombine.low %v5659_v58, %v5663_v39 }
 0x587   :  { %6328 = vmatpush1.bf16.msra.mxu0 %v10833_v22  ;;  %6369 = vmatpush1.bf16.msra.mxu1 %v10835_v50  ;;  %v10899_v22 = vcombine.low %v5660_v38, %v5664_v41  ;;  %v10900_v50 = vcombine.high %v5660_v38, %v5664_v41  ;;  %v15501_v41 = vld [vmem:[#allocation40_spill] sm:$0xff] }
 0x588   :  { %6329 = vmatprep.subr.bf16.mxu0 %v10826_v54  ;;  %6370 = vmatprep.subr.bf16.mxu1 %v10828_v55  ;;  %v5651_v54 = vld [vmem:[#allocation9 + $0x300] sm:$0xff] }
 0x589   :  { %v5655_v55 = vld [vmem:[#allocation9 + $0x320] sm:$0xff] }
 0x58a   :  { %v10890_v60 = vcombine.high %v5651_v54, %v5655_v55  ;;  %v10889_v11 = vcombine.low %v5651_v54, %v5655_v55  ;;  %v15503_v54 = vld [vmem:[#allocation42_spill] sm:$0xff] }
 0x58b   :  { %6330 = vmatpush1.bf16.msra.mxu0 %v10825_v14  ;;  %6371 = vmatpush1.bf16.msra.mxu1 %v10827_v21  ;;  %v10891_v14 = vcombine.low %v5652_v56, %v5656_v2  ;;  %v10892_v21 = vcombine.high %v5652_v56, %v5656_v2 }
 0x58c   :  { %6331 = vmatprep.subr.bf16.mxu0 %v10818_v24  ;;  %6372 = vmatprep.subr.bf16.mxu1 %v10820_v40  ;;  %v5643_v24 = vld [vmem:[#allocation9 + $0x2c0] sm:$0xff] }
 0x58d   :  { %v5647_v40 = vld [vmem:[#allocation9 + $0x2e0] sm:$0xff] }
 0x58e   :  { %v10882_v44 = vcombine.high %v5643_v24, %v5647_v40  ;;  %v10881_v31 = vcombine.low %v5643_v24, %v5647_v40 }
 0x58f   :  { %6332 = vmatpush1.bf16.msra.mxu0 %v10817_v57  ;;  %6373 = vmatpush1.bf16.msra.mxu1 %v10819_v35  ;;  %v10883_v57 = vcombine.low %v5644_v52, %v5648_v46  ;;  %v10884_v35 = vcombine.high %v5644_v52, %v5648_v46  ;;  %v15505_v52 = vld [vmem:[#allocation70_spill] sm:$0xff] }
 0x590   :  { %6333 = vmatprep.subr.bf16.mxu0 %v10810_v59  ;;  %6374 = vmatprep.subr.bf16.mxu1 %v10812_v48  ;;  %v5635_v59 = vld [vmem:[#allocation9 + $0x280] sm:$0xff] }
 0x591   :  { %v5639_v48 = vld [vmem:[#allocation9 + $0x2a0] sm:$0xff] }
 0x592   :  { %v10873_v37 = vcombine.low %v5635_v59, %v5639_v48 }
 0x593   :  { %6334 = vmatpush1.bf16.msra.mxu0 %v10809_v18  ;;  %6375 = vmatpush1.bf16.msra.mxu1 %v10811_v9  ;;  %v5636_v18 = vld [vmem:[#allocation9 + $0x288] sm:$0xff]  ;;  %v10874_v9 = vcombine.high %v5635_v59, %v5639_v48 }
 0x594   :  { %6335 = vmatprep.subr.bf16.mxu0 %v10802_v27  ;;  %6376 = vmatprep.subr.bf16.mxu1 %v10804_v20  ;;  %v10875_v49 = vcombine.low %v5636_v18, %v5640_v42  ;;  %v10876_v27 = vcombine.high %v5636_v18, %v5640_v42 }
 0x597   :  { %6336 = vmatpush1.bf16.msra.mxu0 %v10801_v43  ;;  %6377 = vmatpush1.bf16.msra.mxu1 %v10803_v8  ;;  %v5631_v43 = vld [vmem:[#allocation9 + $0x260] sm:$0xff]  ;;  %v5628_v8 = vld [vmem:[#allocation9 + $0x248] sm:$0xff] }
 0x598   :  { %6337 = vmatprep.subr.bf16.mxu0 %v10794_v7  ;;  %6378 = vmatprep.subr.bf16.mxu1 %v10796_v4  ;;  %v10866_v20 = vcombine.high %v5627_v33, %v5631_v43  ;;  %v10865_v12 = vcombine.low %v5627_v33, %v5631_v43  ;;  %v10867_v51 = vcombine.low %v5628_v8, %v5632_v63  ;;  %v15508_v33 = vld [vmem:[#allocation76_spill] sm:$0xff] }
 0x599   :  { %v10868_v7 = vcombine.high %v5628_v8, %v5632_v63 }
 0x59b   :  { %6338 = vmatpush1.bf16.msra.mxu0 %v10793_v32  ;;  %6379 = vmatpush1.bf16.msra.mxu1 %v10795_v62  ;;  %v5623_v32 = vld [vmem:[#allocation9 + $0x220] sm:$0xff]  ;;  %v5620_v62 = vld [vmem:[#allocation9 + $0x208] sm:$0xff] }
 0x59c   :  { %6339 = vmatprep.subr.bf16.mxu0 %v10914_v13  ;;  %6380 = vmatprep.subr.bf16.mxu1 %v10916_v28  ;;  %v10858_v4 = vcombine.high %v5619_v23, %v5623_v32  ;;  %v10857_v61 = vcombine.low %v5619_v23, %v5623_v32  ;;  %v10859_v3 = vcombine.low %v5620_v62, %v5624_v30 }
 0x59d   :  { %v10860_v13 = vcombine.high %v5620_v62, %v5624_v30 }
 0x59f   :  { %6340 = vmatpush2.bf16.msra.mxu0 %v10913_v25  ;;  %6381 = vmatpush2.bf16.msra.mxu1 %v10915_v1  ;;  %v13178_v25 = vld [vmem:[#allocation9 + $0x1f0] sm:$0xff]  ;;  %v13180_v1 = vld [vmem:[#allocation9 + $0x1d8] sm:$0xff] }
 0x5a0   :  { %6341 = vmatprep.subr.bf16.mxu0 %v10906_v45  ;;  %6382 = vmatprep.subr.bf16.mxu1 %v10908_v16  ;;  %v10854_v28 = vcombine.high %v13176_v47, %v13178_v25  ;;  %v10853_v26 = vcombine.low %v13176_v47, %v13178_v25  ;;  %v10855_v19 = vcombine.low %v13180_v1, %v13184_v10 }
 0x5a1   :  { %v10856_v45 = vcombine.high %v13180_v1, %v13184_v10 }
 0x5a3   :  { %6342 = vmatpush2.bf16.msra.mxu0 %v10905_v29  ;;  %6383 = vmatpush2.bf16.msra.mxu1 %v10907_v17 }
 0x5a4   :  { %6343 = vmatprep.subr.bf16.mxu0 %v10898_v15  ;;  %6384 = vmatprep.subr.bf16.mxu1 %v10900_v50 }
 0x5a7   :  { %6344 = vmatpush2.bf16.msra.mxu0 %v10897_v0  ;;  %6385 = vmatpush2.bf16.msra.mxu1 %v10899_v22  ;;  %v15502_v22 = vld [vmem:[#allocation39_spill] sm:$0xff] }
 0x5a8   :  { %6345 = vmatprep.subr.bf16.mxu0 %v10890_v60  ;;  %6386 = vmatprep.subr.bf16.mxu1 %v10892_v21  ;;  %v15504_v60 = vld [vmem:[#allocation41_spill] sm:$0xff] }
 0x5ab   :  { %6346 = vmatpush2.bf16.msra.mxu0 %v10889_v11  ;;  %6387 = vmatpush2.bf16.msra.mxu1 %v10891_v14 }
 0x5ac   :  { %6347 = vmatprep.subr.bf16.mxu0 %v10882_v44  ;;  %6388 = vmatprep.subr.bf16.mxu1 %v10884_v35 }
 0x5af   :  { %6348 = vmatpush2.bf16.msra.mxu0 %v10881_v31  ;;  %6389 = vmatpush2.bf16.msra.mxu1 %v10883_v57  ;;  %v15506_v57 = vld [vmem:[#allocation75_spill] sm:$0xff] }
 0x5b0   :  { %6349 = vmatprep.subr.bf16.mxu0 %v10874_v9  ;;  %6390 = vmatprep.subr.bf16.mxu1 %v10876_v27 }
 0x5b3   :  { %6350 = vmatpush2.bf16.msra.mxu0 %v10873_v37  ;;  %6391 = vmatpush2.bf16.msra.mxu1 %v10875_v49  ;;  %v15507_v37 = vld [vmem:[#allocation71_spill] sm:$0xff] }
 0x5b4   :  { %6351 = vmatprep.subr.bf16.mxu0 %v10866_v20  ;;  %6392 = vmatprep.subr.bf16.mxu1 %v10868_v7 }
 0x5b7   :  { %6352 = vmatpush2.bf16.msra.mxu0 %v10865_v12  ;;  %6393 = vmatpush2.bf16.msra.mxu1 %v10867_v51 }
 0x5b8   :  { %6353 = vmatprep.subr.bf16.mxu0 %v10858_v4  ;;  %6394 = vmatprep.subr.bf16.mxu1 %v10860_v13 }
 0x5bb   :  { %6354 = vmatpush2.bf16.msra.mxu0 %v10857_v61  ;;  %6395 = vmatpush2.bf16.msra.mxu1 %v10859_v3 }
 0x5bc   :  { %6405 = vmatprep.subr.bf16.mxu0 %v10854_v28  ;;  %6446 = vmatprep.subr.bf16.mxu1 %v10856_v45 }
 0x5fe   :  { %v5363_v6 = vpop.f32.mrf.mxu0  ;;  %v5404_v29 = vpop.f32.mrf.mxu1 }
 0x5ff   :  { %v5495_v0 = vadd.f32 %v5404_v29, %v15501_v41  ;;  %v5493_v50 = vadd.f32 %v5363_v6, %v15502_v22 }
 0x600   :  { %v5365_v17 = vpop.f32.mrf.mxu0  ;;  %v5406_v16 = vpop.f32.mrf.mxu1 }
 0x601   :  { %v5496_v55 = vadd.f32 %v5406_v16, %v15503_v54  ;;  %v5509_v56 = vmul.f32 0.5, %v5495_v0  ;;  %v5494_v2 = vadd.f32 %v5365_v17, %v15504_v60  ;;  %v5501_v11 = vmul.f32 0.5, %v5493_v50  ;;  %v5610_v60 = vld [vmem:[#allocation9 + $0x1b8] sm:$0xff] }
 0x602   :  { %v5367_v58 = vpop.f32.mrf.mxu0  ;;  %v5408_v39 = vpop.f32.mrf.mxu1 }
 0x603   :  { %v5510_v14 = vmul.f32 0.5, %v5496_v55  ;;  %11364 = vtanh.f32 %v5509_v56  ;;  %v5502_v21 = vmul.f32 0.5, %v5494_v2  ;;  %v5609_v55 = vld [vmem:[#allocation9 + $0x1b0] sm:$0xff]  ;;  %v5606_v56 = vld [vmem:[#allocation9 + $0x198] sm:$0xff] }
 0x604   :  { %v5368_v38 = vpop.f32.mrf.mxu0  ;;  %v5409_v15 = vpop.f32.mrf.mxu1  ;;  %11366 = vtanh.f32 %v5501_v11 }
 0x605   :  { %11368 = vtanh.f32 %v5510_v14  ;;  %v5597_v14 = vld [vmem:[#allocation9 + $0x150] sm:$0xff] }
 0x606   :  { %11370 = vtanh.f32 %v5502_v21 }
 0x610   :  { %v11365_v18 = vpop.eup %11364 }
 0x611   :  { %v11367_v27 = vpop.eup %11366  ;;  %v5513_v20 = vmul.f32 0.5, %v11365_v18  ;;  %v5590_v18 = vld [vmem:[#allocation9 + $0x118] sm:$0xff] }
 0x612   :  { %v11369_v8 = vpop.eup %11368  ;;  %v5505_v12 = vmul.f32 0.5, %v11367_v27 }
 0x613   :  { %v11371_v63 = vpop.eup %11370  ;;  %v5514_v7 = vmul.f32 0.5, %v11369_v8  ;;  %v5515_v32 = vadd.f32 0.5, %v5513_v20  ;;  %v5573_v8 = vld [vmem:[#allocation9 + $0x90] sm:$0xff] }
 0x614   :  { %v5506_v62 = vmul.f32 0.5, %v11371_v63  ;;  %v5507_v4 = vadd.f32 0.5, %v5505_v12  ;;  %v5577_v20 = vld [vmem:[#allocation9 + $0xb0] sm:$0xff]  ;;  %v5574_v63 = vld [vmem:[#allocation9 + $0x98] sm:$0xff] }
 0x615   :  { %v5516_v61 = vadd.f32 0.5, %v5514_v7  ;;  %v5527_v3 = vmul.f32 %v5515_v32, %v13095_v5  ;;  %v5578_v12 = vld [vmem:[#allocation9 + $0xb8] sm:$0xff] }
 0x616   :  { %v5508_v28 = vadd.f32 0.5, %v5506_v62  ;;  %v10816_v32 = vcombine.high %v5574_v63, %v5578_v12  ;;  %v5565_v62 = vld [vmem:[#allocation9 + $0x50] sm:$0xff] }
 0x617   :  { %v5528_v29 = vmul.f32 %v5516_v61, %v13099_v53  ;;  %v5605_v53 = vld [vmem:[#allocation9 + $0x190] sm:$0xff]  ;;  %v5570_v61 = vld [vmem:[#allocation9 + $0x78] sm:$0xff] }
 0x618   :  { %v10846_v21 = vcombine.high %v5605_v53, %v5609_v55 }
 0x63e   :  { %v5445_v24 = vpop.f32.mrf.mxu0  ;;  %v5486_v40 = vpop.f32.mrf.mxu1 }
 0x63f   :  { %v5497_v44 = vadd.f32 %v5445_v24, %v15505_v52  ;;  %v5499_v49 = vadd.f32 %v5486_v40, %v15507_v37  ;;  %v10848_v24 = vcombine.high %v5606_v56, %v5610_v60  ;;  %v5601_v40 = vld [vmem:[#allocation9 + $0x170] sm:$0xff]  ;;  %v5598_v52 = vld [vmem:[#allocation9 + $0x158] sm:$0xff] }
 0x640   :  { %v5447_v46 = vpop.f32.mrf.mxu0  ;;  %v5488_v31 = vpop.f32.mrf.mxu1  ;;  %v10837_v47 = vcombine.low %v5597_v14, %v5601_v40  ;;  %v5586_v37 = vld [vmem:[#allocation9 + $0xf8] sm:$0xff] }
 0x641   :  { %11372 = vtanh.f32 %v5497_v44  ;;  %v5498_v35 = vadd.f32 %v5447_v46, %v15506_v57  ;;  %v5500_v43 = vadd.f32 %v5488_v31, %v15508_v33  ;;  %v5519_v51 = vmul.f32 0.5, %v5499_v49  ;;  %v5602_v44 = vld [vmem:[#allocation9 + $0x178] sm:$0xff] }
 0x642   :  { %v5449_v59 = vpop.f32.mrf.mxu0  ;;  %v5490_v48 = vpop.f32.mrf.mxu1  ;;  %v10845_v46 = vcombine.low %v5605_v53, %v5609_v55  ;;  %v10847_v31 = vcombine.low %v5606_v56, %v5610_v60  ;;  %v10838_v57 = vcombine.high %v5597_v14, %v5601_v40  ;;  %v10839_v25 = vcombine.low %v5598_v52, %v5602_v44  ;;  %v5678_v53 = vld [vmem:[#allocation9 + $0x3d8] sm:$0xff] }
 0x643   :  { %11374 = vtanh.f32 %v5498_v35  ;;  %v5520_v23 = vmul.f32 0.5, %v5500_v43  ;;  %v10840_v35 = vcombine.high %v5598_v52, %v5602_v44  ;;  %v5589_v59 = vld [vmem:[#allocation9 + $0x110] sm:$0xff]  ;;  %v5682_v55 = vld [vmem:[#allocation9 + $0x3f8] sm:$0xff] }
 0x644   :  { %v5450_v9 = vpop.f32.mrf.mxu0  ;;  %v5491_v42 = vpop.f32.mrf.mxu1  ;;  %11376 = vtanh.f32 %v5519_v51  ;;  %v5593_v48 = vld [vmem:[#allocation9 + $0x130] sm:$0xff]  ;;  %v10920_v14 = vcombine.high %v5678_v53, %v5682_v55  ;;  %v5670_v40 = vld [vmem:[#allocation9 + $0x398] sm:$0xff] }
 0x645   :  { %11378 = vtanh.f32 %v5520_v23  ;;  %v5594_v9 = vld [vmem:[#allocation9 + $0x138] sm:$0xff]  ;;  %v10830_v1 = vcombine.high %v5589_v59, %v5593_v48  ;;  %v10829_v49 = vcombine.low %v5589_v59, %v5593_v48  ;;  %v10814_v23 = vcombine.high %v5573_v8, %v5577_v20  ;;  %v5665_v59 = vld [vmem:[#allocation9 + $0x370] sm:$0xff] }
 0x646   :  { %v10832_v10 = vcombine.high %v5590_v18, %v5594_v9  ;;  %v5582_v42 = vld [vmem:[#allocation9 + $0xd8] sm:$0xff]  ;;  %v10831_v27 = vcombine.low %v5590_v18, %v5594_v9 }
 0x647   :  { %v10824_v43 = vcombine.high %v5582_v42, %v5586_v37  ;;  %v10823_v7 = vcombine.low %v5582_v42, %v5586_v37  ;;  %v5674_v52 = vld [vmem:[#allocation9 + $0x3b8] sm:$0xff] }
 0x648   :  { %v5662_v48 = vld [vmem:[#allocation9 + $0x358] sm:$0xff] }
 0x649   :  { %v5666_v18 = vld [vmem:[#allocation9 + $0x378] sm:$0xff] }
 0x64a   :  { %v5658_v42 = vld [vmem:[#allocation9 + $0x338] sm:$0xff] }
 0x64e   :  { %v11373_v30 = vpop.eup %11372 }
 0x64f   :  { %v5529_v13 = vmul.f32 %v11373_v30, %v5507_v4  ;;  %v5569_v4 = vld [vmem:[#allocation9 + $0x70] sm:$0xff]  ;;  %v5566_v30 = vld [vmem:[#allocation9 + $0x58] sm:$0xff] }
 0x650   :  { %v11375_v45 = vpop.eup %11374 }
 0x651   :  { %v13201_v6 = vadd.f32 %v5529_v13, %v5527_v3  ;;  %v5530_v17 = vmul.f32 %v11375_v45, %v5508_v28  ;;  %v11377_v58 = vpop.eup %11376  ;;  %v10813_v3 = vcombine.low %v5573_v8, %v5577_v20  ;;  %v10815_v13 = vcombine.low %v5574_v63, %v5578_v12  ;;  %v5649_v8 = vld [vmem:[#allocation9 + $0x2f0] sm:$0xff]  ;;  %v5646_v20 = vld [vmem:[#allocation9 + $0x2d8] sm:$0xff] }
 0x652   :  { %v11379_v39 = vpop.eup %11378  ;;  %v5523_v38 = vmul.f32 0.5, %v11377_v58  ;;  %v10806_v28 = vcombine.high %v5565_v62, %v5569_v4  ;;  %v10808_v45 = vcombine.high %v5566_v30, %v5570_v61  ;;  %v5558_v58 = vld [vmem:[#allocation9 + $0x18] sm:$0xff] }
 0x653   :  { %11380 = vtanh.f32 %v13201_v6  ;;  %v13205_v16 = vadd.f32 %v5530_v17, %v5528_v29  ;;  %v5524_v15 = vmul.f32 0.5, %v11379_v39  ;;  %v5557_v29 = vld [vmem:[#allocation9 + $0x10] sm:$0xff]  ;;  %v5562_v39 = vld [vmem:[#allocation9 + $0x38] sm:$0xff] }
 0x654   :  { %v5525_v5 = vadd.f32 0.5, %v5523_v38  ;;  %v5561_v17 = vld [vmem:[#allocation9 + $0x30] sm:$0xff]  ;;  %v10805_v38 = vcombine.low %v5565_v62, %v5569_v4  ;;  %v10799_v60 = vcombine.low %v5558_v58, %v5562_v39  ;;  %v5650_v63 = vld [vmem:[#allocation9 + $0x2f8] sm:$0xff] }
 0x655   :  { %11382 = vtanh.f32 %v13205_v16  ;;  %v5526_v0 = vadd.f32 0.5, %v5524_v15  ;;  %v10807_v15 = vcombine.low %v5566_v30, %v5570_v61  ;;  %v10797_v56 = vcombine.low %v5557_v29, %v5561_v17  ;;  %v5641_v62 = vld [vmem:[#allocation9 + $0x2b0] sm:$0xff]  ;;  %v5638_v4 = vld [vmem:[#allocation9 + $0x298] sm:$0xff] }
 0x656   :  { %v5642_v30 = vld [vmem:[#allocation9 + $0x2b8] sm:$0xff] }
 0x660   :  { %v11381_v41 = vpop.eup %11380 }
 0x661   :  { %v13208_v50 = vmul.f32 %v11381_v41, %v5525_v5  ;;  %v10798_v41 = vcombine.high %v5557_v29, %v5561_v17  ;;  %v10800_v5 = vcombine.high %v5558_v58, %v5562_v39  ;;  %v5633_v29 = vld [vmem:[#allocation9 + $0x270] sm:$0xff]  ;;  %v5630_v17 = vld [vmem:[#allocation9 + $0x258] sm:$0xff] }
 0x662   :  { %v11383_v22 = vpop.eup %11382  ;;  %v5634_v58 = vld [vmem:[#allocation9 + $0x278] sm:$0xff] }
 0x663   :  { %v13210_v54 = vmul.f32 %v11383_v22, %v5526_v0  ;;  %v13216_v11 = vpack.c.bf16 %v13208_v50, %v13208_v50  ;;  %v5677_v0 = vld [vmem:[#allocation9 + $0x3d0] sm:$0xff] }
 0x664   :  { %v5681_v22 = vld [vmem:[#allocation9 + $0x3f0] sm:$0xff] }
 0x665   :  { %v5554_v2 = vpack.c.bf16 %v13210_v54, %v13210_v54  ;;  %v10917_v44 = vcombine.low %v5677_v0, %v5681_v22 }
 0x667   :  { %6355 = vmatprep.mubr.bf16.mxu0 %v5554_v2  ;;  %6396 = vmatprep.mubr.bf16.mxu1 %v5554_v2 }
 0x668   :  { %6356 = vmatmul.mubr.bf16.vlgmr.msra.gmra.mxu0 %v13216_v11  ;;  %6397 = vmatmul.mubr.bf16.vlgmr.msra.gmra.mxu1 %v13216_v11 }
 0x669   :  { %6406 = vmatpush1.bf16.msra.mxu0 %v10853_v26  ;;  %6447 = vmatpush1.bf16.msra.mxu1 %v10855_v19  ;;  %v5581_v26 = vld [vmem:[#allocation9 + $0xd0] sm:$0xff] }
 0x66a   :  { %6437 = vmatprep.mubr.bf16.mxu0 %v5554_v2  ;;  %6478 = vmatprep.mubr.bf16.mxu1 %v5554_v2  ;;  %v5585_v19 = vld [vmem:[#allocation9 + $0xf0] sm:$0xff]  ;;  %v10918_v2 = vcombine.high %v5677_v0, %v5681_v22  ;;  %v5622_v22 = vld [vmem:[#allocation9 + $0x218] sm:$0xff] }
 0x66b   :  { %6407 = vmatprep.subr.bf16.mxu0 %v10846_v21  ;;  %6448 = vmatprep.subr.bf16.mxu1 %v10848_v24  ;;  %v10822_v33 = vcombine.high %v5581_v26, %v5585_v19  ;;  %v10821_v51 = vcombine.low %v5581_v26, %v5585_v19  ;;  %v5669_v21 = vld [vmem:[#allocation9 + $0x390] sm:$0xff]  ;;  %v5654_v19 = vld [vmem:[#allocation9 + $0x318] sm:$0xff] }
 0x66c   :  { %v5673_v24 = vld [vmem:[#allocation9 + $0x3b0] sm:$0xff] }
 0x66d   :  { %6408 = vmatpush1.bf16.msra.mxu0 %v10845_v46  ;;  %6449 = vmatpush1.bf16.msra.mxu1 %v10847_v31  ;;  %v10919_v46 = vcombine.low %v5678_v53, %v5682_v55  ;;  %v10910_v31 = vcombine.high %v5669_v21, %v5673_v24  ;;  %v10909_v9 = vcombine.low %v5669_v21, %v5673_v24  ;;  %v5657_v26 = vld [vmem:[#allocation9 + $0x330] sm:$0xff]  ;;  %v5626_v53 = vld [vmem:[#allocation9 + $0x238] sm:$0xff] }
 0x66e   :  { %6409 = vmatprep.subr.bf16.mxu0 %v10838_v57  ;;  %6450 = vmatprep.subr.bf16.mxu1 %v10840_v35  ;;  %v10912_v57 = vcombine.high %v5670_v40, %v5674_v52  ;;  %v5661_v35 = vld [vmem:[#allocation9 + $0x350] sm:$0xff]  ;;  %v10863_v21 = vcombine.low %v5622_v22, %v5626_v53 }
 0x66f   :  { %v10901_v37 = vcombine.low %v5661_v35, %v5665_v59  ;;  %v5625_v0 = vld [vmem:[#allocation9 + $0x230] sm:$0xff] }
 0x671   :  { %6410 = vmatpush1.bf16.msra.mxu0 %v10837_v47  ;;  %6451 = vmatpush1.bf16.msra.mxu1 %v10839_v25  ;;  %v10911_v47 = vcombine.low %v5670_v40, %v5674_v52  ;;  %v10902_v25 = vcombine.high %v5661_v35, %v5665_v59 }
 0x672   :  { %6411 = vmatprep.subr.bf16.mxu0 %v10830_v1  ;;  %6452 = vmatprep.subr.bf16.mxu1 %v10832_v10  ;;  %v10904_v1 = vcombine.high %v5662_v48, %v5666_v18  ;;  %v5653_v10 = vld [vmem:[#allocation9 + $0x310] sm:$0xff] }
 0x673   :  { %v10893_v12 = vcombine.low %v5653_v10, %v5657_v26 }
 0x675   :  { %6412 = vmatpush1.bf16.msra.mxu0 %v10829_v49  ;;  %6453 = vmatpush1.bf16.msra.mxu1 %v10831_v27  ;;  %v10903_v49 = vcombine.low %v5662_v48, %v5666_v18  ;;  %v10894_v27 = vcombine.high %v5653_v10, %v5657_v26 }
 0x676   :  { %6413 = vmatprep.subr.bf16.mxu0 %v10822_v33  ;;  %6454 = vmatprep.subr.bf16.mxu1 %v10824_v43  ;;  %v10896_v33 = vcombine.high %v5654_v19, %v5658_v42  ;;  %v5645_v43 = vld [vmem:[#allocation9 + $0x2d0] sm:$0xff] }
 0x677   :  { %v10885_v61 = vcombine.low %v5645_v43, %v5649_v8 }
 0x679   :  { %6414 = vmatpush1.bf16.msra.mxu0 %v10821_v51  ;;  %6455 = vmatpush1.bf16.msra.mxu1 %v10823_v7  ;;  %v10895_v51 = vcombine.low %v5654_v19, %v5658_v42  ;;  %v10886_v7 = vcombine.high %v5645_v43, %v5649_v8 }
 0x67a   :  { %6415 = vmatprep.subr.bf16.mxu0 %v10814_v23  ;;  %6456 = vmatprep.subr.bf16.mxu1 %v10816_v32  ;;  %v10888_v23 = vcombine.high %v5646_v20, %v5650_v63  ;;  %v5637_v32 = vld [vmem:[#allocation9 + $0x290] sm:$0xff] }
 0x67b   :  { %v10877_v39 = vcombine.low %v5637_v32, %v5641_v62 }
 0x67d   :  { %6416 = vmatpush1.bf16.msra.mxu0 %v10813_v3  ;;  %6457 = vmatpush1.bf16.msra.mxu1 %v10815_v13  ;;  %v10887_v3 = vcombine.low %v5646_v20, %v5650_v63  ;;  %v10878_v13 = vcombine.high %v5637_v32, %v5641_v62 }
 0x67e   :  { %6417 = vmatprep.subr.bf16.mxu0 %v10806_v28  ;;  %6458 = vmatprep.subr.bf16.mxu1 %v10808_v45  ;;  %v10880_v28 = vcombine.high %v5638_v4, %v5642_v30  ;;  %v5629_v45 = vld [vmem:[#allocation9 + $0x250] sm:$0xff] }
 0x67f   :  { %v10869_v55 = vcombine.low %v5629_v45, %v5633_v29 }
 0x681   :  { %6418 = vmatpush1.bf16.msra.mxu0 %v10805_v38  ;;  %6459 = vmatpush1.bf16.msra.mxu1 %v10807_v15  ;;  %v10879_v38 = vcombine.low %v5638_v4, %v5642_v30  ;;  %v10870_v15 = vcombine.high %v5629_v45, %v5633_v29 }
 0x682   :  { %6419 = vmatprep.subr.bf16.mxu0 %v10798_v41  ;;  %6460 = vmatprep.subr.bf16.mxu1 %v10800_v5  ;;  %v10872_v41 = vcombine.high %v5630_v17, %v5634_v58  ;;  %v5621_v5 = vld [vmem:[#allocation9 + $0x210] sm:$0xff] }
 0x685   :  { %6420 = vmatpush1.bf16.msra.mxu0 %v10797_v56  ;;  %6461 = vmatpush1.bf16.msra.mxu1 %v10799_v60  ;;  %v10871_v56 = vcombine.low %v5630_v17, %v5634_v58  ;;  %v10862_v60 = vcombine.high %v5621_v5, %v5625_v0 }
 0x686   :  { %6421 = vmatprep.subr.bf16.mxu0 %v10918_v2  ;;  %6462 = vmatprep.subr.bf16.mxu1 %v10920_v14  ;;  %v10864_v2 = vcombine.high %v5622_v22, %v5626_v53  ;;  %v10861_v14 = vcombine.low %v5621_v5, %v5625_v0 }
 0x689   :  { %6422 = vmatpush2.bf16.msra.mxu0 %v10917_v44  ;;  %6463 = vmatpush2.bf16.msra.mxu1 %v10919_v46 }
 0x68a   :  { %6423 = vmatprep.subr.bf16.mxu0 %v10910_v31  ;;  %6464 = vmatprep.subr.bf16.mxu1 %v10912_v57 }
 0x68d   :  { %6424 = vmatpush2.bf16.msra.mxu0 %v10909_v9  ;;  %6465 = vmatpush2.bf16.msra.mxu1 %v10911_v47 }
 0x68e   :  { %6425 = vmatprep.subr.bf16.mxu0 %v10902_v25  ;;  %6466 = vmatprep.subr.bf16.mxu1 %v10904_v1 }
 0x691   :  { %6426 = vmatpush2.bf16.msra.mxu0 %v10901_v37  ;;  %6467 = vmatpush2.bf16.msra.mxu1 %v10903_v49 }
 0x692   :  { %6427 = vmatprep.subr.bf16.mxu0 %v10894_v27  ;;  %6468 = vmatprep.subr.bf16.mxu1 %v10896_v33 }
 0x695   :  { %6428 = vmatpush2.bf16.msra.mxu0 %v10893_v12  ;;  %6469 = vmatpush2.bf16.msra.mxu1 %v10895_v51 }
 0x696   :  { %6429 = vmatprep.subr.bf16.mxu0 %v10886_v7  ;;  %6470 = vmatprep.subr.bf16.mxu1 %v10888_v23 }
 0x699   :  { %6430 = vmatpush2.bf16.msra.mxu0 %v10885_v61  ;;  %6471 = vmatpush2.bf16.msra.mxu1 %v10887_v3 }
 0x69a   :  { %6431 = vmatprep.subr.bf16.mxu0 %v10878_v13  ;;  %6472 = vmatprep.subr.bf16.mxu1 %v10880_v28 }
 0x69d   :  { %6432 = vmatpush2.bf16.msra.mxu0 %v10877_v39  ;;  %6473 = vmatpush2.bf16.msra.mxu1 %v10879_v38 }
 0x69e   :  { %6433 = vmatprep.subr.bf16.mxu0 %v10870_v15  ;;  %6474 = vmatprep.subr.bf16.mxu1 %v10872_v41 }
 0x6a1   :  { %6434 = vmatpush2.bf16.msra.mxu0 %v10869_v55  ;;  %6475 = vmatpush2.bf16.msra.mxu1 %v10871_v56 }
 0x6a2   :  { %6435 = vmatprep.subr.bf16.mxu0 %v10862_v60  ;;  %6476 = vmatprep.subr.bf16.mxu1 %v10864_v2 }
 0x6a5   :  { %6436 = vmatpush2.bf16.msra.mxu0 %v10861_v14  ;;  %6477 = vmatpush2.bf16.msra.mxu1 %v10863_v21 }
 0x6a8   :  { %6438 = vmatmul.mubr.bf16.vlgmr.msra.gmra.mxu0 %v13216_v11  ;;  %6479 = vmatmul.mubr.bf16.vlgmr.msra.gmra.mxu1 %v13216_v11 }
 0x6a9   :  { %11647 = shalt.err (!%p11644_p10)  }
 0x6aa   :  { %97 = dma.hbm_to_vmem [thread:$0]  %s14682_s5, 16384, %s95_s17, [#allocation6] }
 0x6ab   :  { %s11656_s22 = scalar_lea.vmem %s107_s18, 16384  ;;  %p11661_p12 = scmp.lt.s32.totalorder %s107_s18, %s107_s18 }
 0x6ac   :  { %p11657_p11 = scmp.ne.s32.totalorder %s107_s18, %s11656_s22  ;;  %p11662_p13 = scmp.lt.s32.totalorder %s11656_s22, %s11656_s22 }
 0x6ae   :  { %p11663_p0 = por %p11662_p13, %p11661_p12 }
 0x6b0   :  { %p11664_p1 = pnand %p11663_p0, %p11657_p11 }
 0x6b2   :  { %11667 = shalt.err (!%p11664_p1)  }
 0x6b3   :  { %109 = dma.hbm_to_vmem [thread:$0]  %s14683_s6, 16384, %s107_s18, [#allocation6 + $0x1]  ;;  %v15509_v35 = vld [vmem:[#allocation44_spill] sm:$0xff]  ;;  %v15510_v48 = vld [vmem:[#allocation43_spill] sm:$0xff]  ;;  %v15511_v9 = vld [vmem:[#allocation46_spill] sm:$0xff] }
 0x6b4   :  { %v15512_v1 = vld [vmem:[#allocation45_spill] sm:$0xff]  ;;  %v15513_v27 = vld [vmem:[#allocation78_spill] sm:$0xff]  ;;  %v15514_v20 = vld [vmem:[#allocation83_spill] sm:$0xff] }
 0x6b5   :  { %v15515_v7 = vld [vmem:[#allocation79_spill] sm:$0xff]  ;;  %v15516_v61 = vld [vmem:[#allocation84_spill] sm:$0xff] }
 0x728   :  { %v6357_v11 = vpop.f32.mrf.mxu0  ;;  %v6398_v24 = vpop.f32.mrf.mxu1 }
 0x729   :  { %v6489_v59 = vadd.f32 %v6398_v24, %v15509_v35  ;;  %v6487_v18 = vadd.f32 %v6357_v11, %v15510_v48 }
 0x72a   :  { %v6359_v40 = vpop.f32.mrf.mxu0  ;;  %v6400_v52 = vpop.f32.mrf.mxu1 }
 0x72b   :  { %v6490_v47 = vadd.f32 %v6400_v52, %v15511_v9  ;;  %v6503_v25 = vmul.f32 0.5, %v6489_v59  ;;  %v6488_v10 = vadd.f32 %v6359_v40, %v15512_v1  ;;  %v6495_v26 = vmul.f32 0.5, %v6487_v18 }
 0x72c   :  { %v6361_v44 = vpop.f32.mrf.mxu0  ;;  %v6402_v46 = vpop.f32.mrf.mxu1 }
 0x72d   :  { %v6504_v19 = vmul.f32 0.5, %v6490_v47  ;;  %11384 = vtanh.f32 %v6503_v25  ;;  %v6496_v42 = vmul.f32 0.5, %v6488_v10 }
 0x72e   :  { %v6362_v31 = vpop.f32.mrf.mxu0  ;;  %v6403_v57 = vpop.f32.mrf.mxu1  ;;  %11386 = vtanh.f32 %v6495_v26 }
 0x72f   :  { %11388 = vtanh.f32 %v6504_v19 }
 0x730   :  { %11390 = vtanh.f32 %v6496_v42 }
 0x73a   :  { %v11385_v32 = vpop.eup %11384 }
 0x73b   :  { %v11387_v30 = vpop.eup %11386  ;;  %v6507_v28 = vmul.f32 0.5, %v11385_v32 }
 0x73c   :  { %v11389_v13 = vpop.eup %11388  ;;  %v6499_v17 = vmul.f32 0.5, %v11387_v30 }
 0x73d   :  { %v11391_v29 = vpop.eup %11390  ;;  %v6508_v58 = vmul.f32 0.5, %v11389_v13  ;;  %v6509_v38 = vadd.f32 0.5, %v6507_v28 }
 0x73e   :  { %v6500_v15 = vmul.f32 0.5, %v11391_v29  ;;  %v6501_v41 = vadd.f32 0.5, %v6499_v17 }
 0x73f   :  { %v6510_v0 = vadd.f32 0.5, %v6508_v58  ;;  %v6521_v22 = vmul.f32 %v6509_v38, %v13201_v6 }
 0x740   :  { %v6502_v55 = vadd.f32 0.5, %v6500_v15 }
 0x741   :  { %v6522_v2 = vmul.f32 %v6510_v0, %v13205_v16 }
 0x768   :  { %v6439_v37 = vpop.f32.mrf.mxu0  ;;  %v6480_v49 = vpop.f32.mrf.mxu1 }
 0x769   :  { %v6491_v33 = vadd.f32 %v6439_v37, %v15513_v27  ;;  %v6493_v23 = vadd.f32 %v6480_v49, %v15515_v7 }
 0x76a   :  { %v6441_v43 = vpop.f32.mrf.mxu0  ;;  %v6482_v8 = vpop.f32.mrf.mxu1 }
 0x76b   :  { %11392 = vtanh.f32 %v6491_v33  ;;  %v6492_v63 = vadd.f32 %v6441_v43, %v15514_v20  ;;  %v6494_v3 = vadd.f32 %v6482_v8, %v15516_v61  ;;  %v6513_v45 = vmul.f32 0.5, %v6493_v23 }
 0x76c   :  { %v6443_v12 = vpop.f32.mrf.mxu0  ;;  %v6484_v51 = vpop.f32.mrf.mxu1 }
 0x76d   :  { %11394 = vtanh.f32 %v6492_v63  ;;  %v6514_v39 = vmul.f32 0.5, %v6494_v3 }
 0x76e   :  { %v6444_v62 = vpop.f32.mrf.mxu0  ;;  %v6485_v4 = vpop.f32.mrf.mxu1  ;;  %11396 = vtanh.f32 %v6513_v45 }
 0x76f   :  { %11398 = vtanh.f32 %v6514_v39 }
 0x778   :  { %v11393_v5 = vpop.eup %11392 }
 0x779   :  { %v6523_v53 = vmul.f32 %v11393_v5, %v6501_v41 }
 0x77a   :  { %v11395_v56 = vpop.eup %11394 }
 0x77b   :  { %v6525_v60 = vadd.f32 %v6523_v53, %v6521_v22  ;;  %v6524_v14 = vmul.f32 %v11395_v56, %v6502_v55  ;;  %v11397_v11 = vpop.eup %11396 }
 0x77c   :  { %v11399_v24 = vpop.eup %11398  ;;  %v6517_v40 = vmul.f32 0.5, %v11397_v11 }
 0x77d   :  { %11400 = vtanh.f32 %v6525_v60  ;;  %v6526_v21 = vadd.f32 %v6524_v14, %v6522_v2  ;;  %v6518_v52 = vmul.f32 0.5, %v11399_v24 }
 0x77e   :  { %v6519_v44 = vadd.f32 0.5, %v6517_v40 }
 0x77f   :  { %11402 = vtanh.f32 %v6526_v21  ;;  %v6520_v57 = vadd.f32 0.5, %v6518_v52 }
 0x78a   :  { %v11401_v46 = vpop.eup %11400 }
 0x78b   :  { %v6529_v31 = vmul.f32 %v11401_v46, %v6519_v44 }
 0x78c   :  { %v11403_v35 = vpop.eup %11402 }
 0x78d   :  { %v13245_v6 = vpack.c.bf16 %v6529_v31, %v13208_v50  ;;  %v6530_v59 = vmul.f32 %v11403_v35, %v6520_v57 }
 0x78f   :  { %v13248_v48 = vpack.c.bf16 %v6530_v59, %v13210_v54 }
 0x790   :  { %11674 = dma.done.wait [#allocation6], 16384 }
 0x791   :  { %11675 = vsyncadd [#allocation6], 4294950912 }
 0x792   :  { %11676 = dma.done.wait [#allocation6 + $0x1], 16384 }
 0x793   :  { %11677 = vsyncadd [#allocation6 + $0x1], 4294950912  ;;  %v15517_v16 = vld [vmem:[#allocation50_spill] sm:$0xff]  ;;  %v6853_v47 = vld [vmem:[#allocation4 + $0x1c8] sm:$0xff]  ;;  %vm11688_vm2 = vmmov 0   ;;  %vm9760_vm3 = vcmask 31744  }
 0x794   :  { %6796 = vmatprep.mubr.bf16.mxu0 %v15517_v16  ;;  %7075 = vmatprep.mubr.bf16.mxu1 %v15517_v16  ;;  %v6574_v18 = vld [vmem:[#allocation4 + $0x1c0] sm:$0xff]  ;;  %v6854_v1 = vld [vmem:[#allocation4 + $0x1e8] sm:$0xff] }
 0x795   :  { %v6575_v9 = vld [vmem:[#allocation4 + $0x1e0] sm:$0xff]  ;;  %v10968_v19 = vcombine.high %v6853_v47, %v6854_v1  ;;  %v10967_v42 = vcombine.low %v6853_v47, %v6854_v1  ;;  %v6851_v37 = vld [vmem:[#allocation4 + $0x188] sm:$0xff] }
 0x796   :  { %v10936_v25 = vcombine.high %v6574_v18, %v6575_v9  ;;  %v10935_v10 = vcombine.low %v6574_v18, %v6575_v9  ;;  %v6572_v50 = vld [vmem:[#allocation4 + $0x180] sm:$0xff]  ;;  %v6852_v49 = vld [vmem:[#allocation4 + $0x1a8] sm:$0xff] }
 0x797   :  { %v6573_v26 = vld [vmem:[#allocation4 + $0x1a0] sm:$0xff]  ;;  %v10966_v33 = vcombine.high %v6851_v37, %v6852_v49  ;;  %v6849_v8 = vld [vmem:[#allocation4 + $0x148] sm:$0xff]  ;;  %7043 = vmatprep.subr.bf16.mxu1 %v10968_v19  ;;  %v10965_v12 = vcombine.low %v6851_v37, %v6852_v49 }
 0x798   :  { %v10934_v54 = vcombine.high %v6572_v50, %v6573_v26  ;;  %v6570_v27 = vld [vmem:[#allocation4 + $0x140] sm:$0xff]  ;;  %6764 = vmatprep.subr.bf16.mxu0 %v10936_v25  ;;  %v6850_v20 = vld [vmem:[#allocation4 + $0x168] sm:$0xff]  ;;  %v10933_v63 = vcombine.low %v6572_v50, %v6573_v26  ;;  %7044 = vmatpush1.bf16.msra.mxu1 %v10967_v42 }
 0x799   :  { %v6571_v43 = vld [vmem:[#allocation4 + $0x160] sm:$0xff]  ;;  %6765 = vmatpush1.bf16.msra.mxu0 %v10935_v10  ;;  %7045 = vmatprep.subr.bf16.mxu1 %v10966_v33  ;;  %v10964_v7 = vcombine.high %v6849_v8, %v6850_v20  ;;  %v6847_v62 = vld [vmem:[#allocation4 + $0x108] sm:$0xff]  ;;  %v10963_v61 = vcombine.low %v6849_v8, %v6850_v20 }
 0x79a   :  { %6766 = vmatprep.subr.bf16.mxu0 %v10934_v54  ;;  %v10932_v51 = vcombine.high %v6570_v27, %v6571_v43  ;;  %v6568_v23 = vld [vmem:[#allocation4 + $0x100] sm:$0xff]  ;;  %v6848_v4 = vld [vmem:[#allocation4 + $0x128] sm:$0xff]  ;;  %v10931_v30 = vcombine.low %v6570_v27, %v6571_v43 }
 0x79b   :  { %v6569_v32 = vld [vmem:[#allocation4 + $0x120] sm:$0xff]  ;;  %v10962_v13 = vcombine.high %v6847_v62, %v6848_v4  ;;  %v6845_v29 = vld [vmem:[#allocation4 + $0xc8] sm:$0xff]  ;;  %v10961_v39 = vcombine.low %v6847_v62, %v6848_v4 }
 0x79c   :  { %7046 = vmatpush1.bf16.msra.mxu1 %v10965_v12  ;;  %v10930_v3 = vcombine.high %v6568_v23, %v6569_v32  ;;  %v6566_v28 = vld [vmem:[#allocation4 + $0xc0] sm:$0xff]  ;;  %v6846_v17 = vld [vmem:[#allocation4 + $0xe8] sm:$0xff]  ;;  %v10929_v58 = vcombine.low %v6568_v23, %v6569_v32 }
 0x79d   :  { %6767 = vmatpush1.bf16.msra.mxu0 %v10933_v63  ;;  %7047 = vmatprep.subr.bf16.mxu1 %v10964_v7  ;;  %v6567_v45 = vld [vmem:[#allocation4 + $0xe0] sm:$0xff]  ;;  %v10960_v15 = vcombine.high %v6845_v29, %v6846_v17  ;;  %v6843_v0 = vld [vmem:[#allocation4 + $0x88] sm:$0xff]  ;;  %v10959_v55 = vcombine.low %v6845_v29, %v6846_v17 }
 0x79e   :  { %6768 = vmatprep.subr.bf16.mxu0 %v10932_v51  ;;  %v10928_v38 = vcombine.high %v6566_v28, %v6567_v45  ;;  %v6564_v41 = vld [vmem:[#allocation4 + $0x80] sm:$0xff]  ;;  %v6844_v22 = vld [vmem:[#allocation4 + $0xa8] sm:$0xff]  ;;  %v10927_v53 = vcombine.low %v6566_v28, %v6567_v45 }
 0x79f   :  { %v6565_v5 = vld [vmem:[#allocation4 + $0xa0] sm:$0xff]  ;;  %v10958_v60 = vcombine.high %v6843_v0, %v6844_v22  ;;  %v6841_v21 = vld [vmem:[#allocation4 + $0x48] sm:$0xff]  ;;  %v10957_v40 = vcombine.low %v6843_v0, %v6844_v22 }
 0x7a0   :  { %7048 = vmatpush1.bf16.msra.mxu1 %v10963_v61  ;;  %v10926_v56 = vcombine.high %v6564_v41, %v6565_v5  ;;  %v6562_v2 = vld [vmem:[#allocation4 + $0x40] sm:$0xff]  ;;  %v6842_v11 = vld [vmem:[#allocation4 + $0x68] sm:$0xff]  ;;  %v10925_v24 = vcombine.low %v6564_v41, %v6565_v5 }
 0x7a1   :  { %6769 = vmatpush1.bf16.msra.mxu0 %v10931_v30  ;;  %7049 = vmatprep.subr.bf16.mxu1 %v10962_v13  ;;  %v6563_v14 = vld [vmem:[#allocation4 + $0x60] sm:$0xff]  ;;  %v10956_v44 = vcombine.high %v6841_v21, %v6842_v11  ;;  %v6839_v57 = vld [vmem:[#allocation4 + $0x8] sm:$0xff]  ;;  %v10955_v18 = vcombine.low %v6841_v21, %v6842_v11 }
 0x7a2   :  { %6770 = vmatprep.subr.bf16.mxu0 %v10930_v3  ;;  %v10924_v52 = vcombine.high %v6562_v2, %v6563_v14  ;;  %v6560_v46 = vld [vmem:[#allocation4] sm:$0xff]  ;;  %v6840_v35 = vld [vmem:[#allocation4 + $0x28] sm:$0xff]  ;;  %v10923_v59 = vcombine.low %v6562_v2, %v6563_v14 }
 0x7a3   :  { %v6561_v31 = vld [vmem:[#allocation4 + $0x20] sm:$0xff]  ;;  %v10954_v47 = vcombine.high %v6839_v57, %v6840_v35  ;;  %v6869_v10 = vld [vmem:[#allocation4 + $0x3c8] sm:$0xff]  ;;  %v10953_v19 = vcombine.low %v6839_v57, %v6840_v35 }
 0x7a4   :  { %7050 = vmatpush1.bf16.msra.mxu1 %v10961_v39  ;;  %v10922_v9 = vcombine.high %v6560_v46, %v6561_v31  ;;  %v6590_v25 = vld [vmem:[#allocation4 + $0x3c0] sm:$0xff]  ;;  %v6870_v50 = vld [vmem:[#allocation4 + $0x3e8] sm:$0xff]  ;;  %v10921_v26 = vcombine.low %v6560_v46, %v6561_v31 }
 0x7a5   :  { %6771 = vmatpush1.bf16.msra.mxu0 %v10929_v58  ;;  %7051 = vmatprep.subr.bf16.mxu1 %v10960_v15  ;;  %v6591_v1 = vld [vmem:[#allocation4 + $0x3e0] sm:$0xff]  ;;  %v10984_v54 = vcombine.high %v6869_v10, %v6870_v50  ;;  %v6867_v27 = vld [vmem:[#allocation4 + $0x388] sm:$0xff]  ;;  %v10983_v8 = vcombine.low %v6869_v10, %v6870_v50 }
 0x7a6   :  { %6772 = vmatprep.subr.bf16.mxu0 %v10928_v38  ;;  %v10952_v42 = vcombine.high %v6590_v25, %v6591_v1  ;;  %v6588_v37 = vld [vmem:[#allocation4 + $0x380] sm:$0xff]  ;;  %v6868_v33 = vld [vmem:[#allocation4 + $0x3a8] sm:$0xff]  ;;  %v10951_v43 = vcombine.low %v6590_v25, %v6591_v1 }
 0x7a7   :  { %v6589_v49 = vld [vmem:[#allocation4 + $0x3a0] sm:$0xff]  ;;  %v10982_v63 = vcombine.high %v6867_v27, %v6868_v33  ;;  %v6865_v7 = vld [vmem:[#allocation4 + $0x348] sm:$0xff]  ;;  %v10981_v62 = vcombine.low %v6867_v27, %v6868_v33 }
 0x7a8   :  { %7052 = vmatpush1.bf16.msra.mxu1 %v10959_v55  ;;  %v10950_v20 = vcombine.high %v6588_v37, %v6589_v49  ;;  %v6586_v12 = vld [vmem:[#allocation4 + $0x340] sm:$0xff]  ;;  %v6866_v23 = vld [vmem:[#allocation4 + $0x368] sm:$0xff]  ;;  %v10949_v32 = vcombine.low %v6588_v37, %v6589_v49  ;;  %v7412_v37 = vld [vmem:[#allocation4 + $0x1f8] sm:$0xff] }
 0x7a9   :  { %6773 = vmatpush1.bf16.msra.mxu0 %v10927_v53  ;;  %7053 = vmatprep.subr.bf16.mxu1 %v10958_v60  ;;  %v6587_v51 = vld [vmem:[#allocation4 + $0x360] sm:$0xff]  ;;  %v10980_v30 = vcombine.high %v6865_v7, %v6866_v23  ;;  %v6863_v13 = vld [vmem:[#allocation4 + $0x308] sm:$0xff]  ;;  %v10979_v29 = vcombine.low %v6865_v7, %v6866_v23 }
 0x7aa   :  { %6774 = vmatprep.subr.bf16.mxu0 %v10926_v56  ;;  %v10948_v4 = vcombine.high %v6586_v12, %v6587_v51  ;;  %v6584_v61 = vld [vmem:[#allocation4 + $0x300] sm:$0xff]  ;;  %v6864_v28 = vld [vmem:[#allocation4 + $0x328] sm:$0xff]  ;;  %v10947_v45 = vcombine.low %v6586_v12, %v6587_v51  ;;  %v7410_v12 = vld [vmem:[#allocation4 + $0x1b8] sm:$0xff] }
 0x7ab   :  { %v6585_v3 = vld [vmem:[#allocation4 + $0x320] sm:$0xff]  ;;  %v10978_v58 = vcombine.high %v6863_v13, %v6864_v28  ;;  %v6861_v15 = vld [vmem:[#allocation4 + $0x2c8] sm:$0xff]  ;;  %v10977_v0 = vcombine.low %v6863_v13, %v6864_v28 }
 0x7ac   :  { %7054 = vmatpush1.bf16.msra.mxu1 %v10957_v40  ;;  %v10946_v17 = vcombine.high %v6584_v61, %v6585_v3  ;;  %v6582_v39 = vld [vmem:[#allocation4 + $0x2c0] sm:$0xff]  ;;  %v6862_v41 = vld [vmem:[#allocation4 + $0x2e8] sm:$0xff]  ;;  %v10945_v5 = vcombine.low %v6584_v61, %v6585_v3  ;;  %v7408_v61 = vld [vmem:[#allocation4 + $0x178] sm:$0xff] }
 0x7ad   :  { %6775 = vmatpush1.bf16.msra.mxu0 %v10925_v24  ;;  %7055 = vmatprep.subr.bf16.mxu1 %v10956_v44  ;;  %v6583_v38 = vld [vmem:[#allocation4 + $0x2e0] sm:$0xff]  ;;  %v10976_v53 = vcombine.high %v6861_v15, %v6862_v41  ;;  %v6859_v60 = vld [vmem:[#allocation4 + $0x288] sm:$0xff]  ;;  %v10975_v21 = vcombine.low %v6861_v15, %v6862_v41  ;;  %v15518_v3 = vld [vmem:[#allocation49_spill] sm:$0xff] }
 0x7ae   :  { %6776 = vmatprep.subr.bf16.mxu0 %v10924_v52  ;;  %v10944_v22 = vcombine.high %v6582_v39, %v6583_v38  ;;  %v6580_v55 = vld [vmem:[#allocation4 + $0x280] sm:$0xff]  ;;  %v6860_v2 = vld [vmem:[#allocation4 + $0x2a8] sm:$0xff]  ;;  %v10943_v14 = vcombine.low %v6582_v39, %v6583_v38  ;;  %v7406_v38 = vld [vmem:[#allocation4 + $0x138] sm:$0xff] }
 0x7af   :  { %v6581_v56 = vld [vmem:[#allocation4 + $0x2a0] sm:$0xff]  ;;  %v10974_v24 = vcombine.high %v6859_v60, %v6860_v2  ;;  %v6857_v44 = vld [vmem:[#allocation4 + $0x248] sm:$0xff]  ;;  %v10973_v57 = vcombine.low %v6859_v60, %v6860_v2 }
 0x7b0   :  { %7056 = vmatpush1.bf16.msra.mxu1 %v10955_v18  ;;  %v10942_v11 = vcombine.high %v6580_v55, %v6581_v56  ;;  %v6578_v40 = vld [vmem:[#allocation4 + $0x240] sm:$0xff]  ;;  %v6858_v46 = vld [vmem:[#allocation4 + $0x268] sm:$0xff]  ;;  %v10941_v31 = vcombine.low %v6580_v55, %v6581_v56  ;;  %v7404_v56 = vld [vmem:[#allocation4 + $0xf8] sm:$0xff] }
 0x7b1   :  { %6777 = vmatpush1.bf16.msra.mxu0 %v10923_v59  ;;  %7057 = vmatprep.subr.bf16.mxu1 %v10954_v47  ;;  %v6579_v52 = vld [vmem:[#allocation4 + $0x260] sm:$0xff]  ;;  %v10972_v59 = vcombine.high %v6857_v44, %v6858_v46  ;;  %v6855_v47 = vld [vmem:[#allocation4 + $0x208] sm:$0xff]  ;;  %v10971_v10 = vcombine.low %v6857_v44, %v6858_v46 }
 0x7b2   :  { %6778 = vmatprep.subr.bf16.mxu0 %v10922_v9  ;;  %v10940_v35 = vcombine.high %v6578_v40, %v6579_v52  ;;  %v6576_v18 = vld [vmem:[#allocation4 + $0x200] sm:$0xff]  ;;  %v6856_v25 = vld [vmem:[#allocation4 + $0x228] sm:$0xff]  ;;  %v10939_v1 = vcombine.low %v6578_v40, %v6579_v52  ;;  %v7402_v52 = vld [vmem:[#allocation4 + $0xb8] sm:$0xff] }
 0x7b3   :  { %v6577_v9 = vld [vmem:[#allocation4 + $0x220] sm:$0xff]  ;;  %v10969_v27 = vcombine.low %v6855_v47, %v6856_v25 }
 0x7b4   :  { %7058 = vmatpush1.bf16.msra.mxu1 %v10953_v19  ;;  %v10938_v50 = vcombine.high %v6576_v18, %v6577_v9  ;;  %v7132_v19 = vld [vmem:[#allocation4 + $0x1d0] sm:$0xff]  ;;  %v10937_v49 = vcombine.low %v6576_v18, %v6577_v9  ;;  %v7400_v9 = vld [vmem:[#allocation4 + $0x78] sm:$0xff] }
 0x7b5   :  { %6779 = vmatpush1.bf16.msra.mxu0 %v10921_v26  ;;  %7059 = vmatprep.subr.bf16.mxu1 %v10984_v54  ;;  %v10970_v26 = vcombine.high %v6855_v47, %v6856_v25  ;;  %v7411_v54 = vld [vmem:[#allocation4 + $0x1d8] sm:$0xff] }
 0x7b6   :  { %6780 = vmatprep.subr.bf16.mxu0 %v10952_v42  ;;  %v7133_v42 = vld [vmem:[#allocation4 + $0x1f0] sm:$0xff]  ;;  %v11031_v7 = vcombine.low %v7411_v54, %v7412_v37 }
 0x7b7   :  { %v11000_v33 = vcombine.high %v7132_v19, %v7133_v42  ;;  %v10999_v51 = vcombine.low %v7132_v19, %v7133_v42  ;;  %v7398_v42 = vld [vmem:[#allocation4 + $0x38] sm:$0xff] }
 0x7b8   :  { %7060 = vmatpush2.bf16.msra.mxu1 %v10983_v8  ;;  %v7130_v8 = vld [vmem:[#allocation4 + $0x190] sm:$0xff] }
 0x7b9   :  { %6781 = vmatpush2.bf16.msra.mxu0 %v10951_v43  ;;  %7061 = vmatprep.subr.bf16.mxu1 %v10982_v63  ;;  %v11032_v43 = vcombine.high %v7411_v54, %v7412_v37  ;;  %v7409_v63 = vld [vmem:[#allocation4 + $0x198] sm:$0xff] }
 0x7ba   :  { %6782 = vmatprep.subr.bf16.mxu0 %v10950_v20  ;;  %v7131_v20 = vld [vmem:[#allocation4 + $0x1b0] sm:$0xff]  ;;  %v11029_v28 = vcombine.low %v7409_v63, %v7410_v12 }
 0x7bb   :  { %v10998_v23 = vcombine.high %v7130_v8, %v7131_v20  ;;  %v10997_v13 = vcombine.low %v7130_v8, %v7131_v20  ;;  %v7427_v8 = vld [vmem:[#allocation4 + $0x3d8] sm:$0xff] }
 0x7bc   :  { %7062 = vmatpush2.bf16.msra.mxu1 %v10981_v62  ;;  %v7129_v62 = vld [vmem:[#allocation4 + $0x170] sm:$0xff]  ;;  %v7428_v20 = vld [vmem:[#allocation4 + $0x3f8] sm:$0xff] }
 0x7bd   :  { %6783 = vmatpush2.bf16.msra.mxu0 %v10949_v32  ;;  %7063 = vmatprep.subr.bf16.mxu1 %v10980_v30  ;;  %v7128_v32 = vld [vmem:[#allocation4 + $0x150] sm:$0xff]  ;;  %v11030_v30 = vcombine.high %v7409_v63, %v7410_v12 }
 0x7be   :  { %6784 = vmatprep.subr.bf16.mxu0 %v10948_v4  ;;  %v7407_v4 = vld [vmem:[#allocation4 + $0x158] sm:$0xff]  ;;  %v10995_v15 = vcombine.low %v7128_v32, %v7129_v62 }
 0x7bf   :  { %v11028_v39 = vcombine.high %v7407_v4, %v7408_v61  ;;  %v11027_v41 = vcombine.low %v7407_v4, %v7408_v61 }
 0x7c0   :  { %7064 = vmatpush2.bf16.msra.mxu1 %v10979_v29  ;;  %v7126_v29 = vld [vmem:[#allocation4 + $0x110] sm:$0xff] }
 0x7c1   :  { %6785 = vmatpush2.bf16.msra.mxu0 %v10947_v45  ;;  %7065 = vmatprep.subr.bf16.mxu1 %v10978_v58  ;;  %v10996_v45 = vcombine.high %v7128_v32, %v7129_v62  ;;  %v7405_v58 = vld [vmem:[#allocation4 + $0x118] sm:$0xff] }
 0x7c2   :  { %6786 = vmatprep.subr.bf16.mxu0 %v10946_v17  ;;  %v7127_v17 = vld [vmem:[#allocation4 + $0x130] sm:$0xff]  ;;  %v11026_v55 = vcombine.high %v7405_v58, %v7406_v38  ;;  %v11025_v2 = vcombine.low %v7405_v58, %v7406_v38  ;;  %v7425_v32 = vld [vmem:[#allocation4 + $0x398] sm:$0xff] }
 0x7c3   :  { %v10993_v60 = vcombine.low %v7126_v29, %v7127_v17  ;;  %v7426_v62 = vld [vmem:[#allocation4 + $0x3b8] sm:$0xff] }
 0x7c4   :  { %7066 = vmatpush2.bf16.msra.mxu1 %v10977_v0  ;;  %v7124_v0 = vld [vmem:[#allocation4 + $0xd0] sm:$0xff] }
 0x7c5   :  { %6787 = vmatpush2.bf16.msra.mxu0 %v10945_v5  ;;  %7067 = vmatprep.subr.bf16.mxu1 %v10976_v53  ;;  %v10994_v5 = vcombine.high %v7126_v29, %v7127_v17  ;;  %v7403_v53 = vld [vmem:[#allocation4 + $0xd8] sm:$0xff] }
 0x7c6   :  { %6788 = vmatprep.subr.bf16.mxu0 %v10944_v22  ;;  %v7125_v22 = vld [vmem:[#allocation4 + $0xf0] sm:$0xff]  ;;  %v11024_v40 = vcombine.high %v7403_v53, %v7404_v56  ;;  %v11023_v46 = vcombine.low %v7403_v53, %v7404_v56  ;;  %v7423_v29 = vld [vmem:[#allocation4 + $0x358] sm:$0xff] }
 0x7c7   :  { %v10991_v44 = vcombine.low %v7124_v0, %v7125_v22  ;;  %v7424_v17 = vld [vmem:[#allocation4 + $0x378] sm:$0xff] }
 0x7c8   :  { %7068 = vmatpush2.bf16.msra.mxu1 %v10975_v21  ;;  %v7122_v21 = vld [vmem:[#allocation4 + $0x90] sm:$0xff] }
 0x7c9   :  { %6789 = vmatpush2.bf16.msra.mxu0 %v10943_v14  ;;  %7069 = vmatprep.subr.bf16.mxu1 %v10974_v24  ;;  %v10992_v14 = vcombine.high %v7124_v0, %v7125_v22  ;;  %v7401_v24 = vld [vmem:[#allocation4 + $0x98] sm:$0xff] }
 0x7ca   :  { %6790 = vmatprep.subr.bf16.mxu0 %v10942_v11  ;;  %v7123_v11 = vld [vmem:[#allocation4 + $0xb0] sm:$0xff]  ;;  %v11022_v18 = vcombine.high %v7401_v24, %v7402_v52  ;;  %v11021_v25 = vcombine.low %v7401_v24, %v7402_v52  ;;  %v7421_v0 = vld [vmem:[#allocation4 + $0x318] sm:$0xff] }
 0x7cb   :  { %v10989_v47 = vcombine.low %v7122_v21, %v7123_v11  ;;  %v7422_v22 = vld [vmem:[#allocation4 + $0x338] sm:$0xff] }
 0x7cc   :  { %7070 = vmatpush2.bf16.msra.mxu1 %v10973_v57  ;;  %v7120_v57 = vld [vmem:[#allocation4 + $0x50] sm:$0xff] }
 0x7cd   :  { %6791 = vmatpush2.bf16.msra.mxu0 %v10941_v31  ;;  %7071 = vmatprep.subr.bf16.mxu1 %v10972_v59  ;;  %v10990_v31 = vcombine.high %v7122_v21, %v7123_v11  ;;  %v7399_v59 = vld [vmem:[#allocation4 + $0x58] sm:$0xff] }
 0x7ce   :  { %6792 = vmatprep.subr.bf16.mxu0 %v10940_v35  ;;  %v7121_v35 = vld [vmem:[#allocation4 + $0x70] sm:$0xff]  ;;  %v11020_v19 = vcombine.high %v7399_v59, %v7400_v9  ;;  %v11019_v37 = vcombine.low %v7399_v59, %v7400_v9  ;;  %v7419_v21 = vld [vmem:[#allocation4 + $0x2d8] sm:$0xff] }
 0x7cf   :  { %v10987_v54 = vcombine.low %v7120_v57, %v7121_v35  ;;  %v7420_v11 = vld [vmem:[#allocation4 + $0x2f8] sm:$0xff] }
 0x7d0   :  { %7072 = vmatpush2.bf16.msra.mxu1 %v10971_v10  ;;  %v7118_v10 = vld [vmem:[#allocation4 + $0x10] sm:$0xff] }
 0x7d1   :  { %6793 = vmatpush2.bf16.msra.mxu0 %v10939_v1  ;;  %7073 = vmatprep.subr.bf16.mxu1 %v10970_v26  ;;  %v10988_v1 = vcombine.high %v7120_v57, %v7121_v35  ;;  %v7397_v26 = vld [vmem:[#allocation4 + $0x18] sm:$0xff] }
 0x7d2   :  { %6794 = vmatprep.subr.bf16.mxu0 %v10938_v50  ;;  %v7119_v50 = vld [vmem:[#allocation4 + $0x30] sm:$0xff]  ;;  %v11017_v12 = vcombine.low %v7397_v26, %v7398_v42  ;;  %v7417_v57 = vld [vmem:[#allocation4 + $0x298] sm:$0xff] }
 0x7d3   :  { %v10985_v63 = vcombine.low %v7118_v10, %v7119_v50  ;;  %v7418_v35 = vld [vmem:[#allocation4 + $0x2b8] sm:$0xff] }
 0x7d4   :  { %7074 = vmatpush2.bf16.msra.mxu1 %v10969_v27  ;;  %v11018_v27 = vcombine.high %v7397_v26, %v7398_v42 }
 0x7d5   :  { %6795 = vmatpush2.bf16.msra.mxu0 %v10937_v49  ;;  %7601 = vmatprep.subr.bf16.mxu1 %v11032_v43  ;;  %v10986_v49 = vcombine.high %v7118_v10, %v7119_v50  ;;  %v7149_v43 = vld [vmem:[#allocation4 + $0x3f0] sm:$0xff]  ;;  %v7415_v10 = vld [vmem:[#allocation4 + $0x258] sm:$0xff] }
 0x7d6   :  { %7322 = vmatprep.subr.bf16.mxu0 %v11000_v33  ;;  %v7148_v33 = vld [vmem:[#allocation4 + $0x3d0] sm:$0xff]  ;;  %v7416_v50 = vld [vmem:[#allocation4 + $0x278] sm:$0xff] }
 0x7d7   :  { %7076 = vmatmul.mubr.bf16.vlgmr.msra.gmra.mxu1 %v15518_v3  ;;  %v11015_v4 = vcombine.low %v7148_v33, %v7149_v43 }
 0x7d8   :  { %6797 = vmatmul.mubr.bf16.vlgmr.msra.gmra.mxu0 %v15518_v3  ;;  %7602 = vmatpush1.bf16.msra.mxu1 %v11031_v7  ;;  %v7146_v7 = vld [vmem:[#allocation4 + $0x390] sm:$0xff] }
 0x7d9   :  { %7323 = vmatpush1.bf16.msra.mxu0 %v10999_v51  ;;  %7603 = vmatprep.subr.bf16.mxu1 %v11030_v30  ;;  %v11016_v51 = vcombine.high %v7148_v33, %v7149_v43  ;;  %v11047_v30 = vcombine.low %v7427_v8, %v7428_v20  ;;  %v7414_v33 = vld [vmem:[#allocation4 + $0x238] sm:$0xff] }
 0x7da   :  { %7324 = vmatprep.subr.bf16.mxu0 %v10998_v23  ;;  %6806 = vmatprep.mubr.bf16.mxu0 %v13106_v36  ;;  %v7147_v23 = vld [vmem:[#allocation4 + $0x3b0] sm:$0xff] }
 0x7db   :  { %7085 = vmatprep.mubr.bf16.mxu1 %v13106_v36  ;;  %v11014_v61 = vcombine.high %v7146_v7, %v7147_v23  ;;  %v11013_v58 = vcombine.low %v7146_v7, %v7147_v23  ;;  %v7745_v7 = vld [vmem:[#allocation5 + $0x1e8] sm:$0xff] }
 0x7dc   :  { %7604 = vmatpush1.bf16.msra.mxu1 %v11029_v28  ;;  %v7144_v28 = vld [vmem:[#allocation4 + $0x350] sm:$0xff] }
 0x7dd   :  { %7325 = vmatpush1.bf16.msra.mxu0 %v10997_v13  ;;  %7605 = vmatprep.subr.bf16.mxu1 %v11028_v39  ;;  %v11046_v13 = vcombine.high %v7425_v32, %v7426_v62  ;;  %v11045_v39 = vcombine.low %v7425_v32, %v7426_v62 }
 0x7de   :  { %7326 = vmatprep.subr.bf16.mxu0 %v10996_v45  ;;  %v7145_v45 = vld [vmem:[#allocation4 + $0x370] sm:$0xff] }
 0x7df   :  { %7086 = vmatmul.mubr.bf16.gmra.mxu1 %v13103_v34  ;;  %v11012_v38 = vcombine.high %v7144_v28, %v7145_v45  ;;  %v11011_v53 = vcombine.low %v7144_v28, %v7145_v45  ;;  %v7737_v28 = vld [vmem:[#allocation5 + $0x1a8] sm:$0xff] }
 0x7e0   :  { %6807 = vmatmul.mubr.bf16.gmra.mxu0 %v13103_v34  ;;  %7606 = vmatpush1.bf16.msra.mxu1 %v11027_v41  ;;  %v7142_v41 = vld [vmem:[#allocation4 + $0x310] sm:$0xff] }
 0x7e1   :  { %7327 = vmatpush1.bf16.msra.mxu0 %v10995_v15  ;;  %7607 = vmatprep.subr.bf16.mxu1 %v11026_v55  ;;  %v11044_v15 = vcombine.high %v7423_v29, %v7424_v17  ;;  %v11043_v55 = vcombine.low %v7423_v29, %v7424_v17 }
 0x7e2   :  { %7328 = vmatprep.subr.bf16.mxu0 %v10994_v5  ;;  %6816 = vmatprep.mubr.bf16.mxu0 %v13248_v48  ;;  %v7143_v5 = vld [vmem:[#allocation4 + $0x330] sm:$0xff] }
 0x7e3   :  { %7095 = vmatprep.mubr.bf16.mxu1 %v13248_v48  ;;  %v11010_v56 = vcombine.high %v7142_v41, %v7143_v5  ;;  %v11009_v24 = vcombine.low %v7142_v41, %v7143_v5  ;;  %v7729_v41 = vld [vmem:[#allocation5 + $0x168] sm:$0xff] }
 0x7e4   :  { %7608 = vmatpush1.bf16.msra.mxu1 %v11025_v2  ;;  %v7140_v2 = vld [vmem:[#allocation4 + $0x2d0] sm:$0xff] }
 0x7e5   :  { %7329 = vmatpush1.bf16.msra.mxu0 %v10993_v60  ;;  %7609 = vmatprep.subr.bf16.mxu1 %v11024_v40  ;;  %v11042_v60 = vcombine.high %v7421_v0, %v7422_v22  ;;  %v11041_v40 = vcombine.low %v7421_v0, %v7422_v22 }
 0x7e6   :  { %7330 = vmatprep.subr.bf16.mxu0 %v10992_v14  ;;  %v7141_v14 = vld [vmem:[#allocation4 + $0x2f0] sm:$0xff] }
 0x7e7   :  { %7096 = vmatmul.mubr.bf16.gmra.mxu1 %v13245_v6  ;;  %v11008_v52 = vcombine.high %v7140_v2, %v7141_v14  ;;  %v11007_v59 = vcombine.low %v7140_v2, %v7141_v14 }
 0x7e8   :  { %6817 = vmatmul.mubr.bf16.gmra.mxu0 %v13245_v6  ;;  %7610 = vmatpush1.bf16.msra.mxu1 %v11023_v46  ;;  %v7138_v46 = vld [vmem:[#allocation4 + $0x290] sm:$0xff] }
 0x7e9   :  { %7331 = vmatpush1.bf16.msra.mxu0 %v10991_v44  ;;  %7611 = vmatprep.subr.bf16.mxu1 %v11022_v18  ;;  %v11040_v44 = vcombine.high %v7419_v21, %v7420_v11  ;;  %v11039_v18 = vcombine.low %v7419_v21, %v7420_v11 }
 0x7ea   :  { %7332 = vmatprep.subr.bf16.mxu0 %v10990_v31  ;;  %7354 = vmatprep.mubr.bf16.mxu0 %v15517_v16  ;;  %v7139_v31 = vld [vmem:[#allocation4 + $0x2b0] sm:$0xff] }
 0x7eb   :  { %7633 = vmatprep.mubr.bf16.mxu1 %v15517_v16  ;;  %v11048_v16 = vcombine.high %v7427_v8, %v7428_v20  ;;  %v11006_v9 = vcombine.high %v7138_v46, %v7139_v31  ;;  %v11005_v26 = vcombine.low %v7138_v46, %v7139_v31  ;;  %v11035_v8 = vcombine.low %v7415_v10, %v7416_v50 }
 0x7ec   :  { %7612 = vmatpush1.bf16.msra.mxu1 %v11021_v25  ;;  %v7136_v25 = vld [vmem:[#allocation4 + $0x250] sm:$0xff] }
 0x7ed   :  { %7333 = vmatpush1.bf16.msra.mxu0 %v10989_v47  ;;  %7613 = vmatprep.subr.bf16.mxu1 %v11020_v19  ;;  %v11038_v47 = vcombine.high %v7417_v57, %v7418_v35  ;;  %v11037_v19 = vcombine.low %v7417_v57, %v7418_v35  ;;  %v7700_v35 = vld [vmem:[#allocation5 + $0x80] sm:$0xff] }
 0x7ee   :  { %7334 = vmatprep.subr.bf16.mxu0 %v10988_v1  ;;  %v7137_v1 = vld [vmem:[#allocation4 + $0x270] sm:$0xff] }
 0x7ef   :  { %v11004_v42 = vcombine.high %v7136_v25, %v7137_v1  ;;  %v11003_v43 = vcombine.low %v7136_v25, %v7137_v1 }
 0x7f0   :  { %7614 = vmatpush1.bf16.msra.mxu1 %v11019_v37  ;;  %v7134_v37 = vld [vmem:[#allocation4 + $0x210] sm:$0xff] }
 0x7f1   :  { %7335 = vmatpush1.bf16.msra.mxu0 %v10987_v54  ;;  %7615 = vmatprep.subr.bf16.mxu1 %v11018_v27  ;;  %v11036_v54 = vcombine.high %v7415_v10, %v7416_v50  ;;  %v7413_v27 = vld [vmem:[#allocation4 + $0x218] sm:$0xff]  ;;  %v7692_v10 = vld [vmem:[#allocation5 + $0x40] sm:$0xff] }
 0x7f2   :  { %7336 = vmatprep.subr.bf16.mxu0 %v10986_v49  ;;  %v7135_v49 = vld [vmem:[#allocation4 + $0x230] sm:$0xff]  ;;  %v11033_v32 = vcombine.low %v7413_v27, %v7414_v33  ;;  %v7696_v50 = vld [vmem:[#allocation5 + $0x60] sm:$0xff] }
 0x7f3   :  { %v11002_v20 = vcombine.high %v7134_v37, %v7135_v49  ;;  %v11001_v23 = vcombine.low %v7134_v37, %v7135_v49  ;;  %v7684_v49 = vld [vmem:[#allocation5] sm:$0xff] }
 0x7f4   :  { %7616 = vmatpush1.bf16.msra.mxu1 %v11017_v12  ;;  %v7740_v12 = vld [vmem:[#allocation5 + $0x1c0] sm:$0xff] }
 0x7f5   :  { %7337 = vmatpush1.bf16.msra.mxu0 %v10985_v63  ;;  %7617 = vmatprep.subr.bf16.mxu1 %v11048_v16  ;;  %v11034_v63 = vcombine.high %v7413_v27, %v7414_v33  ;;  %v7741_v16 = vld [vmem:[#allocation5 + $0x1c8] sm:$0xff]  ;;  %v7688_v27 = vld [vmem:[#allocation5 + $0x20] sm:$0xff]  ;;  %v15545_v33 = vmov 0  }
 0x7f6   :  { %7338 = vmatprep.subr.bf16.mxu0 %v11016_v51  ;;  %v7744_v51 = vld [vmem:[#allocation5 + $0x1e0] sm:$0xff]  ;;  %v13271_v29 = vcombine.low %v7741_v16, %v7745_v7 }
 0x7f7   :  { %v13264_v62 = vcombine.high %v7740_v12, %v7744_v51  ;;  %v13268_v45 = vcombine.low %v7740_v12, %v7744_v51  ;;  %v7804_v51 = vld [vmem:[#allocation5 + $0x3c0] sm:$0xff] }
 0x7f8   :  { %7618 = vmatpush2.bf16.msra.mxu1 %v11047_v30  ;;  %v7732_v30 = vld [vmem:[#allocation5 + $0x180] sm:$0xff]  ;;  %15522 = vst [vmem:[#allocation141_spill] sm:$0xff] %v13271_v29 }
 0x7f9   :  { %7339 = vmatpush2.bf16.msra.mxu0 %v11015_v4  ;;  %7619 = vmatprep.subr.bf16.mxu1 %v11046_v13  ;;  %15519 = vst [vmem:[#allocation138_spill] sm:$0xff] %v13264_v62  ;;  %v13266_v4 = vcombine.high %v7741_v16, %v7745_v7  ;;  %v7733_v13 = vld [vmem:[#allocation5 + $0x188] sm:$0xff]  ;;  %15521 = vst [vmem:[#allocation140_spill] sm:$0xff] %v13268_v45  ;;  %v7808_v16 = vld [vmem:[#allocation5 + $0x3e0] sm:$0xff] }
 0x7fa   :  { %7340 = vmatprep.subr.bf16.mxu0 %v11014_v61  ;;  %v7736_v61 = vld [vmem:[#allocation5 + $0x1a0] sm:$0xff]  ;;  %v13285_v0 = vcombine.low %v7733_v13, %v7737_v28  ;;  %v7805_v7 = vld [vmem:[#allocation5 + $0x3c8] sm:$0xff] }
 0x7fb   :  { %15520 = vst [vmem:[#allocation139_spill] sm:$0xff] %v13266_v4  ;;  %v13273_v17 = vcombine.high %v7732_v30, %v7736_v61  ;;  %v13281_v5 = vcombine.low %v7732_v30, %v7736_v61  ;;  %v13369_v61 = vcombine.high %v7804_v51, %v7808_v16 }
 0x7fc   :  { %7620 = vmatpush2.bf16.msra.mxu1 %v11045_v39  ;;  %v7724_v39 = vld [vmem:[#allocation5 + $0x140] sm:$0xff]  ;;  %15526 = vst [vmem:[#allocation31_spill] sm:$0xff] %v13285_v0 }
 0x7fd   :  { %7341 = vmatpush2.bf16.msra.mxu0 %v11013_v58  ;;  %7621 = vmatprep.subr.bf16.mxu1 %v11044_v15  ;;  %15523 = vst [vmem:[#allocation142_spill] sm:$0xff] %v13273_v17  ;;  %v13276_v58 = vcombine.high %v7733_v13, %v7737_v28  ;;  %v7725_v15 = vld [vmem:[#allocation5 + $0x148] sm:$0xff]  ;;  %15525 = vst [vmem:[#allocation32_spill] sm:$0xff] %v13281_v5  ;;  %v7796_v28 = vld [vmem:[#allocation5 + $0x380] sm:$0xff] }
 0x7fe   :  { %7342 = vmatprep.subr.bf16.mxu0 %v11012_v38  ;;  %v7728_v38 = vld [vmem:[#allocation5 + $0x160] sm:$0xff]  ;;  %v13299_v14 = vcombine.low %v7725_v15, %v7729_v41  ;;  %15552 = vst [vmem:[#allocation88_spill] sm:$0xff] %v13369_v61 }
 0x7ff   :  { %15524 = vst [vmem:[#allocation143_spill] sm:$0xff] %v13276_v58  ;;  %v13287_v22 = vcombine.high %v7724_v39, %v7728_v38  ;;  %v13295_v2 = vcombine.low %v7724_v39, %v7728_v38  ;;  %v7800_v39 = vld [vmem:[#allocation5 + $0x3a0] sm:$0xff]  ;;  %v7797_v38 = vld [vmem:[#allocation5 + $0x388] sm:$0xff] }
 0x800   :  { %7622 = vmatpush2.bf16.msra.mxu1 %v11043_v55  ;;  %v7716_v55 = vld [vmem:[#allocation5 + $0x100] sm:$0xff]  ;;  %15530 = vst [vmem:[#allocation59_spill] sm:$0xff] %v13299_v14 }
 0x801   :  { %7343 = vmatpush2.bf16.msra.mxu0 %v11011_v53  ;;  %7623 = vmatprep.subr.bf16.mxu1 %v11042_v60  ;;  %15527 = vst [vmem:[#allocation34_spill] sm:$0xff] %v13287_v22  ;;  %v13290_v53 = vcombine.high %v7725_v15, %v7729_v41  ;;  %v7721_v60 = vld [vmem:[#allocation5 + $0x128] sm:$0xff]  ;;  %15529 = vst [vmem:[#allocation54_spill] sm:$0xff] %v13295_v2  ;;  %v13375_v41 = vcombine.low %v7804_v51, %v7808_v16  ;;  %v7776_v51 = vld [vmem:[#allocation5 + $0x2e0] sm:$0xff] }
 0x802   :  { %7344 = vmatprep.subr.bf16.mxu0 %v11010_v56  ;;  %v7720_v56 = vld [vmem:[#allocation5 + $0x120] sm:$0xff]  ;;  %v7801_v15 = vld [vmem:[#allocation5 + $0x3a8] sm:$0xff] }
 0x803   :  { %15528 = vst [vmem:[#allocation33_spill] sm:$0xff] %v13290_v53  ;;  %v13301_v21 = vcombine.high %v7716_v55, %v7720_v56  ;;  %15554 = vst [vmem:[#allocation90_spill] sm:$0xff] %v13375_v41  ;;  %v7773_v16 = vld [vmem:[#allocation5 + $0x2c8] sm:$0xff] }
 0x804   :  { %7624 = vmatpush2.bf16.msra.mxu1 %v11041_v40  ;;  %v7712_v40 = vld [vmem:[#allocation5 + $0xe0] sm:$0xff] }
 0x805   :  { %7345 = vmatpush2.bf16.msra.mxu0 %v11009_v24  ;;  %7625 = vmatprep.subr.bf16.mxu1 %v11040_v44  ;;  %15531 = vst [vmem:[#allocation55_spill] sm:$0xff] %v13301_v21  ;;  %v7708_v24 = vld [vmem:[#allocation5 + $0xc0] sm:$0xff]  ;;  %v13308_v44 = vcombine.low %v7716_v55, %v7720_v56  ;;  %v13381_v56 = vcombine.high %v7796_v28, %v7800_v39 }
 0x806   :  { %7346 = vmatprep.subr.bf16.mxu0 %v11008_v52  ;;  %v7709_v52 = vld [vmem:[#allocation5 + $0xc8] sm:$0xff]  ;;  %v13315_v31 = vcombine.high %v7708_v24, %v7712_v40 }
 0x807   :  { %15533 = vst [vmem:[#allocation56_spill] sm:$0xff] %v13308_v44  ;;  %15556 = vst [vmem:[#allocation92_spill] sm:$0xff] %v13381_v56 }
 0x808   :  { %7626 = vmatpush2.bf16.msra.mxu1 %v11039_v18  ;;  %15535 = vst [vmem:[#allocation58_spill] sm:$0xff] %v13315_v31  ;;  %v7701_v18 = vld [vmem:[#allocation5 + $0x88] sm:$0xff] }
 0x809   :  { %7347 = vmatpush2.bf16.msra.mxu0 %v11007_v59  ;;  %7627 = vmatprep.subr.bf16.mxu1 %v11038_v47  ;;  %v7704_v59 = vld [vmem:[#allocation5 + $0xa0] sm:$0xff] }
 0x80a   :  { %7348 = vmatprep.subr.bf16.mxu0 %v11006_v9  ;;  %v7705_v9 = vld [vmem:[#allocation5 + $0xa8] sm:$0xff]  ;;  %v13329_v25 = vcombine.high %v7700_v35, %v7704_v59 }
 0x80b   :  { %v13332_v1 = vcombine.high %v7701_v18, %v7705_v9 }
 0x80c   :  { %7628 = vmatpush2.bf16.msra.mxu1 %v11037_v19  ;;  %15539 = vst [vmem:[#allocation66_spill] sm:$0xff] %v13329_v25  ;;  %v13336_v19 = vcombine.low %v7700_v35, %v7704_v59  ;;  %v13391_v35 = vcombine.low %v7797_v38, %v7801_v15 }
 0x80d   :  { %7349 = vmatpush2.bf16.msra.mxu0 %v11005_v26  ;;  %7629 = vmatprep.subr.bf16.mxu1 %v11036_v54  ;;  %15540 = vst [vmem:[#allocation65_spill] sm:$0xff] %v13332_v1  ;;  %v7693_v26 = vld [vmem:[#allocation5 + $0x48] sm:$0xff]  ;;  %v13343_v54 = vcombine.high %v7692_v10, %v7696_v50 }
 0x80e   :  { %7350 = vmatprep.subr.bf16.mxu0 %v11004_v42  ;;  %15541 = vst [vmem:[#allocation72_spill] sm:$0xff] %v13336_v19  ;;  %v13341_v42 = vcombine.low %v7701_v18, %v7705_v9  ;;  %15559 = vst [vmem:[#allocation93_spill] sm:$0xff] %v13391_v35  ;;  %v7780_v9 = vld [vmem:[#allocation5 + $0x300] sm:$0xff] }
 0x80f   :  { %15543 = vst [vmem:[#allocation74_spill] sm:$0xff] %v13343_v54 }
 0x810   :  { %7630 = vmatpush2.bf16.msra.mxu1 %v11035_v8  ;;  %15542 = vst [vmem:[#allocation69_spill] sm:$0xff] %v13341_v42  ;;  %v7689_v8 = vld [vmem:[#allocation5 + $0x28] sm:$0xff] }
 0x811   :  { %7351 = vmatpush2.bf16.msra.mxu0 %v11003_v43  ;;  %7631 = vmatprep.subr.bf16.mxu1 %v11034_v63  ;;  %v7685_v43 = vld [vmem:[#allocation5 + $0x8] sm:$0xff]  ;;  %v13357_v63 = vcombine.high %v7684_v49, %v7688_v27 }
 0x812   :  { %7352 = vmatprep.subr.bf16.mxu0 %v11002_v20  ;;  %v13360_v12 = vcombine.high %v7685_v43, %v7689_v8  ;;  %v13367_v30 = vcombine.low %v7685_v43, %v7689_v8  ;;  %v7772_v8 = vld [vmem:[#allocation5 + $0x2c0] sm:$0xff] }
 0x813   :  { %15548 = vst [vmem:[#allocation82_spill] sm:$0xff] %v13357_v63 }
 0x814   :  { %7632 = vmatpush2.bf16.msra.mxu1 %v11033_v32  ;;  %15549 = vst [vmem:[#allocation81_spill] sm:$0xff] %v13360_v12  ;;  %v13363_v32 = vcombine.low %v7684_v49, %v7688_v27  ;;  %15551 = vst [vmem:[#allocation85_spill] sm:$0xff] %v13367_v30 }
 0x815   :  { %7353 = vmatpush2.bf16.msra.mxu0 %v11001_v23  ;;  %8493 = vmatprep.subr.bf16.mxu1 %v13266_v4  ;;  %v7809_v23 = vld [vmem:[#allocation5 + $0x3e8] sm:$0xff] }
 0x816   :  { %8452 = vmatprep.subr.bf16.mxu0 %v13264_v62  ;;  %15550 = vst [vmem:[#allocation86_spill] sm:$0xff] %v13363_v32  ;;  %v13372_v13 = vcombine.high %v7805_v7, %v7809_v23  ;;  %v13379_v55 = vcombine.low %v7805_v7, %v7809_v23  ;;  %v7777_v7 = vld [vmem:[#allocation5 + $0x2e8] sm:$0xff] }
 0x817   :  { %7634 = vmatmul.mubr.bf16.vlgmr.msra.gmra.mxu1 %v15518_v3 }
 0x818   :  { %7355 = vmatmul.mubr.bf16.vlgmr.msra.gmra.mxu0 %v15518_v3  ;;  %8494 = vmatpush1.bf16.msra.mxu1 %v13271_v29  ;;  %v7717_v3 = vld [vmem:[#allocation5 + $0x108] sm:$0xff]  ;;  %15553 = vst [vmem:[#allocation87_spill] sm:$0xff] %v13372_v13  ;;  %15555 = vst [vmem:[#allocation89_spill] sm:$0xff] %v13379_v55 }
 0x819   :  { %8453 = vmatpush1.bf16.msra.mxu0 %v13268_v45  ;;  %8495 = vmatprep.subr.bf16.mxu1 %v13276_v58  ;;  %v13304_v11 = vcombine.high %v7717_v3, %v7721_v60  ;;  %v13313_v46 = vcombine.low %v7717_v3, %v7721_v60  ;;  %v13384_v3 = vcombine.high %v7797_v38, %v7801_v15  ;;  %v7788_v60 = vld [vmem:[#allocation5 + $0x340] sm:$0xff] }
 0x81a   :  { %8454 = vmatprep.subr.bf16.mxu0 %v13273_v17  ;;  %7364 = vmatprep.mubr.bf16.mxu0 %v13106_v36  ;;  %v13420_v38 = vcombine.high %v7773_v16, %v7777_v7  ;;  %v7764_v15 = vld [vmem:[#allocation5 + $0x280] sm:$0xff] }
 0x81b   :  { %7643 = vmatprep.mubr.bf16.mxu1 %v13106_v36  ;;  %15532 = vst [vmem:[#allocation60_spill] sm:$0xff] %v13304_v11  ;;  %v7713_v36 = vld [vmem:[#allocation5 + $0xe8] sm:$0xff]  ;;  %15534 = vst [vmem:[#allocation53_spill] sm:$0xff] %v13313_v46 }
 0x81c   :  { %8496 = vmatpush1.bf16.msra.mxu1 %v13285_v0  ;;  %v13318_v57 = vcombine.high %v7709_v52, %v7713_v36  ;;  %v13327_v47 = vcombine.low %v7709_v52, %v7713_v36  ;;  %15557 = vst [vmem:[#allocation91_spill] sm:$0xff] %v13384_v3  ;;  %v7793_v52 = vld [vmem:[#allocation5 + $0x368] sm:$0xff]  ;;  %v13387_v36 = vcombine.low %v7796_v28, %v7800_v39  ;;  %15569 = vst [vmem:[#allocation63_spill] sm:$0xff] %v13420_v38 }
 0x81d   :  { %8455 = vmatpush1.bf16.msra.mxu0 %v13281_v5  ;;  %8497 = vmatprep.subr.bf16.mxu1 %v13290_v53  ;;  %v13417_v39 = vcombine.high %v7772_v8, %v7776_v51 }
 0x81e   :  { %8456 = vmatprep.subr.bf16.mxu0 %v13287_v22  ;;  %15536 = vst [vmem:[#allocation57_spill] sm:$0xff] %v13318_v57  ;;  %15538 = vst [vmem:[#allocation61_spill] sm:$0xff] %v13327_v47 }
 0x81f   :  { %7644 = vmatmul.mubr.bf16.gmra.mxu1 %v13103_v34  ;;  %15558 = vst [vmem:[#allocation94_spill] sm:$0xff] %v13387_v36  ;;  %15568 = vst [vmem:[#allocation67_spill] sm:$0xff] %v13417_v39 }
 0x820   :  { %7365 = vmatmul.mubr.bf16.gmra.mxu0 %v13103_v34  ;;  %8498 = vmatpush1.bf16.msra.mxu1 %v13299_v14  ;;  %v13323_v34 = vcombine.low %v7708_v24, %v7712_v40  ;;  %v7792_v24 = vld [vmem:[#allocation5 + $0x360] sm:$0xff]  ;;  %v7789_v40 = vld [vmem:[#allocation5 + $0x348] sm:$0xff] }
 0x821   :  { %8457 = vmatpush1.bf16.msra.mxu0 %v13295_v2  ;;  %8499 = vmatprep.subr.bf16.mxu1 %v13304_v11  ;;  %v13393_v59 = vcombine.high %v7788_v60, %v7792_v24  ;;  %v13396_v18 = vcombine.high %v7789_v40, %v7793_v52  ;;  %v13403_v49 = vcombine.low %v7789_v40, %v7793_v52  ;;  %v7769_v40 = vld [vmem:[#allocation5 + $0x2a8] sm:$0xff] }
 0x822   :  { %8458 = vmatprep.subr.bf16.mxu0 %v13301_v21  ;;  %7374 = vmatprep.mubr.bf16.mxu0 %v13248_v48  ;;  %15537 = vst [vmem:[#allocation64_spill] sm:$0xff] %v13323_v34  ;;  %v13423_v52 = vcombine.low %v7772_v8, %v7776_v51 }
 0x823   :  { %7653 = vmatprep.mubr.bf16.mxu1 %v13248_v48  ;;  %v7697_v48 = vld [vmem:[#allocation5 + $0x68] sm:$0xff]  ;;  %15560 = vst [vmem:[#allocation96_spill] sm:$0xff] %v13393_v59  ;;  %15561 = vst [vmem:[#allocation95_spill] sm:$0xff] %v13396_v18 }
 0x824   :  { %8500 = vmatpush1.bf16.msra.mxu1 %v13313_v46  ;;  %v13346_v37 = vcombine.high %v7693_v26, %v7697_v48  ;;  %v13355_v20 = vcombine.low %v7693_v26, %v7697_v48  ;;  %v7785_v26 = vld [vmem:[#allocation5 + $0x328] sm:$0xff]  ;;  %v13399_v48 = vcombine.low %v7788_v60, %v7792_v24  ;;  %15563 = vst [vmem:[#allocation36_spill] sm:$0xff] %v13403_v49  ;;  %v7768_v60 = vld [vmem:[#allocation5 + $0x2a0] sm:$0xff]  ;;  %15570 = vst [vmem:[#allocation68_spill] sm:$0xff] %v13423_v52 }
 0x825   :  { %8459 = vmatpush1.bf16.msra.mxu0 %v13308_v44  ;;  %8501 = vmatprep.subr.bf16.mxu1 %v13318_v57  ;;  %v7765_v24 = vld [vmem:[#allocation5 + $0x288] sm:$0xff]  ;;  %v13435_v8 = vcombine.low %v7764_v15, %v7768_v60 }
 0x826   :  { %8460 = vmatprep.subr.bf16.mxu0 %v13315_v31  ;;  %15544 = vst [vmem:[#allocation73_spill] sm:$0xff] %v13346_v37  ;;  %15547 = vst [vmem:[#allocation77_spill] sm:$0xff] %v13355_v20  ;;  %v13439_v51 = vcombine.low %v7765_v24, %v7769_v40 }
 0x827   :  { %7654 = vmatmul.mubr.bf16.gmra.mxu1 %v13245_v6  ;;  %15562 = vst [vmem:[#allocation97_spill] sm:$0xff] %v13399_v48  ;;  %15574 = vst [vmem:[#allocation101_spill] sm:$0xff] %v13435_v8 }
 0x828   :  { %7375 = vmatmul.mubr.bf16.gmra.mxu0 %v13245_v6  ;;  %8502 = vmatpush1.bf16.msra.mxu1 %v13327_v47  ;;  %v13351_v6 = vcombine.low %v7692_v10, %v7696_v50  ;;  %v7784_v10 = vld [vmem:[#allocation5 + $0x320] sm:$0xff]  ;;  %v7781_v50 = vld [vmem:[#allocation5 + $0x308] sm:$0xff]  ;;  %15575 = vst [vmem:[#allocation102_spill] sm:$0xff] %v13439_v51 }
 0x829   :  { %8461 = vmatpush1.bf16.msra.mxu0 %v13323_v34  ;;  %8503 = vmatprep.subr.bf16.mxu1 %v13332_v1  ;;  %v13405_v27 = vcombine.high %v7780_v9, %v7784_v10  ;;  %v13408_v43 = vcombine.high %v7781_v50, %v7785_v26  ;;  %v13411_v23 = vcombine.low %v7780_v9, %v7784_v10 }
 0x82a   :  { %8462 = vmatprep.subr.bf16.mxu0 %v13329_v25  ;;  %8484 = vmatprep.mubr.bf16.mxu0 %v15545_v33  ;;  %15546 = vst [vmem:[#allocation80_spill] sm:$0xff] %v13351_v6  ;;  %v13415_v28 = vcombine.low %v7781_v50, %v7785_v26  ;;  %v13427_v9 = vcombine.low %v7773_v16, %v7777_v7  ;;  %v7756_v26 = vld [vmem:[#allocation5 + $0x240] sm:$0xff] }
 0x82b   :  { %8525 = vmatprep.mubr.bf16.mxu1 %v15545_v33  ;;  %15564 = vst [vmem:[#allocation35_spill] sm:$0xff] %v13405_v27  ;;  %15565 = vst [vmem:[#allocation38_spill] sm:$0xff] %v13408_v43  ;;  %v13429_v10 = vcombine.high %v7764_v15, %v7768_v60  ;;  %v13432_v50 = vcombine.high %v7765_v24, %v7769_v40 }
 0x82c   :  { %8504 = vmatpush1.bf16.msra.mxu1 %v13341_v42  ;;  %15566 = vst [vmem:[#allocation37_spill] sm:$0xff] %v13411_v23  ;;  %15567 = vst [vmem:[#allocation62_spill] sm:$0xff] %v13415_v28 }
 0x82d   :  { %8463 = vmatpush1.bf16.msra.mxu0 %v13336_v19  ;;  %8505 = vmatprep.subr.bf16.mxu1 %v13346_v37  ;;  %15571 = vst [vmem:[#allocation100_spill] sm:$0xff] %v13427_v9  ;;  %15572 = vst [vmem:[#allocation98_spill] sm:$0xff] %v13429_v10 }
 0x82e   :  { %8464 = vmatprep.subr.bf16.mxu0 %v13343_v54  ;;  %15573 = vst [vmem:[#allocation99_spill] sm:$0xff] %v13432_v50 }
 0x830   :  { %8506 = vmatpush1.bf16.msra.mxu1 %v13355_v20 }
 0x831   :  { %8465 = vmatpush1.bf16.msra.mxu0 %v13351_v6  ;;  %8507 = vmatprep.subr.bf16.mxu1 %v13360_v12 }
 0x832   :  { %8466 = vmatprep.subr.bf16.mxu0 %v13357_v63 }
 0x834   :  { %8508 = vmatpush1.bf16.msra.mxu1 %v13367_v30 }
 0x835   :  { %8467 = vmatpush1.bf16.msra.mxu0 %v13363_v32  ;;  %8509 = vmatprep.subr.bf16.mxu1 %v13372_v13 }
 0x836   :  { %8468 = vmatprep.subr.bf16.mxu0 %v13369_v61 }
 0x838   :  { %8510 = vmatpush2.bf16.msra.mxu1 %v13379_v55 }
 0x839   :  { %8469 = vmatpush2.bf16.msra.mxu0 %v13375_v41  ;;  %8511 = vmatprep.subr.bf16.mxu1 %v13384_v3 }
 0x83a   :  { %8470 = vmatprep.subr.bf16.mxu0 %v13381_v56 }
 0x83c   :  { %8512 = vmatpush2.bf16.msra.mxu1 %v13391_v35 }
 0x83d   :  { %8471 = vmatpush2.bf16.msra.mxu0 %v13387_v36  ;;  %8513 = vmatprep.subr.bf16.mxu1 %v13396_v18 }
 0x83e   :  { %8472 = vmatprep.subr.bf16.mxu0 %v13393_v59 }
 0x840   :  { %8514 = vmatpush2.bf16.msra.mxu1 %v13403_v49  ;;  %v7761_v49 = vld [vmem:[#allocation5 + $0x268] sm:$0xff] }
 0x841   :  { %8473 = vmatpush2.bf16.msra.mxu0 %v13399_v48  ;;  %8515 = vmatprep.subr.bf16.mxu1 %v13408_v43  ;;  %v7760_v43 = vld [vmem:[#allocation5 + $0x260] sm:$0xff] }
 0x842   :  { %8474 = vmatprep.subr.bf16.mxu0 %v13405_v27  ;;  %v7757_v27 = vld [vmem:[#allocation5 + $0x248] sm:$0xff]  ;;  %v13441_v16 = vcombine.high %v7756_v26, %v7760_v43  ;;  %v13447_v15 = vcombine.low %v7756_v26, %v7760_v43 }
 0x843   :  { %v13444_v7 = vcombine.high %v7757_v27, %v7761_v49  ;;  %v13451_v60 = vcombine.low %v7757_v27, %v7761_v49 }
 0x844   :  { %8516 = vmatpush2.bf16.msra.mxu1 %v13415_v28  ;;  %15576 = vst [vmem:[#allocation28_spill] sm:$0xff] %v13441_v16  ;;  %v7749_v28 = vld [vmem:[#allocation5 + $0x208] sm:$0xff]  ;;  %15578 = vst [vmem:[#allocation30_spill] sm:$0xff] %v13447_v15 }
 0x845   :  { %8475 = vmatpush2.bf16.msra.mxu0 %v13411_v23  ;;  %8517 = vmatprep.subr.bf16.mxu1 %v13420_v38  ;;  %15577 = vst [vmem:[#allocation27_spill] sm:$0xff] %v13444_v7  ;;  %v7748_v38 = vld [vmem:[#allocation5 + $0x200] sm:$0xff]  ;;  %v7753_v23 = vld [vmem:[#allocation5 + $0x228] sm:$0xff]  ;;  %15579 = vst [vmem:[#allocation29_spill] sm:$0xff] %v13451_v60 }
 0x846   :  { %8476 = vmatprep.subr.bf16.mxu0 %v13417_v39  ;;  %v7752_v39 = vld [vmem:[#allocation5 + $0x220] sm:$0xff]  ;;  %v13456_v40 = vcombine.high %v7749_v28, %v7753_v23  ;;  %v13463_v49 = vcombine.low %v7749_v28, %v7753_v23 }
 0x847   :  { %v13453_v24 = vcombine.high %v7748_v38, %v7752_v39  ;;  %v13459_v43 = vcombine.low %v7748_v38, %v7752_v39 }
 0x848   :  { %8518 = vmatpush2.bf16.msra.mxu1 %v13427_v9  ;;  %15581 = vst [vmem:[#allocation51_spill] sm:$0xff] %v13456_v40  ;;  %v7743_v9 = vld [vmem:[#allocation5 + $0x1d8] sm:$0xff]  ;;  %15583 = vst [vmem:[#allocation52_spill] sm:$0xff] %v13463_v49 }
 0x849   :  { %8477 = vmatpush2.bf16.msra.mxu0 %v13423_v52  ;;  %8519 = vmatprep.subr.bf16.mxu1 %v13432_v50  ;;  %15580 = vst [vmem:[#allocation47_spill] sm:$0xff] %v13453_v24  ;;  %v7742_v50 = vld [vmem:[#allocation5 + $0x1d0] sm:$0xff]  ;;  %v7747_v52 = vld [vmem:[#allocation5 + $0x1f8] sm:$0xff]  ;;  %15582 = vst [vmem:[#allocation48_spill] sm:$0xff] %v13459_v43 }
 0x84a   :  { %8478 = vmatprep.subr.bf16.mxu0 %v13429_v10  ;;  %v7746_v10 = vld [vmem:[#allocation5 + $0x1f0] sm:$0xff]  ;;  %v13468_v26 = vcombine.high %v7743_v9, %v7747_v52  ;;  %v13475_v23 = vcombine.low %v7743_v9, %v7747_v52 }
 0x84b   :  { %v13465_v27 = vcombine.high %v7742_v50, %v7746_v10  ;;  %v13471_v39 = vcombine.low %v7742_v50, %v7746_v10 }
 0x84c   :  { %8520 = vmatpush2.bf16.msra.mxu1 %v13439_v51  ;;  %15585 = vst [vmem:[#allocation104_spill] sm:$0xff] %v13468_v26  ;;  %v7735_v51 = vld [vmem:[#allocation5 + $0x198] sm:$0xff]  ;;  %15587 = vst [vmem:[#allocation106_spill] sm:$0xff] %v13475_v23 }
 0x84d   :  { %8479 = vmatpush2.bf16.msra.mxu0 %v13435_v8  ;;  %8521 = vmatprep.subr.bf16.mxu1 %v13444_v7  ;;  %15584 = vst [vmem:[#allocation103_spill] sm:$0xff] %v13465_v27  ;;  %v7734_v7 = vld [vmem:[#allocation5 + $0x190] sm:$0xff]  ;;  %v7739_v8 = vld [vmem:[#allocation5 + $0x1b8] sm:$0xff]  ;;  %15586 = vst [vmem:[#allocation105_spill] sm:$0xff] %v13471_v39 }
 0x84e   :  { %8480 = vmatprep.subr.bf16.mxu0 %v13441_v16  ;;  %v7738_v16 = vld [vmem:[#allocation5 + $0x1b0] sm:$0xff]  ;;  %v13480_v38 = vcombine.high %v7735_v51, %v7739_v8  ;;  %v13489_v52 = vcombine.low %v7735_v51, %v7739_v8 }
 0x84f   :  { %v13477_v28 = vcombine.high %v7734_v7, %v7738_v16  ;;  %v13485_v10 = vcombine.low %v7734_v7, %v7738_v16 }
 0x850   :  { %8522 = vmatpush2.bf16.msra.mxu1 %v13451_v60  ;;  %15589 = vst [vmem:[#allocation108_spill] sm:$0xff] %v13480_v38  ;;  %v7727_v60 = vld [vmem:[#allocation5 + $0x158] sm:$0xff]  ;;  %15591 = vst [vmem:[#allocation110_spill] sm:$0xff] %v13489_v52 }
 0x851   :  { %8481 = vmatpush2.bf16.msra.mxu0 %v13447_v15  ;;  %8523 = vmatprep.subr.bf16.mxu1 %v13456_v40  ;;  %15588 = vst [vmem:[#allocation107_spill] sm:$0xff] %v13477_v28  ;;  %v7726_v40 = vld [vmem:[#allocation5 + $0x150] sm:$0xff]  ;;  %15590 = vst [vmem:[#allocation109_spill] sm:$0xff] %v13485_v10  ;;  %v7715_v15 = vld [vmem:[#allocation5 + $0xf8] sm:$0xff] }
 0x852   :  { %8482 = vmatprep.subr.bf16.mxu0 %v13453_v24  ;;  %v7730_v24 = vld [vmem:[#allocation5 + $0x170] sm:$0xff] }
 0x853   :  { %v13491_v9 = vcombine.high %v7726_v40, %v7730_v24  ;;  %v13499_v16 = vcombine.low %v7726_v40, %v7730_v24 }
 0x854   :  { %8524 = vmatpush2.bf16.msra.mxu1 %v13463_v49  ;;  %v7719_v49 = vld [vmem:[#allocation5 + $0x118] sm:$0xff] }
 0x855   :  { %8483 = vmatpush2.bf16.msra.mxu0 %v13459_v43  ;;  %8575 = vmatprep.subr.bf16.mxu1 %v13468_v26  ;;  %v7731_v43 = vld [vmem:[#allocation5 + $0x178] sm:$0xff]  ;;  %15592 = vst [vmem:[#allocation111_spill] sm:$0xff] %v13491_v9  ;;  %v7718_v26 = vld [vmem:[#allocation5 + $0x110] sm:$0xff]  ;;  %15594 = vst [vmem:[#allocation113_spill] sm:$0xff] %v13499_v16 }
 0x856   :  { %8534 = vmatprep.subr.bf16.mxu0 %v13465_v27  ;;  %v13494_v50 = vcombine.high %v7727_v60, %v7731_v43  ;;  %v7722_v27 = vld [vmem:[#allocation5 + $0x130] sm:$0xff]  ;;  %v13503_v8 = vcombine.low %v7727_v60, %v7731_v43 }
 0x857   :  { %8526 = vmatmul.mubr.bf16.vlgmr.msra.gmra.mxu1 %v15545_v33  ;;  %v13505_v51 = vcombine.high %v7718_v26, %v7722_v27  ;;  %v13511_v24 = vcombine.low %v7718_v26, %v7722_v27 }
 0x858   :  { %8485 = vmatmul.mubr.bf16.vlgmr.msra.gmra.mxu0 %v15545_v33  ;;  %8576 = vmatpush1.bf16.msra.mxu1 %v13475_v23  ;;  %15593 = vst [vmem:[#allocation112_spill] sm:$0xff] %v13494_v50  ;;  %15595 = vst [vmem:[#allocation114_spill] sm:$0xff] %v13503_v8  ;;  %v7711_v23 = vld [vmem:[#allocation5 + $0xd8] sm:$0xff] }
 0x859   :  { %8535 = vmatpush1.bf16.msra.mxu0 %v13471_v39  ;;  %8577 = vmatprep.subr.bf16.mxu1 %v13480_v38  ;;  %v7723_v39 = vld [vmem:[#allocation5 + $0x138] sm:$0xff]  ;;  %15596 = vst [vmem:[#allocation115_spill] sm:$0xff] %v13505_v51  ;;  %v7710_v38 = vld [vmem:[#allocation5 + $0xd0] sm:$0xff]  ;;  %15598 = vst [vmem:[#allocation117_spill] sm:$0xff] %v13511_v24  ;;  %v13520_v43 = vcombine.high %v7711_v23, %v7715_v15 }
 0x85a   :  { %8536 = vmatprep.subr.bf16.mxu0 %v13477_v28  ;;  %8566 = vmatprep.mubr.bf16.mxu0 %v15545_v33  ;;  %v13508_v7 = vcombine.high %v7719_v49, %v7723_v39  ;;  %v7714_v28 = vld [vmem:[#allocation5 + $0xf0] sm:$0xff]  ;;  %v13515_v60 = vcombine.low %v7719_v49, %v7723_v39  ;;  %v13527_v49 = vcombine.low %v7711_v23, %v7715_v15 }
 0x85b   :  { %8607 = vmatprep.mubr.bf16.mxu1 %v15545_v33  ;;  %v13517_v40 = vcombine.high %v7710_v38, %v7714_v28  ;;  %15601 = vst [vmem:[#allocation120_spill] sm:$0xff] %v13520_v43  ;;  %v13523_v27 = vcombine.low %v7710_v38, %v7714_v28 }
 0x85c   :  { %8578 = vmatpush1.bf16.msra.mxu1 %v13489_v52  ;;  %15597 = vst [vmem:[#allocation116_spill] sm:$0xff] %v13508_v7  ;;  %15599 = vst [vmem:[#allocation118_spill] sm:$0xff] %v13515_v60  ;;  %v7703_v52 = vld [vmem:[#allocation5 + $0x98] sm:$0xff] }
 0x85d   :  { %8537 = vmatpush1.bf16.msra.mxu0 %v13485_v10  ;;  %8579 = vmatprep.subr.bf16.mxu1 %v13494_v50  ;;  %15600 = vst [vmem:[#allocation119_spill] sm:$0xff] %v13517_v40  ;;  %v7702_v50 = vld [vmem:[#allocation5 + $0x90] sm:$0xff]  ;;  %v7707_v10 = vld [vmem:[#allocation5 + $0xb8] sm:$0xff]  ;;  %15602 = vst [vmem:[#allocation121_spill] sm:$0xff] %v13523_v27 }
 0x85e   :  { %8538 = vmatprep.subr.bf16.mxu0 %v13491_v9  ;;  %v7706_v9 = vld [vmem:[#allocation5 + $0xb0] sm:$0xff]  ;;  %15603 = vst [vmem:[#allocation122_spill] sm:$0xff] %v13527_v49  ;;  %v13532_v39 = vcombine.high %v7703_v52, %v7707_v10  ;;  %v13539_v15 = vcombine.low %v7703_v52, %v7707_v10 }
 0x85f   :  { %v13529_v26 = vcombine.high %v7702_v50, %v7706_v9  ;;  %v13535_v28 = vcombine.low %v7702_v50, %v7706_v9 }
 0x860   :  { %8580 = vmatpush1.bf16.msra.mxu1 %v13503_v8  ;;  %15605 = vst [vmem:[#allocation124_spill] sm:$0xff] %v13532_v39  ;;  %v7695_v8 = vld [vmem:[#allocation5 + $0x58] sm:$0xff]  ;;  %15607 = vst [vmem:[#allocation126_spill] sm:$0xff] %v13539_v15 }
 0x861   :  { %8539 = vmatpush1.bf16.msra.mxu0 %v13499_v16  ;;  %8581 = vmatprep.subr.bf16.mxu1 %v13508_v7  ;;  %15604 = vst [vmem:[#allocation123_spill] sm:$0xff] %v13529_v26  ;;  %v7694_v7 = vld [vmem:[#allocation5 + $0x50] sm:$0xff]  ;;  %v7699_v16 = vld [vmem:[#allocation5 + $0x78] sm:$0xff]  ;;  %15606 = vst [vmem:[#allocation125_spill] sm:$0xff] %v13535_v28 }
 0x862   :  { %8540 = vmatprep.subr.bf16.mxu0 %v13505_v51  ;;  %v7698_v51 = vld [vmem:[#allocation5 + $0x70] sm:$0xff]  ;;  %v13544_v38 = vcombine.high %v7695_v8, %v7699_v16  ;;  %v13551_v10 = vcombine.low %v7695_v8, %v7699_v16 }
 0x863   :  { %v13541_v23 = vcombine.high %v7694_v7, %v7698_v51  ;;  %v13547_v9 = vcombine.low %v7694_v7, %v7698_v51 }
 0x864   :  { %8582 = vmatpush1.bf16.msra.mxu1 %v13515_v60  ;;  %15609 = vst [vmem:[#allocation128_spill] sm:$0xff] %v13544_v38  ;;  %v7687_v60 = vld [vmem:[#allocation5 + $0x18] sm:$0xff]  ;;  %15611 = vst [vmem:[#allocation130_spill] sm:$0xff] %v13551_v10 }
 0x865   :  { %8541 = vmatpush1.bf16.msra.mxu0 %v13511_v24  ;;  %8583 = vmatprep.subr.bf16.mxu1 %v13520_v43  ;;  %15608 = vst [vmem:[#allocation127_spill] sm:$0xff] %v13541_v23  ;;  %v7686_v43 = vld [vmem:[#allocation5 + $0x10] sm:$0xff]  ;;  %v7691_v24 = vld [vmem:[#allocation5 + $0x38] sm:$0xff]  ;;  %15610 = vst [vmem:[#allocation129_spill] sm:$0xff] %v13547_v9 }
 0x866   :  { %8542 = vmatprep.subr.bf16.mxu0 %v13517_v40  ;;  %v7690_v40 = vld [vmem:[#allocation5 + $0x30] sm:$0xff]  ;;  %v13556_v50 = vcombine.high %v7687_v60, %v7691_v24  ;;  %v13563_v16 = vcombine.low %v7687_v60, %v7691_v24 }
 0x867   :  { %v13553_v52 = vcombine.high %v7686_v43, %v7690_v40  ;;  %v13559_v51 = vcombine.low %v7686_v43, %v7690_v40 }
 0x868   :  { %8584 = vmatpush1.bf16.msra.mxu1 %v13527_v49  ;;  %15613 = vst [vmem:[#allocation132_spill] sm:$0xff] %v13556_v50  ;;  %v7807_v49 = vld [vmem:[#allocation5 + $0x3d8] sm:$0xff]  ;;  %15615 = vst [vmem:[#allocation134_spill] sm:$0xff] %v13563_v16 }
 0x869   :  { %8543 = vmatpush1.bf16.msra.mxu0 %v13523_v27  ;;  %8585 = vmatprep.subr.bf16.mxu1 %v13532_v39  ;;  %15612 = vst [vmem:[#allocation131_spill] sm:$0xff] %v13553_v52  ;;  %v7806_v39 = vld [vmem:[#allocation5 + $0x3d0] sm:$0xff]  ;;  %v7811_v27 = vld [vmem:[#allocation5 + $0x3f8] sm:$0xff]  ;;  %15614 = vst [vmem:[#allocation133_spill] sm:$0xff] %v13559_v51 }
 0x86a   :  { %8544 = vmatprep.subr.bf16.mxu0 %v13529_v26  ;;  %v7810_v26 = vld [vmem:[#allocation5 + $0x3f0] sm:$0xff]  ;;  %v13568_v7 = vcombine.high %v7807_v49, %v7811_v27  ;;  %v13575_v24 = vcombine.low %v7807_v49, %v7811_v27 }
 0x86b   :  { %v13565_v8 = vcombine.high %v7806_v39, %v7810_v26  ;;  %v13571_v40 = vcombine.low %v7806_v39, %v7810_v26 }
 0x86c   :  { %8586 = vmatpush1.bf16.msra.mxu1 %v13539_v15  ;;  %15617 = vst [vmem:[#allocation136_spill] sm:$0xff] %v13568_v7  ;;  %v7799_v15 = vld [vmem:[#allocation5 + $0x398] sm:$0xff]  ;;  %15619 = vst [vmem:[#allocation40_spill] sm:$0xff] %v13575_v24 }
 0x86d   :  { %8545 = vmatpush1.bf16.msra.mxu0 %v13535_v28  ;;  %8587 = vmatprep.subr.bf16.mxu1 %v13544_v38  ;;  %15616 = vst [vmem:[#allocation135_spill] sm:$0xff] %v13565_v8  ;;  %v7798_v38 = vld [vmem:[#allocation5 + $0x390] sm:$0xff]  ;;  %v7803_v28 = vld [vmem:[#allocation5 + $0x3b8] sm:$0xff]  ;;  %15618 = vst [vmem:[#allocation137_spill] sm:$0xff] %v13571_v40 }
 0x86e   :  { %8546 = vmatprep.subr.bf16.mxu0 %v13541_v23  ;;  %v7802_v23 = vld [vmem:[#allocation5 + $0x3b0] sm:$0xff]  ;;  %v13580_v43 = vcombine.high %v7799_v15, %v7803_v28  ;;  %v13587_v27 = vcombine.low %v7799_v15, %v7803_v28 }
 0x86f   :  { %v13577_v60 = vcombine.high %v7798_v38, %v7802_v23  ;;  %v13583_v26 = vcombine.low %v7798_v38, %v7802_v23 }
 0x870   :  { %8588 = vmatpush1.bf16.msra.mxu1 %v13551_v10  ;;  %15621 = vst [vmem:[#allocation42_spill] sm:$0xff] %v13580_v43  ;;  %v7791_v10 = vld [vmem:[#allocation5 + $0x358] sm:$0xff]  ;;  %15623 = vst [vmem:[#allocation70_spill] sm:$0xff] %v13587_v27 }
 0x871   :  { %8547 = vmatpush1.bf16.msra.mxu0 %v13547_v9  ;;  %8589 = vmatprep.subr.bf16.mxu1 %v13556_v50  ;;  %15620 = vst [vmem:[#allocation39_spill] sm:$0xff] %v13577_v60  ;;  %v7790_v50 = vld [vmem:[#allocation5 + $0x350] sm:$0xff]  ;;  %v7795_v9 = vld [vmem:[#allocation5 + $0x378] sm:$0xff]  ;;  %15622 = vst [vmem:[#allocation41_spill] sm:$0xff] %v13583_v26 }
 0x872   :  { %8548 = vmatprep.subr.bf16.mxu0 %v13553_v52  ;;  %v7794_v52 = vld [vmem:[#allocation5 + $0x370] sm:$0xff]  ;;  %v13592_v39 = vcombine.high %v7791_v10, %v7795_v9  ;;  %v13599_v28 = vcombine.low %v7791_v10, %v7795_v9 }
 0x873   :  { %v13589_v49 = vcombine.high %v7790_v50, %v7794_v52  ;;  %v13595_v23 = vcombine.low %v7790_v50, %v7794_v52 }
 0x874   :  { %8590 = vmatpush1.bf16.msra.mxu1 %v13563_v16  ;;  %15625 = vst [vmem:[#allocation71_spill] sm:$0xff] %v13592_v39  ;;  %v7783_v16 = vld [vmem:[#allocation5 + $0x318] sm:$0xff]  ;;  %15627 = vst [vmem:[#allocation44_spill] sm:$0xff] %v13599_v28 }
 0x875   :  { %8549 = vmatpush1.bf16.msra.mxu0 %v13559_v51  ;;  %8591 = vmatprep.subr.bf16.mxu1 %v13568_v7  ;;  %15624 = vst [vmem:[#allocation75_spill] sm:$0xff] %v13589_v49  ;;  %v7782_v7 = vld [vmem:[#allocation5 + $0x310] sm:$0xff]  ;;  %v7787_v51 = vld [vmem:[#allocation5 + $0x338] sm:$0xff]  ;;  %15626 = vst [vmem:[#allocation76_spill] sm:$0xff] %v13595_v23 }
 0x876   :  { %8550 = vmatprep.subr.bf16.mxu0 %v13565_v8  ;;  %v7786_v8 = vld [vmem:[#allocation5 + $0x330] sm:$0xff]  ;;  %v13604_v38 = vcombine.high %v7783_v16, %v7787_v51  ;;  %v13611_v9 = vcombine.low %v7783_v16, %v7787_v51 }
 0x877   :  { %v13601_v15 = vcombine.high %v7782_v7, %v7786_v8  ;;  %v13607_v52 = vcombine.low %v7782_v7, %v7786_v8 }
 0x878   :  { %8592 = vmatpush2.bf16.msra.mxu1 %v13575_v24  ;;  %15629 = vst [vmem:[#allocation46_spill] sm:$0xff] %v13604_v38  ;;  %v7775_v24 = vld [vmem:[#allocation5 + $0x2d8] sm:$0xff]  ;;  %15631 = vst [vmem:[#allocation78_spill] sm:$0xff] %v13611_v9 }
 0x879   :  { %8551 = vmatpush2.bf16.msra.mxu0 %v13571_v40  ;;  %8593 = vmatprep.subr.bf16.mxu1 %v13580_v43  ;;  %15628 = vst [vmem:[#allocation43_spill] sm:$0xff] %v13601_v15  ;;  %v7774_v43 = vld [vmem:[#allocation5 + $0x2d0] sm:$0xff]  ;;  %v7779_v40 = vld [vmem:[#allocation5 + $0x2f8] sm:$0xff]  ;;  %15630 = vst [vmem:[#allocation45_spill] sm:$0xff] %v13607_v52 }
 0x87a   :  { %8552 = vmatprep.subr.bf16.mxu0 %v13577_v60  ;;  %v7778_v60 = vld [vmem:[#allocation5 + $0x2f0] sm:$0xff]  ;;  %v13616_v50 = vcombine.high %v7775_v24, %v7779_v40  ;;  %v13623_v51 = vcombine.low %v7775_v24, %v7779_v40 }
 0x87b   :  { %v13613_v10 = vcombine.high %v7774_v43, %v7778_v60  ;;  %v13619_v8 = vcombine.low %v7774_v43, %v7778_v60 }
 0x87c   :  { %8594 = vmatpush2.bf16.msra.mxu1 %v13587_v27  ;;  %15633 = vst [vmem:[#allocation79_spill] sm:$0xff] %v13616_v50  ;;  %v7767_v27 = vld [vmem:[#allocation5 + $0x298] sm:$0xff]  ;;  %15635 = vst [vmem:[#allocation50_spill] sm:$0xff] %v13623_v51 }
 0x87d   :  { %8553 = vmatpush2.bf16.msra.mxu0 %v13583_v26  ;;  %8595 = vmatprep.subr.bf16.mxu1 %v13592_v39  ;;  %15632 = vst [vmem:[#allocation83_spill] sm:$0xff] %v13613_v10  ;;  %v7766_v39 = vld [vmem:[#allocation5 + $0x290] sm:$0xff]  ;;  %v7771_v26 = vld [vmem:[#allocation5 + $0x2b8] sm:$0xff]  ;;  %15634 = vst [vmem:[#allocation84_spill] sm:$0xff] %v13619_v8 }
 0x87e   :  { %8554 = vmatprep.subr.bf16.mxu0 %v13589_v49  ;;  %v7770_v49 = vld [vmem:[#allocation5 + $0x2b0] sm:$0xff]  ;;  %v13628_v7 = vcombine.high %v7767_v27, %v7771_v26  ;;  %v13635_v40 = vcombine.low %v7767_v27, %v7771_v26 }
 0x87f   :  { %v13625_v16 = vcombine.high %v7766_v39, %v7770_v49  ;;  %v13631_v60 = vcombine.low %v7766_v39, %v7770_v49 }
 0x880   :  { %8596 = vmatpush2.bf16.msra.mxu1 %v13599_v28  ;;  %15637 = vst [vmem:[#allocation144_spill] sm:$0xff] %v13628_v7  ;;  %v7759_v28 = vld [vmem:[#allocation5 + $0x258] sm:$0xff]  ;;  %15639 = vst [vmem:[#allocation146_spill] sm:$0xff] %v13635_v40 }
 0x881   :  { %8555 = vmatpush2.bf16.msra.mxu0 %v13595_v23  ;;  %8597 = vmatprep.subr.bf16.mxu1 %v13604_v38  ;;  %15636 = vst [vmem:[#allocation49_spill] sm:$0xff] %v13625_v16  ;;  %v7758_v38 = vld [vmem:[#allocation5 + $0x250] sm:$0xff]  ;;  %v7763_v23 = vld [vmem:[#allocation5 + $0x278] sm:$0xff]  ;;  %15638 = vst [vmem:[#allocation145_spill] sm:$0xff] %v13631_v60 }
 0x882   :  { %8556 = vmatprep.subr.bf16.mxu0 %v13601_v15  ;;  %v7762_v15 = vld [vmem:[#allocation5 + $0x270] sm:$0xff]  ;;  %v13640_v43 = vcombine.high %v7759_v28, %v7763_v23  ;;  %v13647_v26 = vcombine.low %v7759_v28, %v7763_v23  ;;  %v6871_v23 = vld [vmem:[#allocation11 + $0x2] sm:$0x3]  ;;  %v6592_v28 = vld [vmem:[#allocation11] sm:$0x3] }
 0x883   :  { %v13637_v24 = vcombine.high %v7758_v38, %v7762_v15  ;;  %v13643_v49 = vcombine.low %v7758_v38, %v7762_v15 }
 0x884   :  { %8598 = vmatpush2.bf16.msra.mxu1 %v13611_v9  ;;  %15641 = vst [vmem:[#allocation148_spill] sm:$0xff] %v13640_v43  ;;  %v7751_v9 = vld [vmem:[#allocation5 + $0x218] sm:$0xff]  ;;  %15643 = vst [vmem:[#allocation150_spill] sm:$0xff] %v13647_v26 }
 0x885   :  { %8557 = vmatpush2.bf16.msra.mxu0 %v13607_v52  ;;  %8599 = vmatprep.subr.bf16.mxu1 %v13616_v50  ;;  %15640 = vst [vmem:[#allocation147_spill] sm:$0xff] %v13637_v24  ;;  %v7750_v50 = vld [vmem:[#allocation5 + $0x210] sm:$0xff]  ;;  %v7755_v52 = vld [vmem:[#allocation5 + $0x238] sm:$0xff]  ;;  %15642 = vst [vmem:[#allocation149_spill] sm:$0xff] %v13643_v49 }
 0x886   :  { %8558 = vmatprep.subr.bf16.mxu0 %v13613_v10  ;;  %v7754_v10 = vld [vmem:[#allocation5 + $0x230] sm:$0xff]  ;;  %v13652_v39 = vcombine.high %v7751_v9, %v7755_v52  ;;  %v13659_v15 = vcombine.low %v7751_v9, %v7755_v52 }
 0x887   :  { %v13649_v27 = vcombine.high %v7750_v50, %v7754_v10 }
 0x888   :  { %8600 = vmatpush2.bf16.msra.mxu1 %v13623_v51  ;;  %15645 = vst [vmem:[#allocation152_spill] sm:$0xff] %v13652_v39  ;;  %15647 = vst [vmem:[#allocation154_spill] sm:$0xff] %v13659_v15 }
 0x889   :  { %8559 = vmatpush2.bf16.msra.mxu0 %v13619_v8  ;;  %8601 = vmatprep.subr.bf16.mxu1 %v13628_v7  ;;  %15644 = vst [vmem:[#allocation151_spill] sm:$0xff] %v13649_v27  ;;  %v13655_v7 = vcombine.low %v7750_v50, %v7754_v10  ;;  %v15648_v10 = vld [vmem:[#allocation25_spill] sm:$0xff] }
 0x88a   :  { %8560 = vmatprep.subr.bf16.mxu0 %v13625_v16  ;;  %v13676_v50 = vrot.slane %v6871_v23, %v15648_v10 }
 0x88b   :  { %15646 = vst [vmem:[#allocation153_spill] sm:$0xff] %v13655_v7 }
 0x88c   :  { %8602 = vmatpush2.bf16.msra.mxu1 %v13635_v40 }
 0x88d   :  { %8561 = vmatpush2.bf16.msra.mxu0 %v13631_v60  ;;  %8603 = vmatprep.subr.bf16.mxu1 %v13640_v43 }
 0x88e   :  { %8562 = vmatprep.subr.bf16.mxu0 %v13637_v24 }
 0x890   :  { %8604 = vmatpush2.bf16.msra.mxu1 %v13647_v26 }
 0x891   :  { %8563 = vmatpush2.bf16.msra.mxu0 %v13643_v49  ;;  %8605 = vmatprep.subr.bf16.mxu1 %v13652_v39 }
 0x892   :  { %8564 = vmatprep.subr.bf16.mxu0 %v13649_v27 }
 0x894   :  { %8606 = vmatpush2.bf16.msra.mxu1 %v13659_v15  ;;  %v15649_v15 = vld [vmem:[#allocation26_spill] sm:$0xff] }
 0x895   :  { %8565 = vmatpush2.bf16.msra.mxu0 %v13655_v7  ;;  %8711 = vmatprep.subr.bf16.mxu1 %v13266_v4  ;;  %v13681_v4 = vrot.slane %v6592_v28, %v15648_v10  ;;  %v13687_v7 = vrot.slane %v6871_v23, %v15649_v15 }
 0x896   :  { %8670 = vmatprep.subr.bf16.mxu0 %v13264_v62 }
 0x897   :  { %8608 = vmatmul.mubr.bf16.vlgmr.msra.gmra.mxu1 %v15545_v33  ;;  %v13670_v52 = vpop.f32.mrf.mxu1 }
 0x898   :  { %v13666_v38 = vpop.f32.mrf.mxu0  ;;  %8567 = vmatmul.mubr.bf16.vlgmr.msra.gmra.mxu0 %v15545_v33  ;;  %8712 = vmatpush1.bf16.msra.mxu1 %v13271_v29 }
 0x899   :  { %8671 = vmatpush1.bf16.msra.mxu0 %v13268_v45  ;;  %v13683_v62 = vpop.f32.mrf.mxu1  ;;  %8713 = vmatprep.subr.bf16.mxu1 %v13276_v58  ;;  %v13690_v45 = vrot.slane %v6592_v28, %v15649_v15 }
 0x89a   :  { %v13673_v9 = vpop.f32.mrf.mxu0  ;;  %8672 = vmatprep.subr.bf16.mxu0 %v13273_v17 }
 0x89b   :  { %v7081_v29 = vpop.f32.mrf.mxu1 }
 0x89c   :  { %v6802_v33 = vpop.f32.mrf.mxu0  ;;  %v13697_v27 = vadd.f32 %v7081_v29, %v13676_v50  ;;  %8714 = vmatpush1.bf16.msra.mxu1 %v13285_v0 }
 0x89d   :  { %v13693_v39 = vadd.f32 %v6802_v33, %v13681_v4  ;;  %8673 = vmatpush1.bf16.msra.mxu0 %v13281_v5  ;;  %v7083_v58 = vpop.f32.mrf.mxu1  ;;  %8715 = vmatprep.subr.bf16.mxu1 %v13290_v53 }
 0x89e   :  { %v6804_v17 = vpop.f32.mrf.mxu0  ;;  %15651 = vst [vmem:[#allocation26_spill] sm:$0xff] %v13697_v27  ;;  %8674 = vmatprep.subr.bf16.mxu0 %v13287_v22  ;;  %v13706_v28 = vadd.f32 %v7083_v58, %v13687_v7 }
 0x89f   :  { %15650 = vst [vmem:[#allocation25_spill] sm:$0xff] %v13693_v39  ;;  %v13702_v23 = vadd.f32 %v6804_v17, %v13690_v45  ;;  %v7087_v5 = vpop.f32.mrf.mxu1 }
 0x8a0   :  { %15653 = vst [vmem:[#allocation156_spill] sm:$0xff] %v13706_v28  ;;  %v6808_v33 = vpop.f32.mrf.mxu0  ;;  %v13713_v27 = vadd.f32 %v7087_v5, %v13676_v50  ;;  %8716 = vmatpush1.bf16.msra.mxu1 %v13299_v14 }
 0x8a1   :  { %15652 = vst [vmem:[#allocation155_spill] sm:$0xff] %v13702_v23  ;;  %v13709_v39 = vadd.f32 %v6808_v33, %v13681_v4  ;;  %8675 = vmatpush1.bf16.msra.mxu0 %v13295_v2  ;;  %v7089_v58 = vpop.f32.mrf.mxu1  ;;  %8717 = vmatprep.subr.bf16.mxu1 %v13304_v11 }
 0x8a2   :  { %v6810_v29 = vpop.f32.mrf.mxu0  ;;  %15655 = vst [vmem:[#allocation158_spill] sm:$0xff] %v13713_v27  ;;  %8676 = vmatprep.subr.bf16.mxu0 %v13301_v21  ;;  %v13722_v33 = vadd.f32 %v7089_v58, %v13687_v7 }
 0x8a3   :  { %15654 = vst [vmem:[#allocation157_spill] sm:$0xff] %v13709_v39  ;;  %v13718_v17 = vadd.f32 %v6810_v29, %v13690_v45  ;;  %v7091_v28 = vpop.f32.mrf.mxu1 }
 0x8a4   :  { %v6812_v23 = vpop.f32.mrf.mxu0  ;;  %15657 = vst [vmem:[#allocation160_spill] sm:$0xff] %v13722_v33  ;;  %v13729_v27 = vadd.f32 %v7091_v28, %v13676_v50  ;;  %8718 = vmatpush1.bf16.msra.mxu1 %v13313_v46 }
 0x8a5   :  { %15656 = vst [vmem:[#allocation159_spill] sm:$0xff] %v13718_v17  ;;  %v13725_v39 = vadd.f32 %v6812_v23, %v13681_v4  ;;  %8677 = vmatpush1.bf16.msra.mxu0 %v13308_v44  ;;  %v7093_v17 = vpop.f32.mrf.mxu1  ;;  %8719 = vmatprep.subr.bf16.mxu1 %v13318_v57 }
 0x8a6   :  { %v6814_v5 = vpop.f32.mrf.mxu0  ;;  %15659 = vst [vmem:[#allocation162_spill] sm:$0xff] %v13729_v27  ;;  %8678 = vmatprep.subr.bf16.mxu0 %v13315_v31  ;;  %v13738_v23 = vadd.f32 %v7093_v17, %v13687_v7 }
 0x8a7   :  { %15658 = vst [vmem:[#allocation161_spill] sm:$0xff] %v13725_v39  ;;  %v13734_v29 = vadd.f32 %v6814_v5, %v13690_v45  ;;  %v7097_v33 = vpop.f32.mrf.mxu1 }
 0x8a8   :  { %v6818_v58 = vpop.f32.mrf.mxu0  ;;  %15661 = vst [vmem:[#allocation164_spill] sm:$0xff] %v13738_v23  ;;  %v13745_v27 = vadd.f32 %v7097_v33, %v13676_v50  ;;  %8720 = vmatpush1.bf16.msra.mxu1 %v13327_v47 }
 0x8a9   :  { %15660 = vst [vmem:[#allocation163_spill] sm:$0xff] %v13734_v29  ;;  %v13741_v39 = vadd.f32 %v6818_v58, %v13681_v4  ;;  %8679 = vmatpush1.bf16.msra.mxu0 %v13323_v34  ;;  %v7099_v29 = vpop.f32.mrf.mxu1  ;;  %8721 = vmatprep.subr.bf16.mxu1 %v13332_v1 }
 0x8aa   :  { %v6820_v28 = vpop.f32.mrf.mxu0  ;;  %15663 = vst [vmem:[#allocation166_spill] sm:$0xff] %v13745_v27  ;;  %8680 = vmatprep.subr.bf16.mxu0 %v13329_v25  ;;  %v13754_v58 = vadd.f32 %v7099_v29, %v13687_v7 }
 0x8ab   :  { %15662 = vst [vmem:[#allocation165_spill] sm:$0xff] %v13741_v39  ;;  %v13750_v5 = vadd.f32 %v6820_v28, %v13690_v45  ;;  %v7101_v23 = vpop.f32.mrf.mxu1 }
 0x8ac   :  { %v6822_v17 = vpop.f32.mrf.mxu0  ;;  %15665 = vst [vmem:[#allocation168_spill] sm:$0xff] %v13754_v58  ;;  %v13761_v27 = vadd.f32 %v7101_v23, %v13676_v50  ;;  %8722 = vmatpush1.bf16.msra.mxu1 %v13341_v42  ;;  %v15670_v23 = vld [vmem:[#allocation36_spill] sm:$0xff] }
 0x8ad   :  { %15664 = vst [vmem:[#allocation167_spill] sm:$0xff] %v13750_v5  ;;  %v13757_v39 = vadd.f32 %v6822_v17, %v13681_v4  ;;  %8681 = vmatpush1.bf16.msra.mxu0 %v13336_v19  ;;  %v7103_v5 = vpop.f32.mrf.mxu1  ;;  %8723 = vmatprep.subr.bf16.mxu1 %v13346_v37  ;;  %v15672_v17 = vld [vmem:[#allocation38_spill] sm:$0xff]  ;;  %v15678_v58 = vld [vmem:[#allocation100_spill] sm:$0xff] }
 0x8ae   :  { %v6824_v33 = vpop.f32.mrf.mxu0  ;;  %15667 = vst [vmem:[#allocation170_spill] sm:$0xff] %v13761_v27  ;;  %8682 = vmatprep.subr.bf16.mxu0 %v13343_v54  ;;  %v13770_v29 = vadd.f32 %v7103_v5, %v13687_v7  ;;  %v15671_v5 = vld [vmem:[#allocation35_spill] sm:$0xff]  ;;  %v15677_v27 = vld [vmem:[#allocation68_spill] sm:$0xff] }
 0x8af   :  { %15666 = vst [vmem:[#allocation169_spill] sm:$0xff] %v13757_v39  ;;  %v13766_v28 = vadd.f32 %v6824_v33, %v13690_v45  ;;  %v15673_v33 = vld [vmem:[#allocation37_spill] sm:$0xff]  ;;  %v15676_v39 = vld [vmem:[#allocation63_spill] sm:$0xff] }
 0x8b0   :  { %15669 = vst [vmem:[#allocation172_spill] sm:$0xff] %v13770_v29  ;;  %8724 = vmatpush1.bf16.msra.mxu1 %v13355_v20  ;;  %v15675_v29 = vld [vmem:[#allocation67_spill] sm:$0xff] }
 0x8b1   :  { %15668 = vst [vmem:[#allocation171_spill] sm:$0xff] %v13766_v28  ;;  %8683 = vmatpush1.bf16.msra.mxu0 %v13351_v6  ;;  %8725 = vmatprep.subr.bf16.mxu1 %v13360_v12  ;;  %v15674_v28 = vld [vmem:[#allocation62_spill] sm:$0xff] }
 0x8b2   :  { %8684 = vmatprep.subr.bf16.mxu0 %v13357_v63 }
 0x8b4   :  { %8726 = vmatpush1.bf16.msra.mxu1 %v13367_v30  ;;  %v7078_v30 = vadd.f32 %v13670_v52, %v13676_v50 }
 0x8b5   :  { %8685 = vmatpush1.bf16.msra.mxu0 %v13363_v32  ;;  %8727 = vmatprep.subr.bf16.mxu1 %v13372_v13 }
 0x8b6   :  { %8686 = vmatprep.subr.bf16.mxu0 %v13369_v61 }
 0x8b8   :  { %8728 = vmatpush2.bf16.msra.mxu1 %v13379_v55 }
 0x8b9   :  { %8687 = vmatpush2.bf16.msra.mxu0 %v13375_v41  ;;  %8729 = vmatprep.subr.bf16.mxu1 %v13384_v3 }
 0x8ba   :  { %8688 = vmatprep.subr.bf16.mxu0 %v13381_v56 }
 0x8bc   :  { %8730 = vmatpush2.bf16.msra.mxu1 %v13391_v35 }
 0x8bd   :  { %8689 = vmatpush2.bf16.msra.mxu0 %v13387_v36  ;;  %8731 = vmatprep.subr.bf16.mxu1 %v13396_v18  ;;  %v15679_v18 = vld [vmem:[#allocation98_spill] sm:$0xff] }
 0x8be   :  { %8690 = vmatprep.subr.bf16.mxu0 %v13393_v59 }
 0x8c0   :  { %8732 = vmatpush2.bf16.msra.mxu1 %v15670_v23  ;;  %v15681_v23 = vld [vmem:[#allocation101_spill] sm:$0xff] }
 0x8c1   :  { %8691 = vmatpush2.bf16.msra.mxu0 %v13399_v48  ;;  %8733 = vmatprep.subr.bf16.mxu1 %v15672_v17  ;;  %v15680_v48 = vld [vmem:[#allocation99_spill] sm:$0xff]  ;;  %v15683_v17 = vld [vmem:[#allocation28_spill] sm:$0xff] }
 0x8c2   :  { %8692 = vmatprep.subr.bf16.mxu0 %v15671_v5  ;;  %v15682_v5 = vld [vmem:[#allocation102_spill] sm:$0xff] }
 0x8c4   :  { %8734 = vmatpush2.bf16.msra.mxu1 %v15674_v28  ;;  %v15685_v28 = vld [vmem:[#allocation30_spill] sm:$0xff] }
 0x8c5   :  { %8693 = vmatpush2.bf16.msra.mxu0 %v15673_v33  ;;  %8735 = vmatprep.subr.bf16.mxu1 %v15676_v39  ;;  %v15684_v33 = vld [vmem:[#allocation27_spill] sm:$0xff] }
 0x8c6   :  { %8694 = vmatprep.subr.bf16.mxu0 %v15675_v29  ;;  %v15686_v29 = vld [vmem:[#allocation29_spill] sm:$0xff]  ;;  %v15687_v39 = vld [vmem:[#allocation47_spill] sm:$0xff] }
 0x8c8   :  { %8736 = vmatpush2.bf16.msra.mxu1 %v15678_v58  ;;  %v15689_v58 = vld [vmem:[#allocation48_spill] sm:$0xff] }
 0x8c9   :  { %8695 = vmatpush2.bf16.msra.mxu0 %v15677_v27  ;;  %8737 = vmatprep.subr.bf16.mxu1 %v15680_v48  ;;  %v15688_v27 = vld [vmem:[#allocation51_spill] sm:$0xff] }
 0x8ca   :  { %8696 = vmatprep.subr.bf16.mxu0 %v15679_v18  ;;  %v15690_v18 = vld [vmem:[#allocation52_spill] sm:$0xff]  ;;  %v15691_v48 = vld [vmem:[#allocation103_spill] sm:$0xff] }
 0x8cc   :  { %8738 = vmatpush2.bf16.msra.mxu1 %v15682_v5  ;;  %v15692_v5 = vld [vmem:[#allocation104_spill] sm:$0xff] }
 0x8cd   :  { %8697 = vmatpush2.bf16.msra.mxu0 %v15681_v23  ;;  %8739 = vmatprep.subr.bf16.mxu1 %v15684_v33  ;;  %v7429_v23 = vld [vmem:[#allocation11 + $0x6] sm:$0x3] }
 0x8ce   :  { %8698 = vmatprep.subr.bf16.mxu0 %v15683_v17  ;;  %v7150_v17 = vld [vmem:[#allocation11 + $0x4] sm:$0x3] }
 0x8d0   :  { %8740 = vmatpush2.bf16.msra.mxu1 %v15686_v29 }
 0x8d1   :  { %8699 = vmatpush2.bf16.msra.mxu0 %v15685_v28  ;;  %8741 = vmatprep.subr.bf16.mxu1 %v15688_v27  ;;  %v13822_v27 = vrot.slane %v7150_v17, %v15648_v10 }
 0x8d2   :  { %8700 = vmatprep.subr.bf16.mxu0 %v15687_v39  ;;  %v13819_v39 = vrot.slane %v7429_v23, %v15648_v10 }
 0x8d4   :  { %8742 = vmatpush2.bf16.msra.mxu1 %v15690_v18 }
 0x8d5   :  { %8701 = vmatpush2.bf16.msra.mxu0 %v15689_v58  ;;  %8793 = vmatprep.subr.bf16.mxu1 %v15692_v5  ;;  %v13830_v5 = vrot.slane %v7150_v17, %v15649_v15 }
 0x8d6   :  { %8752 = vmatprep.subr.bf16.mxu0 %v15691_v48  ;;  %v13827_v48 = vrot.slane %v7429_v23, %v15649_v15 }
 0x8d7   :  { %v13814_v33 = vpop.f32.mrf.mxu1 }
 0x8d8   :  { %v13812_v59 = vpop.f32.mrf.mxu0 }
 0x8d9   :  { %v13824_v58 = vpop.f32.mrf.mxu1 }
 0x8da   :  { %v13816_v28 = vpop.f32.mrf.mxu0  ;;  %v7638_v50 = vadd.f32 %v13824_v58, %v13827_v48 }
 0x8db   :  { %v7639_v35 = vpop.f32.mrf.mxu1 }
 0x8dc   :  { %v7360_v18 = vpop.f32.mrf.mxu0  ;;  %v13836_v3 = vadd.f32 %v7639_v35, %v13819_v39 }
 0x8dd   :  { %v13833_v29 = vadd.f32 %v7360_v18, %v13822_v27  ;;  %v7641_v56 = vpop.f32.mrf.mxu1 }
 0x8de   :  { %v7362_v36 = vpop.f32.mrf.mxu0  ;;  %15694 = vst [vmem:[#allocation174_spill] sm:$0xff] %v13836_v3  ;;  %v13842_v55 = vadd.f32 %v7641_v56, %v13827_v48 }
 0x8df   :  { %15693 = vst [vmem:[#allocation173_spill] sm:$0xff] %v13833_v29  ;;  %v13839_v10 = vadd.f32 %v7362_v36, %v13830_v5  ;;  %v7645_v15 = vpop.f32.mrf.mxu1 }
 0x8e0   :  { %15696 = vst [vmem:[#allocation176_spill] sm:$0xff] %v13842_v55  ;;  %v7366_v23 = vpop.f32.mrf.mxu0  ;;  %v13848_v18 = vadd.f32 %v7645_v15, %v13819_v39 }
 0x8e1   :  { %15695 = vst [vmem:[#allocation175_spill] sm:$0xff] %v13839_v10  ;;  %v13845_v41 = vadd.f32 %v7366_v23, %v13822_v27  ;;  %v7647_v35 = vpop.f32.mrf.mxu1 }
 0x8e2   :  { %v7368_v17 = vpop.f32.mrf.mxu0  ;;  %15698 = vst [vmem:[#allocation178_spill] sm:$0xff] %v13848_v18  ;;  %v13854_v36 = vadd.f32 %v7647_v35, %v13827_v48 }
 0x8e3   :  { %15697 = vst [vmem:[#allocation177_spill] sm:$0xff] %v13845_v41  ;;  %v13851_v29 = vadd.f32 %v7368_v17, %v13830_v5  ;;  %v7649_v55 = vpop.f32.mrf.mxu1 }
 0x8e4   :  { %v7370_v3 = vpop.f32.mrf.mxu0  ;;  %15700 = vst [vmem:[#allocation180_spill] sm:$0xff] %v13854_v36  ;;  %v13860_v23 = vadd.f32 %v7649_v55, %v13819_v39 }
 0x8e5   :  { %15699 = vst [vmem:[#allocation179_spill] sm:$0xff] %v13851_v29  ;;  %v13857_v56 = vadd.f32 %v7370_v3, %v13822_v27  ;;  %v7651_v15 = vpop.f32.mrf.mxu1 }
 0x8e6   :  { %v7372_v10 = vpop.f32.mrf.mxu0  ;;  %15702 = vst [vmem:[#allocation182_spill] sm:$0xff] %v13860_v23  ;;  %v13866_v17 = vadd.f32 %v7651_v15, %v13827_v48 }
 0x8e7   :  { %15701 = vst [vmem:[#allocation181_spill] sm:$0xff] %v13857_v56  ;;  %v13863_v41 = vadd.f32 %v7372_v10, %v13830_v5  ;;  %v7655_v35 = vpop.f32.mrf.mxu1 }
 0x8e8   :  { %v7376_v18 = vpop.f32.mrf.mxu0  ;;  %15704 = vst [vmem:[#allocation184_spill] sm:$0xff] %v13866_v17  ;;  %v13872_v3 = vadd.f32 %v7655_v35, %v13819_v39 }
 0x8e9   :  { %15703 = vst [vmem:[#allocation183_spill] sm:$0xff] %v13863_v41  ;;  %v13869_v29 = vadd.f32 %v7376_v18, %v13822_v27  ;;  %v7657_v55 = vpop.f32.mrf.mxu1 }
 0x8ea   :  { %v7378_v36 = vpop.f32.mrf.mxu0  ;;  %15706 = vst [vmem:[#allocation186_spill] sm:$0xff] %v13872_v3  ;;  %v13878_v10 = vadd.f32 %v7657_v55, %v13827_v48 }
 0x8eb   :  { %15705 = vst [vmem:[#allocation185_spill] sm:$0xff] %v13869_v29  ;;  %v13875_v56 = vadd.f32 %v7378_v36, %v13830_v5  ;;  %v7659_v15 = vpop.f32.mrf.mxu1 }
 0x8ec   :  { %v7380_v23 = vpop.f32.mrf.mxu0  ;;  %15708 = vst [vmem:[#allocation188_spill] sm:$0xff] %v13878_v10  ;;  %v13884_v18 = vadd.f32 %v7659_v15, %v13819_v39  ;;  %v6799_v15 = vadd.f32 %v13666_v38, %v13681_v4  ;;  %v7357_v4 = vadd.f32 %v13812_v59, %v13822_v27 }
 0x8ed   :  { %15707 = vst [vmem:[#allocation187_spill] sm:$0xff] %v13875_v56  ;;  %v13881_v41 = vadd.f32 %v7380_v23, %v13822_v27  ;;  %v7661_v35 = vpop.f32.mrf.mxu1 }
 0x8ee   :  { %v7382_v17 = vpop.f32.mrf.mxu0  ;;  %15710 = vst [vmem:[#allocation190_spill] sm:$0xff] %v13884_v18  ;;  %v13890_v36 = vadd.f32 %v7661_v35, %v13827_v48 }
 0x8ef   :  { %15709 = vst [vmem:[#allocation189_spill] sm:$0xff] %v13881_v41  ;;  %v13887_v29 = vadd.f32 %v7382_v17, %v13830_v5  ;;  %v7080_v17 = vadd.f32 %v13683_v62, %v13687_v7  ;;  %v7359_v62 = vadd.f32 %v13816_v28, %v13830_v5 }
 0x8f0   :  { %15712 = vst [vmem:[#allocation192_spill] sm:$0xff] %v13890_v36  ;;  %v6801_v36 = vadd.f32 %v13673_v9, %v13690_v45 }
 0x8f1   :  { %15711 = vst [vmem:[#allocation191_spill] sm:$0xff] %v13887_v29 }
 0x917   :  { %v8527_v56 = vpop.f32.mrf.mxu1 }
 0x918   :  { %v8486_v3 = vpop.f32.mrf.mxu0  ;;  %v8618_v18 = vadd.f32 %v8527_v56, %v7078_v30 }
 0x919   :  { %v8529_v55 = vpop.f32.mrf.mxu1  ;;  %v8616_v35 = vadd.f32 %v8486_v3, %v6799_v15 }
 0x91a   :  { %v8488_v13 = vpop.f32.mrf.mxu0  ;;  %v8619_v29 = vadd.f32 %v8529_v55, %v7080_v17  ;;  %v8632_v32 = vmul.f32 0.5, %v8618_v18 }
 0x91b   :  { %v8531_v61 = vpop.f32.mrf.mxu1 }
 0x91c   :  { %v8490_v10 = vpop.f32.mrf.mxu0  ;;  %v8624_v61 = vmul.f32 0.5, %v8616_v35  ;;  %11428 = vtanh.f32 %v8632_v32  ;;  %v7636_v32 = vadd.f32 %v13814_v33, %v13819_v39 }
 0x91d   :  { %v8532_v41 = vpop.f32.mrf.mxu1  ;;  %v8617_v10 = vadd.f32 %v8488_v13, %v6801_v36 }
 0x91e   :  { %v8491_v23 = vpop.f32.mrf.mxu0  ;;  %11430 = vtanh.f32 %v8624_v61 }
 0x91f   :  { %v8633_v23 = vmul.f32 0.5, %v8619_v29  ;;  %v8625_v41 = vmul.f32 0.5, %v8617_v10 }
 0x921   :  { %11432 = vtanh.f32 %v8633_v23 }
 0x922   :  { %11434 = vtanh.f32 %v8625_v41 }
 0x929   :  { %v11429_v59 = vpop.eup %11428 }
 0x92a   :  { %v8636_v36 = vmul.f32 0.5, %v11429_v59 }
 0x92b   :  { %v11431_v3 = vpop.eup %11430 }
 0x92c   :  { %v8628_v17 = vmul.f32 0.5, %v11431_v3  ;;  %v8638_v39 = vadd.f32 0.5, %v8636_v36  ;;  %v15714_v36 = vld [vmem:[#allocation106_spill] sm:$0xff] }
 0x92e   :  { %v11433_v18 = vpop.eup %11432  ;;  %v8630_v61 = vadd.f32 0.5, %v8628_v17  ;;  %v8650_v23 = vmul.f32 0.0, %v8638_v39  ;;  %v15717_v17 = vld [vmem:[#allocation109_spill] sm:$0xff]  ;;  %v15720_v39 = vld [vmem:[#allocation112_spill] sm:$0xff] }
 0x92f   :  { %v11435_v55 = vpop.eup %11434  ;;  %v8637_v35 = vmul.f32 0.5, %v11433_v18  ;;  %v15713_v18 = vld [vmem:[#allocation105_spill] sm:$0xff] }
 0x930   :  { %v8629_v33 = vmul.f32 0.5, %v11435_v55  ;;  %v15715_v55 = vld [vmem:[#allocation107_spill] sm:$0xff] }
 0x931   :  { %v8639_v48 = vadd.f32 0.5, %v8637_v35  ;;  %v15718_v35 = vld [vmem:[#allocation110_spill] sm:$0xff] }
 0x932   :  { %v8631_v41 = vadd.f32 0.5, %v8629_v33  ;;  %v15721_v33 = vld [vmem:[#allocation113_spill] sm:$0xff] }
 0x957   :  { %v8609_v7 = vpop.f32.mrf.mxu1 }
 0x958   :  { %v8568_v38 = vpop.f32.mrf.mxu0  ;;  %v8622_v27 = vadd.f32 %v8609_v7, %v7636_v32 }
 0x959   :  { %v8620_v30 = vadd.f32 %v8568_v38, %v7357_v4  ;;  %v8611_v13 = vpop.f32.mrf.mxu1 }
 0x95a   :  { %v8570_v45 = vpop.f32.mrf.mxu0  ;;  %v8623_v28 = vadd.f32 %v8611_v13, %v7638_v50  ;;  %v8642_v15 = vmul.f32 0.5, %v8622_v27 }
 0x95b   :  { %11436 = vtanh.f32 %v8620_v30  ;;  %v8621_v52 = vadd.f32 %v8570_v45, %v7359_v62  ;;  %v8613_v29 = vpop.f32.mrf.mxu1  ;;  %v8651_v62 = vmul.f32 0.0, %v8639_v48  ;;  %v15723_v48 = vld [vmem:[#allocation115_spill] sm:$0xff] }
 0x95c   :  { %v8572_v9 = vpop.f32.mrf.mxu0  ;;  %v8643_v10 = vmul.f32 0.5, %v8623_v28 }
 0x95d   :  { %11438 = vtanh.f32 %v8621_v52  ;;  %v8614_v5 = vpop.f32.mrf.mxu1 }
 0x95e   :  { %v8573_v56 = vpop.f32.mrf.mxu0  ;;  %11440 = vtanh.f32 %v8642_v15  ;;  %v15716_v15 = vld [vmem:[#allocation108_spill] sm:$0xff] }
 0x95f   :  { %11442 = vtanh.f32 %v8643_v10  ;;  %v15719_v10 = vld [vmem:[#allocation111_spill] sm:$0xff] }
 0x968   :  { %v11437_v58 = vpop.eup %11436 }
 0x969   :  { %v8652_v4 = vmul.f32 %v11437_v58, %v8630_v61  ;;  %v15722_v61 = vld [vmem:[#allocation114_spill] sm:$0xff]  ;;  %v15724_v58 = vld [vmem:[#allocation116_spill] sm:$0xff] }
 0x96a   :  { %v11439_v38 = vpop.eup %11438 }
 0x96b   :  { %v13908_v30 = vadd.f32 %v8652_v4, %v8650_v23  ;;  %v8653_v7 = vmul.f32 %v11439_v38, %v8631_v41  ;;  %v11441_v52 = vpop.eup %11440  ;;  %v15725_v23 = vld [vmem:[#allocation117_spill] sm:$0xff]  ;;  %v15726_v41 = vld [vmem:[#allocation118_spill] sm:$0xff]  ;;  %v15727_v4 = vld [vmem:[#allocation119_spill] sm:$0xff] }
 0x96c   :  { %v11443_v13 = vpop.eup %11442  ;;  %v8646_v32 = vmul.f32 0.5, %v11441_v52  ;;  %v15728_v38 = vld [vmem:[#allocation120_spill] sm:$0xff]  ;;  %v15731_v52 = vld [vmem:[#allocation123_spill] sm:$0xff] }
 0x96d   :  { %11444 = vtanh.f32 %v13908_v30  ;;  %v13911_v45 = vadd.f32 %v8653_v7, %v8651_v62  ;;  %v8647_v9 = vmul.f32 0.5, %v11443_v13  ;;  %v15729_v62 = vld [vmem:[#allocation121_spill] sm:$0xff]  ;;  %v15730_v7 = vld [vmem:[#allocation122_spill] sm:$0xff]  ;;  %v15732_v13 = vld [vmem:[#allocation124_spill] sm:$0xff] }
 0x96e   :  { %v8648_v29 = vadd.f32 0.5, %v8646_v32  ;;  %v15733_v32 = vld [vmem:[#allocation125_spill] sm:$0xff] }
 0x96f   :  { %11446 = vtanh.f32 %v13911_v45  ;;  %v8649_v59 = vadd.f32 0.5, %v8647_v9  ;;  %v15734_v9 = vld [vmem:[#allocation126_spill] sm:$0xff] }
 0x97a   :  { %v11445_v50 = vpop.eup %11444 }
 0x97b   :  { %v8658_v56 = vmul.f32 %v11445_v50, %v8648_v29  ;;  %v15735_v50 = vld [vmem:[#allocation127_spill] sm:$0xff]  ;;  %v15736_v29 = vld [vmem:[#allocation128_spill] sm:$0xff] }
 0x97c   :  { %v11447_v27 = vpop.eup %11446 }
 0x97d   :  { %v8659_v3 = vmul.f32 %v11447_v27, %v8649_v59  ;;  %v13914_v5 = vpack.c.bf16 %v8658_v56, %v8658_v56  ;;  %v15737_v59 = vld [vmem:[#allocation129_spill] sm:$0xff]  ;;  %v15738_v27 = vld [vmem:[#allocation130_spill] sm:$0xff]  ;;  %v15739_v56 = vld [vmem:[#allocation131_spill] sm:$0xff] }
 0x97f   :  { %v8669_v28 = vpack.c.bf16 %v8659_v3, %v8659_v3  ;;  %v15740_v3 = vld [vmem:[#allocation132_spill] sm:$0xff] }
 0x981   :  { %8702 = vmatprep.mubr.bf16.mxu0 %v8669_v28  ;;  %8743 = vmatprep.mubr.bf16.mxu1 %v8669_v28 }
 0x982   :  { %8703 = vmatmul.mubr.bf16.vlgmr.msra.gmra.mxu0 %v13914_v5  ;;  %8744 = vmatmul.mubr.bf16.vlgmr.msra.gmra.mxu1 %v13914_v5 }
 0x983   :  { %8753 = vmatpush1.bf16.msra.mxu0 %v15713_v18  ;;  %8794 = vmatpush1.bf16.msra.mxu1 %v15714_v36 }
 0x984   :  { %8784 = vmatprep.mubr.bf16.mxu0 %v8669_v28  ;;  %8825 = vmatprep.mubr.bf16.mxu1 %v8669_v28  ;;  %v15741_v28 = vld [vmem:[#allocation133_spill] sm:$0xff] }
 0x985   :  { %8754 = vmatprep.subr.bf16.mxu0 %v15715_v55  ;;  %8795 = vmatprep.subr.bf16.mxu1 %v15716_v15 }
 0x987   :  { %8755 = vmatpush1.bf16.msra.mxu0 %v15717_v17  ;;  %8796 = vmatpush1.bf16.msra.mxu1 %v15718_v35 }
 0x988   :  { %8756 = vmatprep.subr.bf16.mxu0 %v15719_v10  ;;  %8797 = vmatprep.subr.bf16.mxu1 %v15720_v39 }
 0x98b   :  { %8757 = vmatpush1.bf16.msra.mxu0 %v15721_v33  ;;  %8798 = vmatpush1.bf16.msra.mxu1 %v15722_v61 }
 0x98c   :  { %8758 = vmatprep.subr.bf16.mxu0 %v15723_v48  ;;  %8799 = vmatprep.subr.bf16.mxu1 %v15724_v58 }
 0x98f   :  { %8759 = vmatpush1.bf16.msra.mxu0 %v15725_v23  ;;  %8800 = vmatpush1.bf16.msra.mxu1 %v15726_v41 }
 0x990   :  { %8760 = vmatprep.subr.bf16.mxu0 %v15727_v4  ;;  %8801 = vmatprep.subr.bf16.mxu1 %v15728_v38 }
 0x993   :  { %8761 = vmatpush1.bf16.msra.mxu0 %v15729_v62  ;;  %8802 = vmatpush1.bf16.msra.mxu1 %v15730_v7 }
 0x994   :  { %8762 = vmatprep.subr.bf16.mxu0 %v15731_v52  ;;  %8803 = vmatprep.subr.bf16.mxu1 %v15732_v13  ;;  %v15742_v52 = vld [vmem:[#allocation134_spill] sm:$0xff]  ;;  %v15743_v13 = vld [vmem:[#allocation135_spill] sm:$0xff] }
 0x997   :  { %8763 = vmatpush1.bf16.msra.mxu0 %v15733_v32  ;;  %8804 = vmatpush1.bf16.msra.mxu1 %v15734_v9  ;;  %v15744_v32 = vld [vmem:[#allocation136_spill] sm:$0xff]  ;;  %v15745_v9 = vld [vmem:[#allocation137_spill] sm:$0xff] }
 0x998   :  { %8764 = vmatprep.subr.bf16.mxu0 %v15735_v50  ;;  %8805 = vmatprep.subr.bf16.mxu1 %v15736_v29  ;;  %v15746_v50 = vld [vmem:[#allocation40_spill] sm:$0xff]  ;;  %v15747_v29 = vld [vmem:[#allocation39_spill] sm:$0xff] }
 0x99b   :  { %8765 = vmatpush1.bf16.msra.mxu0 %v15737_v59  ;;  %8806 = vmatpush1.bf16.msra.mxu1 %v15738_v27  ;;  %v15748_v59 = vld [vmem:[#allocation42_spill] sm:$0xff]  ;;  %v15749_v27 = vld [vmem:[#allocation41_spill] sm:$0xff] }
 0x99c   :  { %8766 = vmatprep.subr.bf16.mxu0 %v15739_v56  ;;  %8807 = vmatprep.subr.bf16.mxu1 %v15740_v3  ;;  %v15750_v56 = vld [vmem:[#allocation70_spill] sm:$0xff]  ;;  %v15751_v3 = vld [vmem:[#allocation75_spill] sm:$0xff] }
 0x99f   :  { %8767 = vmatpush1.bf16.msra.mxu0 %v15741_v28  ;;  %8808 = vmatpush1.bf16.msra.mxu1 %v15742_v52  ;;  %v15752_v28 = vld [vmem:[#allocation71_spill] sm:$0xff]  ;;  %v15753_v52 = vld [vmem:[#allocation76_spill] sm:$0xff] }
 0x9a0   :  { %8768 = vmatprep.subr.bf16.mxu0 %v15743_v13  ;;  %8809 = vmatprep.subr.bf16.mxu1 %v15744_v32  ;;  %v15754_v13 = vld [vmem:[#allocation44_spill] sm:$0xff]  ;;  %v15755_v32 = vld [vmem:[#allocation43_spill] sm:$0xff] }
 0x9a3   :  { %8769 = vmatpush2.bf16.msra.mxu0 %v15745_v9  ;;  %8810 = vmatpush2.bf16.msra.mxu1 %v15746_v50  ;;  %v15756_v9 = vld [vmem:[#allocation46_spill] sm:$0xff]  ;;  %v15757_v50 = vld [vmem:[#allocation45_spill] sm:$0xff] }
 0x9a4   :  { %8770 = vmatprep.subr.bf16.mxu0 %v15747_v29  ;;  %8811 = vmatprep.subr.bf16.mxu1 %v15748_v59  ;;  %v15758_v29 = vld [vmem:[#allocation78_spill] sm:$0xff]  ;;  %v15759_v59 = vld [vmem:[#allocation83_spill] sm:$0xff] }
 0x9a7   :  { %8771 = vmatpush2.bf16.msra.mxu0 %v15749_v27  ;;  %8812 = vmatpush2.bf16.msra.mxu1 %v15750_v56  ;;  %v15760_v27 = vld [vmem:[#allocation79_spill] sm:$0xff] }
 0x9a8   :  { %8772 = vmatprep.subr.bf16.mxu0 %v15751_v3  ;;  %8813 = vmatprep.subr.bf16.mxu1 %v15752_v28 }
 0x9ab   :  { %8773 = vmatpush2.bf16.msra.mxu0 %v15753_v52  ;;  %8814 = vmatpush2.bf16.msra.mxu1 %v15754_v13  ;;  %v15761_v52 = vld [vmem:[#allocation144_spill] sm:$0xff] }
 0x9ac   :  { %8774 = vmatprep.subr.bf16.mxu0 %v15755_v32  ;;  %8815 = vmatprep.subr.bf16.mxu1 %v15756_v9 }
 0x9af   :  { %8775 = vmatpush2.bf16.msra.mxu0 %v15757_v50  ;;  %8816 = vmatpush2.bf16.msra.mxu1 %v15758_v29 }
 0x9b0   :  { %8776 = vmatprep.subr.bf16.mxu0 %v15759_v59  ;;  %8817 = vmatprep.subr.bf16.mxu1 %v15760_v27  ;;  %v15762_v27 = vld [vmem:[#allocation151_spill] sm:$0xff] }
 0x9b3   :  { %8777 = vmatpush2.bf16.msra.mxu0 %v13619_v8  ;;  %8818 = vmatpush2.bf16.msra.mxu1 %v13623_v51  ;;  %v15763_v8 = vld [vmem:[#allocation152_spill] sm:$0xff]  ;;  %v15764_v51 = vld [vmem:[#allocation153_spill] sm:$0xff] }
 0x9b4   :  { %8778 = vmatprep.subr.bf16.mxu0 %v13625_v16  ;;  %8819 = vmatprep.subr.bf16.mxu1 %v15761_v52  ;;  %v15765_v16 = vld [vmem:[#allocation154_spill] sm:$0xff] }
 0x9b5   :  { %v15766_v52 = vld [vmem:[#allocation138_spill] sm:$0xff] }
 0x9b7   :  { %8779 = vmatpush2.bf16.msra.mxu0 %v13631_v60  ;;  %8820 = vmatpush2.bf16.msra.mxu1 %v13635_v40  ;;  %v15767_v60 = vld [vmem:[#allocation139_spill] sm:$0xff] }
 0x9b8   :  { %8780 = vmatprep.subr.bf16.mxu0 %v13637_v24  ;;  %8821 = vmatprep.subr.bf16.mxu1 %v13640_v43  ;;  %v15768_v43 = vld [vmem:[#allocation140_spill] sm:$0xff] }
 0x9bb   :  { %8781 = vmatpush2.bf16.msra.mxu0 %v13643_v49  ;;  %8822 = vmatpush2.bf16.msra.mxu1 %v13647_v26  ;;  %v15769_v49 = vld [vmem:[#allocation141_spill] sm:$0xff]  ;;  %v15770_v26 = vld [vmem:[#allocation142_spill] sm:$0xff] }
 0x9bc   :  { %8782 = vmatprep.subr.bf16.mxu0 %v15762_v27  ;;  %8823 = vmatprep.subr.bf16.mxu1 %v15763_v8  ;;  %v15771_v27 = vld [vmem:[#allocation143_spill] sm:$0xff]  ;;  %v15772_v8 = vld [vmem:[#allocation32_spill] sm:$0xff] }
 0x9bf   :  { %8783 = vmatpush2.bf16.msra.mxu0 %v15764_v51  ;;  %8824 = vmatpush2.bf16.msra.mxu1 %v15765_v16 }
 0x9c0   :  { %8888 = vmatprep.subr.bf16.mxu0 %v15766_v52  ;;  %8929 = vmatprep.subr.bf16.mxu1 %v15767_v60 }
 0x9c2   :  { %8785 = vmatmul.mubr.bf16.vlgmr.msra.gmra.mxu0 %v13914_v5  ;;  %8826 = vmatmul.mubr.bf16.vlgmr.msra.gmra.mxu1 %v13914_v5  ;;  %v15773_v5 = vld [vmem:[#allocation86_spill] sm:$0xff] }
 0x9c3   :  { %8889 = vmatpush1.bf16.msra.mxu0 %v15768_v43  ;;  %8930 = vmatpush1.bf16.msra.mxu1 %v15769_v49 }
 0x9c4   :  { %8890 = vmatprep.subr.bf16.mxu0 %v15770_v26  ;;  %8931 = vmatprep.subr.bf16.mxu1 %v15771_v27 }
 0x9c7   :  { %8891 = vmatpush1.bf16.msra.mxu0 %v15772_v8  ;;  %8932 = vmatpush1.bf16.msra.mxu1 %v13285_v0 }
 0x9c8   :  { %8892 = vmatprep.subr.bf16.mxu0 %v13287_v22  ;;  %8933 = vmatprep.subr.bf16.mxu1 %v13290_v53 }
 0x9cb   :  { %8893 = vmatpush1.bf16.msra.mxu0 %v13295_v2  ;;  %8934 = vmatpush1.bf16.msra.mxu1 %v13299_v14 }
 0x9cc   :  { %8894 = vmatprep.subr.bf16.mxu0 %v13301_v21  ;;  %8935 = vmatprep.subr.bf16.mxu1 %v13304_v11 }
 0x9cf   :  { %8895 = vmatpush1.bf16.msra.mxu0 %v13308_v44  ;;  %8936 = vmatpush1.bf16.msra.mxu1 %v13313_v46  ;;  %v15810_v46 = vld [vmem:[#allocation25_spill] sm:$0xff]  ;;  %v15811_v44 = vld [vmem:[#allocation156_spill] sm:$0xff] }
 0x9d0   :  { %8896 = vmatprep.subr.bf16.mxu0 %v13315_v31  ;;  %8937 = vmatprep.subr.bf16.mxu1 %v13318_v57  ;;  %v15809_v31 = vld [vmem:[#allocation26_spill] sm:$0xff] }
 0x9d3   :  { %8897 = vmatpush1.bf16.msra.mxu0 %v13323_v34  ;;  %8938 = vmatpush1.bf16.msra.mxu1 %v13327_v47 }
 0x9d4   :  { %8898 = vmatprep.subr.bf16.mxu0 %v13329_v25  ;;  %8939 = vmatprep.subr.bf16.mxu1 %v13332_v1  ;;  %v15774_v25 = vld [vmem:[#allocation85_spill] sm:$0xff]  ;;  %v15775_v1 = vld [vmem:[#allocation88_spill] sm:$0xff] }
 0x9d7   :  { %8899 = vmatpush1.bf16.msra.mxu0 %v13336_v19  ;;  %8940 = vmatpush1.bf16.msra.mxu1 %v13341_v42  ;;  %v15776_v19 = vld [vmem:[#allocation87_spill] sm:$0xff]  ;;  %v15777_v42 = vld [vmem:[#allocation90_spill] sm:$0xff] }
 0x9d8   :  { %8900 = vmatprep.subr.bf16.mxu0 %v13343_v54  ;;  %8941 = vmatprep.subr.bf16.mxu1 %v13346_v37  ;;  %v15778_v54 = vld [vmem:[#allocation89_spill] sm:$0xff]  ;;  %v15779_v37 = vld [vmem:[#allocation92_spill] sm:$0xff] }
 0x9db   :  { %8901 = vmatpush1.bf16.msra.mxu0 %v13351_v6  ;;  %8942 = vmatpush1.bf16.msra.mxu1 %v13355_v20  ;;  %v15780_v6 = vld [vmem:[#allocation91_spill] sm:$0xff]  ;;  %v15781_v20 = vld [vmem:[#allocation94_spill] sm:$0xff] }
 0x9dc   :  { %8902 = vmatprep.subr.bf16.mxu0 %v13357_v63  ;;  %8943 = vmatprep.subr.bf16.mxu1 %v13360_v12  ;;  %v15782_v63 = vld [vmem:[#allocation93_spill] sm:$0xff]  ;;  %v15783_v12 = vld [vmem:[#allocation96_spill] sm:$0xff] }
 0x9df   :  { %8903 = vmatpush1.bf16.msra.mxu0 %v15773_v5  ;;  %8944 = vmatpush1.bf16.msra.mxu1 %v15774_v25  ;;  %v15784_v5 = vld [vmem:[#allocation95_spill] sm:$0xff]  ;;  %v15785_v25 = vld [vmem:[#allocation97_spill] sm:$0xff] }
 0x9e0   :  { %8904 = vmatprep.subr.bf16.mxu0 %v15775_v1  ;;  %8945 = vmatprep.subr.bf16.mxu1 %v15776_v19  ;;  %v15786_v1 = vld [vmem:[#allocation36_spill] sm:$0xff]  ;;  %v15787_v19 = vld [vmem:[#allocation35_spill] sm:$0xff] }
 0x9e3   :  { %8905 = vmatpush2.bf16.msra.mxu0 %v15777_v42  ;;  %8946 = vmatpush2.bf16.msra.mxu1 %v15778_v54  ;;  %v15788_v42 = vld [vmem:[#allocation38_spill] sm:$0xff]  ;;  %v15789_v54 = vld [vmem:[#allocation37_spill] sm:$0xff] }
 0x9e4   :  { %8906 = vmatprep.subr.bf16.mxu0 %v15779_v37  ;;  %8947 = vmatprep.subr.bf16.mxu1 %v15780_v6  ;;  %v15790_v37 = vld [vmem:[#allocation62_spill] sm:$0xff]  ;;  %v15791_v6 = vld [vmem:[#allocation67_spill] sm:$0xff] }
 0x9e7   :  { %8907 = vmatpush2.bf16.msra.mxu0 %v15781_v20  ;;  %8948 = vmatpush2.bf16.msra.mxu1 %v15782_v63  ;;  %v15792_v20 = vld [vmem:[#allocation63_spill] sm:$0xff]  ;;  %v15793_v63 = vld [vmem:[#allocation68_spill] sm:$0xff] }
 0x9e8   :  { %8908 = vmatprep.subr.bf16.mxu0 %v15783_v12  ;;  %8949 = vmatprep.subr.bf16.mxu1 %v15784_v5  ;;  %v15794_v12 = vld [vmem:[#allocation100_spill] sm:$0xff]  ;;  %v15795_v5 = vld [vmem:[#allocation98_spill] sm:$0xff] }
 0x9eb   :  { %8909 = vmatpush2.bf16.msra.mxu0 %v15785_v25  ;;  %8950 = vmatpush2.bf16.msra.mxu1 %v15786_v1  ;;  %v15796_v25 = vld [vmem:[#allocation99_spill] sm:$0xff]  ;;  %v15797_v1 = vld [vmem:[#allocation101_spill] sm:$0xff] }
 0x9ec   :  { %8910 = vmatprep.subr.bf16.mxu0 %v15787_v19  ;;  %8951 = vmatprep.subr.bf16.mxu1 %v15788_v42  ;;  %v15798_v19 = vld [vmem:[#allocation102_spill] sm:$0xff]  ;;  %v15799_v42 = vld [vmem:[#allocation28_spill] sm:$0xff] }
 0x9ef   :  { %8911 = vmatpush2.bf16.msra.mxu0 %v15789_v54  ;;  %8952 = vmatpush2.bf16.msra.mxu1 %v15790_v37  ;;  %v15800_v54 = vld [vmem:[#allocation27_spill] sm:$0xff]  ;;  %v15801_v37 = vld [vmem:[#allocation30_spill] sm:$0xff] }
 0x9f0   :  { %8912 = vmatprep.subr.bf16.mxu0 %v15791_v6  ;;  %8953 = vmatprep.subr.bf16.mxu1 %v15792_v20  ;;  %v15802_v6 = vld [vmem:[#allocation29_spill] sm:$0xff]  ;;  %v15803_v20 = vld [vmem:[#allocation47_spill] sm:$0xff] }
 0x9f3   :  { %8913 = vmatpush2.bf16.msra.mxu0 %v15793_v63  ;;  %8954 = vmatpush2.bf16.msra.mxu1 %v15794_v12  ;;  %v15804_v63 = vld [vmem:[#allocation51_spill] sm:$0xff]  ;;  %v15805_v12 = vld [vmem:[#allocation48_spill] sm:$0xff] }
 0x9f4   :  { %8914 = vmatprep.subr.bf16.mxu0 %v15795_v5  ;;  %8955 = vmatprep.subr.bf16.mxu1 %v15796_v25  ;;  %v15806_v5 = vld [vmem:[#allocation52_spill] sm:$0xff]  ;;  %v15807_v25 = vld [vmem:[#allocation103_spill] sm:$0xff] }
 0x9f7   :  { %8915 = vmatpush2.bf16.msra.mxu0 %v15797_v1  ;;  %8956 = vmatpush2.bf16.msra.mxu1 %v15798_v19  ;;  %v15808_v1 = vld [vmem:[#allocation104_spill] sm:$0xff] }
 0x9f8   :  { %8916 = vmatprep.subr.bf16.mxu0 %v15799_v42  ;;  %8957 = vmatprep.subr.bf16.mxu1 %v15800_v54 }
 0x9fb   :  { %8917 = vmatpush2.bf16.msra.mxu0 %v15801_v37  ;;  %8958 = vmatpush2.bf16.msra.mxu1 %v15802_v6 }
 0x9fc   :  { %8918 = vmatprep.subr.bf16.mxu0 %v15803_v20  ;;  %8959 = vmatprep.subr.bf16.mxu1 %v15804_v63 }
 0x9ff   :  { %8919 = vmatpush2.bf16.msra.mxu0 %v15805_v12  ;;  %8960 = vmatpush2.bf16.msra.mxu1 %v15806_v5  ;;  %v15812_v5 = vld [vmem:[#allocation155_spill] sm:$0xff] }
 0xa00   :  { %8970 = vmatprep.subr.bf16.mxu0 %v15807_v25  ;;  %9011 = vmatprep.subr.bf16.mxu1 %v15808_v1 }
 0xa42   :  { %v8704_v19 = vpop.f32.mrf.mxu0  ;;  %v8745_v42 = vpop.f32.mrf.mxu1 }
 0xa43   :  { %v8836_v20 = vadd.f32 %v8745_v42, %v15809_v31  ;;  %v8834_v63 = vadd.f32 %v8704_v19, %v15810_v46  ;;  %v15814_v46 = vld [vmem:[#allocation175_spill] sm:$0xff] }
 0xa44   :  { %v8706_v47 = vpop.f32.mrf.mxu0  ;;  %v8747_v54 = vpop.f32.mrf.mxu1 }
 0xa45   :  { %v8837_v12 = vadd.f32 %v8747_v54, %v15811_v44  ;;  %v8850_v11 = vmul.f32 0.5, %v8836_v20  ;;  %v8835_v21 = vadd.f32 %v8706_v47, %v15812_v5  ;;  %v8842_v25 = vmul.f32 0.5, %v8834_v63 }
 0xa46   :  { %v8708_v34 = vpop.f32.mrf.mxu0  ;;  %v8749_v37 = vpop.f32.mrf.mxu1 }
 0xa47   :  { %v8851_v14 = vmul.f32 0.5, %v8837_v12  ;;  %11448 = vtanh.f32 %v8850_v11  ;;  %v8843_v1 = vmul.f32 0.5, %v8835_v21  ;;  %v15815_v11 = vld [vmem:[#allocation174_spill] sm:$0xff] }
 0xa48   :  { %v8709_v57 = vpop.f32.mrf.mxu0  ;;  %v8750_v6 = vpop.f32.mrf.mxu1  ;;  %11450 = vtanh.f32 %v8842_v25 }
 0xa49   :  { %11452 = vtanh.f32 %v8851_v14  ;;  %v15813_v57 = vld [vmem:[#allocation173_spill] sm:$0xff]  ;;  %v15816_v14 = vld [vmem:[#allocation176_spill] sm:$0xff] }
 0xa4a   :  { %11454 = vtanh.f32 %v8843_v1 }
 0xa54   :  { %v11449_v54 = vpop.eup %11448 }
 0xa55   :  { %v11451_v25 = vpop.eup %11450  ;;  %v8854_v12 = vmul.f32 0.5, %v11449_v54 }
 0xa56   :  { %v11453_v63 = vpop.eup %11452 }
 0xa57   :  { %v11455_v5 = vpop.eup %11454  ;;  %v8855_v53 = vmul.f32 0.5, %v11453_v63  ;;  %v8856_v22 = vadd.f32 0.5, %v8854_v12 }
 0xa82   :  { %v8786_v34 = vpop.f32.mrf.mxu0  ;;  %v8827_v37 = vpop.f32.mrf.mxu1 }
 0xa83   :  { %v8838_v6 = vadd.f32 %v8786_v34, %v15813_v57  ;;  %v8840_v21 = vadd.f32 %v8827_v37, %v15815_v11  ;;  %v8846_v34 = vmul.f32 0.5, %v11451_v25 }
 0xa84   :  { %v8788_v2 = vpop.f32.mrf.mxu0  ;;  %v8829_v31 = vpop.f32.mrf.mxu1 }
 0xa85   :  { %11456 = vtanh.f32 %v8838_v6  ;;  %v8839_v19 = vadd.f32 %v8788_v2, %v15814_v46  ;;  %v8841_v1 = vadd.f32 %v8829_v31, %v15816_v14  ;;  %v8860_v57 = vmul.f32 0.5, %v8840_v21 }
 0xa86   :  { %v8790_v44 = vpop.f32.mrf.mxu0  ;;  %v8831_v42 = vpop.f32.mrf.mxu1  ;;  %v8847_v2 = vmul.f32 0.5, %v11455_v5  ;;  %v8848_v46 = vadd.f32 0.5, %v8846_v34 }
 0xa87   :  { %11458 = vtanh.f32 %v8839_v19  ;;  %v8861_v6 = vmul.f32 0.5, %v8841_v1  ;;  %v8857_v19 = vadd.f32 0.5, %v8855_v53  ;;  %v8868_v42 = vmul.f32 %v8856_v22, %v13908_v30 }
 0xa88   :  { %v8791_v47 = vpop.f32.mrf.mxu0  ;;  %v8832_v20 = vpop.f32.mrf.mxu1  ;;  %11460 = vtanh.f32 %v8860_v57 }
 0xa89   :  { %11462 = vtanh.f32 %v8861_v6  ;;  %v8849_v47 = vadd.f32 0.5, %v8847_v2  ;;  %v8869_v54 = vmul.f32 %v8857_v19, %v13911_v45  ;;  %v15817_v45 = vld [vmem:[#allocation123_spill] sm:$0xff]  ;;  %v15818_v2 = vld [vmem:[#allocation124_spill] sm:$0xff] }
 0xa8a   :  { %v15821_v19 = vld [vmem:[#allocation127_spill] sm:$0xff] }
 0xa92   :  { %v11457_v44 = vpop.eup %11456 }
 0xa93   :  { %v8870_v37 = vmul.f32 %v11457_v44, %v8848_v46  ;;  %v15819_v46 = vld [vmem:[#allocation125_spill] sm:$0xff]  ;;  %v15820_v44 = vld [vmem:[#allocation126_spill] sm:$0xff] }
 0xa94   :  { %v11459_v20 = vpop.eup %11458 }
 0xa95   :  { %v14057_v31 = vadd.f32 %v8870_v37, %v8868_v42  ;;  %v8871_v11 = vmul.f32 %v11459_v20, %v8849_v47  ;;  %v11461_v25 = vpop.eup %11460  ;;  %v15822_v42 = vld [vmem:[#allocation128_spill] sm:$0xff]  ;;  %v15823_v37 = vld [vmem:[#allocation129_spill] sm:$0xff]  ;;  %v15824_v47 = vld [vmem:[#allocation130_spill] sm:$0xff] }
 0xa96   :  { %v11463_v14 = vpop.eup %11462  ;;  %v8864_v53 = vmul.f32 0.5, %v11461_v25  ;;  %v15825_v20 = vld [vmem:[#allocation131_spill] sm:$0xff]  ;;  %v15828_v25 = vld [vmem:[#allocation134_spill] sm:$0xff] }
 0xa97   :  { %11464 = vtanh.f32 %v14057_v31  ;;  %v14061_v21 = vadd.f32 %v8871_v11, %v8869_v54  ;;  %v8865_v1 = vmul.f32 0.5, %v11463_v14  ;;  %v15826_v54 = vld [vmem:[#allocation132_spill] sm:$0xff]  ;;  %v15827_v11 = vld [vmem:[#allocation133_spill] sm:$0xff]  ;;  %v15829_v14 = vld [vmem:[#allocation135_spill] sm:$0xff] }
 0xa98   :  { %v8866_v22 = vadd.f32 0.5, %v8864_v53  ;;  %v15830_v53 = vld [vmem:[#allocation136_spill] sm:$0xff] }
 0xa99   :  { %11466 = vtanh.f32 %v14061_v21  ;;  %v8867_v30 = vadd.f32 0.5, %v8865_v1  ;;  %v15831_v1 = vld [vmem:[#allocation137_spill] sm:$0xff] }
 0xaa4   :  { %v11465_v63 = vpop.eup %11464 }
 0xaa5   :  { %v8876_v5 = vmul.f32 %v11465_v63, %v8866_v22  ;;  %v15832_v63 = vld [vmem:[#allocation40_spill] sm:$0xff]  ;;  %v15833_v22 = vld [vmem:[#allocation39_spill] sm:$0xff] }
 0xaa6   :  { %v11467_v12 = vpop.eup %11466 }
 0xaa7   :  { %v8877_v34 = vmul.f32 %v11467_v12, %v8867_v30  ;;  %v14064_v6 = vpack.c.bf16 %v8876_v5, %v8876_v5  ;;  %v15834_v30 = vld [vmem:[#allocation42_spill] sm:$0xff]  ;;  %v15835_v12 = vld [vmem:[#allocation41_spill] sm:$0xff]  ;;  %v15836_v5 = vld [vmem:[#allocation76_spill] sm:$0xff] }
 0xaa9   :  { %v8887_v57 = vpack.c.bf16 %v8877_v34, %v8877_v34  ;;  %v15837_v34 = vld [vmem:[#allocation79_spill] sm:$0xff] }
 0xaab   :  { %8920 = vmatprep.mubr.bf16.mxu0 %v8887_v57  ;;  %8961 = vmatprep.mubr.bf16.mxu1 %v8887_v57 }
 0xaac   :  { %8921 = vmatmul.mubr.bf16.vlgmr.msra.gmra.mxu0 %v14064_v6  ;;  %8962 = vmatmul.mubr.bf16.vlgmr.msra.gmra.mxu1 %v14064_v6 }
 0xaad   :  { %8971 = vmatpush1.bf16.msra.mxu0 %v15713_v18  ;;  %9012 = vmatpush1.bf16.msra.mxu1 %v15714_v36 }
 0xaae   :  { %9002 = vmatprep.mubr.bf16.mxu0 %v8887_v57  ;;  %9043 = vmatprep.mubr.bf16.mxu1 %v8887_v57  ;;  %v15838_v57 = vld [vmem:[#allocation84_spill] sm:$0xff] }
 0xaaf   :  { %8972 = vmatprep.subr.bf16.mxu0 %v15715_v55  ;;  %9013 = vmatprep.subr.bf16.mxu1 %v15716_v15 }
 0xab1   :  { %8973 = vmatpush1.bf16.msra.mxu0 %v15717_v17  ;;  %9014 = vmatpush1.bf16.msra.mxu1 %v15718_v35 }
 0xab2   :  { %8974 = vmatprep.subr.bf16.mxu0 %v15719_v10  ;;  %9015 = vmatprep.subr.bf16.mxu1 %v15720_v39 }
 0xab5   :  { %8975 = vmatpush1.bf16.msra.mxu0 %v15721_v33  ;;  %9016 = vmatpush1.bf16.msra.mxu1 %v15722_v61 }
 0xab6   :  { %8976 = vmatprep.subr.bf16.mxu0 %v15723_v48  ;;  %9017 = vmatprep.subr.bf16.mxu1 %v15724_v58 }
 0xab9   :  { %8977 = vmatpush1.bf16.msra.mxu0 %v15725_v23  ;;  %9018 = vmatpush1.bf16.msra.mxu1 %v15726_v41 }
 0xaba   :  { %8978 = vmatprep.subr.bf16.mxu0 %v15727_v4  ;;  %9019 = vmatprep.subr.bf16.mxu1 %v15728_v38 }
 0xabd   :  { %8979 = vmatpush1.bf16.msra.mxu0 %v15729_v62  ;;  %9020 = vmatpush1.bf16.msra.mxu1 %v15730_v7 }
 0xabe   :  { %8980 = vmatprep.subr.bf16.mxu0 %v15817_v45  ;;  %9021 = vmatprep.subr.bf16.mxu1 %v15818_v2 }
 0xac1   :  { %8981 = vmatpush1.bf16.msra.mxu0 %v15819_v46  ;;  %9022 = vmatpush1.bf16.msra.mxu1 %v15820_v44 }
 0xac2   :  { %8982 = vmatprep.subr.bf16.mxu0 %v15821_v19  ;;  %9023 = vmatprep.subr.bf16.mxu1 %v15822_v42 }
 0xac5   :  { %8983 = vmatpush1.bf16.msra.mxu0 %v15823_v37  ;;  %9024 = vmatpush1.bf16.msra.mxu1 %v15824_v47 }
 0xac6   :  { %8984 = vmatprep.subr.bf16.mxu0 %v15825_v20  ;;  %9025 = vmatprep.subr.bf16.mxu1 %v15826_v54 }
 0xac9   :  { %8985 = vmatpush1.bf16.msra.mxu0 %v15827_v11  ;;  %9026 = vmatpush1.bf16.msra.mxu1 %v15828_v25 }
 0xaca   :  { %8986 = vmatprep.subr.bf16.mxu0 %v15829_v14  ;;  %9027 = vmatprep.subr.bf16.mxu1 %v15830_v53 }
 0xacd   :  { %8987 = vmatpush2.bf16.msra.mxu0 %v15831_v1  ;;  %9028 = vmatpush2.bf16.msra.mxu1 %v15832_v63 }
 0xace   :  { %8988 = vmatprep.subr.bf16.mxu0 %v15833_v22  ;;  %9029 = vmatprep.subr.bf16.mxu1 %v15834_v30 }
 0xad1   :  { %8989 = vmatpush2.bf16.msra.mxu0 %v15835_v12  ;;  %9030 = vmatpush2.bf16.msra.mxu1 %v15750_v56 }
 0xad2   :  { %8990 = vmatprep.subr.bf16.mxu0 %v15751_v3  ;;  %9031 = vmatprep.subr.bf16.mxu1 %v15752_v28  ;;  %v15839_v3 = vld [vmem:[#allocation50_spill] sm:$0xff]  ;;  %v15840_v28 = vld [vmem:[#allocation49_spill] sm:$0xff] }
 0xad5   :  { %8991 = vmatpush2.bf16.msra.mxu0 %v15836_v5  ;;  %9032 = vmatpush2.bf16.msra.mxu1 %v15754_v13  ;;  %v15841_v5 = vld [vmem:[#allocation144_spill] sm:$0xff]  ;;  %v15842_v13 = vld [vmem:[#allocation145_spill] sm:$0xff] }
 0xad6   :  { %8992 = vmatprep.subr.bf16.mxu0 %v15755_v32  ;;  %9033 = vmatprep.subr.bf16.mxu1 %v15756_v9 }
 0xad9   :  { %8993 = vmatpush2.bf16.msra.mxu0 %v15757_v50  ;;  %9034 = vmatpush2.bf16.msra.mxu1 %v15758_v29  ;;  %v15843_v50 = vld [vmem:[#allocation148_spill] sm:$0xff]  ;;  %v15844_v29 = vld [vmem:[#allocation149_spill] sm:$0xff] }
 0xada   :  { %8994 = vmatprep.subr.bf16.mxu0 %v15759_v59  ;;  %9035 = vmatprep.subr.bf16.mxu1 %v15837_v34  ;;  %v15845_v59 = vld [vmem:[#allocation150_spill] sm:$0xff]  ;;  %v15846_v34 = vld [vmem:[#allocation151_spill] sm:$0xff] }
 0xadd   :  { %8995 = vmatpush2.bf16.msra.mxu0 %v15838_v57  ;;  %9036 = vmatpush2.bf16.msra.mxu1 %v15839_v3  ;;  %v15847_v57 = vld [vmem:[#allocation152_spill] sm:$0xff] }
 0xade   :  { %8996 = vmatprep.subr.bf16.mxu0 %v15840_v28  ;;  %9037 = vmatprep.subr.bf16.mxu1 %v15841_v5 }
 0xae1   :  { %8997 = vmatpush2.bf16.msra.mxu0 %v15842_v13  ;;  %9038 = vmatpush2.bf16.msra.mxu1 %v13635_v40 }
 0xae2   :  { %8998 = vmatprep.subr.bf16.mxu0 %v13637_v24  ;;  %9039 = vmatprep.subr.bf16.mxu1 %v15843_v50  ;;  %v15907_v50 = vld [vmem:[#allocation157_spill] sm:$0xff]  ;;  %v15908_v24 = vld [vmem:[#allocation160_spill] sm:$0xff] }
 0xae5   :  { %8999 = vmatpush2.bf16.msra.mxu0 %v15844_v29  ;;  %9040 = vmatpush2.bf16.msra.mxu1 %v15845_v59  ;;  %v15906_v29 = vld [vmem:[#allocation158_spill] sm:$0xff] }
 0xae6   :  { %9000 = vmatprep.subr.bf16.mxu0 %v15846_v34  ;;  %9041 = vmatprep.subr.bf16.mxu1 %v15847_v57 }
 0xae9   :  { %9001 = vmatpush2.bf16.msra.mxu0 %v15764_v51  ;;  %9042 = vmatpush2.bf16.msra.mxu1 %v15765_v16  ;;  %v15848_v16 = vld [vmem:[#allocation34_spill] sm:$0xff]  ;;  %v15851_v51 = vld [vmem:[#allocation59_spill] sm:$0xff] }
 0xaea   :  { %9106 = vmatprep.subr.bf16.mxu0 %v15766_v52  ;;  %9147 = vmatprep.subr.bf16.mxu1 %v15767_v60  ;;  %v15849_v52 = vld [vmem:[#allocation33_spill] sm:$0xff]  ;;  %v15850_v60 = vld [vmem:[#allocation54_spill] sm:$0xff] }
 0xaec   :  { %9003 = vmatmul.mubr.bf16.vlgmr.msra.gmra.mxu0 %v14064_v6  ;;  %9044 = vmatmul.mubr.bf16.vlgmr.msra.gmra.mxu1 %v14064_v6  ;;  %v15852_v6 = vld [vmem:[#allocation55_spill] sm:$0xff] }
 0xaed   :  { %9107 = vmatpush1.bf16.msra.mxu0 %v15768_v43  ;;  %9148 = vmatpush1.bf16.msra.mxu1 %v15769_v49  ;;  %v15853_v43 = vld [vmem:[#allocation60_spill] sm:$0xff] }
 0xaee   :  { %9108 = vmatprep.subr.bf16.mxu0 %v15770_v26  ;;  %9149 = vmatprep.subr.bf16.mxu1 %v15771_v27  ;;  %v15854_v49 = vld [vmem:[#allocation56_spill] sm:$0xff]  ;;  %v15855_v26 = vld [vmem:[#allocation53_spill] sm:$0xff]  ;;  %v15856_v27 = vld [vmem:[#allocation58_spill] sm:$0xff] }
 0xaf1   :  { %9109 = vmatpush1.bf16.msra.mxu0 %v15772_v8  ;;  %9150 = vmatpush1.bf16.msra.mxu1 %v13285_v0  ;;  %v15857_v8 = vld [vmem:[#allocation57_spill] sm:$0xff]  ;;  %v15858_v0 = vld [vmem:[#allocation64_spill] sm:$0xff] }
 0xaf2   :  { %9110 = vmatprep.subr.bf16.mxu0 %v15848_v16  ;;  %9151 = vmatprep.subr.bf16.mxu1 %v15849_v52  ;;  %v15859_v16 = vld [vmem:[#allocation61_spill] sm:$0xff]  ;;  %v15860_v52 = vld [vmem:[#allocation66_spill] sm:$0xff] }
 0xaf5   :  { %9111 = vmatpush1.bf16.msra.mxu0 %v15850_v60  ;;  %9152 = vmatpush1.bf16.msra.mxu1 %v15851_v51  ;;  %v15861_v60 = vld [vmem:[#allocation65_spill] sm:$0xff]  ;;  %v15862_v51 = vld [vmem:[#allocation72_spill] sm:$0xff] }
 0xaf6   :  { %9112 = vmatprep.subr.bf16.mxu0 %v15852_v6  ;;  %9153 = vmatprep.subr.bf16.mxu1 %v15853_v43  ;;  %v15863_v6 = vld [vmem:[#allocation69_spill] sm:$0xff]  ;;  %v15864_v43 = vld [vmem:[#allocation74_spill] sm:$0xff] }
 0xaf9   :  { %9113 = vmatpush1.bf16.msra.mxu0 %v15854_v49  ;;  %9154 = vmatpush1.bf16.msra.mxu1 %v15855_v26  ;;  %v15865_v49 = vld [vmem:[#allocation73_spill] sm:$0xff]  ;;  %v15866_v26 = vld [vmem:[#allocation80_spill] sm:$0xff] }
 0xafa   :  { %9114 = vmatprep.subr.bf16.mxu0 %v15856_v27  ;;  %9155 = vmatprep.subr.bf16.mxu1 %v15857_v8  ;;  %v15867_v27 = vld [vmem:[#allocation77_spill] sm:$0xff]  ;;  %v15868_v8 = vld [vmem:[#allocation82_spill] sm:$0xff] }
 0xafd   :  { %9115 = vmatpush1.bf16.msra.mxu0 %v15858_v0  ;;  %9156 = vmatpush1.bf16.msra.mxu1 %v15859_v16  ;;  %v15869_v0 = vld [vmem:[#allocation81_spill] sm:$0xff]  ;;  %v15870_v16 = vld [vmem:[#allocation86_spill] sm:$0xff] }
 0xafe   :  { %9116 = vmatprep.subr.bf16.mxu0 %v15860_v52  ;;  %9157 = vmatprep.subr.bf16.mxu1 %v15861_v60  ;;  %v15871_v52 = vld [vmem:[#allocation85_spill] sm:$0xff]  ;;  %v15872_v60 = vld [vmem:[#allocation88_spill] sm:$0xff] }
 0xb01   :  { %9117 = vmatpush1.bf16.msra.mxu0 %v15862_v51  ;;  %9158 = vmatpush1.bf16.msra.mxu1 %v15863_v6  ;;  %v15873_v51 = vld [vmem:[#allocation87_spill] sm:$0xff]  ;;  %v15874_v6 = vld [vmem:[#allocation90_spill] sm:$0xff] }
 0xb02   :  { %9118 = vmatprep.subr.bf16.mxu0 %v15864_v43  ;;  %9159 = vmatprep.subr.bf16.mxu1 %v15865_v49  ;;  %v15875_v43 = vld [vmem:[#allocation89_spill] sm:$0xff]  ;;  %v15876_v49 = vld [vmem:[#allocation92_spill] sm:$0xff] }
 0xb05   :  { %9119 = vmatpush1.bf16.msra.mxu0 %v15866_v26  ;;  %9160 = vmatpush1.bf16.msra.mxu1 %v15867_v27  ;;  %v15877_v26 = vld [vmem:[#allocation91_spill] sm:$0xff]  ;;  %v15878_v27 = vld [vmem:[#allocation94_spill] sm:$0xff] }
 0xb06   :  { %9120 = vmatprep.subr.bf16.mxu0 %v15868_v8  ;;  %9161 = vmatprep.subr.bf16.mxu1 %v15869_v0  ;;  %v15879_v8 = vld [vmem:[#allocation93_spill] sm:$0xff]  ;;  %v15880_v0 = vld [vmem:[#allocation96_spill] sm:$0xff] }
 0xb09   :  { %9121 = vmatpush1.bf16.msra.mxu0 %v15870_v16  ;;  %9162 = vmatpush1.bf16.msra.mxu1 %v15871_v52  ;;  %v15881_v16 = vld [vmem:[#allocation95_spill] sm:$0xff]  ;;  %v15882_v52 = vld [vmem:[#allocation97_spill] sm:$0xff] }
 0xb0a   :  { %9122 = vmatprep.subr.bf16.mxu0 %v15872_v60  ;;  %9163 = vmatprep.subr.bf16.mxu1 %v15873_v51  ;;  %v15883_v60 = vld [vmem:[#allocation36_spill] sm:$0xff]  ;;  %v15884_v51 = vld [vmem:[#allocation35_spill] sm:$0xff] }
 0xb0d   :  { %9123 = vmatpush2.bf16.msra.mxu0 %v15874_v6  ;;  %9164 = vmatpush2.bf16.msra.mxu1 %v15875_v43  ;;  %v15885_v6 = vld [vmem:[#allocation38_spill] sm:$0xff]  ;;  %v15886_v43 = vld [vmem:[#allocation37_spill] sm:$0xff] }
 0xb0e   :  { %9124 = vmatprep.subr.bf16.mxu0 %v15876_v49  ;;  %9165 = vmatprep.subr.bf16.mxu1 %v15877_v26  ;;  %v15887_v49 = vld [vmem:[#allocation62_spill] sm:$0xff]  ;;  %v15888_v26 = vld [vmem:[#allocation67_spill] sm:$0xff] }
 0xb11   :  { %9125 = vmatpush2.bf16.msra.mxu0 %v15878_v27  ;;  %9166 = vmatpush2.bf16.msra.mxu1 %v15879_v8  ;;  %v15889_v27 = vld [vmem:[#allocation63_spill] sm:$0xff]  ;;  %v15890_v8 = vld [vmem:[#allocation68_spill] sm:$0xff] }
 0xb12   :  { %9126 = vmatprep.subr.bf16.mxu0 %v15880_v0  ;;  %9167 = vmatprep.subr.bf16.mxu1 %v15881_v16  ;;  %v15891_v0 = vld [vmem:[#allocation100_spill] sm:$0xff]  ;;  %v15892_v16 = vld [vmem:[#allocation98_spill] sm:$0xff] }
 0xb15   :  { %9127 = vmatpush2.bf16.msra.mxu0 %v15882_v52  ;;  %9168 = vmatpush2.bf16.msra.mxu1 %v15883_v60  ;;  %v15893_v52 = vld [vmem:[#allocation99_spill] sm:$0xff]  ;;  %v15894_v60 = vld [vmem:[#allocation101_spill] sm:$0xff] }
 0xb16   :  { %9128 = vmatprep.subr.bf16.mxu0 %v15884_v51  ;;  %9169 = vmatprep.subr.bf16.mxu1 %v15885_v6  ;;  %v15895_v51 = vld [vmem:[#allocation102_spill] sm:$0xff]  ;;  %v15896_v6 = vld [vmem:[#allocation28_spill] sm:$0xff] }
 0xb19   :  { %9129 = vmatpush2.bf16.msra.mxu0 %v15886_v43  ;;  %9170 = vmatpush2.bf16.msra.mxu1 %v15887_v49  ;;  %v15897_v43 = vld [vmem:[#allocation27_spill] sm:$0xff]  ;;  %v15898_v49 = vld [vmem:[#allocation30_spill] sm:$0xff] }
 0xb1a   :  { %9130 = vmatprep.subr.bf16.mxu0 %v15888_v26  ;;  %9171 = vmatprep.subr.bf16.mxu1 %v15889_v27  ;;  %v15899_v26 = vld [vmem:[#allocation29_spill] sm:$0xff]  ;;  %v15900_v27 = vld [vmem:[#allocation47_spill] sm:$0xff] }
 0xb1d   :  { %9131 = vmatpush2.bf16.msra.mxu0 %v15890_v8  ;;  %9172 = vmatpush2.bf16.msra.mxu1 %v15891_v0  ;;  %v15901_v8 = vld [vmem:[#allocation51_spill] sm:$0xff]  ;;  %v15902_v0 = vld [vmem:[#allocation48_spill] sm:$0xff] }
 0xb1e   :  { %9132 = vmatprep.subr.bf16.mxu0 %v15892_v16  ;;  %9173 = vmatprep.subr.bf16.mxu1 %v15893_v52  ;;  %v15903_v16 = vld [vmem:[#allocation52_spill] sm:$0xff]  ;;  %v15904_v52 = vld [vmem:[#allocation103_spill] sm:$0xff] }
 0xb21   :  { %9133 = vmatpush2.bf16.msra.mxu0 %v15894_v60  ;;  %9174 = vmatpush2.bf16.msra.mxu1 %v15895_v51  ;;  %v15905_v60 = vld [vmem:[#allocation104_spill] sm:$0xff] }
 0xb22   :  { %9134 = vmatprep.subr.bf16.mxu0 %v15896_v6  ;;  %9175 = vmatprep.subr.bf16.mxu1 %v15897_v43 }
 0xb25   :  { %9135 = vmatpush2.bf16.msra.mxu0 %v15898_v49  ;;  %9176 = vmatpush2.bf16.msra.mxu1 %v15899_v26 }
 0xb26   :  { %9136 = vmatprep.subr.bf16.mxu0 %v15900_v27  ;;  %9177 = vmatprep.subr.bf16.mxu1 %v15901_v8 }
 0xb29   :  { %9137 = vmatpush2.bf16.msra.mxu0 %v15902_v0  ;;  %9178 = vmatpush2.bf16.msra.mxu1 %v15903_v16  ;;  %v15909_v16 = vld [vmem:[#allocation159_spill] sm:$0xff] }
 0xb2a   :  { %9188 = vmatprep.subr.bf16.mxu0 %v15904_v52  ;;  %9229 = vmatprep.subr.bf16.mxu1 %v15905_v60 }
 0xb6c   :  { %v8922_v51 = vpop.f32.mrf.mxu0  ;;  %v8963_v6 = vpop.f32.mrf.mxu1 }
 0xb6d   :  { %v9054_v27 = vadd.f32 %v8963_v6, %v15906_v29  ;;  %v9052_v8 = vadd.f32 %v8922_v51, %v15907_v50  ;;  %v15911_v51 = vld [vmem:[#allocation179_spill] sm:$0xff] }
 0xb6e   :  { %v8924_v57 = vpop.f32.mrf.mxu0  ;;  %v8965_v43 = vpop.f32.mrf.mxu1 }
 0xb6f   :  { %v9055_v0 = vadd.f32 %v8965_v43, %v15908_v24  ;;  %v9068_v40 = vmul.f32 0.5, %v9054_v27  ;;  %v9053_v13 = vadd.f32 %v8924_v57, %v15909_v16  ;;  %v9060_v52 = vmul.f32 0.5, %v9052_v8  ;;  %v15912_v16 = vld [vmem:[#allocation178_spill] sm:$0xff] }
 0xb70   :  { %v8926_v34 = vpop.f32.mrf.mxu0  ;;  %v8967_v49 = vpop.f32.mrf.mxu1 }
 0xb71   :  { %v9069_v5 = vmul.f32 0.5, %v9055_v0  ;;  %11468 = vtanh.f32 %v9068_v40  ;;  %v9061_v60 = vmul.f32 0.5, %v9053_v13  ;;  %v15913_v13 = vld [vmem:[#allocation180_spill] sm:$0xff] }
 0xb72   :  { %v8927_v59 = vpop.f32.mrf.mxu0  ;;  %v8968_v26 = vpop.f32.mrf.mxu1  ;;  %11470 = vtanh.f32 %v9060_v52 }
 0xb73   :  { %11472 = vtanh.f32 %v9069_v5  ;;  %v15910_v59 = vld [vmem:[#allocation177_spill] sm:$0xff] }
 0xb74   :  { %11474 = vtanh.f32 %v9061_v60 }
 0xb7e   :  { %v11469_v27 = vpop.eup %11468 }
 0xb7f   :  { %v11471_v52 = vpop.eup %11470  ;;  %v9072_v57 = vmul.f32 0.5, %v11469_v27 }
 0xb80   :  { %v11473_v5 = vpop.eup %11472 }
 0xb81   :  { %v11475_v6 = vpop.eup %11474  ;;  %v9073_v3 = vmul.f32 0.5, %v11473_v5  ;;  %v9074_v9 = vadd.f32 0.5, %v9072_v57 }
 0xbac   :  { %v9004_v34 = vpop.f32.mrf.mxu0  ;;  %v9045_v49 = vpop.f32.mrf.mxu1 }
 0xbad   :  { %v9056_v26 = vadd.f32 %v9004_v34, %v15910_v59  ;;  %v9058_v40 = vadd.f32 %v9045_v49, %v15912_v16  ;;  %v9064_v34 = vmul.f32 0.5, %v11471_v52 }
 0xbae   :  { %v9006_v28 = vpop.f32.mrf.mxu0  ;;  %v9047_v29 = vpop.f32.mrf.mxu1 }
 0xbaf   :  { %11476 = vtanh.f32 %v9056_v26  ;;  %v9057_v50 = vadd.f32 %v9006_v28, %v15911_v51  ;;  %v9059_v60 = vadd.f32 %v9047_v29, %v15913_v13  ;;  %v9078_v59 = vmul.f32 0.5, %v9058_v40 }
 0xbb0   :  { %v9008_v24 = vpop.f32.mrf.mxu0  ;;  %v9049_v43 = vpop.f32.mrf.mxu1  ;;  %v9065_v28 = vmul.f32 0.5, %v11475_v6  ;;  %v9066_v51 = vadd.f32 0.5, %v9064_v34 }
 0xbb1   :  { %11478 = vtanh.f32 %v9057_v50  ;;  %v9079_v26 = vmul.f32 0.5, %v9059_v60  ;;  %v9075_v50 = vadd.f32 0.5, %v9073_v3  ;;  %v9086_v43 = vmul.f32 %v9074_v9, %v14057_v31 }
 0xbb2   :  { %v9009_v8 = vpop.f32.mrf.mxu0  ;;  %v9050_v0 = vpop.f32.mrf.mxu1  ;;  %11480 = vtanh.f32 %v9078_v59 }
 0xbb3   :  { %11482 = vtanh.f32 %v9079_v26  ;;  %v9067_v8 = vadd.f32 0.5, %v9065_v28  ;;  %v9087_v27 = vmul.f32 %v9075_v50, %v14061_v21  ;;  %v15914_v21 = vld [vmem:[#allocation75_spill] sm:$0xff]  ;;  %v15918_v50 = vld [vmem:[#allocation46_spill] sm:$0xff] }
 0xbb4   :  { %v15915_v28 = vld [vmem:[#allocation71_spill] sm:$0xff] }
 0xbbc   :  { %v11477_v24 = vpop.eup %11476 }
 0xbbd   :  { %v9088_v49 = vmul.f32 %v11477_v24, %v9066_v51  ;;  %v15916_v51 = vld [vmem:[#allocation76_spill] sm:$0xff] }
 0xbbe   :  { %v11479_v0 = vpop.eup %11478  ;;  %v15917_v24 = vld [vmem:[#allocation44_spill] sm:$0xff] }
 0xbbf   :  { %v14207_v29 = vadd.f32 %v9088_v49, %v9086_v43  ;;  %v9089_v16 = vmul.f32 %v11479_v0, %v9067_v8  ;;  %v11481_v52 = vpop.eup %11480  ;;  %v15919_v43 = vld [vmem:[#allocation45_spill] sm:$0xff]  ;;  %v15920_v49 = vld [vmem:[#allocation78_spill] sm:$0xff]  ;;  %v15921_v8 = vld [vmem:[#allocation83_spill] sm:$0xff] }
 0xbc0   :  { %v11483_v13 = vpop.eup %11482  ;;  %v9082_v3 = vmul.f32 0.5, %v11481_v52  ;;  %v15922_v0 = vld [vmem:[#allocation79_spill] sm:$0xff]  ;;  %v15925_v52 = vld [vmem:[#allocation49_spill] sm:$0xff] }
 0xbc1   :  { %11484 = vtanh.f32 %v14207_v29  ;;  %v14211_v40 = vadd.f32 %v9089_v16, %v9087_v27  ;;  %v9083_v60 = vmul.f32 0.5, %v11483_v13  ;;  %v15923_v27 = vld [vmem:[#allocation84_spill] sm:$0xff]  ;;  %v15924_v16 = vld [vmem:[#allocation50_spill] sm:$0xff] }
 0xbc2   :  { %v9084_v9 = vadd.f32 0.5, %v9082_v3  ;;  %v15926_v13 = vld [vmem:[#allocation144_spill] sm:$0xff]  ;;  %v15927_v3 = vld [vmem:[#allocation145_spill] sm:$0xff] }
 0xbc3   :  { %11486 = vtanh.f32 %v14211_v40  ;;  %v9085_v31 = vadd.f32 0.5, %v9083_v60  ;;  %v15928_v60 = vld [vmem:[#allocation146_spill] sm:$0xff] }
 0xbce   :  { %v11485_v5 = vpop.eup %11484 }
 0xbcf   :  { %v9094_v6 = vmul.f32 %v11485_v5, %v9084_v9  ;;  %v15929_v5 = vld [vmem:[#allocation147_spill] sm:$0xff]  ;;  %v15930_v9 = vld [vmem:[#allocation148_spill] sm:$0xff] }
 0xbd0   :  { %v11487_v57 = vpop.eup %11486 }
 0xbd1   :  { %v9095_v34 = vmul.f32 %v11487_v57, %v9085_v31  ;;  %v14214_v26 = vpack.c.bf16 %v9094_v6, %v9094_v6  ;;  %v15931_v31 = vld [vmem:[#allocation149_spill] sm:$0xff]  ;;  %v15932_v57 = vld [vmem:[#allocation150_spill] sm:$0xff]  ;;  %v15933_v6 = vld [vmem:[#allocation151_spill] sm:$0xff] }
 0xbd3   :  { %v9105_v59 = vpack.c.bf16 %v9095_v34, %v9095_v34  ;;  %v15934_v34 = vld [vmem:[#allocation152_spill] sm:$0xff] }
 0xbd5   :  { %9138 = vmatprep.mubr.bf16.mxu0 %v9105_v59  ;;  %9179 = vmatprep.mubr.bf16.mxu1 %v9105_v59 }
 0xbd6   :  { %9139 = vmatmul.mubr.bf16.vlgmr.msra.gmra.mxu0 %v14214_v26  ;;  %9180 = vmatmul.mubr.bf16.vlgmr.msra.gmra.mxu1 %v14214_v26 }
 0xbd7   :  { %9189 = vmatpush1.bf16.msra.mxu0 %v15713_v18  ;;  %9230 = vmatpush1.bf16.msra.mxu1 %v15714_v36 }
 0xbd8   :  { %9220 = vmatprep.mubr.bf16.mxu0 %v9105_v59  ;;  %9261 = vmatprep.mubr.bf16.mxu1 %v9105_v59  ;;  %v15935_v59 = vld [vmem:[#allocation153_spill] sm:$0xff] }
 0xbd9   :  { %9190 = vmatprep.subr.bf16.mxu0 %v15715_v55  ;;  %9231 = vmatprep.subr.bf16.mxu1 %v15716_v15 }
 0xbdb   :  { %9191 = vmatpush1.bf16.msra.mxu0 %v15717_v17  ;;  %9232 = vmatpush1.bf16.msra.mxu1 %v15718_v35 }
 0xbdc   :  { %9192 = vmatprep.subr.bf16.mxu0 %v15719_v10  ;;  %9233 = vmatprep.subr.bf16.mxu1 %v15720_v39 }
 0xbdf   :  { %9193 = vmatpush1.bf16.msra.mxu0 %v15721_v33  ;;  %9234 = vmatpush1.bf16.msra.mxu1 %v15722_v61 }
 0xbe0   :  { %9194 = vmatprep.subr.bf16.mxu0 %v15723_v48  ;;  %9235 = vmatprep.subr.bf16.mxu1 %v15724_v58 }
 0xbe3   :  { %9195 = vmatpush1.bf16.msra.mxu0 %v15725_v23  ;;  %9236 = vmatpush1.bf16.msra.mxu1 %v15726_v41 }
 0xbe4   :  { %9196 = vmatprep.subr.bf16.mxu0 %v15727_v4  ;;  %9237 = vmatprep.subr.bf16.mxu1 %v15728_v38 }
 0xbe7   :  { %9197 = vmatpush1.bf16.msra.mxu0 %v15729_v62  ;;  %9238 = vmatpush1.bf16.msra.mxu1 %v15730_v7 }
 0xbe8   :  { %9198 = vmatprep.subr.bf16.mxu0 %v15817_v45  ;;  %9239 = vmatprep.subr.bf16.mxu1 %v15818_v2 }
 0xbeb   :  { %9199 = vmatpush1.bf16.msra.mxu0 %v15819_v46  ;;  %9240 = vmatpush1.bf16.msra.mxu1 %v15820_v44 }
 0xbec   :  { %9200 = vmatprep.subr.bf16.mxu0 %v15821_v19  ;;  %9241 = vmatprep.subr.bf16.mxu1 %v15822_v42 }
 0xbef   :  { %9201 = vmatpush1.bf16.msra.mxu0 %v15823_v37  ;;  %9242 = vmatpush1.bf16.msra.mxu1 %v15824_v47 }
 0xbf0   :  { %9202 = vmatprep.subr.bf16.mxu0 %v15825_v20  ;;  %9243 = vmatprep.subr.bf16.mxu1 %v15826_v54 }
 0xbf3   :  { %9203 = vmatpush1.bf16.msra.mxu0 %v15827_v11  ;;  %9244 = vmatpush1.bf16.msra.mxu1 %v15828_v25 }
 0xbf4   :  { %9204 = vmatprep.subr.bf16.mxu0 %v15829_v14  ;;  %9245 = vmatprep.subr.bf16.mxu1 %v15830_v53 }
 0xbf7   :  { %9205 = vmatpush2.bf16.msra.mxu0 %v15831_v1  ;;  %9246 = vmatpush2.bf16.msra.mxu1 %v15832_v63 }
 0xbf8   :  { %9206 = vmatprep.subr.bf16.mxu0 %v15833_v22  ;;  %9247 = vmatprep.subr.bf16.mxu1 %v15834_v30 }
 0xbfb   :  { %9207 = vmatpush2.bf16.msra.mxu0 %v15835_v12  ;;  %9248 = vmatpush2.bf16.msra.mxu1 %v15750_v56 }
 0xbfc   :  { %9208 = vmatprep.subr.bf16.mxu0 %v15914_v21  ;;  %9249 = vmatprep.subr.bf16.mxu1 %v15915_v28 }
 0xbff   :  { %9209 = vmatpush2.bf16.msra.mxu0 %v15916_v51  ;;  %9250 = vmatpush2.bf16.msra.mxu1 %v15917_v24 }
 0xc00   :  { %9210 = vmatprep.subr.bf16.mxu0 %v15755_v32  ;;  %9251 = vmatprep.subr.bf16.mxu1 %v15918_v50 }
 0xc03   :  { %9211 = vmatpush2.bf16.msra.mxu0 %v15919_v43  ;;  %9252 = vmatpush2.bf16.msra.mxu1 %v15920_v49  ;;  %v16005_v49 = vld [vmem:[#allocation164_spill] sm:$0xff] }
 0xc04   :  { %9212 = vmatprep.subr.bf16.mxu0 %v15921_v8  ;;  %9253 = vmatprep.subr.bf16.mxu1 %v15922_v0  ;;  %v16003_v0 = vld [vmem:[#allocation162_spill] sm:$0xff]  ;;  %v16004_v8 = vld [vmem:[#allocation161_spill] sm:$0xff] }
 0xc07   :  { %9213 = vmatpush2.bf16.msra.mxu0 %v15923_v27  ;;  %9254 = vmatpush2.bf16.msra.mxu1 %v15924_v16 }
 0xc08   :  { %9214 = vmatprep.subr.bf16.mxu0 %v15925_v52  ;;  %9255 = vmatprep.subr.bf16.mxu1 %v15926_v13  ;;  %v15936_v52 = vld [vmem:[#allocation154_spill] sm:$0xff] }
 0xc09   :  { %v15937_v13 = vld [vmem:[#allocation138_spill] sm:$0xff] }
 0xc0b   :  { %9215 = vmatpush2.bf16.msra.mxu0 %v15927_v3  ;;  %9256 = vmatpush2.bf16.msra.mxu1 %v15928_v60  ;;  %v15938_v3 = vld [vmem:[#allocation139_spill] sm:$0xff] }
 0xc0c   :  { %9216 = vmatprep.subr.bf16.mxu0 %v15929_v5  ;;  %9257 = vmatprep.subr.bf16.mxu1 %v15930_v9  ;;  %v15939_v9 = vld [vmem:[#allocation140_spill] sm:$0xff]  ;;  %v15948_v5 = vld [vmem:[#allocation59_spill] sm:$0xff] }
 0xc0f   :  { %9217 = vmatpush2.bf16.msra.mxu0 %v15931_v31  ;;  %9258 = vmatpush2.bf16.msra.mxu1 %v15932_v57  ;;  %v15940_v31 = vld [vmem:[#allocation141_spill] sm:$0xff]  ;;  %v15941_v57 = vld [vmem:[#allocation142_spill] sm:$0xff] }
 0xc10   :  { %9218 = vmatprep.subr.bf16.mxu0 %v15933_v6  ;;  %9259 = vmatprep.subr.bf16.mxu1 %v15934_v34  ;;  %v15942_v6 = vld [vmem:[#allocation143_spill] sm:$0xff]  ;;  %v15943_v34 = vld [vmem:[#allocation32_spill] sm:$0xff] }
 0xc13   :  { %9219 = vmatpush2.bf16.msra.mxu0 %v15935_v59  ;;  %9260 = vmatpush2.bf16.msra.mxu1 %v15936_v52  ;;  %v15944_v59 = vld [vmem:[#allocation31_spill] sm:$0xff]  ;;  %v15945_v52 = vld [vmem:[#allocation34_spill] sm:$0xff] }
 0xc14   :  { %9324 = vmatprep.subr.bf16.mxu0 %v15937_v13  ;;  %9365 = vmatprep.subr.bf16.mxu1 %v15938_v3  ;;  %v15946_v13 = vld [vmem:[#allocation33_spill] sm:$0xff]  ;;  %v15947_v3 = vld [vmem:[#allocation54_spill] sm:$0xff] }
 0xc16   :  { %9221 = vmatmul.mubr.bf16.vlgmr.msra.gmra.mxu0 %v14214_v26  ;;  %9262 = vmatmul.mubr.bf16.vlgmr.msra.gmra.mxu1 %v14214_v26  ;;  %v15949_v26 = vld [vmem:[#allocation55_spill] sm:$0xff] }
 0xc17   :  { %9325 = vmatpush1.bf16.msra.mxu0 %v15939_v9  ;;  %9366 = vmatpush1.bf16.msra.mxu1 %v15940_v31  ;;  %v15950_v9 = vld [vmem:[#allocation60_spill] sm:$0xff] }
 0xc18   :  { %9326 = vmatprep.subr.bf16.mxu0 %v15941_v57  ;;  %9367 = vmatprep.subr.bf16.mxu1 %v15942_v6  ;;  %v15951_v31 = vld [vmem:[#allocation56_spill] sm:$0xff]  ;;  %v15952_v57 = vld [vmem:[#allocation53_spill] sm:$0xff]  ;;  %v15953_v6 = vld [vmem:[#allocation58_spill] sm:$0xff] }
 0xc1b   :  { %9327 = vmatpush1.bf16.msra.mxu0 %v15943_v34  ;;  %9368 = vmatpush1.bf16.msra.mxu1 %v15944_v59  ;;  %v15954_v34 = vld [vmem:[#allocation57_spill] sm:$0xff]  ;;  %v15955_v59 = vld [vmem:[#allocation64_spill] sm:$0xff] }
 0xc1c   :  { %9328 = vmatprep.subr.bf16.mxu0 %v15945_v52  ;;  %9369 = vmatprep.subr.bf16.mxu1 %v15946_v13  ;;  %v15956_v52 = vld [vmem:[#allocation61_spill] sm:$0xff]  ;;  %v15957_v13 = vld [vmem:[#allocation66_spill] sm:$0xff] }
 0xc1f   :  { %9329 = vmatpush1.bf16.msra.mxu0 %v15947_v3  ;;  %9370 = vmatpush1.bf16.msra.mxu1 %v15948_v5  ;;  %v15958_v3 = vld [vmem:[#allocation65_spill] sm:$0xff]  ;;  %v15959_v5 = vld [vmem:[#allocation72_spill] sm:$0xff] }
 0xc20   :  { %9330 = vmatprep.subr.bf16.mxu0 %v15949_v26  ;;  %9371 = vmatprep.subr.bf16.mxu1 %v15950_v9  ;;  %v15960_v26 = vld [vmem:[#allocation69_spill] sm:$0xff]  ;;  %v15961_v9 = vld [vmem:[#allocation74_spill] sm:$0xff] }
 0xc23   :  { %9331 = vmatpush1.bf16.msra.mxu0 %v15951_v31  ;;  %9372 = vmatpush1.bf16.msra.mxu1 %v15952_v57  ;;  %v15962_v31 = vld [vmem:[#allocation73_spill] sm:$0xff]  ;;  %v15963_v57 = vld [vmem:[#allocation80_spill] sm:$0xff] }
 0xc24   :  { %9332 = vmatprep.subr.bf16.mxu0 %v15953_v6  ;;  %9373 = vmatprep.subr.bf16.mxu1 %v15954_v34  ;;  %v15964_v6 = vld [vmem:[#allocation77_spill] sm:$0xff]  ;;  %v15965_v34 = vld [vmem:[#allocation82_spill] sm:$0xff] }
 0xc27   :  { %9333 = vmatpush1.bf16.msra.mxu0 %v15955_v59  ;;  %9374 = vmatpush1.bf16.msra.mxu1 %v15956_v52  ;;  %v15966_v59 = vld [vmem:[#allocation81_spill] sm:$0xff]  ;;  %v15967_v52 = vld [vmem:[#allocation86_spill] sm:$0xff] }
 0xc28   :  { %9334 = vmatprep.subr.bf16.mxu0 %v15957_v13  ;;  %9375 = vmatprep.subr.bf16.mxu1 %v15958_v3  ;;  %v15968_v13 = vld [vmem:[#allocation85_spill] sm:$0xff]  ;;  %v15969_v3 = vld [vmem:[#allocation88_spill] sm:$0xff] }
 0xc2b   :  { %9335 = vmatpush1.bf16.msra.mxu0 %v15959_v5  ;;  %9376 = vmatpush1.bf16.msra.mxu1 %v15960_v26  ;;  %v15970_v5 = vld [vmem:[#allocation87_spill] sm:$0xff]  ;;  %v15971_v26 = vld [vmem:[#allocation90_spill] sm:$0xff] }
 0xc2c   :  { %9336 = vmatprep.subr.bf16.mxu0 %v15961_v9  ;;  %9377 = vmatprep.subr.bf16.mxu1 %v15962_v31  ;;  %v15972_v9 = vld [vmem:[#allocation89_spill] sm:$0xff]  ;;  %v15973_v31 = vld [vmem:[#allocation92_spill] sm:$0xff] }
 0xc2f   :  { %9337 = vmatpush1.bf16.msra.mxu0 %v15963_v57  ;;  %9378 = vmatpush1.bf16.msra.mxu1 %v15964_v6  ;;  %v15974_v57 = vld [vmem:[#allocation91_spill] sm:$0xff]  ;;  %v15975_v6 = vld [vmem:[#allocation94_spill] sm:$0xff] }
 0xc30   :  { %9338 = vmatprep.subr.bf16.mxu0 %v15965_v34  ;;  %9379 = vmatprep.subr.bf16.mxu1 %v15966_v59  ;;  %v15976_v34 = vld [vmem:[#allocation93_spill] sm:$0xff]  ;;  %v15977_v59 = vld [vmem:[#allocation96_spill] sm:$0xff] }
 0xc33   :  { %9339 = vmatpush1.bf16.msra.mxu0 %v15967_v52  ;;  %9380 = vmatpush1.bf16.msra.mxu1 %v15968_v13  ;;  %v15978_v52 = vld [vmem:[#allocation95_spill] sm:$0xff]  ;;  %v15979_v13 = vld [vmem:[#allocation97_spill] sm:$0xff] }
 0xc34   :  { %9340 = vmatprep.subr.bf16.mxu0 %v15969_v3  ;;  %9381 = vmatprep.subr.bf16.mxu1 %v15970_v5  ;;  %v15980_v3 = vld [vmem:[#allocation36_spill] sm:$0xff]  ;;  %v15981_v5 = vld [vmem:[#allocation35_spill] sm:$0xff] }
 0xc37   :  { %9341 = vmatpush2.bf16.msra.mxu0 %v15971_v26  ;;  %9382 = vmatpush2.bf16.msra.mxu1 %v15972_v9  ;;  %v15982_v26 = vld [vmem:[#allocation38_spill] sm:$0xff]  ;;  %v15983_v9 = vld [vmem:[#allocation37_spill] sm:$0xff] }
 0xc38   :  { %9342 = vmatprep.subr.bf16.mxu0 %v15973_v31  ;;  %9383 = vmatprep.subr.bf16.mxu1 %v15974_v57  ;;  %v15984_v31 = vld [vmem:[#allocation62_spill] sm:$0xff]  ;;  %v15985_v57 = vld [vmem:[#allocation67_spill] sm:$0xff] }
 0xc3b   :  { %9343 = vmatpush2.bf16.msra.mxu0 %v15975_v6  ;;  %9384 = vmatpush2.bf16.msra.mxu1 %v15976_v34  ;;  %v15986_v6 = vld [vmem:[#allocation63_spill] sm:$0xff]  ;;  %v15987_v34 = vld [vmem:[#allocation68_spill] sm:$0xff] }
 0xc3c   :  { %9344 = vmatprep.subr.bf16.mxu0 %v15977_v59  ;;  %9385 = vmatprep.subr.bf16.mxu1 %v15978_v52  ;;  %v15988_v59 = vld [vmem:[#allocation100_spill] sm:$0xff]  ;;  %v15989_v52 = vld [vmem:[#allocation98_spill] sm:$0xff] }
 0xc3f   :  { %9345 = vmatpush2.bf16.msra.mxu0 %v15979_v13  ;;  %9386 = vmatpush2.bf16.msra.mxu1 %v15980_v3  ;;  %v15990_v13 = vld [vmem:[#allocation99_spill] sm:$0xff]  ;;  %v15991_v3 = vld [vmem:[#allocation101_spill] sm:$0xff] }
 0xc40   :  { %9346 = vmatprep.subr.bf16.mxu0 %v15981_v5  ;;  %9387 = vmatprep.subr.bf16.mxu1 %v15982_v26  ;;  %v15992_v5 = vld [vmem:[#allocation102_spill] sm:$0xff]  ;;  %v15993_v26 = vld [vmem:[#allocation28_spill] sm:$0xff] }
 0xc43   :  { %9347 = vmatpush2.bf16.msra.mxu0 %v15983_v9  ;;  %9388 = vmatpush2.bf16.msra.mxu1 %v15984_v31  ;;  %v15994_v9 = vld [vmem:[#allocation27_spill] sm:$0xff]  ;;  %v15995_v31 = vld [vmem:[#allocation30_spill] sm:$0xff] }
 0xc44   :  { %9348 = vmatprep.subr.bf16.mxu0 %v15985_v57  ;;  %9389 = vmatprep.subr.bf16.mxu1 %v15986_v6  ;;  %v15996_v57 = vld [vmem:[#allocation29_spill] sm:$0xff]  ;;  %v15997_v6 = vld [vmem:[#allocation47_spill] sm:$0xff] }
 0xc47   :  { %9349 = vmatpush2.bf16.msra.mxu0 %v15987_v34  ;;  %9390 = vmatpush2.bf16.msra.mxu1 %v15988_v59  ;;  %v15998_v34 = vld [vmem:[#allocation51_spill] sm:$0xff]  ;;  %v15999_v59 = vld [vmem:[#allocation48_spill] sm:$0xff] }
 0xc48   :  { %9350 = vmatprep.subr.bf16.mxu0 %v15989_v52  ;;  %9391 = vmatprep.subr.bf16.mxu1 %v15990_v13  ;;  %v16000_v52 = vld [vmem:[#allocation52_spill] sm:$0xff]  ;;  %v16001_v13 = vld [vmem:[#allocation103_spill] sm:$0xff] }
 0xc4b   :  { %9351 = vmatpush2.bf16.msra.mxu0 %v15991_v3  ;;  %9392 = vmatpush2.bf16.msra.mxu1 %v15992_v5  ;;  %v16002_v3 = vld [vmem:[#allocation104_spill] sm:$0xff] }
 0xc4c   :  { %9352 = vmatprep.subr.bf16.mxu0 %v15993_v26  ;;  %9393 = vmatprep.subr.bf16.mxu1 %v15994_v9 }
 0xc4f   :  { %9353 = vmatpush2.bf16.msra.mxu0 %v15995_v31  ;;  %9394 = vmatpush2.bf16.msra.mxu1 %v15996_v57 }
 0xc50   :  { %9354 = vmatprep.subr.bf16.mxu0 %v15997_v6  ;;  %9395 = vmatprep.subr.bf16.mxu1 %v15998_v34 }
 0xc53   :  { %9355 = vmatpush2.bf16.msra.mxu0 %v15999_v59  ;;  %9396 = vmatpush2.bf16.msra.mxu1 %v16000_v52  ;;  %v16006_v52 = vld [vmem:[#allocation163_spill] sm:$0xff] }
 0xc54   :  { %9406 = vmatprep.subr.bf16.mxu0 %v16001_v13  ;;  %9447 = vmatprep.subr.bf16.mxu1 %v16002_v3 }
 0xc96   :  { %v9140_v5 = vpop.f32.mrf.mxu0  ;;  %v9181_v26 = vpop.f32.mrf.mxu1 }
 0xc97   :  { %v9272_v6 = vadd.f32 %v9181_v26, %v16003_v0  ;;  %v9270_v34 = vadd.f32 %v9140_v5, %v16004_v8  ;;  %v16008_v8 = vld [vmem:[#allocation183_spill] sm:$0xff] }
 0xc98   :  { %v9142_v60 = vpop.f32.mrf.mxu0  ;;  %v9183_v9 = vpop.f32.mrf.mxu1 }
 0xc99   :  { %v9273_v59 = vadd.f32 %v9183_v9, %v16005_v49  ;;  %v9286_v43 = vmul.f32 0.5, %v9272_v6  ;;  %v9271_v50 = vadd.f32 %v9142_v60, %v16006_v52  ;;  %v9278_v13 = vmul.f32 0.5, %v9270_v34 }
 0xc9a   :  { %v9144_v16 = vpop.f32.mrf.mxu0  ;;  %v9185_v31 = vpop.f32.mrf.mxu1 }
 0xc9b   :  { %v9287_v32 = vmul.f32 0.5, %v9273_v59  ;;  %11488 = vtanh.f32 %v9286_v43  ;;  %v9279_v3 = vmul.f32 0.5, %v9271_v50  ;;  %v16009_v43 = vld [vmem:[#allocation182_spill] sm:$0xff] }
 0xc9c   :  { %v9145_v27 = vpop.f32.mrf.mxu0  ;;  %v9186_v57 = vpop.f32.mrf.mxu1  ;;  %11490 = vtanh.f32 %v9278_v13 }
 0xc9d   :  { %11492 = vtanh.f32 %v9287_v32  ;;  %v16007_v27 = vld [vmem:[#allocation181_spill] sm:$0xff]  ;;  %v16010_v32 = vld [vmem:[#allocation184_spill] sm:$0xff] }
 0xc9e   :  { %11494 = vtanh.f32 %v9279_v3 }
 0xca8   :  { %v11489_v6 = vpop.eup %11488 }
 0xca9   :  { %v11491_v13 = vpop.eup %11490  ;;  %v9290_v59 = vmul.f32 0.5, %v11489_v6 }
 0xcaa   :  { %v11493_v34 = vpop.eup %11492 }
 0xcab   :  { %v11495_v26 = vpop.eup %11494  ;;  %v9291_v51 = vmul.f32 0.5, %v11493_v34  ;;  %v9292_v28 = vadd.f32 0.5, %v9290_v59 }
 0xcd6   :  { %v9222_v16 = vpop.f32.mrf.mxu0  ;;  %v9263_v31 = vpop.f32.mrf.mxu1 }
 0xcd7   :  { %v9274_v57 = vadd.f32 %v9222_v16, %v16007_v27  ;;  %v9276_v50 = vadd.f32 %v9263_v31, %v16009_v43  ;;  %v9282_v16 = vmul.f32 0.5, %v11491_v13 }
 0xcd8   :  { %v9224_v24 = vpop.f32.mrf.mxu0  ;;  %v9265_v0 = vpop.f32.mrf.mxu1 }
 0xcd9   :  { %11496 = vtanh.f32 %v9274_v57  ;;  %v9275_v5 = vadd.f32 %v9224_v24, %v16008_v8  ;;  %v9277_v3 = vadd.f32 %v9265_v0, %v16010_v32  ;;  %v9296_v27 = vmul.f32 0.5, %v9276_v50 }
 0xcda   :  { %v9226_v49 = vpop.f32.mrf.mxu0  ;;  %v9267_v9 = vpop.f32.mrf.mxu1  ;;  %v9283_v24 = vmul.f32 0.5, %v11495_v26  ;;  %v9284_v8 = vadd.f32 0.5, %v9282_v16 }
 0xcdb   :  { %11498 = vtanh.f32 %v9275_v5  ;;  %v9297_v57 = vmul.f32 0.5, %v9277_v3  ;;  %v9293_v5 = vadd.f32 0.5, %v9291_v51  ;;  %v9304_v9 = vmul.f32 %v9292_v28, %v14207_v29 }
 0xcdc   :  { %v9227_v52 = vpop.f32.mrf.mxu0  ;;  %v9268_v60 = vpop.f32.mrf.mxu1  ;;  %11500 = vtanh.f32 %v9296_v27 }
 0xcdd   :  { %11502 = vtanh.f32 %v9297_v57  ;;  %v9285_v52 = vadd.f32 0.5, %v9283_v24  ;;  %v9305_v6 = vmul.f32 %v9293_v5, %v14211_v40  ;;  %v16011_v40 = vld [vmem:[#allocation71_spill] sm:$0xff]  ;;  %v16012_v24 = vld [vmem:[#allocation76_spill] sm:$0xff]  ;;  %v16015_v5 = vld [vmem:[#allocation46_spill] sm:$0xff] }
 0xce6   :  { %v11497_v49 = vpop.eup %11496 }
 0xce7   :  { %v9306_v31 = vmul.f32 %v11497_v49, %v9284_v8  ;;  %v16013_v8 = vld [vmem:[#allocation44_spill] sm:$0xff]  ;;  %v16014_v49 = vld [vmem:[#allocation43_spill] sm:$0xff] }
 0xce8   :  { %v11499_v60 = vpop.eup %11498 }
 0xce9   :  { %v14357_v0 = vadd.f32 %v9306_v31, %v9304_v9  ;;  %v9307_v43 = vmul.f32 %v11499_v60, %v9285_v52  ;;  %v11501_v13 = vpop.eup %11500  ;;  %v16016_v9 = vld [vmem:[#allocation45_spill] sm:$0xff]  ;;  %v16017_v31 = vld [vmem:[#allocation78_spill] sm:$0xff]  ;;  %v16018_v52 = vld [vmem:[#allocation83_spill] sm:$0xff] }
 0xcea   :  { %v11503_v32 = vpop.eup %11502  ;;  %v9300_v51 = vmul.f32 0.5, %v11501_v13  ;;  %v16019_v60 = vld [vmem:[#allocation79_spill] sm:$0xff]  ;;  %v16022_v13 = vld [vmem:[#allocation49_spill] sm:$0xff] }
 0xceb   :  { %11504 = vtanh.f32 %v14357_v0  ;;  %v14361_v50 = vadd.f32 %v9307_v43, %v9305_v6  ;;  %v9301_v3 = vmul.f32 0.5, %v11503_v32  ;;  %v16020_v6 = vld [vmem:[#allocation84_spill] sm:$0xff]  ;;  %v16021_v43 = vld [vmem:[#allocation50_spill] sm:$0xff] }
 0xcec   :  { %v9302_v29 = vadd.f32 0.5, %v9300_v51  ;;  %v16023_v32 = vld [vmem:[#allocation144_spill] sm:$0xff]  ;;  %v16024_v51 = vld [vmem:[#allocation145_spill] sm:$0xff] }
 0xced   :  { %11506 = vtanh.f32 %v14361_v50  ;;  %v9303_v28 = vadd.f32 0.5, %v9301_v3  ;;  %v16025_v3 = vld [vmem:[#allocation146_spill] sm:$0xff] }
 0xcf8   :  { %v11505_v34 = vpop.eup %11504 }
 0xcf9   :  { %v9312_v26 = vmul.f32 %v11505_v34, %v9302_v29  ;;  %v16026_v34 = vld [vmem:[#allocation147_spill] sm:$0xff]  ;;  %v16027_v29 = vld [vmem:[#allocation148_spill] sm:$0xff] }
 0xcfa   :  { %v11507_v59 = vpop.eup %11506 }
 0xcfb   :  { %v9313_v16 = vmul.f32 %v11507_v59, %v9303_v28  ;;  %v14364_v57 = vpack.c.bf16 %v9312_v26, %v9312_v26  ;;  %v16028_v28 = vld [vmem:[#allocation149_spill] sm:$0xff]  ;;  %v16029_v59 = vld [vmem:[#allocation150_spill] sm:$0xff]  ;;  %v16030_v26 = vld [vmem:[#allocation151_spill] sm:$0xff] }
 0xcfd   :  { %v9323_v27 = vpack.c.bf16 %v9313_v16, %v9313_v16  ;;  %v16031_v16 = vld [vmem:[#allocation152_spill] sm:$0xff] }
 0xcff   :  { %9356 = vmatprep.mubr.bf16.mxu0 %v9323_v27  ;;  %9397 = vmatprep.mubr.bf16.mxu1 %v9323_v27 }
 0xd00   :  { %9357 = vmatmul.mubr.bf16.vlgmr.msra.gmra.mxu0 %v14364_v57  ;;  %9398 = vmatmul.mubr.bf16.vlgmr.msra.gmra.mxu1 %v14364_v57 }
 0xd01   :  { %9407 = vmatpush1.bf16.msra.mxu0 %v15713_v18  ;;  %9448 = vmatpush1.bf16.msra.mxu1 %v15714_v36 }
 0xd02   :  { %9438 = vmatprep.mubr.bf16.mxu0 %v9323_v27  ;;  %9479 = vmatprep.mubr.bf16.mxu1 %v9323_v27  ;;  %v16032_v27 = vld [vmem:[#allocation153_spill] sm:$0xff] }
 0xd03   :  { %9408 = vmatprep.subr.bf16.mxu0 %v15715_v55  ;;  %9449 = vmatprep.subr.bf16.mxu1 %v15716_v15 }
 0xd05   :  { %9409 = vmatpush1.bf16.msra.mxu0 %v15717_v17  ;;  %9450 = vmatpush1.bf16.msra.mxu1 %v15718_v35 }
 0xd06   :  { %9410 = vmatprep.subr.bf16.mxu0 %v15719_v10  ;;  %9451 = vmatprep.subr.bf16.mxu1 %v15720_v39 }
 0xd09   :  { %9411 = vmatpush1.bf16.msra.mxu0 %v15721_v33  ;;  %9452 = vmatpush1.bf16.msra.mxu1 %v15722_v61 }
 0xd0a   :  { %9412 = vmatprep.subr.bf16.mxu0 %v15723_v48  ;;  %9453 = vmatprep.subr.bf16.mxu1 %v15724_v58 }
 0xd0d   :  { %9413 = vmatpush1.bf16.msra.mxu0 %v15725_v23  ;;  %9454 = vmatpush1.bf16.msra.mxu1 %v15726_v41 }
 0xd0e   :  { %9414 = vmatprep.subr.bf16.mxu0 %v15727_v4  ;;  %9455 = vmatprep.subr.bf16.mxu1 %v15728_v38 }
 0xd11   :  { %9415 = vmatpush1.bf16.msra.mxu0 %v15729_v62  ;;  %9456 = vmatpush1.bf16.msra.mxu1 %v15730_v7 }
 0xd12   :  { %9416 = vmatprep.subr.bf16.mxu0 %v15817_v45  ;;  %9457 = vmatprep.subr.bf16.mxu1 %v15818_v2 }
 0xd15   :  { %9417 = vmatpush1.bf16.msra.mxu0 %v15819_v46  ;;  %9458 = vmatpush1.bf16.msra.mxu1 %v15820_v44 }
 0xd16   :  { %9418 = vmatprep.subr.bf16.mxu0 %v15821_v19  ;;  %9459 = vmatprep.subr.bf16.mxu1 %v15822_v42 }
 0xd19   :  { %9419 = vmatpush1.bf16.msra.mxu0 %v15823_v37  ;;  %9460 = vmatpush1.bf16.msra.mxu1 %v15824_v47 }
 0xd1a   :  { %9420 = vmatprep.subr.bf16.mxu0 %v15825_v20  ;;  %9461 = vmatprep.subr.bf16.mxu1 %v15826_v54 }
 0xd1d   :  { %9421 = vmatpush1.bf16.msra.mxu0 %v15827_v11  ;;  %9462 = vmatpush1.bf16.msra.mxu1 %v15828_v25 }
 0xd1e   :  { %9422 = vmatprep.subr.bf16.mxu0 %v15829_v14  ;;  %9463 = vmatprep.subr.bf16.mxu1 %v15830_v53 }
 0xd21   :  { %9423 = vmatpush2.bf16.msra.mxu0 %v15831_v1  ;;  %9464 = vmatpush2.bf16.msra.mxu1 %v15832_v63 }
 0xd22   :  { %9424 = vmatprep.subr.bf16.mxu0 %v15833_v22  ;;  %9465 = vmatprep.subr.bf16.mxu1 %v15834_v30 }
 0xd25   :  { %9425 = vmatpush2.bf16.msra.mxu0 %v15835_v12  ;;  %9466 = vmatpush2.bf16.msra.mxu1 %v15750_v56 }
 0xd26   :  { %9426 = vmatprep.subr.bf16.mxu0 %v15914_v21  ;;  %9467 = vmatprep.subr.bf16.mxu1 %v16011_v40 }
 0xd29   :  { %9427 = vmatpush2.bf16.msra.mxu0 %v16012_v24  ;;  %9468 = vmatpush2.bf16.msra.mxu1 %v16013_v8 }
 0xd2a   :  { %9428 = vmatprep.subr.bf16.mxu0 %v16014_v49  ;;  %9469 = vmatprep.subr.bf16.mxu1 %v16015_v5 }
 0xd2d   :  { %9429 = vmatpush2.bf16.msra.mxu0 %v16016_v9  ;;  %9470 = vmatpush2.bf16.msra.mxu1 %v16017_v31  ;;  %v16102_v31 = vld [vmem:[#allocation168_spill] sm:$0xff] }
 0xd2e   :  { %9430 = vmatprep.subr.bf16.mxu0 %v16018_v52  ;;  %9471 = vmatprep.subr.bf16.mxu1 %v16019_v60  ;;  %v16100_v60 = vld [vmem:[#allocation166_spill] sm:$0xff]  ;;  %v16101_v52 = vld [vmem:[#allocation165_spill] sm:$0xff] }
 0xd31   :  { %9431 = vmatpush2.bf16.msra.mxu0 %v16020_v6  ;;  %9472 = vmatpush2.bf16.msra.mxu1 %v16021_v43 }
 0xd32   :  { %9432 = vmatprep.subr.bf16.mxu0 %v16022_v13  ;;  %9473 = vmatprep.subr.bf16.mxu1 %v16023_v32  ;;  %v16033_v13 = vld [vmem:[#allocation154_spill] sm:$0xff] }
 0xd33   :  { %v16034_v32 = vld [vmem:[#allocation138_spill] sm:$0xff] }
 0xd35   :  { %9433 = vmatpush2.bf16.msra.mxu0 %v16024_v51  ;;  %9474 = vmatpush2.bf16.msra.mxu1 %v16025_v3  ;;  %v16035_v51 = vld [vmem:[#allocation139_spill] sm:$0xff] }
 0xd36   :  { %9434 = vmatprep.subr.bf16.mxu0 %v16026_v34  ;;  %9475 = vmatprep.subr.bf16.mxu1 %v16027_v29  ;;  %v16036_v29 = vld [vmem:[#allocation140_spill] sm:$0xff]  ;;  %v16045_v34 = vld [vmem:[#allocation59_spill] sm:$0xff] }
 0xd39   :  { %9435 = vmatpush2.bf16.msra.mxu0 %v16028_v28  ;;  %9476 = vmatpush2.bf16.msra.mxu1 %v16029_v59  ;;  %v16037_v28 = vld [vmem:[#allocation141_spill] sm:$0xff]  ;;  %v16038_v59 = vld [vmem:[#allocation142_spill] sm:$0xff] }
 0xd3a   :  { %9436 = vmatprep.subr.bf16.mxu0 %v16030_v26  ;;  %9477 = vmatprep.subr.bf16.mxu1 %v16031_v16  ;;  %v16039_v26 = vld [vmem:[#allocation143_spill] sm:$0xff]  ;;  %v16040_v16 = vld [vmem:[#allocation32_spill] sm:$0xff] }
 0xd3d   :  { %9437 = vmatpush2.bf16.msra.mxu0 %v16032_v27  ;;  %9478 = vmatpush2.bf16.msra.mxu1 %v16033_v13  ;;  %v16041_v27 = vld [vmem:[#allocation31_spill] sm:$0xff]  ;;  %v16042_v13 = vld [vmem:[#allocation34_spill] sm:$0xff] }
 0xd3e   :  { %9542 = vmatprep.subr.bf16.mxu0 %v16034_v32  ;;  %9583 = vmatprep.subr.bf16.mxu1 %v16035_v51  ;;  %v16043_v32 = vld [vmem:[#allocation33_spill] sm:$0xff]  ;;  %v16044_v51 = vld [vmem:[#allocation54_spill] sm:$0xff] }
 0xd40   :  { %9439 = vmatmul.mubr.bf16.vlgmr.msra.gmra.mxu0 %v14364_v57  ;;  %9480 = vmatmul.mubr.bf16.vlgmr.msra.gmra.mxu1 %v14364_v57  ;;  %v16046_v57 = vld [vmem:[#allocation55_spill] sm:$0xff] }
 0xd41   :  { %9543 = vmatpush1.bf16.msra.mxu0 %v16036_v29  ;;  %9584 = vmatpush1.bf16.msra.mxu1 %v16037_v28  ;;  %v16047_v29 = vld [vmem:[#allocation60_spill] sm:$0xff] }
 0xd42   :  { %9544 = vmatprep.subr.bf16.mxu0 %v16038_v59  ;;  %9585 = vmatprep.subr.bf16.mxu1 %v16039_v26  ;;  %v16048_v28 = vld [vmem:[#allocation56_spill] sm:$0xff]  ;;  %v16049_v59 = vld [vmem:[#allocation53_spill] sm:$0xff]  ;;  %v16050_v26 = vld [vmem:[#allocation58_spill] sm:$0xff] }
 0xd45   :  { %9545 = vmatpush1.bf16.msra.mxu0 %v16040_v16  ;;  %9586 = vmatpush1.bf16.msra.mxu1 %v16041_v27  ;;  %v16051_v16 = vld [vmem:[#allocation57_spill] sm:$0xff]  ;;  %v16052_v27 = vld [vmem:[#allocation64_spill] sm:$0xff] }
 0xd46   :  { %9546 = vmatprep.subr.bf16.mxu0 %v16042_v13  ;;  %9587 = vmatprep.subr.bf16.mxu1 %v16043_v32  ;;  %v16053_v13 = vld [vmem:[#allocation61_spill] sm:$0xff]  ;;  %v16054_v32 = vld [vmem:[#allocation66_spill] sm:$0xff] }
 0xd49   :  { %9547 = vmatpush1.bf16.msra.mxu0 %v16044_v51  ;;  %9588 = vmatpush1.bf16.msra.mxu1 %v16045_v34  ;;  %v16055_v51 = vld [vmem:[#allocation65_spill] sm:$0xff]  ;;  %v16056_v34 = vld [vmem:[#allocation72_spill] sm:$0xff] }
 0xd4a   :  { %9548 = vmatprep.subr.bf16.mxu0 %v16046_v57  ;;  %9589 = vmatprep.subr.bf16.mxu1 %v16047_v29  ;;  %v16057_v57 = vld [vmem:[#allocation69_spill] sm:$0xff]  ;;  %v16058_v29 = vld [vmem:[#allocation74_spill] sm:$0xff] }
 0xd4d   :  { %9549 = vmatpush1.bf16.msra.mxu0 %v16048_v28  ;;  %9590 = vmatpush1.bf16.msra.mxu1 %v16049_v59  ;;  %v16059_v28 = vld [vmem:[#allocation73_spill] sm:$0xff]  ;;  %v16060_v59 = vld [vmem:[#allocation80_spill] sm:$0xff] }
 0xd4e   :  { %9550 = vmatprep.subr.bf16.mxu0 %v16050_v26  ;;  %9591 = vmatprep.subr.bf16.mxu1 %v16051_v16  ;;  %v16061_v26 = vld [vmem:[#allocation77_spill] sm:$0xff]  ;;  %v16062_v16 = vld [vmem:[#allocation82_spill] sm:$0xff] }
 0xd51   :  { %9551 = vmatpush1.bf16.msra.mxu0 %v16052_v27  ;;  %9592 = vmatpush1.bf16.msra.mxu1 %v16053_v13  ;;  %v16063_v27 = vld [vmem:[#allocation81_spill] sm:$0xff]  ;;  %v16064_v13 = vld [vmem:[#allocation86_spill] sm:$0xff] }
 0xd52   :  { %9552 = vmatprep.subr.bf16.mxu0 %v16054_v32  ;;  %9593 = vmatprep.subr.bf16.mxu1 %v16055_v51  ;;  %v16065_v32 = vld [vmem:[#allocation85_spill] sm:$0xff]  ;;  %v16066_v51 = vld [vmem:[#allocation88_spill] sm:$0xff] }
 0xd55   :  { %9553 = vmatpush1.bf16.msra.mxu0 %v16056_v34  ;;  %9594 = vmatpush1.bf16.msra.mxu1 %v16057_v57  ;;  %v16067_v34 = vld [vmem:[#allocation87_spill] sm:$0xff]  ;;  %v16068_v57 = vld [vmem:[#allocation90_spill] sm:$0xff] }
 0xd56   :  { %9554 = vmatprep.subr.bf16.mxu0 %v16058_v29  ;;  %9595 = vmatprep.subr.bf16.mxu1 %v16059_v28  ;;  %v16069_v29 = vld [vmem:[#allocation89_spill] sm:$0xff]  ;;  %v16070_v28 = vld [vmem:[#allocation92_spill] sm:$0xff] }
 0xd59   :  { %9555 = vmatpush1.bf16.msra.mxu0 %v16060_v59  ;;  %9596 = vmatpush1.bf16.msra.mxu1 %v16061_v26  ;;  %v16071_v59 = vld [vmem:[#allocation91_spill] sm:$0xff]  ;;  %v16072_v26 = vld [vmem:[#allocation94_spill] sm:$0xff] }
 0xd5a   :  { %9556 = vmatprep.subr.bf16.mxu0 %v16062_v16  ;;  %9597 = vmatprep.subr.bf16.mxu1 %v16063_v27  ;;  %v16073_v16 = vld [vmem:[#allocation93_spill] sm:$0xff]  ;;  %v16074_v27 = vld [vmem:[#allocation96_spill] sm:$0xff] }
 0xd5d   :  { %9557 = vmatpush1.bf16.msra.mxu0 %v16064_v13  ;;  %9598 = vmatpush1.bf16.msra.mxu1 %v16065_v32  ;;  %v16075_v13 = vld [vmem:[#allocation95_spill] sm:$0xff]  ;;  %v16076_v32 = vld [vmem:[#allocation97_spill] sm:$0xff] }
 0xd5e   :  { %9558 = vmatprep.subr.bf16.mxu0 %v16066_v51  ;;  %9599 = vmatprep.subr.bf16.mxu1 %v16067_v34  ;;  %v16077_v51 = vld [vmem:[#allocation36_spill] sm:$0xff]  ;;  %v16078_v34 = vld [vmem:[#allocation35_spill] sm:$0xff] }
 0xd61   :  { %9559 = vmatpush2.bf16.msra.mxu0 %v16068_v57  ;;  %9600 = vmatpush2.bf16.msra.mxu1 %v16069_v29  ;;  %v16079_v57 = vld [vmem:[#allocation38_spill] sm:$0xff]  ;;  %v16080_v29 = vld [vmem:[#allocation37_spill] sm:$0xff] }
 0xd62   :  { %9560 = vmatprep.subr.bf16.mxu0 %v16070_v28  ;;  %9601 = vmatprep.subr.bf16.mxu1 %v16071_v59  ;;  %v16081_v28 = vld [vmem:[#allocation62_spill] sm:$0xff]  ;;  %v16082_v59 = vld [vmem:[#allocation67_spill] sm:$0xff] }
 0xd65   :  { %9561 = vmatpush2.bf16.msra.mxu0 %v16072_v26  ;;  %9602 = vmatpush2.bf16.msra.mxu1 %v16073_v16  ;;  %v16083_v26 = vld [vmem:[#allocation63_spill] sm:$0xff]  ;;  %v16084_v16 = vld [vmem:[#allocation68_spill] sm:$0xff] }
 0xd66   :  { %9562 = vmatprep.subr.bf16.mxu0 %v16074_v27  ;;  %9603 = vmatprep.subr.bf16.mxu1 %v16075_v13  ;;  %v16085_v27 = vld [vmem:[#allocation100_spill] sm:$0xff]  ;;  %v16086_v13 = vld [vmem:[#allocation98_spill] sm:$0xff] }
 0xd69   :  { %9563 = vmatpush2.bf16.msra.mxu0 %v16076_v32  ;;  %9604 = vmatpush2.bf16.msra.mxu1 %v16077_v51  ;;  %v16087_v32 = vld [vmem:[#allocation99_spill] sm:$0xff]  ;;  %v16088_v51 = vld [vmem:[#allocation101_spill] sm:$0xff] }
 0xd6a   :  { %9564 = vmatprep.subr.bf16.mxu0 %v16078_v34  ;;  %9605 = vmatprep.subr.bf16.mxu1 %v16079_v57  ;;  %v16089_v34 = vld [vmem:[#allocation102_spill] sm:$0xff]  ;;  %v16090_v57 = vld [vmem:[#allocation28_spill] sm:$0xff] }
 0xd6d   :  { %9565 = vmatpush2.bf16.msra.mxu0 %v16080_v29  ;;  %9606 = vmatpush2.bf16.msra.mxu1 %v16081_v28  ;;  %v16091_v29 = vld [vmem:[#allocation27_spill] sm:$0xff]  ;;  %v16092_v28 = vld [vmem:[#allocation30_spill] sm:$0xff] }
 0xd6e   :  { %9566 = vmatprep.subr.bf16.mxu0 %v16082_v59  ;;  %9607 = vmatprep.subr.bf16.mxu1 %v16083_v26  ;;  %v16093_v59 = vld [vmem:[#allocation29_spill] sm:$0xff]  ;;  %v16094_v26 = vld [vmem:[#allocation47_spill] sm:$0xff] }
 0xd71   :  { %9567 = vmatpush2.bf16.msra.mxu0 %v16084_v16  ;;  %9608 = vmatpush2.bf16.msra.mxu1 %v16085_v27  ;;  %v16095_v16 = vld [vmem:[#allocation51_spill] sm:$0xff]  ;;  %v16096_v27 = vld [vmem:[#allocation48_spill] sm:$0xff] }
 0xd72   :  { %9568 = vmatprep.subr.bf16.mxu0 %v16086_v13  ;;  %9609 = vmatprep.subr.bf16.mxu1 %v16087_v32  ;;  %v16097_v13 = vld [vmem:[#allocation52_spill] sm:$0xff]  ;;  %v16098_v32 = vld [vmem:[#allocation103_spill] sm:$0xff] }
 0xd75   :  { %9569 = vmatpush2.bf16.msra.mxu0 %v16088_v51  ;;  %9610 = vmatpush2.bf16.msra.mxu1 %v16089_v34  ;;  %v16099_v51 = vld [vmem:[#allocation104_spill] sm:$0xff] }
 0xd76   :  { %9570 = vmatprep.subr.bf16.mxu0 %v16090_v57  ;;  %9611 = vmatprep.subr.bf16.mxu1 %v16091_v29 }
 0xd79   :  { %9571 = vmatpush2.bf16.msra.mxu0 %v16092_v28  ;;  %9612 = vmatpush2.bf16.msra.mxu1 %v16093_v59 }
 0xd7a   :  { %9572 = vmatprep.subr.bf16.mxu0 %v16094_v26  ;;  %9613 = vmatprep.subr.bf16.mxu1 %v16095_v16 }
 0xd7d   :  { %9573 = vmatpush2.bf16.msra.mxu0 %v16096_v27  ;;  %9614 = vmatpush2.bf16.msra.mxu1 %v16097_v13  ;;  %v16103_v13 = vld [vmem:[#allocation167_spill] sm:$0xff] }
 0xd7e   :  { %9624 = vmatprep.subr.bf16.mxu0 %v16098_v32  ;;  %9665 = vmatprep.subr.bf16.mxu1 %v16099_v51 }
 0xdc0   :  { %v9358_v34 = vpop.f32.mrf.mxu0  ;;  %v9399_v57 = vpop.f32.mrf.mxu1 }
 0xdc1   :  { %v9490_v26 = vadd.f32 %v9399_v57, %v16100_v60  ;;  %v9488_v16 = vadd.f32 %v9358_v34, %v16101_v52  ;;  %v16105_v52 = vld [vmem:[#allocation187_spill] sm:$0xff] }
 0xdc2   :  { %v9360_v3 = vpop.f32.mrf.mxu0  ;;  %v9401_v29 = vpop.f32.mrf.mxu1 }
 0xdc3   :  { %v9491_v27 = vadd.f32 %v9401_v29, %v16102_v31  ;;  %v9504_v9 = vmul.f32 0.5, %v9490_v26  ;;  %v9489_v5 = vadd.f32 %v9360_v3, %v16103_v13  ;;  %v9496_v32 = vmul.f32 0.5, %v9488_v16 }
 0xdc4   :  { %v9362_v43 = vpop.f32.mrf.mxu0  ;;  %v9403_v28 = vpop.f32.mrf.mxu1 }
 0xdc5   :  { %v9505_v49 = vmul.f32 0.5, %v9491_v27  ;;  %11508 = vtanh.f32 %v9504_v9  ;;  %v9497_v51 = vmul.f32 0.5, %v9489_v5  ;;  %v16106_v9 = vld [vmem:[#allocation186_spill] sm:$0xff] }
 0xdc6   :  { %v9363_v6 = vpop.f32.mrf.mxu0  ;;  %v9404_v59 = vpop.f32.mrf.mxu1  ;;  %11510 = vtanh.f32 %v9496_v32 }
 0xdc7   :  { %11512 = vtanh.f32 %v9505_v49  ;;  %v16104_v6 = vld [vmem:[#allocation185_spill] sm:$0xff]  ;;  %v16107_v49 = vld [vmem:[#allocation188_spill] sm:$0xff] }
 0xdc8   :  { %11514 = vtanh.f32 %v9497_v51 }
 0xdd2   :  { %v11509_v29 = vpop.eup %11508 }
 0xdd3   :  { %v11511_v16 = vpop.eup %11510  ;;  %v9508_v32 = vmul.f32 0.5, %v11509_v29 }
 0xdd4   :  { %v11513_v13 = vpop.eup %11512 }
 0xdd5   :  { %v11515_v51 = vpop.eup %11514  ;;  %v9509_v24 = vmul.f32 0.5, %v11513_v13  ;;  %v9510_v40 = vadd.f32 0.5, %v9508_v32 }
 0xe00   :  { %v9440_v43 = vpop.f32.mrf.mxu0  ;;  %v9481_v28 = vpop.f32.mrf.mxu1 }
 0xe01   :  { %v9492_v59 = vadd.f32 %v9440_v43, %v16104_v6  ;;  %v9494_v5 = vadd.f32 %v9481_v28, %v16106_v9  ;;  %v9500_v43 = vmul.f32 0.5, %v11511_v16 }
 0xe02   :  { %v9442_v8 = vpop.f32.mrf.mxu0  ;;  %v9483_v60 = vpop.f32.mrf.mxu1 }
 0xe03   :  { %11516 = vtanh.f32 %v9492_v59  ;;  %v9493_v34 = vadd.f32 %v9442_v8, %v16105_v52  ;;  %v9495_v27 = vadd.f32 %v9483_v60, %v16107_v49  ;;  %v9514_v6 = vmul.f32 0.5, %v9494_v5 }
 0xe04   :  { %v9444_v31 = vpop.f32.mrf.mxu0  ;;  %v9485_v57 = vpop.f32.mrf.mxu1  ;;  %v9501_v8 = vmul.f32 0.5, %v11515_v51  ;;  %v9502_v52 = vadd.f32 0.5, %v9500_v43 }
 0xe05   :  { %11518 = vtanh.f32 %v9493_v34  ;;  %v9515_v59 = vmul.f32 0.5, %v9495_v27  ;;  %v9511_v34 = vadd.f32 0.5, %v9509_v24  ;;  %v9522_v57 = vmul.f32 %v9510_v40, %v14357_v0 }
 0xe06   :  { %v9445_v3 = vpop.f32.mrf.mxu0  ;;  %v9486_v26 = vpop.f32.mrf.mxu1  ;;  %11520 = vtanh.f32 %v9514_v6 }
 0xe07   :  { %11522 = vtanh.f32 %v9515_v59  ;;  %v9503_v3 = vadd.f32 0.5, %v9501_v8  ;;  %v9523_v29 = vmul.f32 %v9511_v34, %v14361_v50  ;;  %v11415_v50 = vld [vmem:[%s14687_s10 + $0x20] sm:$0xff]   ;;  %v11416_v8 = vld [vmem:[%s14687_s10 + $0x98] sm:$0xff]   ;;  %v11419_v34 = vld [vmem:[%s14687_s10 + $0x90] sm:$0xff]  }
 0xe10   :  { %v11517_v31 = vpop.eup %11516 }
 0xe11   :  { %v9524_v28 = vmul.f32 %v11517_v31, %v9502_v52  ;;  %v11417_v52 = vld [vmem:[%s14687_s10 + $0x58] sm:$0xff]  }
 0xe12   :  { %v11519_v26 = vpop.eup %11518  ;;  %v11418_v31 = vld [vmem:[%s14687_s10 + $0x18] sm:$0xff]  }
 0xe13   :  { %v14507_v60 = vadd.f32 %v9524_v28, %v9522_v57  ;;  %v9525_v9 = vmul.f32 %v11519_v26, %v9503_v3  ;;  %v11521_v16 = vpop.eup %11520  ;;  %v11420_v57 = vld [vmem:[%s14687_s10 + $0x50] sm:$0xff]   ;;  %v11422_v3 = vld [vmem:[%s14687_s10 + $0x88] sm:$0xff]  }
 0xe14   :  { %v11523_v49 = vpop.eup %11522  ;;  %v9518_v24 = vmul.f32 0.5, %v11521_v16  ;;  %v11421_v28 = vld [vmem:[%s14687_s10 + $0x10] sm:$0xff]   ;;  %v11423_v26 = vld [vmem:[%s14687_s10 + $0x48] sm:$0xff]   ;;  %v11426_v16 = vld [vmem:[%s14687_s10 + $0x40] sm:$0xff]  }
 0xe15   :  { %11524 = vtanh.f32 %v14507_v60  ;;  %v14511_v5 = vadd.f32 %v9525_v9, %v9523_v29  ;;  %v9519_v27 = vmul.f32 0.5, %v11523_v49  ;;  %v11424_v29 = vld [vmem:[%s14687_s10 + $0x8] sm:$0xff]   ;;  %v11425_v9 = vld [vmem:[%s14687_s10 + $0x80] sm:$0xff]  }
 0xe16   :  { %v9520_v0 = vadd.f32 0.5, %v9518_v24  ;;  %v11427_v49 = vld [vmem:[%s14687_s10] sm:$0xff]  }
 0xe17   :  { %11526 = vtanh.f32 %v14511_v5  ;;  %v9521_v40 = vadd.f32 0.5, %v9519_v27 }
 0xe22   :  { %v11525_v13 = vpop.eup %11524 }
 0xe23   :  { %v9530_v51 = vmul.f32 %v11525_v13, %v9520_v0 }
 0xe24   :  { %v11527_v32 = vpop.eup %11526 }
 0xe25   :  { %v9531_v43 = vmul.f32 %v11527_v32, %v9521_v40  ;;  %v14514_v59 = vpack.c.bf16 %v9530_v51, %v9530_v51 }
 0xe27   :  { %v9541_v6 = vpack.c.bf16 %v9531_v43, %v9531_v43 }
 0xe29   :  { %9574 = vmatprep.mubr.bf16.mxu0 %v9541_v6  ;;  %9615 = vmatprep.mubr.bf16.mxu1 %v9541_v6 }
 0xe2a   :  { %9575 = vmatmul.mubr.bf16.vlgmr.msra.gmra.mxu0 %v14514_v59  ;;  %9616 = vmatmul.mubr.bf16.vlgmr.msra.gmra.mxu1 %v14514_v59 }
 0xe2b   :  { %9625 = vmatpush1.bf16.msra.mxu0 %v15713_v18  ;;  %9666 = vmatpush1.bf16.msra.mxu1 %v15714_v36  ;;  %v16108_v18 = vld [vmem:[#allocation71_spill] sm:$0xff]  ;;  %v16109_v36 = vld [vmem:[#allocation76_spill] sm:$0xff] }
 0xe2c   :  { %9656 = vmatprep.mubr.bf16.mxu0 %v9541_v6  ;;  %9697 = vmatprep.mubr.bf16.mxu1 %v9541_v6  ;;  %v16131_v6 = vld [vmem:[#allocation170_spill] sm:$0xff] }
 0xe2d   :  { %9626 = vmatprep.subr.bf16.mxu0 %v15715_v55  ;;  %9667 = vmatprep.subr.bf16.mxu1 %v15716_v15  ;;  %v16110_v55 = vld [vmem:[#allocation44_spill] sm:$0xff]  ;;  %v16111_v15 = vld [vmem:[#allocation43_spill] sm:$0xff] }
 0xe2f   :  { %9627 = vmatpush1.bf16.msra.mxu0 %v15717_v17  ;;  %9668 = vmatpush1.bf16.msra.mxu1 %v15718_v35  ;;  %v16112_v17 = vld [vmem:[#allocation46_spill] sm:$0xff]  ;;  %v16113_v35 = vld [vmem:[#allocation45_spill] sm:$0xff] }
 0xe30   :  { %9628 = vmatprep.subr.bf16.mxu0 %v15719_v10  ;;  %9669 = vmatprep.subr.bf16.mxu1 %v15720_v39  ;;  %v16114_v10 = vld [vmem:[#allocation78_spill] sm:$0xff]  ;;  %v16115_v39 = vld [vmem:[#allocation83_spill] sm:$0xff] }
 0xe33   :  { %9629 = vmatpush1.bf16.msra.mxu0 %v15721_v33  ;;  %9670 = vmatpush1.bf16.msra.mxu1 %v15722_v61  ;;  %v16116_v33 = vld [vmem:[#allocation79_spill] sm:$0xff]  ;;  %v16117_v61 = vld [vmem:[#allocation84_spill] sm:$0xff] }
 0xe34   :  { %9630 = vmatprep.subr.bf16.mxu0 %v15723_v48  ;;  %9671 = vmatprep.subr.bf16.mxu1 %v15724_v58  ;;  %v16118_v48 = vld [vmem:[#allocation50_spill] sm:$0xff]  ;;  %v16119_v58 = vld [vmem:[#allocation49_spill] sm:$0xff] }
 0xe37   :  { %9631 = vmatpush1.bf16.msra.mxu0 %v15725_v23  ;;  %9672 = vmatpush1.bf16.msra.mxu1 %v15726_v41  ;;  %v16120_v23 = vld [vmem:[#allocation144_spill] sm:$0xff]  ;;  %v16121_v41 = vld [vmem:[#allocation145_spill] sm:$0xff] }
 0xe38   :  { %9632 = vmatprep.subr.bf16.mxu0 %v15727_v4  ;;  %9673 = vmatprep.subr.bf16.mxu1 %v15728_v38  ;;  %v16122_v4 = vld [vmem:[#allocation146_spill] sm:$0xff]  ;;  %v16123_v38 = vld [vmem:[#allocation147_spill] sm:$0xff] }
 0xe3b   :  { %9633 = vmatpush1.bf16.msra.mxu0 %v15729_v62  ;;  %9674 = vmatpush1.bf16.msra.mxu1 %v15730_v7  ;;  %v16124_v62 = vld [vmem:[#allocation148_spill] sm:$0xff]  ;;  %v16125_v7 = vld [vmem:[#allocation149_spill] sm:$0xff] }
 0xe3c   :  { %9634 = vmatprep.subr.bf16.mxu0 %v15817_v45  ;;  %9675 = vmatprep.subr.bf16.mxu1 %v15818_v2  ;;  %v16127_v45 = vld [vmem:[#allocation151_spill] sm:$0xff]  ;;  %v16128_v2 = vld [vmem:[#allocation152_spill] sm:$0xff] }
 0xe3f   :  { %9635 = vmatpush1.bf16.msra.mxu0 %v15819_v46  ;;  %9676 = vmatpush1.bf16.msra.mxu1 %v15820_v44  ;;  %v9752_v46 = vld [vmem:[%s14685_s8] sm:$0x3]  ;;  %v16129_v44 = vld [vmem:[#allocation153_spill] sm:$0xff] }
 0xe40   :  { %9636 = vmatprep.subr.bf16.mxu0 %v15821_v19  ;;  %9677 = vmatprep.subr.bf16.mxu1 %v15822_v42  ;;  %v16130_v19 = vld [vmem:[#allocation154_spill] sm:$0xff]  ;;  %v11687_v42 = vmov 0.0  }
 0xe43   :  { %9637 = vmatpush1.bf16.msra.mxu0 %v15823_v37  ;;  %9678 = vmatpush1.bf16.msra.mxu1 %v15824_v47  ;;  %v9765_v37 = vsel %vm159_vm0, %v9752_v46, 0  ;;  %v9750_v47 = vld [vmem:[%s14678_s1] sm:$0xff] }
 0xe44   :  { %9638 = vmatprep.subr.bf16.mxu0 %v15825_v20  ;;  %9679 = vmatprep.subr.bf16.mxu1 %v15826_v54  ;;  %v9751_v20 = vpack.c.bf16 %v9750_v47, %v9750_v47  ;;  %v11404_v54 = vld [vmem:[%s14687_s10 + $0xb8] sm:$0xff]  }
 0xe47   :  { %9639 = vmatpush1.bf16.msra.mxu0 %v15827_v11  ;;  %9680 = vmatpush1.bf16.msra.mxu1 %v15828_v25  ;;  %v11405_v11 = vld [vmem:[%s14687_s10 + $0x78] sm:$0xff]  }
 0xe48   :  { %9640 = vmatprep.subr.bf16.mxu0 %v15829_v14  ;;  %9681 = vmatprep.subr.bf16.mxu1 %v15830_v53  ;;  %v11406_v25 = vld [vmem:[%s14687_s10 + $0x38] sm:$0xff]   ;;  %v11407_v14 = vld [vmem:[%s14687_s10 + $0xb0] sm:$0xff]  }
 0xe49   :  { %v11408_v53 = vld [vmem:[%s14687_s10 + $0x70] sm:$0xff]  }
 0xe4b   :  { %9641 = vmatpush2.bf16.msra.mxu0 %v15831_v1  ;;  %9682 = vmatpush2.bf16.msra.mxu1 %v15832_v63  ;;  %v11409_v1 = vld [vmem:[%s14687_s10 + $0x30] sm:$0xff]   ;;  %v11410_v63 = vld [vmem:[%s14687_s10 + $0xa8] sm:$0xff]  }
 0xe4c   :  { %9642 = vmatprep.subr.bf16.mxu0 %v15833_v22  ;;  %9683 = vmatprep.subr.bf16.mxu1 %v15834_v30  ;;  %v11411_v22 = vld [vmem:[%s14687_s10 + $0x68] sm:$0xff]  }
 0xe4d   :  { %v11412_v30 = vld [vmem:[%s14687_s10 + $0x28] sm:$0xff]  }
 0xe4f   :  { %9643 = vmatpush2.bf16.msra.mxu0 %v15835_v12  ;;  %9684 = vmatpush2.bf16.msra.mxu1 %v15750_v56  ;;  %v16126_v56 = vld [vmem:[#allocation150_spill] sm:$0xff] }
 0xe50   :  { %9644 = vmatprep.subr.bf16.mxu0 %v15914_v21  ;;  %9685 = vmatprep.subr.bf16.mxu1 %v16108_v18  ;;  %v11413_v12 = vld [vmem:[%s14687_s10 + $0xa0] sm:$0xff]   ;;  %v16132_v18 = vld [vmem:[#allocation169_spill] sm:$0xff] }
 0xe51   :  { %v11414_v21 = vld [vmem:[%s14687_s10 + $0x60] sm:$0xff]  }
 0xe53   :  { %9645 = vmatpush2.bf16.msra.mxu0 %v16109_v36  ;;  %9686 = vmatpush2.bf16.msra.mxu1 %v16110_v55  ;;  %v16133_v55 = vld [vmem:[#allocation172_spill] sm:$0xff] }
 0xe54   :  { %9646 = vmatprep.subr.bf16.mxu0 %v16111_v15  ;;  %9687 = vmatprep.subr.bf16.mxu1 %v16112_v17 }
 0xe57   :  { %9647 = vmatpush2.bf16.msra.mxu0 %v16113_v35  ;;  %9688 = vmatpush2.bf16.msra.mxu1 %v16114_v10  ;;  %v16134_v35 = vld [vmem:[#allocation171_spill] sm:$0xff] }
 0xe58   :  { %9648 = vmatprep.subr.bf16.mxu0 %v16115_v39  ;;  %9689 = vmatprep.subr.bf16.mxu1 %v16116_v33 }
 0xe5b   :  { %9649 = vmatpush2.bf16.msra.mxu0 %v16117_v61  ;;  %9690 = vmatpush2.bf16.msra.mxu1 %v16118_v48 }
 0xe5c   :  { %9650 = vmatprep.subr.bf16.mxu0 %v16119_v58  ;;  %9691 = vmatprep.subr.bf16.mxu1 %v16120_v23  ;;  %v16135_v23 = vld [vmem:[#allocation189_spill] sm:$0xff] }
 0xe5f   :  { %9651 = vmatpush2.bf16.msra.mxu0 %v16121_v41  ;;  %9692 = vmatpush2.bf16.msra.mxu1 %v16122_v4 }
 0xe60   :  { %9652 = vmatprep.subr.bf16.mxu0 %v16123_v38  ;;  %9693 = vmatprep.subr.bf16.mxu1 %v16124_v62  ;;  %v16136_v62 = vld [vmem:[#allocation191_spill] sm:$0xff] }
 0xe63   :  { %9653 = vmatpush2.bf16.msra.mxu0 %v16125_v7  ;;  %9694 = vmatpush2.bf16.msra.mxu1 %v16126_v56 }
 0xe64   :  { %9654 = vmatprep.subr.bf16.mxu0 %v16127_v45  ;;  %9695 = vmatprep.subr.bf16.mxu1 %v16128_v2  ;;  %v16137_v2 = vld [vmem:[#allocation190_spill] sm:$0xff] }
 0xe67   :  { %9655 = vmatpush2.bf16.msra.mxu0 %v16129_v44  ;;  %9696 = vmatpush2.bf16.msra.mxu1 %v16130_v19 }
 0xe68   :  { %11239 = vmatprep.subr.bf16.mxu0 %v11687_v42  ;;  %11245 = vmatprep.subr.bf16.mxu1 %v11687_v42 }
 0xe6a   :  { %9657 = vmatmul.mubr.bf16.vlgmr.msra.gmra.mxu0 %v14514_v59  ;;  %9698 = vmatmul.mubr.bf16.vlgmr.msra.gmra.mxu1 %v14514_v59 }
 0xe6b   :  { %11240 = vmatpush3.bf16.msra.mxu0 %v9765_v37  ;;  %11241 = vmatprep.mubr.msk.bf16.mxu0 %vm11688_vm2, %v11687_v42  ;;  %v11177_v37 = vld [vmem:[%s14686_s9] ss:$0 sm:$0xff] }
 0xe6c   :  { %11261 = vmatprep.mubr.msk.bf16.mxu1 %vm11688_vm2, %v11687_v42  ;;  %11246 = vmatpush3.bf16.msra.mxu1 %v11404_v54 }
 0xe6d   :  { %11247 = vmatprep.subr.bf16.mxu1 %v11687_v42  ;;  %11217 = vmatprep.subr.bf16.mxu0 %v11405_v11 }
 0xe70   :  { %11248 = vmatpush3.bf16.msra.mxu1 %v11407_v14 }
 0xe71   :  { %11249 = vmatprep.subr.bf16.mxu1 %v11687_v42 }
 0xe72   :  { %11242 = vmatmul.mubr.msk.bf16.vlgmr.msra.gmra.mxu0 %vm9760_vm3, %v9751_v20  ;;  %v16138_v20 = vld [vmem:[#allocation192_spill] sm:$0xff] }
 0xe73   :  { %11218 = vmatpush3.bf16.msra.mxu0 %v11406_v25 }
 0xe74   :  { %11219 = vmatprep.subr.bf16.mxu0 %v11408_v53  ;;  %11250 = vmatpush3.bf16.msra.mxu1 %v11410_v63 }
 0xe75   :  { %11251 = vmatprep.subr.bf16.mxu1 %v11687_v42 }
 0xe77   :  { %11220 = vmatpush3.bf16.msra.mxu0 %v11409_v1 }
 0xe78   :  { %11221 = vmatprep.subr.bf16.mxu0 %v11411_v22  ;;  %11252 = vmatpush3.bf16.msra.mxu1 %v11413_v12 }
 0xe79   :  { %11253 = vmatprep.subr.bf16.mxu1 %v11687_v42 }
 0xe7b   :  { %11222 = vmatpush3.bf16.msra.mxu0 %v11412_v30 }
 0xe7c   :  { %11223 = vmatprep.subr.bf16.mxu0 %v11414_v21  ;;  %11254 = vmatpush3.bf16.msra.mxu1 %v11416_v8 }
 0xe7d   :  { %11255 = vmatprep.subr.bf16.mxu1 %v11687_v42 }
 0xe7f   :  { %11224 = vmatpush3.bf16.msra.mxu0 %v11415_v50 }
 0xe80   :  { %11225 = vmatprep.subr.bf16.mxu0 %v11417_v52  ;;  %11256 = vmatpush3.bf16.msra.mxu1 %v11419_v34 }
 0xe81   :  { %11257 = vmatprep.subr.bf16.mxu1 %v11687_v42 }
 0xe83   :  { %11226 = vmatpush3.bf16.msra.mxu0 %v11418_v31 }
 0xe84   :  { %11227 = vmatprep.subr.bf16.mxu0 %v11420_v57  ;;  %11258 = vmatpush3.bf16.msra.mxu1 %v11422_v3 }
 0xe85   :  { %11259 = vmatprep.subr.bf16.mxu1 %v11687_v42 }
 0xe87   :  { %11228 = vmatpush3.bf16.msra.mxu0 %v11421_v28 }
 0xe88   :  { %11229 = vmatprep.subr.bf16.mxu0 %v11423_v26  ;;  %11260 = vmatpush3.bf16.msra.mxu1 %v11425_v9 }
 0xe8b   :  { %11230 = vmatpush3.bf16.msra.mxu0 %v11424_v29 }
 0xe8c   :  { %11231 = vmatprep.subr.bf16.mxu0 %v11426_v16 }
 0xe8f   :  { %11232 = vmatpush3.bf16.msra.mxu0 %v11427_v49 }
 0xeea   :  { %v9576_v24 = vpop.f32.mrf.mxu0  ;;  %v9617_v27 = vpop.f32.mrf.mxu1 }
 0xeeb   :  { %v9708_v59 = vadd.f32 %v9617_v27, %v16131_v6  ;;  %v9706_v36 = vadd.f32 %v9576_v24, %v16132_v18 }
 0xeec   :  { %v9578_v13 = vpop.f32.mrf.mxu0  ;;  %v9619_v0 = vpop.f32.mrf.mxu1 }
 0xeed   :  { %v9709_v15 = vadd.f32 %v9619_v0, %v16133_v55  ;;  %v9722_v17 = vmul.f32 0.5, %v9708_v59  ;;  %v9707_v10 = vadd.f32 %v9578_v13, %v16134_v35  ;;  %v9714_v39 = vmul.f32 0.5, %v9706_v36 }
 0xeee   :  { %v9580_v40 = vpop.f32.mrf.mxu0  ;;  %v9621_v32 = vpop.f32.mrf.mxu1 }
 0xeef   :  { %v9723_v33 = vmul.f32 0.5, %v9709_v15  ;;  %11528 = vtanh.f32 %v9722_v17  ;;  %v9715_v61 = vmul.f32 0.5, %v9707_v10 }
 0xef0   :  { %v9581_v51 = vpop.f32.mrf.mxu0  ;;  %v9622_v43 = vpop.f32.mrf.mxu1  ;;  %11530 = vtanh.f32 %v9714_v39 }
 0xef1   :  { %11532 = vtanh.f32 %v9723_v33 }
 0xef2   :  { %11534 = vtanh.f32 %v9715_v61 }
 0xefc   :  { %v11529_v44 = vpop.eup %11528 }
 0xefd   :  { %v11531_v47 = vpop.eup %11530  ;;  %v9726_v14 = vmul.f32 0.5, %v11529_v44 }
 0xefe   :  { %v11533_v25 = vpop.eup %11532  ;;  %v9718_v30 = vmul.f32 0.5, %v11531_v47 }
 0xeff   :  { %v11535_v22 = vpop.eup %11534  ;;  %v9727_v21 = vmul.f32 0.5, %v11533_v25  ;;  %v9728_v52 = vadd.f32 0.5, %v9726_v14 }
 0xf00   :  { %v9719_v31 = vmul.f32 0.5, %v11535_v22  ;;  %v9720_v57 = vadd.f32 0.5, %v9718_v30 }
 0xf01   :  { %v9729_v3 = vadd.f32 0.5, %v9727_v21  ;;  %v9740_v26 = vmul.f32 %v9728_v52, %v14507_v60 }
 0xf02   :  { %v9721_v9 = vadd.f32 0.5, %v9719_v31 }
 0xf03   :  { %v9741_v24 = vmul.f32 %v9729_v3, %v14511_v5 }
 0xf2a   :  { %v9658_v48 = vpop.f32.mrf.mxu0  ;;  %v9699_v58 = vpop.f32.mrf.mxu1 }
 0xf2b   :  { %v9710_v41 = vadd.f32 %v9658_v48, %v16135_v23  ;;  %v9712_v46 = vadd.f32 %v9699_v58, %v16137_v2  ;;  %v11203_v48 = vld [vmem:[#allocation12] ss:$0 sm:$0xff] }
 0xf2c   :  { %v9660_v4 = vpop.f32.mrf.mxu0  ;;  %v9701_v38 = vpop.f32.mrf.mxu1 }
 0xf2d   :  { %11536 = vtanh.f32 %v9710_v41  ;;  %v9711_v7 = vadd.f32 %v9660_v4, %v16136_v62  ;;  %v9713_v54 = vadd.f32 %v9701_v38, %v16138_v20  ;;  %v9732_v53 = vmul.f32 0.5, %v9712_v46 }
 0xf2e   :  { %v9662_v56 = vpop.f32.mrf.mxu0  ;;  %v9703_v45 = vpop.f32.mrf.mxu1 }
 0xf2f   :  { %11538 = vtanh.f32 %v9711_v7  ;;  %v9733_v50 = vmul.f32 0.5, %v9713_v54 }
 0xf30   :  { %v9663_v19 = vpop.f32.mrf.mxu0  ;;  %v9704_v42 = vpop.f32.mrf.mxu1  ;;  %11540 = vtanh.f32 %v9732_v53 }
 0xf31   :  { %11542 = vtanh.f32 %v9733_v50 }
 0xf32   :  { %v9801_v11 = vpop.f32.mrf.mxu0 }
 0xf33   :  { %v9802_v1 = vadd.f32 %v11177_v37, %v9801_v11 }
 0xf34   :  { %v11243_v63 = vpop.f32.mrf.mxu0 }
 0xf35   :  { %v9841_v12 = vpack.c.bf16 %v9802_v1, %v9802_v1 }
 0xf36   :  { %v9804_v8 = vpop.f32.mrf.mxu0 }
 0xf37   :  { %11262 = vmatmul.mubr.bf16.vlgmr.msra.gmra.mxu1 %v9841_v12 }
 0xf38   :  { %v11244_v34 = vpop.f32.mrf.mxu0 }
 0xf3a   :  { %v11537_v28 = vpop.eup %11536 }
 0xf3b   :  { %v9742_v29 = vmul.f32 %v11537_v28, %v9720_v57 }
 0xf3c   :  { %v11539_v16 = vpop.eup %11538 }
 0xf3d   :  { %v9744_v49 = vadd.f32 %v9742_v29, %v9740_v26  ;;  %v9743_v27 = vmul.f32 %v11539_v16, %v9721_v9  ;;  %v11541_v0 = vpop.eup %11540 }
 0xf3e   :  { %v11543_v40 = vpop.eup %11542  ;;  %v9736_v32 = vmul.f32 0.5, %v11541_v0 }
 0xf3f   :  { %11544 = vtanh.f32 %v9744_v49  ;;  %v9745_v13 = vadd.f32 %v9743_v27, %v9741_v24  ;;  %v9737_v51 = vmul.f32 0.5, %v11543_v40 }
 0xf40   :  { %v9738_v43 = vadd.f32 0.5, %v9736_v32 }
 0xf41   :  { %11546 = vtanh.f32 %v9745_v13  ;;  %v9739_v18 = vadd.f32 0.5, %v9737_v51 }
 0xf4c   :  { %v11545_v6 = vpop.eup %11544 }
 0xf4d   :  { %v9748_v59 = vmul.f32 %v11545_v6, %v9738_v43 }
 0xf4e   :  { %v11547_v36 = vpop.eup %11546 }
 0xf4f   :  { %v9749_v60 = vmul.f32 %v11547_v36, %v9739_v18  ;;  %v9807_v15 = vpack.c.bf16 %v9748_v59, %v9748_v59 }
 0xf51   :  { %v9808_v55 = vpack.c.bf16 %v9749_v60, %v9749_v60 }
 0xf53   :  { %10074 = vmatprep.mubr.bf16.mxu0 %v9808_v55 }
 0xf54   :  { %10075 = vmatmul.mubr.bf16.vlgmr.msra.gmra.mxu0 %v9807_v15 }
 0xff7   :  { %v9940_v17 = vpop.f32.mrf.mxu1 }
 0xff9   :  { %v11263_v5 = vpop.f32.mrf.mxu1 }
 0xffb   :  { %v9943_v35 = vpop.f32.mrf.mxu1 }
 0xffd   :  { %v11264_v10 = vpop.f32.mrf.mxu1 }
0x1014   :  { %v11233_v39 = vpop.f32.mrf.mxu0 }
0x1016   :  { %v11234_v33 = vpop.f32.mrf.mxu0 }
0x1017   :  { %v11235_v61 = vadd.f32 %v11234_v33, %v11233_v39 }
0x1018   :  { %v11236_v58 = vpop.f32.mrf.mxu0 }
0x1019   :  { %v10077_v23 = vadd.f32 %v11235_v61, %v9940_v17 }
0x101a   :  { %v11237_v41 = vpop.f32.mrf.mxu0 }
0x101b   :  { %v10089_v4 = vadd.f32 %v11203_v48, %v10077_v23 }
0x101d   :  { %10090 = vst [vmem:[%s14689_s12] sm:$0xff] %v10089_v4 }
0x101e   :  { %10095 = vsyncpa [#allocation8], 1 }
0x101f   :  { %10096 = vsyncpa [#allocation10], 1 }
0x1020   :  { %10097 = vsyncpa [#allocation13], 1 }
0x1021   :  { %10098 = vsyncmov [#allocation6] }
0x1024   :  { %s10099_s3 = vpop.sfrf %10098 }
0x1025   :  { %p11204_p2 = scmp.ne.s32.totalorder %s10099_s3, 0 }
0x1027   :  { %10103 = shalt.err (%p11204_p2)  }
0x1028   :  { %10105 = vsyncmov [#allocation6 + $0x1] }
0x102b   :  { %s10106_s23 = vpop.sfrf %10105 }
0x102c   :  { %p11205_p3 = scmp.ne.s32.totalorder %s10106_s23, 0 }
0x102e   :  { %10110 = shalt.err (%p11205_p3)  }

</bundles_post_ra>
